<compile_context>
chip_gen: v7x
topology: tpu7x:2x2x1
jax: 0.10.0
libtpu: 0.0.40
codegen_flags: <defaults>
</compile_context>

<pallas_src>
import functools

import numpy as np
import jax
import jax.numpy as jnp
from jax.experimental import pallas as pl
from jax.experimental.pallas import tpu as pltpu


C_IN = 128       # Stage_1 input channels (fixed by the module)
C_MID = 512      # conv4 output channels
COUT_PAD = 128   # lane-dense padded width for the 38/18-channel heads


# ------------------------------ Pallas kernel ------------------------------ #

def _stage1_branch_kernel(img_w, x_ref, mask_ref, w3_ref, b3_ref, w4_ref,
                          b4_ref, w5_ref, b5_ref, alpha_ref, out_ref):
    """One CPM branch (3x [conv3x3+PReLU], conv1x1+PReLU, conv1x1), all in VMEM.

    x_ref:    (M, C)  f32   flattened NHWC activations, M = N*H*W, C = 128
    mask_ref: (M, 9)  f32   0/1 border/batch-boundary masks per 3x3 tap
    w3_ref:   (27, C, C) bf16  3x3 weights, index = layer*9 + tap (tap=dy*3+dx)
    b3_ref:   (3, 1, C)  f32
    w4_ref:   (C, 512)   bf16    b4_ref: (1, 512) f32
    w5_ref:   (512, 128) bf16    b5_ref: (1, 128) f32  (head zero-padded)
    alpha_ref:(1, 1)     f32 SMEM (shared PReLU slope)
    out_ref:  (M, 128)   f32
    """
    M, C = x_ref.shape
    alpha = alpha_ref[0, 0]

    def prelu(y):
        return jnp.where(y > 0, y, alpha * y)

    masks = mask_ref[...]            # (M, 9)
    h = x_ref[...]                   # (M, C) f32

    # --- three 3x3 convs: 9 per-tap rolls (XLU) + bf16 matmuls, f32 accum ---
    for layer in range(3):
        acc = jnp.zeros((M, C), jnp.float32)
        for s in range(9):
            dy, dx = divmod(s, 3)
            off = (dy - 1) * img_w + (dx - 1)   # row offset of tap (dy, dx)
            rolled = h if off == 0 else pltpu.roll(h, (-off) % M, axis=0)
            shifted = (rolled * masks[:, s:s + 1]).astype(jnp.bfloat16)
            acc = acc + jnp.dot(shifted, w3_ref[layer * 9 + s],
                                preferred_element_type=jnp.float32)
        h = prelu(acc + b3_ref[layer])

    # --- 1x1 conv to 512 + PReLU ---
    y4 = jnp.dot(h.astype(jnp.bfloat16), w4_ref[...],
                 preferred_element_type=jnp.float32) + b4_ref[...]
    h4 = prelu(y4)

    # --- 1x1 head (Cout zero-padded to 128 lanes -> unmasked stores) ---
    y5 = jnp.dot(h4.astype(jnp.bfloat16), w5_ref[...],
                 preferred_element_type=jnp.float32) + b5_ref[...]
    out_ref[...] = y5.astype(out_ref.dtype)


# ------------------------------ border masks ------------------------------- #

@functools.lru_cache(maxsize=None)
def _border_masks_np(N, H, W):
    """mask[r, s] = 1 iff tap s=(dy*3+dx) at flattened row r stays inside the
    same image (zero-padding conv semantics).  Rows ordered r = (n*H+i)*W+j."""
    M = N * H * W
    m = np.zeros((M, 9), np.float32)
    for dy in range(3):
        for dx in range(3):
            s = dy * 3 + dx
            for n in range(N):
                for i in range(H):
                    if not 0 <= i + dy - 1 < H:
                        continue
                    for j in range(W):
                        if 0 <= j + dx - 1 < W:
                            m[(n * H + i) * W + j, s] = 1.0
    return m


# --------------------------- one-time param packing ------------------------ #

def prepare_params(p):
    """Pack / pad / bf16-cast raw Stage_1 params once (outside jit)."""
    C = C_IN

    def pack_branch(tag, cout):
        w3 = jnp.concatenate(
            [p[f"w{k}_{tag}"].reshape(9, C, C) for k in (1, 2, 3)], axis=0)
        b3 = jnp.stack([p[f"b{k}_{tag}"] for k in (1, 2, 3)]).reshape(3, 1, C)
        w4 = p[f"w4_{tag}"]
        b4 = p[f"b4_{tag}"].reshape(1, C_MID)
        w5 = jnp.pad(p[f"w5_{tag}"], ((0, 0), (0, COUT_PAD - cout)))
        b5 = jnp.pad(p[f"b5_{tag}"], ((0, COUT_PAD - cout),)).reshape(1, COUT_PAD)
        return w3, b3, w4, b4, w5, b5

    l1 = pack_branch("L1", 38)
    l2 = pack_branch("L2", 18)
    w3, b3, w4, b4, w5, b5 = [jnp.stack([a, b]) for a, b in zip(l1, l2)]
    return dict(
        w3=w3.astype(jnp.bfloat16), b3=b3.astype(jnp.float32),
        w4=w4.astype(jnp.bfloat16), b4=b4.astype(jnp.float32),
        w5=w5.astype(jnp.bfloat16), b5=b5.astype(jnp.float32),
        alpha=jnp.asarray(p["alpha"], jnp.float32).reshape(1, 1))


# ----------------------------- Stage_1 forward ----------------------------- #

def stage1_forward(x_nchw, pk):
    """Reproduces Stage_1.forward. Input/output layout: NCHW (PyTorch)."""
    N, C, H, W = x_nchw.shape
    assert C == C_IN
    M = N * H * W
    assert M % 8 == 0, "flattened rows must be a multiple of 8 sublanes"

    # NCHW -> flattened rows (n, i, j) with channels on the lane dim.
    x_flat = jnp.transpose(x_nchw, (0, 2, 3, 1)).reshape(M, C)
    masks = jnp.asarray(_border_masks_np(N, H, W))          # (M, 9), ~4.5 KiB

    kernel = functools.partial(_stage1_branch_kernel, W)

    macs = 2 * (3 * M * 9 * C * C + M * C * C_MID + M * C_MID * COUT_PAD)
    bytes_acc = (x_flat.size * 4 + masks.size * 4
                 + (pk["w3"].size + pk["w4"].size + pk["w5"].size) * 2
                 + (pk["b3"].size + pk["b4"].size + pk["b5"].size) * 4
                 + 2 * M * COUT_PAD * 4)
    cost = pl.CostEstimate(flops=2 * macs, transcendentals=0,
                           bytes_accessed=bytes_acc)

    out = pl.pallas_call(
        kernel,
        out_shape=jax.ShapeDtypeStruct((2, M, COUT_PAD), jnp.float32),
        grid=(2,),  # one grid step per branch (L1, L2)
        in_specs=[
            pl.BlockSpec((M, C), lambda b: (0, 0)),              # x (shared)
            pl.BlockSpec((M, 9), lambda b: (0, 0)),              # border masks
            pl.BlockSpec((None, 27, C, C), lambda b: (b, 0, 0, 0)),
            pl.BlockSpec((None, 3, 1, C), lambda b: (b, 0, 0, 0)),
            pl.BlockSpec((None, C, C_MID), lambda b: (b, 0, 0)),
            pl.BlockSpec((None, 1, C_MID), lambda b: (b, 0, 0)),
            pl.BlockSpec((None, C_MID, COUT_PAD), lambda b: (b, 0, 0)),
            pl.BlockSpec((None, 1, COUT_PAD), lambda b: (b, 0, 0)),
            pl.BlockSpec(memory_space=pltpu.MemorySpace.SMEM),   # alpha scalar
        ],
        out_specs=pl.BlockSpec((None, M, COUT_PAD), lambda b: (b, 0, 0)),
        compiler_params=pltpu.CompilerParams(
            # TODO(synk): on v7x consider pltpu.CORE_PARALLEL / pl.core_map to
            # force L1/L2 onto separate TensorCores if "parallel" serializes.
            dimension_semantics=("parallel",),
            vmem_limit_bytes=32 * 1024 * 1024),
        cost_estimate=cost,
    )(x_flat, masks, pk["w3"], pk["b3"], pk["w4"], pk["b4"],
      pk["w5"], pk["b5"], pk["alpha"])

    h1 = out[0, :, :38].reshape(N, H, W, 38)
    h2 = out[1, :, :18].reshape(N, H, W, 18)
    # back to NCHW to match PyTorch output convention
    return (jnp.transpose(h1, (0, 3, 1, 2)), jnp.transpose(h2, (0, 3, 1, 2)))


# -------------------------- parameter construction ------------------------- #

def init_params(key):
    """Deterministic synthetic parameters matching Stage_1's shapes.

    3x3 weights stored HWIO (3,3,Cin,Cout); 1x1 weights stored IO (Cin,Cout).
    """
    def w3(k, cin, cout):
        return (jax.random.normal(k, (3, 3, cin, cout), jnp.float32)
                * (1.0 / jnp.sqrt(9.0 * cin)))

    def w1(k, cin, cout):
        return (jax.random.normal(k, (cin, cout), jnp.float32)
                * (1.0 / jnp.sqrt(1.0 * cin)))

    keys = jax.random.split(key, 21)
    p = {}
    # branch L1
    p["w1_L1"], p["b1_L1"] = w3(keys[0], 128, 128), 0.01 * jnp.arange(128, dtype=jnp.float32)
    p["w2_L1"], p["b2_L1"] = w3(keys[1], 128, 128), 0.02 * jnp.ones((128,), jnp.float32)
    p["w3_L1"], p["b3_L1"] = w3(keys[2], 128, 128), 0.03 * jnp.ones((128,), jnp.float32)
    p["w4_L1"], p["b4_L1"] = w1(keys[3], 128, 512), 0.01 * jnp.ones((512,), jnp.float32)
    p["w5_L1"], p["b5_L1"] = w1(keys[4], 512, 38), 0.01 * jnp.ones((38,), jnp.float32)
    # branch L2
    p["w1_L2"], p["b1_L2"] = w3(keys[5], 128, 128), 0.01 * jnp.ones((128,), jnp.float32)
    p["w2_L2"], p["b2_L2"] = w3(keys[6], 128, 128), 0.02 * jnp.ones((128,), jnp.float32)
    p["w3_L2"], p["b3_L2"] = w3(keys[7], 128, 128), 0.03 * jnp.ones((128,), jnp.float32)
    p["w4_L2"], p["b4_L2"] = w1(keys[8], 128, 512), 0.01 * jnp.ones((512,), jnp.float32)
    p["w5_L2"], p["b5_L2"] = w1(keys[9], 512, 18), 0.01 * jnp.ones((18,), jnp.float32)
    # shared PReLU alpha (nn.PReLU() default: single parameter, init 0.25)
    p["alpha"] = jnp.array(0.25, jnp.float32)
    return p


# ----------------------------- pure-JAX reference --------------------------- #
# Uses the same precision policy as the kernel (bf16 MXU operands, f32
# accumulation / bias / PReLU) so the check verifies the kernel's function.

def _ref_conv(x_nhwc, w, b, pad):
    if w.ndim == 2:  # 1x1
        w = w.reshape(1, 1, *w.shape)
    y = jax.lax.conv_general_dilated(
        x_nhwc.astype(jnp.bfloat16), w.astype(jnp.bfloat16),
        window_strides=(1, 1), padding=((pad, pad), (pad, pad)),
        dimension_numbers=("NHWC", "HWIO", "NHWC"),
        preferred_element_type=jnp.float32)
    return y + b[None, None, None, :]


def _prelu(y, a):
    return jnp.where(y > 0, y, a * y)


def stage1_ref(x_nchw, p):
    x = jnp.transpose(x_nchw, (0, 2, 3, 1))
    a = p["alpha"]
    h1 = _prelu(_ref_conv(x, p["w1_L1"], p["b1_L1"], 1), a)
    h1 = _prelu(_ref_conv(h1, p["w2_L1"], p["b2_L1"], 1), a)
    h1 = _prelu(_ref_conv(h1, p["w3_L1"], p["b3_L1"], 1), a)
    h1 = _prelu(_ref_conv(h1, p["w4_L1"], p["b4_L1"], 0), a)
    h1 = _ref_conv(h1, p["w5_L1"], p["b5_L1"], 0)
    h2 = _prelu(_ref_conv(x, p["w1_L2"], p["b1_L2"], 1), a)
    h2 = _prelu(_ref_conv(h2, p["w2_L2"], p["b2_L2"], 1), a)
    h2 = _prelu(_ref_conv(h2, p["w3_L2"], p["b3_L2"], 1), a)
    h2 = _prelu(_ref_conv(h2, p["w4_L2"], p["b4_L2"], 0), a)
    h2 = _ref_conv(h2, p["w5_L2"], p["b5_L2"], 0)
    return (jnp.transpose(h1, (0, 3, 1, 2)), jnp.transpose(h2, (0, 3, 1, 2)))


# ---------------------------------- main ----------------------------------- #

if __name__ == "__main__":
    key = jax.random.PRNGKey(0)
    k_x, k_p = jax.random.split(key)

    # Small spatial size; channel count is fixed by the module (128 in).
    # N*H*W = 128 -> the flattened matmul M dimension fills the MXU rows.
    N, C, H, W = 2, 128, 8, 8
    x = jax.random.normal(k_x, (N, C, H, W), jnp.float32)
    params = init_params(k_p)
    packed = prepare_params(params)   # one-time packing/casting (outside jit)

    fwd = jax.jit(stage1_forward)
    h1, h2 = fwd(x, packed)
    jax.block_until_ready((h1, h2))

    assert h1.shape == (N, 38, H, W), h1.shape
    assert h2.shape == (N, 18, H, W), h2.shape

    # correctness check against a pure-JAX reference with the same precision
    r1, r2 = jax.jit(stage1_ref)(x, params)
    jax.block_until_ready((r1, r2))
    assert jnp.allclose(h1, r1, atol=2e-2, rtol=2e-2), float(
        jnp.max(jnp.abs(h1 - r1)))
    assert jnp.allclose(h2, r2, atol=2e-2, rtol=2e-2), float(
        jnp.max(jnp.abs(h2 - r2)))

    print("KERNEL_OK")
</pallas_src>

<mosaic_0001>
module attributes {stable_mosaic.version = 11 : i64} {
  func.func @_stage1_branch_kernel(%arg0: i32, %arg1: memref<128x128xf32, #tpu.memory_space<vmem>>, %arg2: memref<128x9xf32, #tpu.memory_space<vmem>>, %arg3: memref<1x27x128x128xbf16, #tpu.memory_space<vmem>>, %arg4: memref<1x3x1x128xf32, #tpu.memory_space<vmem>>, %arg5: memref<1x128x512xbf16, #tpu.memory_space<vmem>>, %arg6: memref<1x1x512xf32, #tpu.memory_space<vmem>>, %arg7: memref<1x512x128xbf16, #tpu.memory_space<vmem>>, %arg8: memref<1x1x128xf32, #tpu.memory_space<vmem>>, %arg9: memref<1x1xf32, #tpu.memory_space<smem>>, %arg10: memref<1x128x128xf32, #tpu.memory_space<vmem>>) attributes {dimension_semantics = [#tpu.dimension_semantics<parallel>], iteration_bounds = array<i64: 2>, scalar_prefetch = 0 : i64, scratch_operands = 0 : i64, tpu.core_type = #tpu.core_type<tc>, window_params = [{pipeline_mode = #tpu.pipeline_mode<synchronous>, transform_indices = @transform_0, window_bounds = array<i64: 128, 128>}, {pipeline_mode = #tpu.pipeline_mode<synchronous>, transform_indices = @transform_1, window_bounds = array<i64: 128, 9>}, {transform_indices = @transform_2, window_bounds = array<i64: 1, 27, 128, 128>}, {transform_indices = @transform_3, window_bounds = array<i64: 1, 3, 1, 128>}, {transform_indices = @transform_4, window_bounds = array<i64: 1, 128, 512>}, {transform_indices = @transform_5, window_bounds = array<i64: 1, 1, 512>}, {transform_indices = @transform_6, window_bounds = array<i64: 1, 512, 128>}, {transform_indices = @transform_7, window_bounds = array<i64: 1, 1, 128>}, {transform_indices = @transform_8, window_bounds = array<i64: 1, 1>}, {transform_indices = @transform_9, window_bounds = array<i64: 1, 128, 128>}]} {
    %c0 = arith.constant 0 : index
    %c0_0 = arith.constant 0 : index
    %0 = memref.load %arg9[%c0, %c0_0] : memref<1x1xf32, #tpu.memory_space<smem>>
    %c0_1 = arith.constant 0 : index
    %c0_2 = arith.constant 0 : index
    %1 = vector.load %arg2[%c0_1, %c0_2] : memref<128x9xf32, #tpu.memory_space<vmem>>, vector<128x9xf32>
    %c0_3 = arith.constant 0 : index
    %c0_4 = arith.constant 0 : index
    %2 = vector.load %arg1[%c0_3, %c0_4] : memref<128x128xf32, #tpu.memory_space<vmem>>, vector<128x128xf32>
    %cst = arith.constant 0.000000e+00 : f32
    %3 = vector.broadcast %cst : f32 to vector<128x128xf32>
    %c9_i32 = arith.constant 9 : i32
    %4 = tpu.dynamic_rotate %2 by %c9_i32 dim 0 : vector<128x128xf32>, i32 -> vector<128x128xf32>
    %5 = vector.extract_strided_slice %1 {offsets = [0, 0], sizes = [128, 1], strides = [1, 1]} : vector<128x9xf32> to vector<128x1xf32>
    %6 = vector.broadcast %5 : vector<128x1xf32> to vector<128x128xf32>
    %7 = arith.mulf %4, %6 : vector<128x128xf32>
    %8 = arith.truncf %7 : vector<128x128xf32> to vector<128x128xbf16>
    %c0_5 = arith.constant 0 : index
    %c0_6 = arith.constant 0 : index
    %c0_7 = arith.constant 0 : index
    %c0_8 = arith.constant 0 : index
    %9 = vector.load %arg3[%c0_5, %c0_6, %c0_7, %c0_8] : memref<1x27x128x128xbf16, #tpu.memory_space<vmem>>, vector<1x1x128x128xbf16>
    %10 = vector.shape_cast %9 : vector<1x1x128x128xbf16> to vector<128x128xbf16>
    %cst_9 = arith.constant dense<0.000000e+00> : vector<128x128xf32>
    %11 = tpu.matmul %8, %10, %cst_9 {dimension_numbers = #tpu.dot_dimension_numbers<[1], [0], [0], [1], [0, 0, 1, 1], [], []>} : vector<128x128xbf16>, vector<128x128xbf16>, vector<128x128xf32> -> vector<128x128xf32>
    %12 = arith.addf %3, %11 : vector<128x128xf32>
    %c8_i32 = arith.constant 8 : i32
    %13 = tpu.dynamic_rotate %2 by %c8_i32 dim 0 : vector<128x128xf32>, i32 -> vector<128x128xf32>
    %14 = vector.extract_strided_slice %1 {offsets = [0, 1], sizes = [128, 1], strides = [1, 1]} : vector<128x9xf32> to vector<128x1xf32>
    %15 = vector.broadcast %14 : vector<128x1xf32> to vector<128x128xf32>
    %16 = arith.mulf %13, %15 : vector<128x128xf32>
    %17 = arith.truncf %16 : vector<128x128xf32> to vector<128x128xbf16>
    %c0_10 = arith.constant 0 : index
    %c1 = arith.constant 1 : index
    %c0_11 = arith.constant 0 : index
    %c0_12 = arith.constant 0 : index
    %18 = vector.load %arg3[%c0_10, %c1, %c0_11, %c0_12] : memref<1x27x128x128xbf16, #tpu.memory_space<vmem>>, vector<1x1x128x128xbf16>
    %19 = vector.shape_cast %18 : vector<1x1x128x128xbf16> to vector<128x128xbf16>
    %cst_13 = arith.constant dense<0.000000e+00> : vector<128x128xf32>
    %20 = tpu.matmul %17, %19, %cst_13 {dimension_numbers = #tpu.dot_dimension_numbers<[1], [0], [0], [1], [0, 0, 1, 1], [], []>} : vector<128x128xbf16>, vector<128x128xbf16>, vector<128x128xf32> -> vector<128x128xf32>
    %21 = arith.addf %12, %20 : vector<128x128xf32>
    %c7_i32 = arith.constant 7 : i32
    %22 = tpu.dynamic_rotate %2 by %c7_i32 dim 0 : vector<128x128xf32>, i32 -> vector<128x128xf32>
    %23 = vector.extract_strided_slice %1 {offsets = [0, 2], sizes = [128, 1], strides = [1, 1]} : vector<128x9xf32> to vector<128x1xf32>
    %24 = vector.broadcast %23 : vector<128x1xf32> to vector<128x128xf32>
    %25 = arith.mulf %22, %24 : vector<128x128xf32>
    %26 = arith.truncf %25 : vector<128x128xf32> to vector<128x128xbf16>
    %c0_14 = arith.constant 0 : index
    %c2 = arith.constant 2 : index
    %c0_15 = arith.constant 0 : index
    %c0_16 = arith.constant 0 : index
    %27 = vector.load %arg3[%c0_14, %c2, %c0_15, %c0_16] : memref<1x27x128x128xbf16, #tpu.memory_space<vmem>>, vector<1x1x128x128xbf16>
    %28 = vector.shape_cast %27 : vector<1x1x128x128xbf16> to vector<128x128xbf16>
    %cst_17 = arith.constant dense<0.000000e+00> : vector<128x128xf32>
    %29 = tpu.matmul %26, %28, %cst_17 {dimension_numbers = #tpu.dot_dimension_numbers<[1], [0], [0], [1], [0, 0, 1, 1], [], []>} : vector<128x128xbf16>, vector<128x128xbf16>, vector<128x128xf32> -> vector<128x128xf32>
    %30 = arith.addf %21, %29 : vector<128x128xf32>
    %c1_i32 = arith.constant 1 : i32
    %31 = tpu.dynamic_rotate %2 by %c1_i32 dim 0 : vector<128x128xf32>, i32 -> vector<128x128xf32>
    %32 = vector.extract_strided_slice %1 {offsets = [0, 3], sizes = [128, 1], strides = [1, 1]} : vector<128x9xf32> to vector<128x1xf32>
    %33 = vector.broadcast %32 : vector<128x1xf32> to vector<128x128xf32>
    %34 = arith.mulf %31, %33 : vector<128x128xf32>
    %35 = arith.truncf %34 : vector<128x128xf32> to vector<128x128xbf16>
    %c0_18 = arith.constant 0 : index
    %c3 = arith.constant 3 : index
    %c0_19 = arith.constant 0 : index
    %c0_20 = arith.constant 0 : index
    %36 = vector.load %arg3[%c0_18, %c3, %c0_19, %c0_20] : memref<1x27x128x128xbf16, #tpu.memory_space<vmem>>, vector<1x1x128x128xbf16>
    %37 = vector.shape_cast %36 : vector<1x1x128x128xbf16> to vector<128x128xbf16>
    %cst_21 = arith.constant dense<0.000000e+00> : vector<128x128xf32>
    %38 = tpu.matmul %35, %37, %cst_21 {dimension_numbers = #tpu.dot_dimension_numbers<[1], [0], [0], [1], [0, 0, 1, 1], [], []>} : vector<128x128xbf16>, vector<128x128xbf16>, vector<128x128xf32> -> vector<128x128xf32>
    %39 = arith.addf %30, %38 : vector<128x128xf32>
    %40 = vector.extract_strided_slice %1 {offsets = [0, 4], sizes = [128, 1], strides = [1, 1]} : vector<128x9xf32> to vector<128x1xf32>
    %41 = vector.broadcast %40 : vector<128x1xf32> to vector<128x128xf32>
    %42 = arith.mulf %2, %41 : vector<128x128xf32>
    %43 = arith.truncf %42 : vector<128x128xf32> to vector<128x128xbf16>
    %c0_22 = arith.constant 0 : index
    %c4 = arith.constant 4 : index
    %c0_23 = arith.constant 0 : index
    %c0_24 = arith.constant 0 : index
    %44 = vector.load %arg3[%c0_22, %c4, %c0_23, %c0_24] : memref<1x27x128x128xbf16, #tpu.memory_space<vmem>>, vector<1x1x128x128xbf16>
    %45 = vector.shape_cast %44 : vector<1x1x128x128xbf16> to vector<128x128xbf16>
    %cst_25 = arith.constant dense<0.000000e+00> : vector<128x128xf32>
    %46 = tpu.matmul %43, %45, %cst_25 {dimension_numbers = #tpu.dot_dimension_numbers<[1], [0], [0], [1], [0, 0, 1, 1], [], []>} : vector<128x128xbf16>, vector<128x128xbf16>, vector<128x128xf32> -> vector<128x128xf32>
    %47 = arith.addf %39, %46 : vector<128x128xf32>
    %c127_i32 = arith.constant 127 : i32
    %48 = tpu.dynamic_rotate %2 by %c127_i32 dim 0 : vector<128x128xf32>, i32 -> vector<128x128xf32>
    %49 = vector.extract_strided_slice %1 {offsets = [0, 5], sizes = [128, 1], strides = [1, 1]} : vector<128x9xf32> to vector<128x1xf32>
    %50 = vector.broadcast %49 : vector<128x1xf32> to vector<128x128xf32>
    %51 = arith.mulf %48, %50 : vector<128x128xf32>
    %52 = arith.truncf %51 : vector<128x128xf32> to vector<128x128xbf16>
    %c0_26 = arith.constant 0 : index
    %c5 = arith.constant 5 : index
    %c0_27 = arith.constant 0 : index
    %c0_28 = arith.constant 0 : index
    %53 = vector.load %arg3[%c0_26, %c5, %c0_27, %c0_28] : memref<1x27x128x128xbf16, #tpu.memory_space<vmem>>, vector<1x1x128x128xbf16>
    %54 = vector.shape_cast %53 : vector<1x1x128x128xbf16> to vector<128x128xbf16>
    %cst_29 = arith.constant dense<0.000000e+00> : vector<128x128xf32>
    %55 = tpu.matmul %52, %54, %cst_29 {dimension_numbers = #tpu.dot_dimension_numbers<[1], [0], [0], [1], [0, 0, 1, 1], [], []>} : vector<128x128xbf16>, vector<128x128xbf16>, vector<128x128xf32> -> vector<128x128xf32>
    %56 = arith.addf %47, %55 : vector<128x128xf32>
    %c121_i32 = arith.constant 121 : i32
    %57 = tpu.dynamic_rotate %2 by %c121_i32 dim 0 : vector<128x128xf32>, i32 -> vector<128x128xf32>
    %58 = vector.extract_strided_slice %1 {offsets = [0, 6], sizes = [128, 1], strides = [1, 1]} : vector<128x9xf32> to vector<128x1xf32>
    %59 = vector.broadcast %58 : vector<128x1xf32> to vector<128x128xf32>
    %60 = arith.mulf %57, %59 : vector<128x128xf32>
    %61 = arith.truncf %60 : vector<128x128xf32> to vector<128x128xbf16>
    %c0_30 = arith.constant 0 : index
    %c6 = arith.constant 6 : index
    %c0_31 = arith.constant 0 : index
    %c0_32 = arith.constant 0 : index
    %62 = vector.load %arg3[%c0_30, %c6, %c0_31, %c0_32] : memref<1x27x128x128xbf16, #tpu.memory_space<vmem>>, vector<1x1x128x128xbf16>
    %63 = vector.shape_cast %62 : vector<1x1x128x128xbf16> to vector<128x128xbf16>
    %cst_33 = arith.constant dense<0.000000e+00> : vector<128x128xf32>
    %64 = tpu.matmul %61, %63, %cst_33 {dimension_numbers = #tpu.dot_dimension_numbers<[1], [0], [0], [1], [0, 0, 1, 1], [], []>} : vector<128x128xbf16>, vector<128x128xbf16>, vector<128x128xf32> -> vector<128x128xf32>
    %65 = arith.addf %56, %64 : vector<128x128xf32>
    %c120_i32 = arith.constant 120 : i32
    %66 = tpu.dynamic_rotate %2 by %c120_i32 dim 0 : vector<128x128xf32>, i32 -> vector<128x128xf32>
    %67 = vector.extract_strided_slice %1 {offsets = [0, 7], sizes = [128, 1], strides = [1, 1]} : vector<128x9xf32> to vector<128x1xf32>
    %68 = vector.broadcast %67 : vector<128x1xf32> to vector<128x128xf32>
    %69 = arith.mulf %66, %68 : vector<128x128xf32>
    %70 = arith.truncf %69 : vector<128x128xf32> to vector<128x128xbf16>
    %c0_34 = arith.constant 0 : index
    %c7 = arith.constant 7 : index
    %c0_35 = arith.constant 0 : index
    %c0_36 = arith.constant 0 : index
    %71 = vector.load %arg3[%c0_34, %c7, %c0_35, %c0_36] : memref<1x27x128x128xbf16, #tpu.memory_space<vmem>>, vector<1x1x128x128xbf16>
    %72 = vector.shape_cast %71 : vector<1x1x128x128xbf16> to vector<128x128xbf16>
    %cst_37 = arith.constant dense<0.000000e+00> : vector<128x128xf32>
    %73 = tpu.matmul %70, %72, %cst_37 {dimension_numbers = #tpu.dot_dimension_numbers<[1], [0], [0], [1], [0, 0, 1, 1], [], []>} : vector<128x128xbf16>, vector<128x128xbf16>, vector<128x128xf32> -> vector<128x128xf32>
    %74 = arith.addf %65, %73 : vector<128x128xf32>
    %c119_i32 = arith.constant 119 : i32
    %75 = tpu.dynamic_rotate %2 by %c119_i32 dim 0 : vector<128x128xf32>, i32 -> vector<128x128xf32>
    %76 = vector.extract_strided_slice %1 {offsets = [0, 8], sizes = [128, 1], strides = [1, 1]} : vector<128x9xf32> to vector<128x1xf32>
    %77 = vector.broadcast %76 : vector<128x1xf32> to vector<128x128xf32>
    %78 = arith.mulf %75, %77 : vector<128x128xf32>
    %79 = arith.truncf %78 : vector<128x128xf32> to vector<128x128xbf16>
    %c0_38 = arith.constant 0 : index
    %c8 = arith.constant 8 : index
    %c0_39 = arith.constant 0 : index
    %c0_40 = arith.constant 0 : index
    %80 = vector.load %arg3[%c0_38, %c8, %c0_39, %c0_40] : memref<1x27x128x128xbf16, #tpu.memory_space<vmem>>, vector<1x1x128x128xbf16>
    %81 = vector.shape_cast %80 : vector<1x1x128x128xbf16> to vector<128x128xbf16>
    %cst_41 = arith.constant dense<0.000000e+00> : vector<128x128xf32>
    %82 = tpu.matmul %79, %81, %cst_41 {dimension_numbers = #tpu.dot_dimension_numbers<[1], [0], [0], [1], [0, 0, 1, 1], [], []>} : vector<128x128xbf16>, vector<128x128xbf16>, vector<128x128xf32> -> vector<128x128xf32>
    %83 = arith.addf %74, %82 : vector<128x128xf32>
    %c0_42 = arith.constant 0 : index
    %c0_43 = arith.constant 0 : index
    %c0_44 = arith.constant 0 : index
    %c0_45 = arith.constant 0 : index
    %84 = vector.load %arg4[%c0_42, %c0_43, %c0_44, %c0_45] : memref<1x3x1x128xf32, #tpu.memory_space<vmem>>, vector<1x1x1x128xf32>
    %85 = vector.shape_cast %84 : vector<1x1x1x128xf32> to vector<1x128xf32>
    %86 = vector.broadcast %85 : vector<1x128xf32> to vector<128x128xf32>
    %87 = arith.addf %83, %86 : vector<128x128xf32>
    %cst_46 = arith.constant 0.000000e+00 : f32
    %88 = vector.broadcast %cst_46 : f32 to vector<128x128xf32>
    %89 = arith.cmpf ogt, %87, %88 : vector<128x128xf32>
    %90 = vector.broadcast %0 : f32 to vector<128x128xf32>
    %91 = arith.mulf %90, %87 : vector<128x128xf32>
    %92 = arith.select %89, %87, %91 : vector<128x128xi1>, vector<128x128xf32>
    %cst_47 = arith.constant 0.000000e+00 : f32
    %93 = vector.broadcast %cst_47 : f32 to vector<128x128xf32>
    %c9_i32_48 = arith.constant 9 : i32
    %94 = tpu.dynamic_rotate %92 by %c9_i32_48 dim 0 : vector<128x128xf32>, i32 -> vector<128x128xf32>
    %95 = vector.extract_strided_slice %1 {offsets = [0, 0], sizes = [128, 1], strides = [1, 1]} : vector<128x9xf32> to vector<128x1xf32>
    %96 = vector.broadcast %95 : vector<128x1xf32> to vector<128x128xf32>
    %97 = arith.mulf %94, %96 : vector<128x128xf32>
    %98 = arith.truncf %97 : vector<128x128xf32> to vector<128x128xbf16>
    %c0_49 = arith.constant 0 : index
    %c9 = arith.constant 9 : index
    %c0_50 = arith.constant 0 : index
    %c0_51 = arith.constant 0 : index
    %99 = vector.load %arg3[%c0_49, %c9, %c0_50, %c0_51] : memref<1x27x128x128xbf16, #tpu.memory_space<vmem>>, vector<1x1x128x128xbf16>
    %100 = vector.shape_cast %99 : vector<1x1x128x128xbf16> to vector<128x128xbf16>
    %cst_52 = arith.constant dense<0.000000e+00> : vector<128x128xf32>
    %101 = tpu.matmul %98, %100, %cst_52 {dimension_numbers = #tpu.dot_dimension_numbers<[1], [0], [0], [1], [0, 0, 1, 1], [], []>} : vector<128x128xbf16>, vector<128x128xbf16>, vector<128x128xf32> -> vector<128x128xf32>
    %102 = arith.addf %93, %101 : vector<128x128xf32>
    %c8_i32_53 = arith.constant 8 : i32
    %103 = tpu.dynamic_rotate %92 by %c8_i32_53 dim 0 : vector<128x128xf32>, i32 -> vector<128x128xf32>
    %104 = vector.extract_strided_slice %1 {offsets = [0, 1], sizes = [128, 1], strides = [1, 1]} : vector<128x9xf32> to vector<128x1xf32>
    %105 = vector.broadcast %104 : vector<128x1xf32> to vector<128x128xf32>
    %106 = arith.mulf %103, %105 : vector<128x128xf32>
    %107 = arith.truncf %106 : vector<128x128xf32> to vector<128x128xbf16>
    %c0_54 = arith.constant 0 : index
    %c10 = arith.constant 10 : index
    %c0_55 = arith.constant 0 : index
    %c0_56 = arith.constant 0 : index
    %108 = vector.load %arg3[%c0_54, %c10, %c0_55, %c0_56] : memref<1x27x128x128xbf16, #tpu.memory_space<vmem>>, vector<1x1x128x128xbf16>
    %109 = vector.shape_cast %108 : vector<1x1x128x128xbf16> to vector<128x128xbf16>
    %cst_57 = arith.constant dense<0.000000e+00> : vector<128x128xf32>
    %110 = tpu.matmul %107, %109, %cst_57 {dimension_numbers = #tpu.dot_dimension_numbers<[1], [0], [0], [1], [0, 0, 1, 1], [], []>} : vector<128x128xbf16>, vector<128x128xbf16>, vector<128x128xf32> -> vector<128x128xf32>
    %111 = arith.addf %102, %110 : vector<128x128xf32>
    %c7_i32_58 = arith.constant 7 : i32
    %112 = tpu.dynamic_rotate %92 by %c7_i32_58 dim 0 : vector<128x128xf32>, i32 -> vector<128x128xf32>
    %113 = vector.extract_strided_slice %1 {offsets = [0, 2], sizes = [128, 1], strides = [1, 1]} : vector<128x9xf32> to vector<128x1xf32>
    %114 = vector.broadcast %113 : vector<128x1xf32> to vector<128x128xf32>
    %115 = arith.mulf %112, %114 : vector<128x128xf32>
    %116 = arith.truncf %115 : vector<128x128xf32> to vector<128x128xbf16>
    %c0_59 = arith.constant 0 : index
    %c11 = arith.constant 11 : index
    %c0_60 = arith.constant 0 : index
    %c0_61 = arith.constant 0 : index
    %117 = vector.load %arg3[%c0_59, %c11, %c0_60, %c0_61] : memref<1x27x128x128xbf16, #tpu.memory_space<vmem>>, vector<1x1x128x128xbf16>
    %118 = vector.shape_cast %117 : vector<1x1x128x128xbf16> to vector<128x128xbf16>
    %cst_62 = arith.constant dense<0.000000e+00> : vector<128x128xf32>
    %119 = tpu.matmul %116, %118, %cst_62 {dimension_numbers = #tpu.dot_dimension_numbers<[1], [0], [0], [1], [0, 0, 1, 1], [], []>} : vector<128x128xbf16>, vector<128x128xbf16>, vector<128x128xf32> -> vector<128x128xf32>
    %120 = arith.addf %111, %119 : vector<128x128xf32>
    %c1_i32_63 = arith.constant 1 : i32
    %121 = tpu.dynamic_rotate %92 by %c1_i32_63 dim 0 : vector<128x128xf32>, i32 -> vector<128x128xf32>
    %122 = vector.extract_strided_slice %1 {offsets = [0, 3], sizes = [128, 1], strides = [1, 1]} : vector<128x9xf32> to vector<128x1xf32>
    %123 = vector.broadcast %122 : vector<128x1xf32> to vector<128x128xf32>
    %124 = arith.mulf %121, %123 : vector<128x128xf32>
    %125 = arith.truncf %124 : vector<128x128xf32> to vector<128x128xbf16>
    %c0_64 = arith.constant 0 : index
    %c12 = arith.constant 12 : index
    %c0_65 = arith.constant 0 : index
    %c0_66 = arith.constant 0 : index
    %126 = vector.load %arg3[%c0_64, %c12, %c0_65, %c0_66] : memref<1x27x128x128xbf16, #tpu.memory_space<vmem>>, vector<1x1x128x128xbf16>
    %127 = vector.shape_cast %126 : vector<1x1x128x128xbf16> to vector<128x128xbf16>
    %cst_67 = arith.constant dense<0.000000e+00> : vector<128x128xf32>
    %128 = tpu.matmul %125, %127, %cst_67 {dimension_numbers = #tpu.dot_dimension_numbers<[1], [0], [0], [1], [0, 0, 1, 1], [], []>} : vector<128x128xbf16>, vector<128x128xbf16>, vector<128x128xf32> -> vector<128x128xf32>
    %129 = arith.addf %120, %128 : vector<128x128xf32>
    %130 = vector.extract_strided_slice %1 {offsets = [0, 4], sizes = [128, 1], strides = [1, 1]} : vector<128x9xf32> to vector<128x1xf32>
    %131 = vector.broadcast %130 : vector<128x1xf32> to vector<128x128xf32>
    %132 = arith.mulf %92, %131 : vector<128x128xf32>
    %133 = arith.truncf %132 : vector<128x128xf32> to vector<128x128xbf16>
    %c0_68 = arith.constant 0 : index
    %c13 = arith.constant 13 : index
    %c0_69 = arith.constant 0 : index
    %c0_70 = arith.constant 0 : index
    %134 = vector.load %arg3[%c0_68, %c13, %c0_69, %c0_70] : memref<1x27x128x128xbf16, #tpu.memory_space<vmem>>, vector<1x1x128x128xbf16>
    %135 = vector.shape_cast %134 : vector<1x1x128x128xbf16> to vector<128x128xbf16>
    %cst_71 = arith.constant dense<0.000000e+00> : vector<128x128xf32>
    %136 = tpu.matmul %133, %135, %cst_71 {dimension_numbers = #tpu.dot_dimension_numbers<[1], [0], [0], [1], [0, 0, 1, 1], [], []>} : vector<128x128xbf16>, vector<128x128xbf16>, vector<128x128xf32> -> vector<128x128xf32>
    %137 = arith.addf %129, %136 : vector<128x128xf32>
    %c127_i32_72 = arith.constant 127 : i32
    %138 = tpu.dynamic_rotate %92 by %c127_i32_72 dim 0 : vector<128x128xf32>, i32 -> vector<128x128xf32>
    %139 = vector.extract_strided_slice %1 {offsets = [0, 5], sizes = [128, 1], strides = [1, 1]} : vector<128x9xf32> to vector<128x1xf32>
    %140 = vector.broadcast %139 : vector<128x1xf32> to vector<128x128xf32>
    %141 = arith.mulf %138, %140 : vector<128x128xf32>
    %142 = arith.truncf %141 : vector<128x128xf32> to vector<128x128xbf16>
    %c0_73 = arith.constant 0 : index
    %c14 = arith.constant 14 : index
    %c0_74 = arith.constant 0 : index
    %c0_75 = arith.constant 0 : index
    %143 = vector.load %arg3[%c0_73, %c14, %c0_74, %c0_75] : memref<1x27x128x128xbf16, #tpu.memory_space<vmem>>, vector<1x1x128x128xbf16>
    %144 = vector.shape_cast %143 : vector<1x1x128x128xbf16> to vector<128x128xbf16>
    %cst_76 = arith.constant dense<0.000000e+00> : vector<128x128xf32>
    %145 = tpu.matmul %142, %144, %cst_76 {dimension_numbers = #tpu.dot_dimension_numbers<[1], [0], [0], [1], [0, 0, 1, 1], [], []>} : vector<128x128xbf16>, vector<128x128xbf16>, vector<128x128xf32> -> vector<128x128xf32>
    %146 = arith.addf %137, %145 : vector<128x128xf32>
    %c121_i32_77 = arith.constant 121 : i32
    %147 = tpu.dynamic_rotate %92 by %c121_i32_77 dim 0 : vector<128x128xf32>, i32 -> vector<128x128xf32>
    %148 = vector.extract_strided_slice %1 {offsets = [0, 6], sizes = [128, 1], strides = [1, 1]} : vector<128x9xf32> to vector<128x1xf32>
    %149 = vector.broadcast %148 : vector<128x1xf32> to vector<128x128xf32>
    %150 = arith.mulf %147, %149 : vector<128x128xf32>
    %151 = arith.truncf %150 : vector<128x128xf32> to vector<128x128xbf16>
    %c0_78 = arith.constant 0 : index
    %c15 = arith.constant 15 : index
    %c0_79 = arith.constant 0 : index
    %c0_80 = arith.constant 0 : index
    %152 = vector.load %arg3[%c0_78, %c15, %c0_79, %c0_80] : memref<1x27x128x128xbf16, #tpu.memory_space<vmem>>, vector<1x1x128x128xbf16>
    %153 = vector.shape_cast %152 : vector<1x1x128x128xbf16> to vector<128x128xbf16>
    %cst_81 = arith.constant dense<0.000000e+00> : vector<128x128xf32>
    %154 = tpu.matmul %151, %153, %cst_81 {dimension_numbers = #tpu.dot_dimension_numbers<[1], [0], [0], [1], [0, 0, 1, 1], [], []>} : vector<128x128xbf16>, vector<128x128xbf16>, vector<128x128xf32> -> vector<128x128xf32>
    %155 = arith.addf %146, %154 : vector<128x128xf32>
    %c120_i32_82 = arith.constant 120 : i32
    %156 = tpu.dynamic_rotate %92 by %c120_i32_82 dim 0 : vector<128x128xf32>, i32 -> vector<128x128xf32>
    %157 = vector.extract_strided_slice %1 {offsets = [0, 7], sizes = [128, 1], strides = [1, 1]} : vector<128x9xf32> to vector<128x1xf32>
    %158 = vector.broadcast %157 : vector<128x1xf32> to vector<128x128xf32>
    %159 = arith.mulf %156, %158 : vector<128x128xf32>
    %160 = arith.truncf %159 : vector<128x128xf32> to vector<128x128xbf16>
    %c0_83 = arith.constant 0 : index
    %c16 = arith.constant 16 : index
    %c0_84 = arith.constant 0 : index
    %c0_85 = arith.constant 0 : index
    %161 = vector.load %arg3[%c0_83, %c16, %c0_84, %c0_85] : memref<1x27x128x128xbf16, #tpu.memory_space<vmem>>, vector<1x1x128x128xbf16>
    %162 = vector.shape_cast %161 : vector<1x1x128x128xbf16> to vector<128x128xbf16>
    %cst_86 = arith.constant dense<0.000000e+00> : vector<128x128xf32>
    %163 = tpu.matmul %160, %162, %cst_86 {dimension_numbers = #tpu.dot_dimension_numbers<[1], [0], [0], [1], [0, 0, 1, 1], [], []>} : vector<128x128xbf16>, vector<128x128xbf16>, vector<128x128xf32> -> vector<128x128xf32>
    %164 = arith.addf %155, %163 : vector<128x128xf32>
    %c119_i32_87 = arith.constant 119 : i32
    %165 = tpu.dynamic_rotate %92 by %c119_i32_87 dim 0 : vector<128x128xf32>, i32 -> vector<128x128xf32>
    %166 = vector.extract_strided_slice %1 {offsets = [0, 8], sizes = [128, 1], strides = [1, 1]} : vector<128x9xf32> to vector<128x1xf32>
    %167 = vector.broadcast %166 : vector<128x1xf32> to vector<128x128xf32>
    %168 = arith.mulf %165, %167 : vector<128x128xf32>
    %169 = arith.truncf %168 : vector<128x128xf32> to vector<128x128xbf16>
    %c0_88 = arith.constant 0 : index
    %c17 = arith.constant 17 : index
    %c0_89 = arith.constant 0 : index
    %c0_90 = arith.constant 0 : index
    %170 = vector.load %arg3[%c0_88, %c17, %c0_89, %c0_90] : memref<1x27x128x128xbf16, #tpu.memory_space<vmem>>, vector<1x1x128x128xbf16>
    %171 = vector.shape_cast %170 : vector<1x1x128x128xbf16> to vector<128x128xbf16>
    %cst_91 = arith.constant dense<0.000000e+00> : vector<128x128xf32>
    %172 = tpu.matmul %169, %171, %cst_91 {dimension_numbers = #tpu.dot_dimension_numbers<[1], [0], [0], [1], [0, 0, 1, 1], [], []>} : vector<128x128xbf16>, vector<128x128xbf16>, vector<128x128xf32> -> vector<128x128xf32>
    %173 = arith.addf %164, %172 : vector<128x128xf32>
    %c0_92 = arith.constant 0 : index
    %c1_93 = arith.constant 1 : index
    %c0_94 = arith.constant 0 : index
    %c0_95 = arith.constant 0 : index
    %174 = vector.load %arg4[%c0_92, %c1_93, %c0_94, %c0_95] : memref<1x3x1x128xf32, #tpu.memory_space<vmem>>, vector<1x1x1x128xf32>
    %175 = vector.shape_cast %174 : vector<1x1x1x128xf32> to vector<1x128xf32>
    %176 = vector.broadcast %175 : vector<1x128xf32> to vector<128x128xf32>
    %177 = arith.addf %173, %176 : vector<128x128xf32>
    %cst_96 = arith.constant 0.000000e+00 : f32
    %178 = vector.broadcast %cst_96 : f32 to vector<128x128xf32>
    %179 = arith.cmpf ogt, %177, %178 : vector<128x128xf32>
    %180 = vector.broadcast %0 : f32 to vector<128x128xf32>
    %181 = arith.mulf %180, %177 : vector<128x128xf32>
    %182 = arith.select %179, %177, %181 : vector<128x128xi1>, vector<128x128xf32>
    %cst_97 = arith.constant 0.000000e+00 : f32
    %183 = vector.broadcast %cst_97 : f32 to vector<128x128xf32>
    %c9_i32_98 = arith.constant 9 : i32
    %184 = tpu.dynamic_rotate %182 by %c9_i32_98 dim 0 : vector<128x128xf32>, i32 -> vector<128x128xf32>
    %185 = vector.extract_strided_slice %1 {offsets = [0, 0], sizes = [128, 1], strides = [1, 1]} : vector<128x9xf32> to vector<128x1xf32>
    %186 = vector.broadcast %185 : vector<128x1xf32> to vector<128x128xf32>
    %187 = arith.mulf %184, %186 : vector<128x128xf32>
    %188 = arith.truncf %187 : vector<128x128xf32> to vector<128x128xbf16>
    %c0_99 = arith.constant 0 : index
    %c18 = arith.constant 18 : index
    %c0_100 = arith.constant 0 : index
    %c0_101 = arith.constant 0 : index
    %189 = vector.load %arg3[%c0_99, %c18, %c0_100, %c0_101] : memref<1x27x128x128xbf16, #tpu.memory_space<vmem>>, vector<1x1x128x128xbf16>
    %190 = vector.shape_cast %189 : vector<1x1x128x128xbf16> to vector<128x128xbf16>
    %cst_102 = arith.constant dense<0.000000e+00> : vector<128x128xf32>
    %191 = tpu.matmul %188, %190, %cst_102 {dimension_numbers = #tpu.dot_dimension_numbers<[1], [0], [0], [1], [0, 0, 1, 1], [], []>} : vector<128x128xbf16>, vector<128x128xbf16>, vector<128x128xf32> -> vector<128x128xf32>
    %192 = arith.addf %183, %191 : vector<128x128xf32>
    %c8_i32_103 = arith.constant 8 : i32
    %193 = tpu.dynamic_rotate %182 by %c8_i32_103 dim 0 : vector<128x128xf32>, i32 -> vector<128x128xf32>
    %194 = vector.extract_strided_slice %1 {offsets = [0, 1], sizes = [128, 1], strides = [1, 1]} : vector<128x9xf32> to vector<128x1xf32>
    %195 = vector.broadcast %194 : vector<128x1xf32> to vector<128x128xf32>
    %196 = arith.mulf %193, %195 : vector<128x128xf32>
    %197 = arith.truncf %196 : vector<128x128xf32> to vector<128x128xbf16>
    %c0_104 = arith.constant 0 : index
    %c19 = arith.constant 19 : index
    %c0_105 = arith.constant 0 : index
    %c0_106 = arith.constant 0 : index
    %198 = vector.load %arg3[%c0_104, %c19, %c0_105, %c0_106] : memref<1x27x128x128xbf16, #tpu.memory_space<vmem>>, vector<1x1x128x128xbf16>
    %199 = vector.shape_cast %198 : vector<1x1x128x128xbf16> to vector<128x128xbf16>
    %cst_107 = arith.constant dense<0.000000e+00> : vector<128x128xf32>
    %200 = tpu.matmul %197, %199, %cst_107 {dimension_numbers = #tpu.dot_dimension_numbers<[1], [0], [0], [1], [0, 0, 1, 1], [], []>} : vector<128x128xbf16>, vector<128x128xbf16>, vector<128x128xf32> -> vector<128x128xf32>
    %201 = arith.addf %192, %200 : vector<128x128xf32>
    %c7_i32_108 = arith.constant 7 : i32
    %202 = tpu.dynamic_rotate %182 by %c7_i32_108 dim 0 : vector<128x128xf32>, i32 -> vector<128x128xf32>
    %203 = vector.extract_strided_slice %1 {offsets = [0, 2], sizes = [128, 1], strides = [1, 1]} : vector<128x9xf32> to vector<128x1xf32>
    %204 = vector.broadcast %203 : vector<128x1xf32> to vector<128x128xf32>
    %205 = arith.mulf %202, %204 : vector<128x128xf32>
    %206 = arith.truncf %205 : vector<128x128xf32> to vector<128x128xbf16>
    %c0_109 = arith.constant 0 : index
    %c20 = arith.constant 20 : index
    %c0_110 = arith.constant 0 : index
    %c0_111 = arith.constant 0 : index
    %207 = vector.load %arg3[%c0_109, %c20, %c0_110, %c0_111] : memref<1x27x128x128xbf16, #tpu.memory_space<vmem>>, vector<1x1x128x128xbf16>
    %208 = vector.shape_cast %207 : vector<1x1x128x128xbf16> to vector<128x128xbf16>
    %cst_112 = arith.constant dense<0.000000e+00> : vector<128x128xf32>
    %209 = tpu.matmul %206, %208, %cst_112 {dimension_numbers = #tpu.dot_dimension_numbers<[1], [0], [0], [1], [0, 0, 1, 1], [], []>} : vector<128x128xbf16>, vector<128x128xbf16>, vector<128x128xf32> -> vector<128x128xf32>
    %210 = arith.addf %201, %209 : vector<128x128xf32>
    %c1_i32_113 = arith.constant 1 : i32
    %211 = tpu.dynamic_rotate %182 by %c1_i32_113 dim 0 : vector<128x128xf32>, i32 -> vector<128x128xf32>
    %212 = vector.extract_strided_slice %1 {offsets = [0, 3], sizes = [128, 1], strides = [1, 1]} : vector<128x9xf32> to vector<128x1xf32>
    %213 = vector.broadcast %212 : vector<128x1xf32> to vector<128x128xf32>
    %214 = arith.mulf %211, %213 : vector<128x128xf32>
    %215 = arith.truncf %214 : vector<128x128xf32> to vector<128x128xbf16>
    %c0_114 = arith.constant 0 : index
    %c21 = arith.constant 21 : index
    %c0_115 = arith.constant 0 : index
    %c0_116 = arith.constant 0 : index
    %216 = vector.load %arg3[%c0_114, %c21, %c0_115, %c0_116] : memref<1x27x128x128xbf16, #tpu.memory_space<vmem>>, vector<1x1x128x128xbf16>
    %217 = vector.shape_cast %216 : vector<1x1x128x128xbf16> to vector<128x128xbf16>
    %cst_117 = arith.constant dense<0.000000e+00> : vector<128x128xf32>
    %218 = tpu.matmul %215, %217, %cst_117 {dimension_numbers = #tpu.dot_dimension_numbers<[1], [0], [0], [1], [0, 0, 1, 1], [], []>} : vector<128x128xbf16>, vector<128x128xbf16>, vector<128x128xf32> -> vector<128x128xf32>
    %219 = arith.addf %210, %218 : vector<128x128xf32>
    %220 = vector.extract_strided_slice %1 {offsets = [0, 4], sizes = [128, 1], strides = [1, 1]} : vector<128x9xf32> to vector<128x1xf32>
    %221 = vector.broadcast %220 : vector<128x1xf32> to vector<128x128xf32>
    %222 = arith.mulf %182, %221 : vector<128x128xf32>
    %223 = arith.truncf %222 : vector<128x128xf32> to vector<128x128xbf16>
    %c0_118 = arith.constant 0 : index
    %c22 = arith.constant 22 : index
    %c0_119 = arith.constant 0 : index
    %c0_120 = arith.constant 0 : index
    %224 = vector.load %arg3[%c0_118, %c22, %c0_119, %c0_120] : memref<1x27x128x128xbf16, #tpu.memory_space<vmem>>, vector<1x1x128x128xbf16>
    %225 = vector.shape_cast %224 : vector<1x1x128x128xbf16> to vector<128x128xbf16>
    %cst_121 = arith.constant dense<0.000000e+00> : vector<128x128xf32>
    %226 = tpu.matmul %223, %225, %cst_121 {dimension_numbers = #tpu.dot_dimension_numbers<[1], [0], [0], [1], [0, 0, 1, 1], [], []>} : vector<128x128xbf16>, vector<128x128xbf16>, vector<128x128xf32> -> vector<128x128xf32>
    %227 = arith.addf %219, %226 : vector<128x128xf32>
    %c127_i32_122 = arith.constant 127 : i32
    %228 = tpu.dynamic_rotate %182 by %c127_i32_122 dim 0 : vector<128x128xf32>, i32 -> vector<128x128xf32>
    %229 = vector.extract_strided_slice %1 {offsets = [0, 5], sizes = [128, 1], strides = [1, 1]} : vector<128x9xf32> to vector<128x1xf32>
    %230 = vector.broadcast %229 : vector<128x1xf32> to vector<128x128xf32>
    %231 = arith.mulf %228, %230 : vector<128x128xf32>
    %232 = arith.truncf %231 : vector<128x128xf32> to vector<128x128xbf16>
    %c0_123 = arith.constant 0 : index
    %c23 = arith.constant 23 : index
    %c0_124 = arith.constant 0 : index
    %c0_125 = arith.constant 0 : index
    %233 = vector.load %arg3[%c0_123, %c23, %c0_124, %c0_125] : memref<1x27x128x128xbf16, #tpu.memory_space<vmem>>, vector<1x1x128x128xbf16>
    %234 = vector.shape_cast %233 : vector<1x1x128x128xbf16> to vector<128x128xbf16>
    %cst_126 = arith.constant dense<0.000000e+00> : vector<128x128xf32>
    %235 = tpu.matmul %232, %234, %cst_126 {dimension_numbers = #tpu.dot_dimension_numbers<[1], [0], [0], [1], [0, 0, 1, 1], [], []>} : vector<128x128xbf16>, vector<128x128xbf16>, vector<128x128xf32> -> vector<128x128xf32>
    %236 = arith.addf %227, %235 : vector<128x128xf32>
    %c121_i32_127 = arith.constant 121 : i32
    %237 = tpu.dynamic_rotate %182 by %c121_i32_127 dim 0 : vector<128x128xf32>, i32 -> vector<128x128xf32>
    %238 = vector.extract_strided_slice %1 {offsets = [0, 6], sizes = [128, 1], strides = [1, 1]} : vector<128x9xf32> to vector<128x1xf32>
    %239 = vector.broadcast %238 : vector<128x1xf32> to vector<128x128xf32>
    %240 = arith.mulf %237, %239 : vector<128x128xf32>
    %241 = arith.truncf %240 : vector<128x128xf32> to vector<128x128xbf16>
    %c0_128 = arith.constant 0 : index
    %c24 = arith.constant 24 : index
    %c0_129 = arith.constant 0 : index
    %c0_130 = arith.constant 0 : index
    %242 = vector.load %arg3[%c0_128, %c24, %c0_129, %c0_130] : memref<1x27x128x128xbf16, #tpu.memory_space<vmem>>, vector<1x1x128x128xbf16>
    %243 = vector.shape_cast %242 : vector<1x1x128x128xbf16> to vector<128x128xbf16>
    %cst_131 = arith.constant dense<0.000000e+00> : vector<128x128xf32>
    %244 = tpu.matmul %241, %243, %cst_131 {dimension_numbers = #tpu.dot_dimension_numbers<[1], [0], [0], [1], [0, 0, 1, 1], [], []>} : vector<128x128xbf16>, vector<128x128xbf16>, vector<128x128xf32> -> vector<128x128xf32>
    %245 = arith.addf %236, %244 : vector<128x128xf32>
    %c120_i32_132 = arith.constant 120 : i32
    %246 = tpu.dynamic_rotate %182 by %c120_i32_132 dim 0 : vector<128x128xf32>, i32 -> vector<128x128xf32>
    %247 = vector.extract_strided_slice %1 {offsets = [0, 7], sizes = [128, 1], strides = [1, 1]} : vector<128x9xf32> to vector<128x1xf32>
    %248 = vector.broadcast %247 : vector<128x1xf32> to vector<128x128xf32>
    %249 = arith.mulf %246, %248 : vector<128x128xf32>
    %250 = arith.truncf %249 : vector<128x128xf32> to vector<128x128xbf16>
    %c0_133 = arith.constant 0 : index
    %c25 = arith.constant 25 : index
    %c0_134 = arith.constant 0 : index
    %c0_135 = arith.constant 0 : index
    %251 = vector.load %arg3[%c0_133, %c25, %c0_134, %c0_135] : memref<1x27x128x128xbf16, #tpu.memory_space<vmem>>, vector<1x1x128x128xbf16>
    %252 = vector.shape_cast %251 : vector<1x1x128x128xbf16> to vector<128x128xbf16>
    %cst_136 = arith.constant dense<0.000000e+00> : vector<128x128xf32>
    %253 = tpu.matmul %250, %252, %cst_136 {dimension_numbers = #tpu.dot_dimension_numbers<[1], [0], [0], [1], [0, 0, 1, 1], [], []>} : vector<128x128xbf16>, vector<128x128xbf16>, vector<128x128xf32> -> vector<128x128xf32>
    %254 = arith.addf %245, %253 : vector<128x128xf32>
    %c119_i32_137 = arith.constant 119 : i32
    %255 = tpu.dynamic_rotate %182 by %c119_i32_137 dim 0 : vector<128x128xf32>, i32 -> vector<128x128xf32>
    %256 = vector.extract_strided_slice %1 {offsets = [0, 8], sizes = [128, 1], strides = [1, 1]} : vector<128x9xf32> to vector<128x1xf32>
    %257 = vector.broadcast %256 : vector<128x1xf32> to vector<128x128xf32>
    %258 = arith.mulf %255, %257 : vector<128x128xf32>
    %259 = arith.truncf %258 : vector<128x128xf32> to vector<128x128xbf16>
    %c0_138 = arith.constant 0 : index
    %c26 = arith.constant 26 : index
    %c0_139 = arith.constant 0 : index
    %c0_140 = arith.constant 0 : index
    %260 = vector.load %arg3[%c0_138, %c26, %c0_139, %c0_140] : memref<1x27x128x128xbf16, #tpu.memory_space<vmem>>, vector<1x1x128x128xbf16>
    %261 = vector.shape_cast %260 : vector<1x1x128x128xbf16> to vector<128x128xbf16>
    %cst_141 = arith.constant dense<0.000000e+00> : vector<128x128xf32>
    %262 = tpu.matmul %259, %261, %cst_141 {dimension_numbers = #tpu.dot_dimension_numbers<[1], [0], [0], [1], [0, 0, 1, 1], [], []>} : vector<128x128xbf16>, vector<128x128xbf16>, vector<128x128xf32> -> vector<128x128xf32>
    %263 = arith.addf %254, %262 : vector<128x128xf32>
    %c0_142 = arith.constant 0 : index
    %c2_143 = arith.constant 2 : index
    %c0_144 = arith.constant 0 : index
    %c0_145 = arith.constant 0 : index
    %264 = vector.load %arg4[%c0_142, %c2_143, %c0_144, %c0_145] : memref<1x3x1x128xf32, #tpu.memory_space<vmem>>, vector<1x1x1x128xf32>
    %265 = vector.shape_cast %264 : vector<1x1x1x128xf32> to vector<1x128xf32>
    %266 = vector.broadcast %265 : vector<1x128xf32> to vector<128x128xf32>
    %267 = arith.addf %263, %266 : vector<128x128xf32>
    %cst_146 = arith.constant 0.000000e+00 : f32
    %268 = vector.broadcast %cst_146 : f32 to vector<128x128xf32>
    %269 = arith.cmpf ogt, %267, %268 : vector<128x128xf32>
    %270 = vector.broadcast %0 : f32 to vector<128x128xf32>
    %271 = arith.mulf %270, %267 : vector<128x128xf32>
    %272 = arith.select %269, %267, %271 : vector<128x128xi1>, vector<128x128xf32>
    %273 = arith.truncf %272 : vector<128x128xf32> to vector<128x128xbf16>
    %c0_147 = arith.constant 0 : index
    %c0_148 = arith.constant 0 : index
    %c0_149 = arith.constant 0 : index
    %274 = vector.load %arg5[%c0_147, %c0_148, %c0_149] : memref<1x128x512xbf16, #tpu.memory_space<vmem>>, vector<1x128x512xbf16>
    %275 = vector.shape_cast %274 : vector<1x128x512xbf16> to vector<128x512xbf16>
    %cst_150 = arith.constant dense<0.000000e+00> : vector<128x512xf32>
    %276 = tpu.matmul %273, %275, %cst_150 {dimension_numbers = #tpu.dot_dimension_numbers<[1], [0], [0], [1], [0, 0, 1, 1], [], []>} : vector<128x128xbf16>, vector<128x512xbf16>, vector<128x512xf32> -> vector<128x512xf32>
    %c0_151 = arith.constant 0 : index
    %c0_152 = arith.constant 0 : index
    %c0_153 = arith.constant 0 : index
    %277 = vector.load %arg6[%c0_151, %c0_152, %c0_153] : memref<1x1x512xf32, #tpu.memory_space<vmem>>, vector<1x1x512xf32>
    %278 = vector.shape_cast %277 : vector<1x1x512xf32> to vector<1x512xf32>
    %279 = vector.broadcast %278 : vector<1x512xf32> to vector<128x512xf32>
    %280 = arith.addf %276, %279 : vector<128x512xf32>
    %cst_154 = arith.constant 0.000000e+00 : f32
    %281 = vector.broadcast %cst_154 : f32 to vector<128x512xf32>
    %282 = arith.cmpf ogt, %280, %281 : vector<128x512xf32>
    %283 = vector.broadcast %0 : f32 to vector<128x512xf32>
    %284 = arith.mulf %283, %280 : vector<128x512xf32>
    %285 = arith.select %282, %280, %284 : vector<128x512xi1>, vector<128x512xf32>
    %286 = arith.truncf %285 : vector<128x512xf32> to vector<128x512xbf16>
    %c0_155 = arith.constant 0 : index
    %c0_156 = arith.constant 0 : index
    %c0_157 = arith.constant 0 : index
    %287 = vector.load %arg7[%c0_155, %c0_156, %c0_157] : memref<1x512x128xbf16, #tpu.memory_space<vmem>>, vector<1x512x128xbf16>
    %288 = vector.shape_cast %287 : vector<1x512x128xbf16> to vector<512x128xbf16>
    %cst_158 = arith.constant dense<0.000000e+00> : vector<128x128xf32>
    %289 = tpu.matmul %286, %288, %cst_158 {dimension_numbers = #tpu.dot_dimension_numbers<[1], [0], [0], [1], [0, 0, 1, 1], [], []>} : vector<128x512xbf16>, vector<512x128xbf16>, vector<128x128xf32> -> vector<128x128xf32>
    %c0_159 = arith.constant 0 : index
    %c0_160 = arith.constant 0 : index
    %c0_161 = arith.constant 0 : index
    %290 = vector.load %arg8[%c0_159, %c0_160, %c0_161] : memref<1x1x128xf32, #tpu.memory_space<vmem>>, vector<1x1x128xf32>
    %291 = vector.shape_cast %290 : vector<1x1x128xf32> to vector<1x128xf32>
    %292 = vector.broadcast %291 : vector<1x128xf32> to vector<128x128xf32>
    %293 = arith.addf %289, %292 : vector<128x128xf32>
    %c0_162 = arith.constant 0 : index
    %c0_163 = arith.constant 0 : index
    %c0_164 = arith.constant 0 : index
    %294 = vector.load %arg10[%c0_162, %c0_163, %c0_164] : memref<1x128x128xf32, #tpu.memory_space<vmem>>, vector<1x128x128xf32>
    %295 = vector.shape_cast %294 : vector<1x128x128xf32> to vector<128x128xf32>
    %296 = vector.shape_cast %293 : vector<128x128xf32> to vector<1x128x128xf32>
    tpu.vector_store %arg10[%c0_162, %c0_163, %c0_164], %296 {strides = array<i32>} : memref<1x128x128xf32, #tpu.memory_space<vmem>>, vector<1x128x128xf32>,
    return
  }
  func.func @transform_0(%arg0: i32) -> (i32, i32) {
    %c0_i32 = arith.constant 0 : i32
    %c0_i32_0 = arith.constant 0 : i32
    %c0_i32_1 = arith.constant 0 : i32
    return %c0_i32, %c0_i32_0 : i32, i32
  }
  func.func @transform_1(%arg0: i32) -> (i32, i32) {
    %c0_i32 = arith.constant 0 : i32
    %c0_i32_0 = arith.constant 0 : i32
    %c0_i32_1 = arith.constant 0 : i32
    return %c0_i32, %c0_i32_0 : i32, i32
  }
  func.func @transform_2(%arg0: i32) -> (i32, i32, i32, i32) {
    %c0_i32 = arith.constant 0 : i32
    %c0_i32_0 = arith.constant 0 : i32
    %c0_i32_1 = arith.constant 0 : i32
    %c0_i32_2 = arith.constant 0 : i32
    return %arg0, %c0_i32, %c0_i32_0, %c0_i32_1 : i32, i32, i32, i32
  }
  func.func @transform_3(%arg0: i32) -> (i32, i32, i32, i32) {
    %c0_i32 = arith.constant 0 : i32
    %c0_i32_0 = arith.constant 0 : i32
    %c0_i32_1 = arith.constant 0 : i32
    %c0_i32_2 = arith.constant 0 : i32
    return %arg0, %c0_i32, %c0_i32_0, %c0_i32_1 : i32, i32, i32, i32
  }
  func.func @transform_4(%arg0: i32) -> (i32, i32, i32) {
    %c0_i32 = arith.constant 0 : i32
    %c0_i32_0 = arith.constant 0 : i32
    %c0_i32_1 = arith.constant 0 : i32
    return %arg0, %c0_i32, %c0_i32_0 : i32, i32, i32
  }
  func.func @transform_5(%arg0: i32) -> (i32, i32, i32) {
    %c0_i32 = arith.constant 0 : i32
    %c0_i32_0 = arith.constant 0 : i32
    %c0_i32_1 = arith.constant 0 : i32
    return %arg0, %c0_i32, %c0_i32_0 : i32, i32, i32
  }
  func.func @transform_6(%arg0: i32) -> (i32, i32, i32) {
    %c0_i32 = arith.constant 0 : i32
    %c0_i32_0 = arith.constant 0 : i32
    %c0_i32_1 = arith.constant 0 : i32
    return %arg0, %c0_i32, %c0_i32_0 : i32, i32, i32
  }
  func.func @transform_7(%arg0: i32) -> (i32, i32, i32) {
    %c0_i32 = arith.constant 0 : i32
    %c0_i32_0 = arith.constant 0 : i32
    %c0_i32_1 = arith.constant 0 : i32
    return %arg0, %c0_i32, %c0_i32_0 : i32, i32, i32
  }
  func.func @transform_8(%arg0: i32) -> (i32, i32) {
    %c0_i32 = arith.constant 0 : i32
    %c0_i32_0 = arith.constant 0 : i32
    %c0_i32_1 = arith.constant 0 : i32
    return %c0_i32, %c0_i32_0 : i32, i32
  }
  func.func @transform_9(%arg0: i32) -> (i32, i32, i32) {
    %c0_i32 = arith.constant 0 : i32
    %c0_i32_0 = arith.constant 0 : i32
    %c0_i32_1 = arith.constant 0 : i32
    return %arg0, %c0_i32, %c0_i32_0 : i32, i32, i32
  }
}

</mosaic_0001>

<bundles_post_ra>
// kernel: stage1_forward.1
= control target key start
LH: loop header
LB: loop body
LE: loop exit
PB: predicated region body
PF: predicated region fallthrough
CT: control target
= control target key end

     0   :  { %s15800_s0 = inlined_call_operand.hbm [shape: f32[128,128], index: 0, kind: input, shape index: {}]   ;;  %s15801_s1 = inlined_call_operand.hbm [shape: f32[128,9], index: 1, kind: input, shape index: {}]   ;;  %s15802_s2 = inlined_call_operand.hbm [shape: bf16[2,27,128,128], index: 2, kind: input, shape index: {}]   ;;  %s15803_s3 = inlined_call_operand.hbm [shape: f32[2,3,1,128], index: 3, kind: input, shape index: {}]   ;;  %s15804_s4 = inlined_call_operand.hbm [shape: bf16[2,128,512], index: 4, kind: input, shape index: {}]   ;;  %s15805_s5 = inlined_call_operand.hbm [shape: f32[2,1,512], index: 5, kind: input, shape index: {}]   ;;  %s15806_s6 = inlined_call_operand.hbm [shape: bf16[2,512,128], index: 6, kind: input, shape index: {}]   ;;  %s15807_s7 = inlined_call_operand.hbm [shape: f32[2,1,128], index: 7, kind: input, shape index: {}]   ;;  %s15808_s8 = inlined_call_operand.<no memory space> [shape: f32[1,1], index: 8, kind: input, shape index: {}]   ;;  %s15809_s9 = inlined_call_operand.vmem [shape: f32[2,128,128], index: 9, kind: output, shape index: {}]  }
   0x1   :  { %16306 = sst [smem:[#allocation227_spill]] %s15800_s0 }
   0x2   :  { %16307 = sst [smem:[#allocation228_spill]] %s15809_s9 }
   0x3   :  { %14 = sst [smem:[#allocation2]] %s15808_s8 }
   0x4   :  { %15 = vsyncpa [#allocation4], 0 }
   0x5   :  { %16 = vsyncpa [#allocation6], 0  ;;  %s11633_s11 = smov 0   ;;  %s11635_s12 = smov 0  }
   0x6   :  { %s11637_s13 = smov 0   ;;  %s11639_s14 = smov 0  }
   0x7 LB: > { %16308 = sst [smem:[#allocation16_spill]] %s11550_s13  ;;  %s11652_s8 = sadd.s32 4294967295, %s11554_s14   ;;  %s11554_s14 = sphi %s11639_s14, %s17238_s14   ;;  %s11550_s13 = sphi %s11637_s13, %s17240_s13   ;;  %s11546_s12 = sphi %s11635_s12, %s17242_s12   ;;  %s11542_s11 = sphi %s11633_s11, %s17241_s11  }
   0x8   : > { %s11655_s15 = sadd.s32 1, %s11554_s14   ;;  %s71_s17 = sadd.s32 1, %s11550_s13 }
   0x9   : > { %16309 = sst [smem:[#allocation17_spill]] %s11655_s15  ;;  %s68_s16 = ssub.s32 %s11554_s14, %s11655_s15 }
   0xa   : > { %p69_p0 = scmp.eq.s32.totalorder %s68_s16, 0  ;;  %p78_p1 = scmp.ne.s32.totalorder %s11550_s13, %s11546_s12 }
   0xb   : > { %p79_p2 = scmp.eq.s32.totalorder %s11554_s14, 0  ;;  %p84_p3 = scmp.ne.s32.totalorder %s11546_s12, %s11542_s11 }
   0xc   : > { %s11665_s18 = scalar_select %p69_p0, %s11550_s13, %s71_s17  }
   0xd   : > { %p11667_p4 = por %p79_p2, %p78_p1  ;;  %p15810_p5 = scmp.eq.s32.totalorder %s11652_s8, 0 }
   0xe   : > { %16310 = sst [smem:[#allocation18_spill]] %s11665_s18  ;;  %p8282_p6 = scmp.ge.s32.totalorder %s11554_s14, 1 }
   0xf   : > { %p272_p7 = scmp.lt.s32.totalorder %s11554_s14, 3  ;;  %p11676_p8 = por %p15810_p5, %p84_p3 }
  0x10   : > { %s11556_s22 = smov [#allocation3]   ;;  %p10876_p12 = scmp.lt.s32.totalorder %s11554_s14, 2 }
  0x11   : > { %s16312_s20 = scalar_select %p11676_p8, 1, 0 }
  0x12   : > { %p11680_p9 = pnand %p8282_p6, %p272_p7  ;;  %s284_s23 = sshll.u32 %s11556_s22, 4  ;;  %s285_s23 = int_to_ptr.vmem [resolvable:$true] %s284_s23 }
  0x13   : > { %s11695_s26 = sand.u32 1, %s11550_s13   ;;  %p11699_p13 = pnand %p10876_p12, %p11667_p4 }
  0x14   : > { %s16313_s21 = scalar_select %p11680_p9, 1, 0 }
  0x15   : > { %p10848_p10 = pneg %p11680_p9  ;;  %s16316_s0 = sld [smem:[#allocation227_spill]] }
  0x16   : > { %s16315_s27 = scalar_select %p11699_p13, 1, 0 }
  0x17   : > { %p11688_p11 = pnand %p10848_p10, %p15810_p5 }
  0x19   : > { %s16314_s24 = scalar_select %p11688_p11, 1, 0 }
  0x1a   : > { %p15817_p1 = pneg %p11688_p11 }
  0x1b   : > { %s11276_s30 = scalar_lea.hbm %s16316_s0, 2048 }
  0x1c   : > { %p11277_p0 = scmp.ne.s32.totalorder %s16316_s0, %s11276_s30  ;;  %p11283_p4 = scmp.lt.u32.totalorder %s11276_s30, %s16316_s0 }
  0x1e   : > { %p11279_p2 = pnand %p15817_p1, %p11277_p0 }
  0x20   : > { %p11280_p3 = pneg %p11279_p2 }
  0x22   : > { %p11285_p6 = pnand %p11283_p4, %p11280_p3 }
  0x24   : > { %11288 = shalt.err (!%p11285_p6)
}
  0x25   : > { %s11289_s19 = scalar_lea.vmem %s285_s23, 2048  ;;  %p11297_p5 = scmp.lt.s32.totalorder %s285_s23, %s285_s23 }
  0x26   : > { %p11290_p7 = scmp.ne.s32.totalorder %s285_s23, %s11289_s19  ;;  %p11298_p8 = scmp.lt.s32.totalorder %s11289_s19, %s11289_s19 }
  0x28   : > { %p11292_p10 = pnand %p11290_p7, %p15817_p1  ;;  %p11299_p9 = por %p11298_p8, %p11297_p5 }
  0x2a   : > { %p11293_p12 = pneg %p11292_p10 }
  0x2c   : > { %p11300_p13 = pnand %p11299_p9, %p11293_p12 }
  0x2e   : > { %11303 = shalt.err (!%p11300_p13)
}
  0x2f   : > { %s15820_s22 = smov 128   ;;  %s15821_s28 = smov 8  }
  0x30   : > { %10851 = dma.hbm_to_vmem [thread:$0]  (!%p11688_p11), %s16316_s0, 2048, %s285_s23, [#allocation4], %s15820_s22, %s15820_s22, %s15821_s28  }
  0x31   : > { %s10822_s10 = smul.u32 1728, %s11695_s26  ;;  %s16317_s15 = sand.u32 1, %s11554_s14  }
  0x32   : > { %s10823_s11 = smul.u32 27648, %s11554_s14  ;;  %s11740_s9 = scalar_lea.sflag [#allocation4], %s16317_s15 }
  0x33   : > { %s10824_s16 = smul.u32 3, %s11695_s26  ;;  %s318_s18 = scalar_lea.vmem [#allocation7], %s10822_s10 }
  0x34   : > { %s11734_s25 = scalar_lea.hbm %s15802_s2, %s10823_s11  ;;  %s325_s13 = sshll.u32 %s318_s18, 4  ;;  %s11736_s13 = int_to_ptr.vmem [resolvable:$true] %s325_s13 }
  0x35   : > { %s11304_s23 = scalar_lea.hbm %s11734_s25, 27648  ;;  %p16318_p8 = scmp.ne.s32.totalorder %s16315_s27, 0 }
  0x36   : > { %p11305_p5 = scmp.ne.s32.totalorder %s11734_s25, %s11304_s23  ;;  %s11309_s18 = scalar_lea.hbm %s15802_s2, 55296 }
  0x37   : > { %p11746_p9 = pneg %p16318_p8  ;;  %p11310_p2 = scmp.lt.u32.totalorder %s11734_s25, %s15802_s2 }
  0x38   : > { %p11311_p3 = scmp.lt.u32.totalorder %s11309_s18, %s11304_s23  ;;  %p11313_p6 = scmp.lt.u32.totalorder %s11304_s23, %s11734_s25 }
  0x39   : > { %s16319_s29 = scalar_select %p11746_p9, 1, 0 }
  0x3a   : > { %p11307_p13 = pnand %p11746_p9, %p11305_p5  ;;  %p11312_p4 = por %p11311_p3, %p11310_p2 }
  0x3c   : > { %p11308_p0 = pneg %p11307_p13  ;;  %p11314_p7 = por %p11313_p6, %p11312_p4 }
  0x3e   : > { %p11315_p10 = pnand %p11314_p7, %p11308_p0 }
  0x40   : > { %11318 = shalt.err (!%p11315_p10)
}
  0x41   : > { %s11319_s15 = scalar_lea.vmem %s11736_s13, 27648  ;;  %s11559_s19 = smov [#allocation7]  }
  0x42   : > { %p11320_p12 = scmp.ne.s32.totalorder %s11736_s13, %s11319_s15  ;;  %s11324_s30 = sshll.u32 %s11559_s19, 4  ;;  %s11325_s30 = int_to_ptr.vmem [resolvable:$false] %s11324_s30 }
  0x43   : > { %s11326_s11 = scalar_lea.vmem %s11325_s30, 55296  ;;  %p11327_p1 = scmp.lt.s32.totalorder %s11736_s13, %s11325_s30 }
  0x44   : > { %p11322_p5 = pnand %p11320_p12, %p11746_p9  ;;  %p11328_p11 = scmp.lt.s32.totalorder %s11326_s11, %s11319_s15 }
  0x46   : > { %p11323_p13 = pneg %p11322_p5  ;;  %p11329_p2 = por %p11328_p11, %p11327_p1 }
  0x48   : > { %p11330_p3 = pnand %p11329_p2, %p11323_p13 }
  0x4a   : > { %11333 = shalt.err (!%p11330_p3)
}
  0x4b   : > { %s15822_s23 = smov 64   ;;  %s15823_s18 = smov 4  }
  0x4c   : > { %10858 = dma.hbm_to_vmem [thread:$0]  (!%p16318_p8), %s11734_s25, 27648, %s11736_s13, %s11740_s9, %s15822_s23, %s15822_s23, %s15823_s18  }
  0x4d   : > { %s10825_s10 = smul.u32 48, %s11554_s14  ;;  %s339_s17 = scalar_lea.vmem [#allocation8], %s10824_s16 }
  0x4e   : > { %s346_s15 = sshll.u32 %s339_s17, 4  ;;  %s11339_s16 = scalar_lea.hbm %s15803_s3, 96  ;;  %s11776_s15 = int_to_ptr.vmem [resolvable:$true] %s346_s15 }
  0x4f   : > { %s11781_s11 = scalar_lea.hbm %s15803_s3, %s10825_s10 }
  0x50   : > { %s11334_s22 = scalar_lea.hbm %s11781_s11, 48  ;;  %p11340_p4 = scmp.lt.u32.totalorder %s11781_s11, %s15803_s3 }
  0x51   : > { %p11335_p11 = scmp.ne.s32.totalorder %s11781_s11, %s11334_s22  ;;  %p11341_p6 = scmp.lt.u32.totalorder %s11339_s16, %s11334_s22 }
  0x52   : > { %p11343_p10 = scmp.lt.u32.totalorder %s11334_s22, %s11781_s11 }
  0x53   : > { %p11337_p1 = pnand %p11335_p11, %p11746_p9  ;;  %p11342_p7 = por %p11341_p6, %p11340_p4 }
  0x55   : > { %p11338_p0 = pneg %p11337_p1  ;;  %p11344_p12 = por %p11343_p10, %p11342_p7 }
  0x57   : > { %p11345_p5 = pnand %p11344_p12, %p11338_p0 }
  0x59   : > { %11348 = shalt.err (!%p11345_p5)
}
  0x5a   : > { %s11349_s10 = scalar_lea.vmem %s11776_s15, 48  ;;  %s11562_s19 = smov [#allocation8]  }
  0x5b   : > { %p11350_p13 = scmp.ne.s32.totalorder %s11776_s15, %s11349_s10  ;;  %s11354_s30 = sshll.u32 %s11562_s19, 4  ;;  %s11355_s30 = int_to_ptr.vmem [resolvable:$false] %s11354_s30 }
  0x5c   : > { %s11356_s28 = scalar_lea.vmem %s11355_s30, 96  ;;  %p11357_p11 = scmp.lt.s32.totalorder %s11776_s15, %s11355_s30 }
  0x5d   : > { %p11352_p2 = pnand %p11350_p13, %p11746_p9  ;;  %p11358_p1 = scmp.lt.s32.totalorder %s11356_s28, %s11349_s10 }
  0x5f   : > { %p11353_p3 = pneg %p11352_p2  ;;  %p11359_p4 = por %p11358_p1, %p11357_p11 }
  0x61   : > { %p11360_p6 = pnand %p11359_p4, %p11353_p3 }
  0x63   : > { %11363 = shalt.err (!%p11360_p6)
}
  0x64   : > { %s11563_s22 = smov 16   ;;  %s11564_s13 = smov 1  }
  0x65   : > { %10861 = dma.hbm_to_vmem [thread:$0]  (!%p16318_p8), %s11781_s11, 48, %s11776_s15, %s11740_s9, %s11563_s22, %s11563_s22, %s11564_s13  }
  0x66   : > { %s15824_s25 = sshll.u32 %s11695_s26, 8  ;;  %s9010_s16 = sshll.u32 %s11554_s14, 12 }
  0x67   : > { %s11814_s19 = scalar_lea.hbm %s15804_s4, %s9010_s16  ;;  %s360_s30 = scalar_lea.vmem [#allocation9], %s15824_s25 }
  0x68   : > { %s367_s28 = sshll.u32 %s360_s30, 4  ;;  %s8291_s23 = sshll.u32 %s11695_s26, 2  ;;  %s11818_s28 = int_to_ptr.vmem [resolvable:$true] %s367_s28 }
  0x69   : > { %s11364_s18 = scalar_lea.hbm %s11814_s19, 4096  ;;  %s11369_s13 = scalar_lea.hbm %s15804_s4, 8192 }
  0x6a   : > { %p11365_p0 = scmp.ne.s32.totalorder %s11814_s19, %s11364_s18  ;;  %p11370_p12 = scmp.lt.u32.totalorder %s11814_s19, %s15804_s4 }
  0x6b   : > { %p11371_p5 = scmp.lt.u32.totalorder %s11369_s13, %s11364_s18  ;;  %p11373_p2 = scmp.lt.u32.totalorder %s11364_s18, %s11814_s19 }
  0x6c   : > { %p11367_p7 = pnand %p11365_p0, %p11746_p9 }
  0x6d   : > { %p11372_p13 = por %p11371_p5, %p11370_p12 }
  0x6e   : > { %p11368_p10 = pneg %p11367_p7 }
  0x6f   : > { %p11374_p3 = por %p11373_p2, %p11372_p13 }
  0x71   : > { %p11375_p11 = pnand %p11374_p3, %p11368_p10 }
  0x73   : > { %11378 = shalt.err (!%p11375_p11)
}
  0x74   : > { %s11379_s30 = scalar_lea.vmem %s11818_s28, 4096  ;;  %s11565_s15 = smov [#allocation9]  }
  0x75   : > { %p11380_p1 = scmp.ne.s32.totalorder %s11818_s28, %s11379_s30  ;;  %s11384_s11 = sshll.u32 %s11565_s15, 4  ;;  %s11385_s11 = int_to_ptr.vmem [resolvable:$false] %s11384_s11 }
  0x76   : > { %s11386_s17 = scalar_lea.vmem %s11385_s11, 8192  ;;  %p11387_p0 = scmp.lt.s32.totalorder %s11818_s28, %s11385_s11 }
  0x77   : > { %p11382_p4 = pnand %p11380_p1, %p11746_p9  ;;  %p11388_p7 = scmp.lt.s32.totalorder %s11386_s17, %s11379_s30 }
  0x79   : > { %p11383_p6 = pneg %p11382_p4  ;;  %p11389_p12 = por %p11388_p7, %p11387_p0 }
  0x7b   : > { %p11390_p5 = pnand %p11389_p12, %p11383_p6 }
  0x7d   : > { %11393 = shalt.err (!%p11390_p5)
}
  0x7e   : > { %s11566_s18 = smov 256   ;;  %s9011_s13 = sshll.u32 %s11554_s14, 6 }
  0x7f   : > { %10864 = dma.hbm_to_vmem [thread:$0]  (!%p16318_p8), %s11814_s19, 4096, %s11818_s28, %s11740_s9, %s11566_s18, %s11566_s18, %s11563_s22  }
  0x80   : > { %s11848_s11 = scalar_lea.hbm %s15805_s5, %s9011_s13  ;;  %s381_s30 = scalar_lea.vmem [#allocation10], %s8291_s23 }
  0x81   : > { %s389_s17 = sshll.u32 %s381_s30, 4  ;;  %s11394_s25 = scalar_lea.hbm %s11848_s11, 64  ;;  %s390_s17 = int_to_ptr.vmem [resolvable:$true] %s389_s17 }
  0x82   : > { %p11395_p10 = scmp.ne.s32.totalorder %s11848_s11, %s11394_s25  ;;  %s11399_s28 = scalar_lea.hbm %s15805_s5, 128 }
  0x83   : > { %p11400_p3 = scmp.lt.u32.totalorder %s11848_s11, %s15805_s5  ;;  %p11401_p11 = scmp.lt.u32.totalorder %s11399_s28, %s11394_s25 }
  0x84   : > { %p11397_p13 = pnand %p11395_p10, %p11746_p9  ;;  %p11403_p4 = scmp.lt.u32.totalorder %s11394_s25, %s11848_s11 }
  0x85   : > { %p11402_p1 = por %p11401_p11, %p11400_p3 }
  0x86   : > { %p11398_p2 = pneg %p11397_p13 }
  0x87   : > { %p11404_p6 = por %p11403_p4, %p11402_p1 }
  0x89   : > { %p11405_p0 = pnand %p11404_p6, %p11398_p2 }
  0x8b   : > { %11408 = shalt.err (!%p11405_p0)
}
  0x8c   : > { %s11409_s23 = scalar_lea.vmem %s390_s17, 64  ;;  %s11567_s10 = smov [#allocation10]  }
  0x8d   : > { %p11410_p7 = scmp.ne.s32.totalorder %s390_s17, %s11409_s23  ;;  %s11414_s15 = sshll.u32 %s11567_s10, 4  ;;  %s11415_s15 = int_to_ptr.vmem [resolvable:$false] %s11414_s15 }
  0x8e   : > { %s11416_s30 = scalar_lea.vmem %s11415_s15, 128  ;;  %p11417_p10 = scmp.lt.s32.totalorder %s390_s17, %s11415_s15 }
  0x8f   : > { %p11412_p12 = pnand %p11410_p7, %p11746_p9  ;;  %p11418_p13 = scmp.lt.s32.totalorder %s11416_s30, %s11409_s23 }
  0x91   : > { %p11413_p5 = pneg %p11412_p12  ;;  %p11419_p8 = por %p11418_p13, %p11417_p10 }
  0x93   : > { %p11420_p3 = pnand %p11419_p8, %p11413_p5 }
  0x95   : > { %11423 = shalt.err (!%p11420_p3)
}
  0x96   : > { %p16320_p11 = scmp.ne.s32.totalorder %s16315_s27, 0  ;;  %s11875_s19 = scalar_lea.hbm %s15806_s6, %s9010_s16 }
  0x97   : > { %s16321_s28 = sshll.u32 %s11695_s26, 8  ;;  %s11424_s23 = scalar_lea.hbm %s11875_s19, 4096 }
  0x98   : > { %10867 = dma.hbm_to_vmem [thread:$0]  (!%p16320_p11), %s11848_s11, 64, %s390_s17, %s11740_s9  }
  0x99   : > { %s400_s18 = scalar_lea.vmem [#allocation11], %s16321_s28  ;;  %p11425_p8 = scmp.ne.s32.totalorder %s11875_s19, %s11424_s23 }
  0x9a   : > { %s407_s13 = sshll.u32 %s400_s18, 4  ;;  %s11429_s10 = scalar_lea.hbm %s15806_s6, 8192  ;;  %s11879_s13 = int_to_ptr.vmem [resolvable:$true] %s407_s13 }
  0x9b   : > { %p11427_p2 = pnand %p11425_p8, %p11746_p9  ;;  %p11430_p4 = scmp.lt.u32.totalorder %s11875_s19, %s15806_s6 }
  0x9c   : > { %p11431_p6 = scmp.lt.u32.totalorder %s11429_s10, %s11424_s23  ;;  %p11433_p7 = scmp.lt.u32.totalorder %s11424_s23, %s11875_s19 }
  0x9d   : > { %p11428_p1 = pneg %p11427_p2 }
  0x9e   : > { %p11432_p0 = por %p11431_p6, %p11430_p4 }
  0xa0   : > { %p11434_p12 = por %p11433_p7, %p11432_p0 }
  0xa2   : > { %p11435_p5 = pnand %p11434_p12, %p11428_p1 }
  0xa4   : > { %11438 = shalt.err (!%p11435_p5)
}
  0xa5   : > { %s11439_s30 = scalar_lea.vmem %s11879_s13, 4096  ;;  %s11568_s25 = smov [#allocation11]  }
  0xa6   : > { %p11440_p10 = scmp.ne.s32.totalorder %s11879_s13, %s11439_s30  ;;  %s11444_s22 = sshll.u32 %s11568_s25, 4  ;;  %s11445_s22 = int_to_ptr.vmem [resolvable:$false] %s11444_s22 }
  0xa7   : > { %s11446_s28 = scalar_lea.vmem %s11445_s22, 8192  ;;  %p11447_p8 = scmp.lt.s32.totalorder %s11879_s13, %s11445_s22 }
  0xa8   : > { %p11442_p13 = pnand %p11440_p10, %p11746_p9  ;;  %p11448_p2 = scmp.lt.s32.totalorder %s11446_s28, %s11439_s30 }
  0xaa   : > { %p11443_p3 = pneg %p11442_p13  ;;  %p11449_p4 = por %p11448_p2, %p11447_p8 }
  0xac   : > { %p11450_p6 = pnand %p11449_p4, %p11443_p3 }
  0xae   : > { %11453 = shalt.err (!%p11450_p6)
}
  0xaf   : > { %s16322_s18 = smov 4   ;;  %s16323_s23 = smov 64  }
  0xb0   : > { %10870 = dma.hbm_to_vmem [thread:$0]  (!%p16320_p11), %s11875_s19, 4096, %s11879_s13, %s11740_s9, %s16323_s23, %s16323_s23, %s16322_s18  }
  0xb1   : > { %s11569_s11 = smov [#allocation5]   ;;  %s8297_s10 = sshll.u32 %s11554_s14, 4 }
  0xb2   : > { %s297_s17 = sshll.u32 %s11569_s11, 4  ;;  %s11454_s30 = scalar_lea.hbm %s15801_s1, 2048  ;;  %s298_s17 = int_to_ptr.vmem [resolvable:$true] %s297_s17 }
  0xb3   : > { %p11455_p1 = scmp.ne.s32.totalorder %s15801_s1, %s11454_s30  ;;  %p16324_p0 = scmp.ne.s32.totalorder %s16314_s24, 0 }
  0xb4   : > { %p11461_p10 = scmp.lt.u32.totalorder %s11454_s30, %s15801_s1 }
  0xb5   : > { %p16325_p7 = pneg %p16324_p0 }
  0xb7   : > { %p11457_p12 = pnand %p11455_p1, %p16325_p7 }
  0xb9   : > { %p11458_p5 = pneg %p11457_p12 }
  0xbb   : > { %p11463_p13 = pnand %p11461_p10, %p11458_p5 }
  0xbd   : > { %11466 = shalt.err (!%p11463_p13)
}
  0xbe   : > { %s11467_s19 = scalar_lea.vmem %s298_s17, 2048  ;;  %p16326_p8 = pmov %p16325_p7 }
  0xbf   : > { %p11468_p3 = scmp.ne.s32.totalorder %s298_s17, %s11467_s19  ;;  %p11475_p6 = scmp.lt.s32.totalorder %s298_s17, %s298_s17 }
  0xc0   : > { %p11476_p11 = scmp.lt.s32.totalorder %s11467_s19, %s11467_s19 }
  0xc1   : > { %p11470_p2 = pnand %p11468_p3, %p16326_p8 }
  0xc2   : > { %p11477_p9 = por %p11476_p11, %p11475_p6 }
  0xc3   : > { %p11471_p4 = pneg %p11470_p2 }
  0xc5   : > { %p11478_p1 = pnand %p11477_p9, %p11471_p4 }
  0xc7   : > { %11481 = shalt.err (!%p11478_p1)
}
  0xc8   : > { %s16327_s14 = smov 8   ;;  %s16328_s13 = smov 128  }
  0xc9   : > { %10854 = dma.hbm_to_vmem [thread:$0]  (!%p16324_p0), %s15801_s1, 2048, %s298_s17, [#allocation6], %s16328_s13, %s16328_s13, %s16327_s14  }
  0xca   : > { %s11933_s16 = scalar_lea.hbm %s15807_s7, %s8297_s10  ;;  %s420_s15 = scalar_lea.vmem [#allocation12], %s11695_s26 }
  0xcb   : > { %s427_s24 = sshll.u32 %s420_s15, 4  ;;  %s11482_s30 = scalar_lea.hbm %s11933_s16, 16  ;;  %s428_s24 = int_to_ptr.vmem [resolvable:$true] %s427_s24 }
  0xcc   : > { %p11483_p9 = scmp.ne.s32.totalorder %s11933_s16, %s11482_s30  ;;  %p16329_p11 = scmp.ne.s32.totalorder %s16319_s29, 0 }
  0xcd   : > { %s11487_s17 = scalar_lea.hbm %s15807_s7, 32  ;;  %p11488_p0 = scmp.lt.u32.totalorder %s11933_s16, %s15807_s7 }
  0xce   : > { %p11485_p7 = pnand %p11483_p9, %p16329_p11  ;;  %p11489_p5 = scmp.lt.u32.totalorder %s11487_s17, %s11482_s30 }
  0xcf   : > { %p11491_p13 = scmp.lt.u32.totalorder %s11482_s30, %s11933_s16 }
  0xd0   : > { %p11486_p12 = pneg %p11485_p7  ;;  %p11490_p10 = por %p11489_p5, %p11488_p0 }
  0xd2   : > { %p11492_p3 = por %p11491_p13, %p11490_p10 }
  0xd4   : > { %p11493_p8 = pnand %p11492_p3, %p11486_p12 }
  0xd6   : > { %11496 = shalt.err (!%p11493_p8)
}
  0xd7   : > { %s11497_s26 = scalar_lea.vmem %s428_s24, 16  ;;  %s11570_s10 = smov [#allocation12]  }
  0xd8   : > { %p11498_p2 = scmp.ne.s32.totalorder %s428_s24, %s11497_s26  ;;  %s11502_s14 = sshll.u32 %s11570_s10, 4  ;;  %s11503_s14 = int_to_ptr.vmem [resolvable:$false] %s11502_s14 }
  0xd9   : > { %s11504_s13 = scalar_lea.vmem %s11503_s14, 32  ;;  %p11505_p1 = scmp.lt.s32.totalorder %s428_s24, %s11503_s14 }
  0xda   : > { %p11500_p4 = pnand %p11498_p2, %p16329_p11  ;;  %p11506_p9 = scmp.lt.s32.totalorder %s11504_s13, %s11497_s26 }
  0xdc   : > { %p11501_p6 = pneg %p11500_p4  ;;  %p11507_p7 = por %p11506_p9, %p11505_p1 }
  0xde   : > { %p11508_p0 = pnand %p11507_p7, %p11501_p6 }
  0xe0   : > { %11511 = shalt.err (!%p11508_p0)
}
  0xe1   : > { %p16330_p5 = scmp.ne.s32.totalorder %s16315_s27, 0  ;;  %p16331_p12 = scmp.ne.s32.totalorder %s16313_s21, 0 }
  0xe3   : > { %10873 = dma.hbm_to_vmem [thread:$0]  (!%p16330_p5), %s11933_s16, 16, %s428_s24, %s11740_s9  }
  0xe4   : > { %436 = sbr.rel (%p16331_p12) target bundleno = 2478 (0x9ae), region = 56 }
  0xeb   : > { %p16332_p11 = scmp.eq.s32.totalorder %s11652_s8, 0 }
  0xed   : > { %11529 = dma.done.wait (%p16332_p11), [#allocation4], 2048   ;;  %p16333_p10 = pmov %p16332_p11 }
  0xef   : > { %11531 = vsyncadd (%p16333_p10), [#allocation4], 4294965248  ;;  %p16334_p13 = pmov %p16333_p10 }
  0xf0   : > { %p16335_p3 = pmov %p16333_p10 }
  0xf1   : > { %11533 = dma.done.wait (%p16334_p13), [#allocation6], 2048  }
  0xf2   : > { %11535 = vsyncadd (%p16335_p3), [#allocation6], 4294965248  ;;  %s446_s27 = sand.u32 1, %s11652_s8   ;;  %s11966_s9 = sand.u32 1, %s11546_s12  }
  0xf3   : > { %s10826_s21 = smul.u32 1728, %s11966_s9  ;;  %s447_s29 = scalar_lea.sflag [#allocation4], %s446_s27 }
  0xf4   : > { %p16336_p8 = scmp.ne.s32.totalorder %s16312_s20, 0 }
  0xf5   : > { %s11969_s0 = scalar_lea.vmem [#allocation7], %s10826_s21 }
  0xf6   : > { %11537 = dma.done.wait (%p16336_p8), %s447_s29, 35968  }
  0xf7   : > { %11539 = vsyncadd (%p16336_p8), %s447_s29, 4294931328  ;;  %v11571_v0 = vmov 1   ;;  %v11975_v1 = vld [vmem:[#allocation5 + $0x10] sm:$0xff]  ;;  %v11977_v2 = vld [vmem:[#allocation5] sm:$0xff]  ;;  %v15829_v25 = vmov 0   ;;  %v11573_v27 = vmov 2   ;;  %v608_v51 = vlaneseq }
  0xf8   : > { %10930 = vset.pattern.permute.xlu1 %v11571_v0  ;;  %10929 = vset.pattern.permute.xlu0 %v11571_v0  ;;  %v11981_v3 = vld [vmem:[#allocation5 + $0x18] sm:$0xff]  ;;  %v11983_v4 = vld [vmem:[#allocation5 + $0x8] sm:$0xff]  ;;  %v11989_v6 = vld [vmem:[#allocation5 + $0x20] sm:$0xff]  ;;  %v11574_v28 = vmov 3   ;;  %v11575_v31 = vmov 4   ;;  %s10827_s20 = smul.u32 3, %s11966_s9 }
  0xf9   : > { %756 = vperm.xlu1 %10930, %v11975_v1   ;;  %748 = vperm.xlu0 %10929, %v11977_v2   ;;  %v11985_v5 = vld [vmem:[#allocation5 + $0x28] sm:$0xff]  ;;  %v10947_v7 = vld [vmem:[%s11969_s0 + $0x40] sm:$0xff]   ;;  %v11995_v9 = vld [vmem:[#allocation5 + $0x38] sm:$0xff]  ;;  %v12140_v60 = vshrl.u32 %v608_v51, 7  ;;  %s559_s18 = sld [smem:[#allocation2]]  ;;  %s8301_s11 = sshll.u32 %s11966_s9, 8 }
  0xfa   : > { %v10948_v8 = vld [vmem:[%s11969_s0 + $0x48] sm:$0xff]   ;;  %9574 = vmatprep.subr.bf16.mxu0 %v10947_v7  ;;  %v11997_v10 = vld [vmem:[#allocation5 + $0x30] sm:$0xff]  ;;  %v12004_v13 = vld [vmem:[#allocation5 + $0x40] sm:$0xff]  ;;  %s13088_s23 = scalar_lea.vmem [#allocation8], %s10827_s20  ;;  %s15295_s16 = scalar_lea.vmem [#allocation9], %s8301_s11 }
  0xfb   : > { %9575 = vmatpush3.bf16.msra.mxu0 %v10947_v7  ;;  %v10949_v11 = vld [vmem:[%s11969_s0 + $0x50] sm:$0xff]   ;;  %v12002_v12 = vld [vmem:[#allocation5 + $0x48] sm:$0xff]  ;;  %v10950_v14 = vld [vmem:[%s11969_s0 + $0x58] sm:$0xff]   ;;  %16345 = vst [vmem:[#allocation27_spill] sm:$0xff] %v12140_v60  ;;  %vm610_vm0 = vcmp.lt.s32.totalorder %v12140_v60, 1  ;;  %vm1158_vm1 = vcmp.lt.s32.totalorder %v12140_v60, 7 }
  0xfc   : > { %9576 = vmatprep.subr.bf16.mxu0 %v10948_v8  ;;  %v12009_v15 = vld [vmem:[#allocation5 + $0x58] sm:$0xff]  ;;  %v12011_v16 = vld [vmem:[#allocation5 + $0x50] sm:$0xff]  ;;  %v10951_v17 = vld [vmem:[%s11969_s0 + $0x60] sm:$0xff]   ;;  %s15322_s15 = scalar_lea.vmem [#allocation11], %s8301_s11  ;;  %s8302_s24 = sshll.u32 %s11966_s9, 2 }
  0xfd   : > { %760 = vperm.xlu1 %10930, %v11981_v3   ;;  %752 = vperm.xlu0 %10929, %v11983_v4   ;;  %v12014_v18 = vld [vmem:[#allocation5 + $0x68] sm:$0xff]  ;;  %v12018_v19 = vld [vmem:[#allocation5 + $0x60] sm:$0xff]  ;;  %v12021_v21 = vld [vmem:[#allocation5 + $0x78] sm:$0xff]  ;;  %s477_s30 = scalar_lea.vmem [#allocation10], %s8302_s24  ;;  %p553_p2 = scmp.lt.s32.totalorder %s11652_s8, 1 }
  0xfe   : > { %v10952_v20 = vld [vmem:[%s11969_s0 + $0x68] sm:$0xff]   ;;  %v12025_v22 = vld [vmem:[#allocation5 + $0x70] sm:$0xff]  ;;  %v10954_v24 = vld [vmem:[%s11969_s0 + $0x78] sm:$0xff]   ;;  %s494_s25 = scalar_lea.vmem [#allocation12], %s11966_s9  ;;  %s17237_s19 = sld [smem:[#allocation228_spill]] }
  0xff   : > { %9577 = vmatpush3.bf16.msra.mxu0 %v10948_v8  ;;  %v10953_v23 = vld [vmem:[%s11969_s0 + $0x70] sm:$0xff]   ;;  %v12036_v26 = vld [vmem:[%s11969_s0] sm:$0xff]   ;;  %v12083_v29 = vld [vmem:[#allocation3 + $0x8] sm:$0xff]  ;;  %s17244_s8 = smov (!%p553_p2, %s11652_s8), 1 }
 0x100   : > { %9578 = vmatprep.subr.bf16.mxu0 %v10949_v11  ;;  %v12090_v33 = vld [vmem:[#allocation3 + $0x10] sm:$0xff]  ;;  %v12092_v34 = vld [vmem:[#allocation3] sm:$0xff]  ;;  %v12094_v35 = vld [vmem:[#allocation3 + $0x78] sm:$0xff]  ;;  %s9013_s22 = sshll.u32 %s17244_s8, 7 }
 0x101   : > { %768 = vperm.xlu1 %10930, %v11985_v5   ;;  %764 = vperm.xlu0 %10929, %v11989_v6   ;;  %v12104_v39 = vld [vmem:[#allocation3 + $0x20] sm:$0xff]  ;;  %v12106_v40 = vld [vmem:[#allocation3 + $0x18] sm:$0xff]  ;;  %v12119_v48 = vld [vmem:[#allocation3 + $0x30] sm:$0xff]  ;;  %v592_v7 = vrot.slane %v12092_v34, 7 }
 0x102   : > { %v12121_v49 = vld [vmem:[#allocation3 + $0x28] sm:$0xff]  ;;  %v12135_v57 = vld [vmem:[#allocation3 + $0x40] sm:$0xff]  ;;  %v12137_v58 = vld [vmem:[#allocation3 + $0x38] sm:$0xff] }
 0x103   : > { %9579 = vmatpush3.bf16.msra.mxu0 %v10949_v11  ;;  %v10956_v50 = vld [vmem:[%s11969_s0 + $0x8] sm:$0xff]   ;;  %v10957_v59 = vld [vmem:[%s11969_s0 + $0x10] sm:$0xff]   ;;  %v12768_v60 = vld [vmem:[#allocation3 + $0x58] sm:$0xff] }
 0x104   : > { %9580 = vmatprep.subr.bf16.mxu0 %v10950_v14  ;;  %v12212_v51 = vld [vmem:[#allocation5 + $0x48] sm:$0xff]  ;;  %16422 = vst [vmem:[#allocation101_spill] sm:$0xff] %v12768_v60  ;;  %s15742_s26 = scalar_lea.vmem %s17237_s19, %s9013_s22 }
 0x105   : > { %776 = vperm.xlu1 %10930, %v11995_v9   ;;  %772 = vperm.xlu0 %10929, %v11997_v10  }
 0x107   : > { %9581 = vmatpush3.bf16.msra.mxu0 %v10950_v14  ;;  %v12171_v14 = vld [vmem:[#allocation3 + $0x60] sm:$0xff] }
 0x108   : > { %9582 = vmatprep.subr.bf16.mxu0 %v10951_v17 }
 0x109   : > { %784 = vperm.xlu1 %10930, %v12002_v12   ;;  %780 = vperm.xlu0 %10929, %v12004_v13  }
 0x10b   : > { %9583 = vmatpush3.bf16.msra.mxu0 %v10951_v17  ;;  %v10959_v17 = vld [vmem:[%s11969_s0 + $0x20] sm:$0xff]  }
 0x10c   : > { %9584 = vmatprep.subr.bf16.mxu0 %v10952_v20 }
 0x10d   : > { %792 = vperm.xlu1 %10930, %v12009_v15   ;;  %788 = vperm.xlu0 %10929, %v12011_v16  }
 0x10f   : > { %9585 = vmatpush3.bf16.msra.mxu0 %v10952_v20 }
 0x110   : > { %9586 = vmatprep.subr.bf16.mxu0 %v10953_v23 }
 0x111   : > { %800 = vperm.xlu1 %10930, %v12014_v18   ;;  %796 = vperm.xlu0 %10929, %v12018_v19  }
 0x113   : > { %9587 = vmatpush3.bf16.msra.mxu0 %v10953_v23 }
 0x114   : > { %9588 = vmatprep.subr.bf16.mxu0 %v10954_v24 }
 0x115   : > { %808 = vperm.xlu1 %10930, %v12021_v21   ;;  %804 = vperm.xlu0 %10929, %v12025_v22  }
 0x117   : > { %9589 = vmatpush3.bf16.msra.mxu0 %v10954_v24 }
 0x118   : > { %9606 = vmatprep.subr.bf16.mxu0 %v12036_v26 }
 0x119   : > { %10932 = vset.pattern.permute.xlu1 %v15829_v25  ;;  %10931 = vset.pattern.permute.xlu0 %v15829_v25  ;;  %v600_v25 = vrot.slane %v12135_v57, 7 }
 0x11a   : > { %634 = vperm.xlu1 %10932, %v11983_v4   ;;  %629 = vperm.xlu0 %10931, %v11977_v2  }
 0x11e   : > { %639 = vperm.xlu1 %10932, %v11975_v1   ;;  %644 = vperm.xlu0 %10931, %v11981_v3  }
 0x122   : > { %649 = vperm.xlu1 %10932, %v11989_v6   ;;  %654 = vperm.xlu0 %10931, %v11985_v5  }
 0x126   : > { %659 = vperm.xlu1 %10932, %v11997_v10   ;;  %664 = vperm.xlu0 %10931, %v11995_v9  }
 0x12a   : > { %669 = vperm.xlu1 %10932, %v12004_v13   ;;  %674 = vperm.xlu0 %10931, %v12002_v12  }
 0x12e   : > { %679 = vperm.xlu1 %10932, %v12011_v16   ;;  %684 = vperm.xlu0 %10931, %v12009_v15  }
 0x132   : > { %689 = vperm.xlu1 %10932, %v12018_v19   ;;  %694 = vperm.xlu0 %10931, %v12014_v18  }
 0x136   : > { %699 = vperm.xlu1 %10932, %v12025_v22   ;;  %704 = vperm.xlu0 %10931, %v12021_v21  }
 0x13a   : > { %10933 = vset.pattern.permute.xlu1 %v11573_v27  ;;  %10934 = vset.pattern.permute.xlu0 %v11573_v27 }
 0x13b   : > { %1176 = vperm.xlu1 %10933, %v11977_v2   ;;  %1180 = vperm.xlu0 %10934, %v11983_v4  }
 0x13f   : > { %1184 = vperm.xlu1 %10933, %v11975_v1   ;;  %1192 = vperm.xlu0 %10934, %v11989_v6  }
 0x143   : > { %1188 = vperm.xlu1 %10933, %v11981_v3   ;;  %1200 = vperm.xlu0 %10934, %v11997_v10  }
 0x147   : > { %1196 = vperm.xlu1 %10933, %v11985_v5   ;;  %1208 = vperm.xlu0 %10934, %v12004_v13  }
 0x14b   : > { %1204 = vperm.xlu1 %10933, %v11995_v9   ;;  %1216 = vperm.xlu0 %10934, %v12011_v16  }
 0x14f   : > { %1212 = vperm.xlu1 %10933, %v12002_v12   ;;  %1224 = vperm.xlu0 %10934, %v12018_v19  }
 0x153   : > { %1220 = vperm.xlu1 %10933, %v12009_v15   ;;  %1232 = vperm.xlu0 %10934, %v12025_v22  }
 0x157   : > { %1228 = vperm.xlu1 %10933, %v12014_v18   ;;  %10935 = vset.pattern.permute.xlu0 %v11574_v28 }
 0x158   : > { %1442 = vperm.xlu0 %10935, %v11977_v2  }
 0x15b   : > { %1236 = vperm.xlu1 %10933, %v12021_v21  }
 0x15c   : > { %1454 = vperm.xlu0 %10935, %v11981_v3  }
 0x15f   : > { %10936 = vset.pattern.permute.xlu1 %v11574_v28  ;;  %v12196_v28 = vld [vmem:[#allocation5 + $0x38] sm:$0xff] }
 0x160   : > { %1446 = vperm.xlu1 %10936, %v11983_v4   ;;  %1462 = vperm.xlu0 %10935, %v11985_v5   ;;  %v12154_v5 = vld [vmem:[#allocation3 + $0x48] sm:$0xff] }
 0x164   : > { %1450 = vperm.xlu1 %10936, %v11975_v1   ;;  %1470 = vperm.xlu0 %10935, %v11995_v9  }
 0x168   : > { %1458 = vperm.xlu1 %10936, %v11989_v6   ;;  %1478 = vperm.xlu0 %10935, %v12002_v12  }
 0x16c   : > { %1466 = vperm.xlu1 %10936, %v11997_v10   ;;  %1486 = vperm.xlu0 %10935, %v12009_v15   ;;  %v12173_v15 = vld [vmem:[#allocation3 + $0x58] sm:$0xff] }
 0x170   : > { %1474 = vperm.xlu1 %10936, %v12004_v13   ;;  %1494 = vperm.xlu0 %10935, %v12014_v18   ;;  %v12180_v18 = vld [vmem:[#allocation5 + $0x28] sm:$0xff] }
 0x174   : > { %1482 = vperm.xlu1 %10936, %v12011_v16   ;;  %1502 = vperm.xlu0 %10935, %v12021_v21  }
 0x178   : > { %v12085_v30 = vpop.permute.xlu1 %756  ;;  %1490 = vperm.xlu1 %10936, %v12018_v19   ;;  %10938 = vset.pattern.permute.xlu0 %v11575_v31  ;;  %v12088_v32 = vpop.permute.xlu0 %748 }
 0x179   : > { %16337 = vst [vmem:[#allocation19_spill] sm:$0xff] %v12085_v30  ;;  %16338 = vst [vmem:[#allocation20_spill] sm:$0xff] %v12088_v32  ;;  %1712 = vperm.xlu0 %10938, %v11983_v4   ;;  %v811_v36 = vmul.f32 %v12088_v32, %v12094_v35  ;;  %v813_v41 = vmul.f32 %v12085_v30, %v12083_v29  ;;  %v12152_v4 = vld [vmem:[#allocation3 + $0x50] sm:$0xff]  ;;  %v10968_v32 = vld [vmem:[%s11969_s0 + $0xa8] sm:$0xff]  }
 0x17a   : > { %v10971_v30 = vld [vmem:[%s11969_s0 + $0xc0] sm:$0xff]  }
 0x17c   : > { %v12099_v37 = vpop.permute.xlu1 %760  ;;  %1498 = vperm.xlu1 %10936, %v12025_v22   ;;  %v12102_v38 = vpop.permute.xlu0 %752 }
 0x17d   : > { %16339 = vst [vmem:[#allocation21_spill] sm:$0xff] %v12099_v37  ;;  %16340 = vst [vmem:[#allocation22_spill] sm:$0xff] %v12102_v38  ;;  %v814_v42 = vmul.f32 %v12099_v37, %v12090_v33  ;;  %1724 = vperm.xlu0 %10938, %v11989_v6   ;;  %v812_v43 = vmul.f32 %v12102_v38, %v12092_v34  ;;  %v10958_v6 = vld [vmem:[%s11969_s0 + $0x18] sm:$0xff]   ;;  %v10972_v37 = vld [vmem:[%s11969_s0 + $0xc8] sm:$0xff]   ;;  %v1150_v38 = vrot.slane %v12135_v57, 1 }
 0x17f   : > { %v827_v44 = vpack.c.bf16 %v812_v43, %v811_v36  ;;  %v828_v45 = vpack.c.bf16 %v814_v42, %v813_v41  ;;  %v593_v36 = vrot.slane %v12083_v29, 7  ;;  %v594_v41 = vrot.slane %v12090_v33, 7  ;;  %v10961_v43 = vld [vmem:[%s11969_s0 + $0x30] sm:$0xff]  }
 0x180   : > { %v12115_v46 = vpop.permute.xlu1 %768  ;;  %10937 = vset.pattern.permute.xlu1 %v11575_v31  ;;  %v12117_v47 = vpop.permute.xlu0 %764  ;;  %v10960_v31 = vld [vmem:[%s11969_s0 + $0x28] sm:$0xff]  }
 0x181   : > { %16341 = vst [vmem:[#allocation23_spill] sm:$0xff] %v12115_v46  ;;  %16342 = vst [vmem:[#allocation24_spill] sm:$0xff] %v12117_v47  ;;  %v816_v52 = vmul.f32 %v12115_v46, %v12104_v39  ;;  %v815_v53 = vmul.f32 %v12117_v47, %v12106_v40  ;;  %1708 = vperm.xlu1 %10937, %v11977_v2   ;;  %1732 = vperm.xlu0 %10938, %v11997_v10   ;;  %v12165_v10 = vld [vmem:[#allocation3 + $0x70] sm:$0xff]  ;;  %v12437_v46 = vld [vmem:[#allocation5 + $0x60] sm:$0xff] }
 0x182   : > { %9590 = vmatprep.mubr.bf16.mxu0 %v827_v44  ;;  %v15831_v20 = vrot.slane %v12165_v10, 7 }
 0x183   : > { %9591 = vmatmul.mubr.bf16.vlgmr.msra.gmra.mrb[0].mxu0 %v828_v45  ;;  %v829_v54 = vpack.c.bf16 %v816_v52, %v815_v53  ;;  %v11576_v52 = vmov 5   ;;  %v595_v53 = vrot.slane %v12106_v40, 7 }
 0x184   : > { %9607 = vmatpush3.bf16.msra.mxu0 %v12036_v26  ;;  %v12131_v55 = vpop.permute.xlu1 %776  ;;  %v12133_v56 = vpop.permute.xlu0 %772  ;;  %v12190_v26 = vld [vmem:[#allocation3 + $0x68] sm:$0xff] }
 0x185   : > { %16343 = vst [vmem:[#allocation25_spill] sm:$0xff] %v12131_v55  ;;  %16344 = vst [vmem:[#allocation26_spill] sm:$0xff] %v12133_v56  ;;  %v818_v61 = vmul.f32 %v12131_v55, %v12119_v48  ;;  %v817_v62 = vmul.f32 %v12133_v56, %v12121_v49  ;;  %1716 = vperm.xlu1 %10937, %v11975_v1   ;;  %1740 = vperm.xlu0 %10938, %v12004_v13   ;;  %v607_v1 = vrot.slane %v12094_v35, 7  ;;  %v12284_v56 = vld [vmem:[#allocation5 + $0x78] sm:$0xff] }
 0x186   : > { %9594 = vmatprep.mubr.bf16.mxu0 %v829_v54  ;;  %9608 = vmatprep.subr.bf16.mxu0 %v10956_v50  ;;  %v596_v54 = vrot.slane %v12104_v39, 7 }
 0x187   : > { %v830_v63 = vpack.c.bf16 %v818_v61, %v817_v62  ;;  %v12224_v61 = vsel %vm610_vm0, %v607_v1, %v592_v7  ;;  %v12230_v62 = vsel %vm610_vm0, %v15831_v20, %v607_v1 }
 0x188   : > { %9609 = vmatpush3.bf16.msra.mxu0 %v10956_v50  ;;  %v12148_v0 = vpop.permute.xlu1 %784  ;;  %v12150_v2 = vpop.permute.xlu0 %780 }
 0x189   : > { %16346 = vst [vmem:[#allocation28_spill] sm:$0xff] %v12148_v0  ;;  %16347 = vst [vmem:[#allocation29_spill] sm:$0xff] %v12150_v2  ;;  %v820_v8 = vmul.f32 %v12148_v0, %v12135_v57  ;;  %v819_v9 = vmul.f32 %v12150_v2, %v12137_v58  ;;  %1720 = vperm.xlu1 %10937, %v11981_v3   ;;  %1748 = vperm.xlu0 %10938, %v12011_v16  }
 0x18a   : > { %9610 = vmatprep.subr.bf16.mxu0 %v10957_v59 }
 0x18b   : > { %9595 = vmatmul.mubr.bf16.gmra.mrb[4].mxu0 %v830_v63  ;;  %v831_v11 = vpack.c.bf16 %v820_v8, %v819_v9  ;;  %v12235_v9 = vld [vmem:[#allocation5 + $0x58] sm:$0xff] }
 0x18c   : > { %9611 = vmatpush3.bf16.msra.mxu0 %v10957_v59  ;;  %v12167_v12 = vpop.permute.xlu1 %792  ;;  %v12169_v13 = vpop.permute.xlu0 %788  ;;  %v12217_v59 = vld [vmem:[#allocation5] sm:$0xff] }
 0x18d   : > { %16348 = vst [vmem:[#allocation30_spill] sm:$0xff] %v12167_v12  ;;  %16349 = vst [vmem:[#allocation31_spill] sm:$0xff] %v12169_v13  ;;  %v822_v3 = vmul.f32 %v12167_v12, %v12152_v4  ;;  %v821_v16 = vmul.f32 %v12169_v13, %v12154_v5  ;;  %1728 = vperm.xlu1 %10937, %v12180_v18   ;;  %1756 = vperm.xlu0 %10938, %v12018_v19  }
 0x18e   : > { %9598 = vmatprep.mubr.bf16.mxu0 %v831_v11  ;;  %9612 = vmatprep.subr.bf16.mxu0 %v10958_v6 }
 0x18f   : > { %v832_v21 = vpack.c.bf16 %v822_v3, %v821_v16  ;;  %v598_v3 = vrot.slane %v12119_v48, 7 }
 0x190   : > { %9613 = vmatpush3.bf16.msra.mxu0 %v10958_v6  ;;  %v12186_v23 = vpop.permute.xlu1 %800  ;;  %v12188_v24 = vpop.permute.xlu0 %796  ;;  %v10962_v6 = vld [vmem:[%s11969_s0 + $0x38] sm:$0xff]  }
 0x191   : > { %16350 = vst [vmem:[#allocation32_spill] sm:$0xff] %v12186_v23  ;;  %16351 = vst [vmem:[#allocation33_spill] sm:$0xff] %v12188_v24  ;;  %v824_v27 = vmul.f32 %v12186_v23, %v12171_v14  ;;  %v823_v19 = vmul.f32 %v12188_v24, %v12173_v15  ;;  %1736 = vperm.xlu1 %10937, %v12196_v28   ;;  %1764 = vperm.xlu0 %10938, %v12025_v22   ;;  %v12380_v24 = vld [vmem:[#allocation5 + $0x30] sm:$0xff]  ;;  %v1143_v23 = vrot.slane %v12083_v29, 1  ;;  %v11577_v29 = vmov 6  }
 0x192   : > { %9614 = vmatprep.subr.bf16.mxu0 %v10959_v17 }
 0x193   : > { %9599 = vmatmul.mubr.bf16.gmra.mrb[8].mxu0 %v832_v21  ;;  %v833_v42 = vpack.c.bf16 %v824_v27, %v823_v19  ;;  %v12246_v21 = vld [vmem:[#allocation5 + $0x18] sm:$0xff]  ;;  %v12253_v27 = vsel %vm610_vm0, %v592_v7, %v593_v36  ;;  %v12257_v19 = vsel %vm610_vm0, %v593_v36, %v594_v41  ;;  %v599_v7 = vrot.slane %v12137_v58, 7 }
 0x194   : > { %9615 = vmatpush3.bf16.msra.mxu0 %v10959_v17  ;;  %v12204_v44 = vpop.permute.xlu1 %808  ;;  %v12206_v45 = vpop.permute.xlu0 %804  ;;  %v597_v17 = vrot.slane %v12121_v49, 7 }
 0x195   : > { %16352 = vst [vmem:[#allocation34_spill] sm:$0xff] %v12204_v44  ;;  %16353 = vst [vmem:[#allocation35_spill] sm:$0xff] %v12206_v45  ;;  %v826_v50 = vmul.f32 %v12204_v44, %v12165_v10  ;;  %v825_v22 = vmul.f32 %v12206_v45, %v12190_v26  ;;  %1744 = vperm.xlu1 %10937, %v12212_v51   ;;  %10939 = vset.pattern.permute.xlu0 %v11576_v52  ;;  %v12358_v44 = vld [vmem:[#allocation5 + $0x20] sm:$0xff] }
 0x196   : > { %9602 = vmatprep.mubr.bf16.mxu0 %v833_v42  ;;  %1974 = vperm.xlu0 %10939, %v12217_v59  }
 0x197   : > { %9616 = vmatprep.subr.bf16.mxu0 %v10960_v31  ;;  %v834_v63 = vpack.c.bf16 %v826_v50, %v825_v22  ;;  %v12262_v22 = vld [vmem:[#allocation5 + $0x68] sm:$0xff] }
 0x198   : > { %9617 = vmatpush3.bf16.msra.mxu0 %v10960_v31  ;;  %v10963_v31 = vld [vmem:[%s11969_s0 + $0x80] sm:$0xff]  }
 0x199   : > { %v12233_v8 = vpop.permute.xlu1 %634  ;;  %1752 = vperm.xlu1 %10937, %v12235_v9   ;;  %v12238_v11 = vpop.permute.xlu0 %629  ;;  %9618 = vmatprep.subr.bf16.mxu0 %v10961_v43 }
 0x19a   : > { %16354 = vst [vmem:[#allocation36_spill] sm:$0xff] %v12233_v8  ;;  %16355 = vst [vmem:[#allocation37_spill] sm:$0xff] %v12238_v11  ;;  %v708_v1 = vmul.f32 %v12233_v8, %v12224_v61  ;;  %v707_v16 = vmul.f32 %v12238_v11, %v12230_v62  ;;  %1986 = vperm.xlu0 %10939, %v12246_v21   ;;  %v12335_v11 = vld [vmem:[#allocation5 + $0x10] sm:$0xff] }
 0x19b   : > { %9603 = vmatmul.mubr.bf16.gmra.mrb[12].mxu0 %v834_v63 }
 0x19c   : > { %9619 = vmatpush3.bf16.msra.mxu0 %v10961_v43  ;;  %v723_v42 = vpack.c.bf16 %v708_v1, %v707_v16  ;;  %v12276_v1 = vsel %vm610_vm0, %v594_v41, %v595_v53  ;;  %v12280_v16 = vsel %vm610_vm0, %v595_v53, %v596_v54  ;;  %v601_v41 = vrot.slane %v12154_v5, 7 }
 0x19d   : > { %v12260_v50 = vpop.permute.xlu1 %639  ;;  %1760 = vperm.xlu1 %10937, %v12262_v22   ;;  %v12265_v63 = vpop.permute.xlu0 %644  ;;  %9620 = vmatprep.subr.bf16.mxu0 %v10962_v6 }
 0x19e   : > { %16356 = vst [vmem:[#allocation38_spill] sm:$0xff] %v12260_v50  ;;  %16357 = vst [vmem:[#allocation39_spill] sm:$0xff] %v12265_v63  ;;  %v709_v36 = vmul.f32 %v12260_v50, %v12253_v27  ;;  %v710_v43 = vmul.f32 %v12265_v63, %v12257_v19  ;;  %1994 = vperm.xlu0 %10939, %v12180_v18   ;;  %9622 = vmatprep.mubr.bf16.mxu0 %v723_v42  ;;  %v10964_v42 = vld [vmem:[%s11969_s0 + $0x88] sm:$0xff]  }
 0x1a0   : > { %v724_v20 = vpack.c.bf16 %v710_v43, %v709_v36  ;;  %9621 = vmatpush3.bf16.msra.mxu0 %v10962_v6  ;;  %v12298_v6 = vsel %vm610_vm0, %v596_v54, %v597_v17  ;;  %v12302_v36 = vsel %vm610_vm0, %v597_v17, %v598_v3  ;;  %v12314_v17 = vld [vmem:[#allocation5 + $0x8] sm:$0xff] }
 0x1a1   : > { %v12282_v0 = vpop.permute.xlu1 %649  ;;  %1768 = vperm.xlu1 %10937, %v12284_v56   ;;  %v12287_v63 = vpop.permute.xlu0 %654  ;;  %9638 = vmatprep.subr.bf16.mxu0 %v10963_v31 }
 0x1a2   : > { %16358 = vst [vmem:[#allocation40_spill] sm:$0xff] %v12282_v0  ;;  %16359 = vst [vmem:[#allocation41_spill] sm:$0xff] %v12287_v63  ;;  %v711_v50 = vmul.f32 %v12282_v0, %v12276_v1  ;;  %v712_v53 = vmul.f32 %v12287_v63, %v12280_v16  ;;  %2002 = vperm.xlu0 %10939, %v12196_v28   ;;  %v602_v63 = vrot.slane %v12152_v4, 7 }
 0x1a3   : > { %9623 = vmatmul.mubr.bf16.vlgmr.msra.gmra.mrb[0].mxu0 %v724_v20  ;;  %v10965_v20 = vld [vmem:[%s11969_s0 + $0x90] sm:$0xff]  }
 0x1a4   : > { %v725_v43 = vpack.c.bf16 %v712_v53, %v711_v50  ;;  %9639 = vmatpush3.bf16.msra.mxu0 %v10963_v31  ;;  %v12324_v31 = vsel %vm610_vm0, %v599_v7, %v600_v25 }
 0x1a5   : > { %v12304_v2 = vpop.permute.xlu1 %659  ;;  %10940 = vset.pattern.permute.xlu1 %v11576_v52  ;;  %v12306_v55 = vpop.permute.xlu0 %664  ;;  %9640 = vmatprep.subr.bf16.mxu0 %v10964_v42  ;;  %v12320_v52 = vsel %vm610_vm0, %v598_v3, %v599_v7  ;;  %v12345_v7 = vsel %vm610_vm0, %v601_v41, %v602_v63 }
 0x1a6   : > { %16360 = vst [vmem:[#allocation42_spill] sm:$0xff] %v12304_v2  ;;  %16361 = vst [vmem:[#allocation43_spill] sm:$0xff] %v12306_v55  ;;  %v713_v54 = vmul.f32 %v12304_v2, %v12298_v6  ;;  %v714_v8 = vmul.f32 %v12306_v55, %v12302_v36  ;;  %1978 = vperm.xlu1 %10940, %v12314_v17   ;;  %2010 = vperm.xlu0 %10939, %v12212_v51   ;;  %v10966_v55 = vld [vmem:[%s11969_s0 + $0x98] sm:$0xff]  }
 0x1a7   : > { %9626 = vmatprep.mubr.bf16.mxu0 %v725_v43 }
 0x1a8   : > { %v726_v50 = vpack.c.bf16 %v714_v8, %v713_v54  ;;  %9641 = vmatpush3.bf16.msra.mxu0 %v10964_v42  ;;  %v12341_v8 = vsel %vm610_vm0, %v600_v25, %v601_v41  ;;  %v603_v42 = vrot.slane %v12173_v15, 7  ;;  %v604_v54 = vrot.slane %v12171_v14, 7 }
 0x1a9   : > { %v12326_v53 = vpop.permute.xlu1 %669  ;;  %v12328_v2 = vpop.permute.xlu0 %674  ;;  %9642 = vmatprep.subr.bf16.mxu0 %v10965_v20 }
 0x1aa   : > { %16362 = vst [vmem:[#allocation44_spill] sm:$0xff] %v12326_v53  ;;  %16363 = vst [vmem:[#allocation45_spill] sm:$0xff] %v12328_v2  ;;  %v715_v43 = vmul.f32 %v12326_v53, %v12320_v52  ;;  %v716_v3 = vmul.f32 %v12328_v2, %v12324_v31  ;;  %1982 = vperm.xlu1 %10940, %v12335_v11   ;;  %2018 = vperm.xlu0 %10939, %v12235_v9  }
 0x1ab   : > { %9627 = vmatmul.mubr.bf16.gmra.mrb[4].mxu0 %v726_v50  ;;  %v10967_v50 = vld [vmem:[%s11969_s0 + $0xa0] sm:$0xff]  }
 0x1ac   : > { %v727_v2 = vpack.c.bf16 %v716_v3, %v715_v43  ;;  %9643 = vmatpush3.bf16.msra.mxu0 %v10965_v20  ;;  %v12364_v20 = vsel %vm610_vm0, %v602_v63, %v603_v42  ;;  %v12368_v43 = vsel %vm610_vm0, %v603_v42, %v604_v54  ;;  %v605_v3 = vrot.slane %v12190_v26, 7 }
 0x1ad   : > { %v12349_v53 = vpop.permute.xlu1 %679  ;;  %v12351_v0 = vpop.permute.xlu0 %684  ;;  %9644 = vmatprep.subr.bf16.mxu0 %v10966_v55  ;;  %v16368_v42 = vrot.slane %v12165_v10, 7 }
 0x1ae   : > { %16364 = vst [vmem:[#allocation46_spill] sm:$0xff] %v12349_v53  ;;  %16365 = vst [vmem:[#allocation47_spill] sm:$0xff] %v12351_v0  ;;  %v717_v25 = vmul.f32 %v12349_v53, %v12341_v8  ;;  %v718_v41 = vmul.f32 %v12351_v0, %v12345_v7  ;;  %1990 = vperm.xlu1 %10940, %v12358_v44   ;;  %2026 = vperm.xlu0 %10939, %v12262_v22  }
 0x1af   : > { %9630 = vmatprep.mubr.bf16.mxu0 %v727_v2 }
 0x1b0   : > { %v728_v53 = vpack.c.bf16 %v718_v41, %v717_v25  ;;  %9645 = vmatpush3.bf16.msra.mxu0 %v10966_v55  ;;  %v12386_v55 = vsel %vm610_vm0, %v604_v54, %v605_v3  ;;  %v12392_v25 = vsel %vm610_vm0, %v605_v3, %v16368_v42  ;;  %v10969_v54 = vld [vmem:[%s11969_s0 + $0xb0] sm:$0xff]  }
 0x1b1   : > { %v12371_v0 = vpop.permute.xlu1 %689  ;;  %v12373_v45 = vpop.permute.xlu0 %694  ;;  %9646 = vmatprep.subr.bf16.mxu0 %v10967_v50 }
 0x1b2   : > { %16366 = vst [vmem:[#allocation48_spill] sm:$0xff] %v12371_v0  ;;  %16367 = vst [vmem:[#allocation49_spill] sm:$0xff] %v12373_v45  ;;  %v719_v2 = vmul.f32 %v12371_v0, %v12364_v20  ;;  %v720_v63 = vmul.f32 %v12373_v45, %v12368_v43  ;;  %1998 = vperm.xlu1 %10940, %v12380_v24   ;;  %2034 = vperm.xlu0 %10939, %v12284_v56   ;;  %v1142_v0 = vrot.slane %v12092_v34, 1  ;;  %v12407_v34 = vld [vmem:[#allocation5 + $0x40] sm:$0xff] }
 0x1b3   : > { %9631 = vmatmul.mubr.bf16.gmra.mrb[8].mxu0 %v728_v53  ;;  %v15886_v45 = vrot.slane %v12094_v35, 1 }
 0x1b4   : > { %v729_v41 = vpack.c.bf16 %v720_v63, %v719_v2  ;;  %9647 = vmatpush3.bf16.msra.mxu0 %v10967_v50  ;;  %v12419_v42 = vsel %vm1158_vm1, %v1142_v0, %v1143_v23 }
 0x1b5   : > { %v12397_v12 = vpop.permute.xlu1 %699  ;;  %v12399_v53 = vpop.permute.xlu0 %704  ;;  %9648 = vmatprep.subr.bf16.mxu0 %v10968_v32  ;;  %v12415_v2 = vsel %vm1158_vm1, %v15886_v45, %v1142_v0 }
 0x1b6   : > { %16369 = vst [vmem:[#allocation50_spill] sm:$0xff] %v12397_v12  ;;  %16370 = vst [vmem:[#allocation51_spill] sm:$0xff] %v12399_v53  ;;  %v721_v3 = vmul.f32 %v12397_v12, %v12386_v55  ;;  %v722_v50 = vmul.f32 %v12399_v53, %v12392_v25  ;;  %2006 = vperm.xlu1 %10940, %v12407_v34   ;;  %9634 = vmatprep.mubr.bf16.mxu0 %v729_v41  ;;  %v10970_v12 = vld [vmem:[%s11969_s0 + $0xb8] sm:$0xff]   ;;  %v12422_v41 = vld [vmem:[#allocation5 + $0x50] sm:$0xff] }
 0x1b7   : > { %10942 = vset.pattern.permute.xlu0 %v11577_v29  ;;  %16371 = vst [vmem:[#allocation52_spill] sm:$0xff] %v12415_v2 }
 0x1b8   : > { %2244 = vperm.xlu0 %10942, %v12314_v17   ;;  %v730_v63 = vpack.c.bf16 %v722_v50, %v721_v3  ;;  %9649 = vmatpush3.bf16.msra.mxu0 %v10968_v32  ;;  %v1144_v32 = vrot.slane %v12090_v33, 1  ;;  %v1145_v3 = vrot.slane %v12106_v40, 1 }
 0x1b9   : > { %9650 = vmatprep.subr.bf16.mxu0 %v10969_v54 }
 0x1ba   : > { %2014 = vperm.xlu1 %10940, %v12422_v41   ;;  %v12425_v53 = vpop.permute.xlu1 %1176  ;;  %v12427_v13 = vpop.permute.xlu0 %1180  ;;  %v12447_v33 = vsel %vm1158_vm1, %v1143_v23, %v1144_v32  ;;  %v12452_v40 = vsel %vm1158_vm1, %v1144_v32, %v1145_v3 }
 0x1bb   : > { %16372 = vst [vmem:[#allocation53_spill] sm:$0xff] %v12425_v53  ;;  %16373 = vst [vmem:[#allocation54_spill] sm:$0xff] %v12427_v13  ;;  %v1239_v45 = vmul.f32 %v12425_v53, %v12415_v2  ;;  %9635 = vmatmul.mubr.bf16.gmra.mrb[12].mxu0 %v730_v63  ;;  %v1240_v0 = vmul.f32 %v12427_v13, %v12419_v42  ;;  %v1146_v63 = vrot.slane %v12104_v39, 1 }
 0x1bc   : > { %2256 = vperm.xlu0 %10942, %v12358_v44   ;;  %9651 = vmatpush3.bf16.msra.mxu0 %v10969_v54  ;;  %v12459_v54 = vld [vmem:[#allocation5 + $0x70] sm:$0xff] }
 0x1bd   : > { %v1255_v50 = vpack.c.bf16 %v1240_v0, %v1239_v45  ;;  %9652 = vmatprep.subr.bf16.mxu0 %v10970_v12  ;;  %v1147_v45 = vrot.slane %v12121_v49, 1  ;;  %v12457_v39 = vsel %vm1158_vm1, %v1145_v3, %v1146_v63  ;;  %v1148_v0 = vrot.slane %v12119_v48, 1 }
 0x1be   : > { %2022 = vperm.xlu1 %10940, %v12437_v46   ;;  %v12440_v47 = vpop.permute.xlu1 %1184  ;;  %v12443_v53 = vpop.permute.xlu0 %1192  ;;  %v1149_v3 = vrot.slane %v12137_v58, 1 }
 0x1bf   : > { %16374 = vst [vmem:[#allocation55_spill] sm:$0xff] %v12440_v47  ;;  %16375 = vst [vmem:[#allocation56_spill] sm:$0xff] %v12443_v53  ;;  %9654 = vmatprep.mubr.bf16.mxu0 %v1255_v50  ;;  %v1241_v49 = vmul.f32 %v12440_v47, %v12447_v33  ;;  %v12474_v32 = vsel %vm1158_vm1, %v1146_v63, %v1147_v45  ;;  %v1243_v13 = vmul.f32 %v12443_v53, %v12457_v39 }
 0x1c0   : > { %2264 = vperm.xlu0 %10942, %v12380_v24   ;;  %9653 = vmatpush3.bf16.msra.mxu0 %v10970_v12  ;;  %v12482_v47 = vsel %vm1158_vm1, %v1147_v45, %v1148_v0  ;;  %v12495_v63 = vsel %vm1158_vm1, %v1148_v0, %v1149_v3  ;;  %v1153_v0 = vrot.slane %v12173_v15, 1  ;;  %v1154_v15 = vrot.slane %v12171_v14, 1 }
 0x1c1   : > { %9670 = vmatprep.subr.bf16.mxu0 %v10971_v30 }
 0x1c2   : > { %2030 = vperm.xlu1 %10940, %v12459_v54   ;;  %v12462_v23 = vpop.permute.xlu1 %1188  ;;  %v12465_v50 = vpop.permute.xlu0 %1200 }
 0x1c3   : > { %16376 = vst [vmem:[#allocation57_spill] sm:$0xff] %v12462_v23  ;;  %16377 = vst [vmem:[#allocation58_spill] sm:$0xff] %v12465_v50  ;;  %v1242_v12 = vmul.f32 %v12462_v23, %v12452_v40  ;;  %v1245_v57 = vmul.f32 %v12465_v50, %v12482_v47  ;;  %v10975_v50 = vld [vmem:[%s11969_s0 + $0xe0] sm:$0xff]  }
 0x1c4   : > { %2272 = vperm.xlu0 %10942, %v12407_v34  }
 0x1c5   : > { %v1256_v48 = vpack.c.bf16 %v1242_v12, %v1241_v49  ;;  %v10973_v49 = vld [vmem:[%s11969_s0 + $0xd0] sm:$0xff]   ;;  %v12503_v12 = vsel %vm1158_vm1, %v1149_v3, %v1150_v38 }
 0x1c6   : > { %10941 = vset.pattern.permute.xlu1 %v11577_v29  ;;  %v12484_v23 = vpop.permute.xlu1 %1196  ;;  %v12487_v2 = vpop.permute.xlu0 %1208  ;;  %v1151_v29 = vrot.slane %v12154_v5, 1 }
 0x1c7   : > { %16378 = vst [vmem:[#allocation59_spill] sm:$0xff] %v12484_v23  ;;  %16379 = vst [vmem:[#allocation60_spill] sm:$0xff] %v12487_v2  ;;  %v1244_v58 = vmul.f32 %v12484_v23, %v12474_v32  ;;  %2240 = vperm.xlu1 %10941, %v12217_v59   ;;  %9655 = vmatmul.mubr.bf16.vlgmr.msra.gmra.mrb[0].mxu0 %v1256_v48 }
 0x1c8   : > { %2280 = vperm.xlu0 %10942, %v12422_v41   ;;  %9671 = vmatpush3.bf16.msra.mxu0 %v10971_v30  ;;  %v1152_v30 = vrot.slane %v12152_v4, 1  ;;  %v1247_v4 = vmul.f32 %v12487_v2, %v12503_v12 }
 0x1c9   : > { %v1257_v45 = vpack.c.bf16 %v1244_v58, %v1243_v13  ;;  %9672 = vmatprep.subr.bf16.mxu0 %v10972_v37  ;;  %v12516_v13 = vsel %vm1158_vm1, %v1150_v38, %v1151_v29  ;;  %v10974_v58 = vld [vmem:[%s11969_s0 + $0xd8] sm:$0xff]  }
 0x1ca   : > { %v12505_v48 = vpop.permute.xlu1 %1204  ;;  %v12508_v23 = vpop.permute.xlu0 %1216 }
 0x1cb   : > { %16380 = vst [vmem:[#allocation61_spill] sm:$0xff] %v12505_v48  ;;  %16381 = vst [vmem:[#allocation62_spill] sm:$0xff] %v12508_v23  ;;  %v1246_v5 = vmul.f32 %v12505_v48, %v12495_v63  ;;  %2248 = vperm.xlu1 %10941, %v12335_v11   ;;  %9658 = vmatprep.mubr.bf16.mxu0 %v1257_v45  ;;  %v12524_v48 = vsel %vm1158_vm1, %v1151_v29, %v1152_v30 }
 0x1cc   : > { %2288 = vperm.xlu0 %10942, %v12437_v46   ;;  %9673 = vmatpush3.bf16.msra.mxu0 %v10972_v37  ;;  %v1249_v29 = vmul.f32 %v12508_v23, %v12524_v48 }
 0x1cd   : > { %v1258_v3 = vpack.c.bf16 %v1246_v5, %v1245_v57  ;;  %9674 = vmatprep.subr.bf16.mxu0 %v10973_v49  ;;  %v12537_v57 = vsel %vm1158_vm1, %v1152_v30, %v1153_v0  ;;  %v1156_v30 = vrot.slane %v12165_v10, 1 }
 0x1ce   : > { %v12526_v45 = vpop.permute.xlu1 %1212  ;;  %v12528_v37 = vpop.permute.xlu0 %1224 }
 0x1cf   : > { %16382 = vst [vmem:[#allocation63_spill] sm:$0xff] %v12526_v45  ;;  %16383 = vst [vmem:[#allocation64_spill] sm:$0xff] %v12528_v37  ;;  %v1248_v38 = vmul.f32 %v12526_v45, %v12516_v13  ;;  %2252 = vperm.xlu1 %10941, %v12246_v21   ;;  %9659 = vmatmul.mubr.bf16.gmra.mrb[4].mxu0 %v1258_v3  ;;  %v1155_v3 = vrot.slane %v12190_v26, 1 }
 0x1d0   : > { %2296 = vperm.xlu0 %10942, %v12459_v54   ;;  %9675 = vmatpush3.bf16.msra.mxu0 %v10973_v49  ;;  %v12552_v49 = vsel %vm1158_vm1, %v1153_v0, %v1154_v15 }
 0x1d1   : > { %v1259_v5 = vpack.c.bf16 %v1248_v38, %v1247_v4  ;;  %9676 = vmatprep.subr.bf16.mxu0 %v10974_v58  ;;  %v15921_v4 = vmov 7   ;;  %v12558_v38 = vsel %vm1158_vm1, %v1154_v15, %v1155_v3  ;;  %v1251_v0 = vmul.f32 %v12528_v37, %v12552_v49 }
 0x1d2   : > { %v12542_v45 = vpop.permute.xlu1 %1220  ;;  %v12545_v2 = vpop.permute.xlu0 %1232  ;;  %v12573_v15 = vsel %vm1158_vm1, %v1155_v3, %v1156_v30 }
 0x1d3   : > { %16384 = vst [vmem:[#allocation65_spill] sm:$0xff] %v12542_v45  ;;  %16385 = vst [vmem:[#allocation66_spill] sm:$0xff] %v12545_v2  ;;  %v1250_v14 = vmul.f32 %v12542_v45, %v12537_v57  ;;  %2260 = vperm.xlu1 %10941, %v12180_v18   ;;  %9662 = vmatprep.mubr.bf16.mxu0 %v1259_v5  ;;  %v10976_v5 = vld [vmem:[%s11969_s0 + $0xe8] sm:$0xff]   ;;  %v1253_v37 = vmul.f32 %v12545_v2, %v12573_v15 }
 0x1d4   : > { %10943 = vset.pattern.permute.xlu0 %v15921_v4  ;;  %9677 = vmatpush3.bf16.msra.mxu0 %v10974_v58 }
 0x1d5   : > { %2506 = vperm.xlu0 %10943, %v12217_v59   ;;  %v1260_v45 = vpack.c.bf16 %v1250_v14, %v1249_v29  ;;  %9678 = vmatprep.subr.bf16.mxu0 %v10975_v50  ;;  %v16388_v29 = vrot.slane %v12094_v35, 1 }
 0x1d6   : > { %v12562_v23 = vpop.permute.xlu1 %1228 }
 0x1d7   : > { %16386 = vst [vmem:[#allocation67_spill] sm:$0xff] %v12562_v23  ;;  %v1252_v10 = vmul.f32 %v12562_v23, %v12558_v38  ;;  %2268 = vperm.xlu1 %10941, %v12196_v28   ;;  %9663 = vmatmul.mubr.bf16.gmra.mrb[8].mxu0 %v1260_v45  ;;  %v12569_v58 = vpop.permute.xlu0 %1442  ;;  %v12579_v14 = vsel %vm1158_vm1, %v1156_v30, %v16388_v29  ;;  %v10977_v23 = vld [vmem:[%s11969_s0 + $0xf0] sm:$0xff]   ;;  %v10978_v30 = vld [vmem:[%s11969_s0 + $0xf8] sm:$0xff]  }
 0x1d8   : > { %16387 = vst [vmem:[#allocation68_spill] sm:$0xff] %v12569_v58  ;;  %9679 = vmatpush3.bf16.msra.mxu0 %v10975_v50 }
 0x1d9   : > { %2518 = vperm.xlu0 %10943, %v12246_v21   ;;  %v1261_v4 = vpack.c.bf16 %v1252_v10, %v1251_v0  ;;  %9680 = vmatprep.subr.bf16.mxu0 %v10976_v5  ;;  %v1505_v0 = vmul.f32 %v12569_v58, %v12224_v61 }
 0x1da   : > { %v12583_v45 = vpop.permute.xlu1 %1236 }
 0x1db   : > { %16389 = vst [vmem:[#allocation69_spill] sm:$0xff] %v12583_v45  ;;  %v1254_v50 = vmul.f32 %v12583_v45, %v12579_v14  ;;  %2276 = vperm.xlu1 %10941, %v12212_v51   ;;  %9666 = vmatprep.mubr.bf16.mxu0 %v1261_v4  ;;  %v12590_v35 = vpop.permute.xlu0 %1454 }
 0x1dc   : > { %16390 = vst [vmem:[#allocation70_spill] sm:$0xff] %v12590_v35  ;;  %9681 = vmatpush3.bf16.msra.mxu0 %v10976_v5 }
 0x1dd   : > { %2526 = vperm.xlu0 %10943, %v12180_v18   ;;  %v1262_v3 = vpack.c.bf16 %v1254_v50, %v1253_v37  ;;  %9682 = vmatprep.subr.bf16.mxu0 %v10977_v23  ;;  %v10979_v18 = vld [vmem:[%s11969_s0 + $0x100] sm:$0xff]   ;;  %v1508_v37 = vmul.f32 %v12590_v35, %v12276_v1 }
 0x1df   : > { %2284 = vperm.xlu1 %10941, %v12235_v9   ;;  %v12597_v10 = vpop.permute.xlu1 %1446  ;;  %9667 = vmatmul.mubr.bf16.gmra.mrb[12].mxu0 %v1262_v3  ;;  %v12599_v29 = vpop.permute.xlu0 %1462 }
 0x1e0   : > { %16391 = vst [vmem:[#allocation71_spill] sm:$0xff] %v12597_v10  ;;  %16392 = vst [vmem:[#allocation72_spill] sm:$0xff] %v12599_v29  ;;  %v1506_v4 = vmul.f32 %v12597_v10, %v12253_v27  ;;  %9683 = vmatpush3.bf16.msra.mxu0 %v10977_v23  ;;  %v1510_v23 = vmul.f32 %v12599_v29, %v12298_v6 }
 0x1e1   : > { %2534 = vperm.xlu0 %10943, %v12196_v28   ;;  %9684 = vmatprep.subr.bf16.mxu0 %v10978_v30 }
 0x1e2   : > { %v1521_v5 = vpack.c.bf16 %v1506_v4, %v1505_v0  ;;  %v10980_v0 = vld [vmem:[%s11969_s0 + $0x108] sm:$0xff]  }
 0x1e3   : > { %2292 = vperm.xlu1 %10941, %v12262_v22   ;;  %v12608_v50 = vpop.permute.xlu1 %1450  ;;  %v12610_v3 = vpop.permute.xlu0 %1470 }
 0x1e4   : > { %16393 = vst [vmem:[#allocation73_spill] sm:$0xff] %v12608_v50  ;;  %16394 = vst [vmem:[#allocation74_spill] sm:$0xff] %v12610_v3  ;;  %v1507_v58 = vmul.f32 %v12608_v50, %v12257_v19  ;;  %9686 = vmatprep.mubr.bf16.mxu0 %v1521_v5  ;;  %9685 = vmatpush3.bf16.msra.mxu0 %v10978_v30  ;;  %v1512_v30 = vmul.f32 %v12610_v3, %v12320_v52 }
 0x1e5   : > { %2542 = vperm.xlu0 %10943, %v12212_v51   ;;  %9702 = vmatprep.subr.bf16.mxu0 %v10979_v18 }
 0x1e6   : > { %v1522_v10 = vpack.c.bf16 %v1508_v37, %v1507_v58  ;;  %v10981_v58 = vld [vmem:[%s11969_s0 + $0x110] sm:$0xff]   ;;  %v16397_v37 = vmov 7  }
 0x1e7   : > { %2300 = vperm.xlu1 %10941, %v12284_v56   ;;  %v12619_v4 = vpop.permute.xlu1 %1458  ;;  %v12621_v45 = vpop.permute.xlu0 %1478 }
 0x1e8   : > { %16395 = vst [vmem:[#allocation75_spill] sm:$0xff] %v12619_v4  ;;  %16396 = vst [vmem:[#allocation76_spill] sm:$0xff] %v12621_v45  ;;  %v1509_v50 = vmul.f32 %v12619_v4, %v12280_v16  ;;  %9687 = vmatmul.mubr.bf16.vlgmr.msra.gmra.mrb[0].mxu0 %v1522_v10  ;;  %v1514_v10 = vmul.f32 %v12621_v45, %v12341_v8 }
 0x1e9   : > { %2550 = vperm.xlu0 %10943, %v12235_v9   ;;  %9703 = vmatpush3.bf16.msra.mxu0 %v10979_v18 }
 0x1ea   : > { %v1523_v5 = vpack.c.bf16 %v1510_v23, %v1509_v50  ;;  %9704 = vmatprep.subr.bf16.mxu0 %v10980_v0  ;;  %v10982_v50 = vld [vmem:[%s11969_s0 + $0x118] sm:$0xff]  }
 0x1eb   : > { %10944 = vset.pattern.permute.xlu1 %v16397_v37  ;;  %v12630_v29 = vpop.permute.xlu1 %1466  ;;  %v12632_v2 = vpop.permute.xlu0 %1486 }
 0x1ec   : > { %16398 = vst [vmem:[#allocation77_spill] sm:$0xff] %v12630_v29  ;;  %16399 = vst [vmem:[#allocation78_spill] sm:$0xff] %v12632_v2  ;;  %v1511_v4 = vmul.f32 %v12630_v29, %v12302_v36  ;;  %2510 = vperm.xlu1 %10944, %v12314_v17   ;;  %9690 = vmatprep.mubr.bf16.mxu0 %v1523_v5  ;;  %v10983_v5 = vld [vmem:[%s11969_s0 + $0x120] sm:$0xff]  }
 0x1ed   : > { %2558 = vperm.xlu0 %10943, %v12262_v22   ;;  %9705 = vmatpush3.bf16.msra.mxu0 %v10980_v0 }
 0x1ee   : > { %v1524_v18 = vpack.c.bf16 %v1512_v30, %v1511_v4  ;;  %9706 = vmatprep.subr.bf16.mxu0 %v10981_v58  ;;  %v1516_v30 = vmul.f32 %v12632_v2, %v12364_v20 }
 0x1ef   : > { %v12641_v23 = vpop.permute.xlu1 %1474  ;;  %v12643_v37 = vpop.permute.xlu0 %1494 }
 0x1f0   : > { %16400 = vst [vmem:[#allocation79_spill] sm:$0xff] %v12641_v23  ;;  %16401 = vst [vmem:[#allocation80_spill] sm:$0xff] %v12643_v37  ;;  %v1513_v3 = vmul.f32 %v12641_v23, %v12324_v31  ;;  %2514 = vperm.xlu1 %10944, %v12335_v11   ;;  %9691 = vmatmul.mubr.bf16.gmra.mrb[4].mxu0 %v1524_v18  ;;  %v11579_v18 = vmov 8   ;;  %v1518_v2 = vmul.f32 %v12643_v37, %v12386_v55 }
 0x1f1   : > { %2566 = vperm.xlu0 %10943, %v12284_v56   ;;  %9707 = vmatpush3.bf16.msra.mxu0 %v10981_v58  ;;  %v10984_v58 = vld [vmem:[%s11969_s0 + $0x128] sm:$0xff]  }
 0x1f2   : > { %v1525_v0 = vpack.c.bf16 %v1514_v10, %v1513_v3  ;;  %9708 = vmatprep.subr.bf16.mxu0 %v10982_v50 }
 0x1f3   : > { %v12650_v4 = vpop.permute.xlu1 %1482  ;;  %v12656_v45 = vpop.permute.xlu0 %1502 }
 0x1f4   : > { %16402 = vst [vmem:[#allocation81_spill] sm:$0xff] %v12650_v4  ;;  %v1515_v29 = vmul.f32 %v12650_v4, %v12345_v7  ;;  %16403 = vst [vmem:[#allocation82_spill] sm:$0xff] %v12656_v45  ;;  %2522 = vperm.xlu1 %10944, %v12358_v44   ;;  %9694 = vmatprep.mubr.bf16.mxu0 %v1525_v0 }
 0x1f5   : > { %9709 = vmatpush3.bf16.msra.mxu0 %v10982_v50  ;;  %10946 = vset.pattern.permute.xlu0 %v11579_v18 }
 0x1f6   : > { %v1526_v3 = vpack.c.bf16 %v1516_v30, %v1515_v29  ;;  %2776 = vperm.xlu0 %10946, %v12314_v17   ;;  %9710 = vmatprep.subr.bf16.mxu0 %v10983_v5  ;;  %v10985_v17 = vld [vmem:[%s11969_s0 + $0x130] sm:$0xff]   ;;  %v1520_v30 = vmul.f32 %v12656_v45, %v12230_v62 }
 0x1f7   : > { %v12661_v10 = vpop.permute.xlu1 %1490 }
 0x1f8   : > { %16404 = vst [vmem:[#allocation83_spill] sm:$0xff] %v12661_v10  ;;  %v1517_v4 = vmul.f32 %v12661_v10, %v12368_v43  ;;  %2530 = vperm.xlu1 %10944, %v12380_v24   ;;  %9695 = vmatmul.mubr.bf16.gmra.mrb[8].mxu0 %v1526_v3  ;;  %v12668_v50 = vpop.permute.xlu0 %1712  ;;  %v10988_v10 = vld [vmem:[%s11969_s0 + $0x148] sm:$0xff]  }
 0x1f9   : > { %16405 = vst [vmem:[#allocation84_spill] sm:$0xff] %v12668_v50  ;;  %9711 = vmatpush3.bf16.msra.mxu0 %v10983_v5  ;;  %v12683_v5 = vld [vmem:[#allocation3 + $0x8] sm:$0xff] }
 0x1fa   : > { %v1527_v29 = vpack.c.bf16 %v1518_v2, %v1517_v4  ;;  %2788 = vperm.xlu0 %10946, %v12358_v44   ;;  %9712 = vmatprep.subr.bf16.mxu0 %v10984_v58  ;;  %v10986_v44 = vld [vmem:[%s11969_s0 + $0x138] sm:$0xff]   ;;  %v1772_v4 = vmul.f32 %v12683_v5, %v12668_v50 }
 0x1fb   : > { %v12672_v0 = vpop.permute.xlu1 %1498 }
 0x1fc   : > { %16406 = vst [vmem:[#allocation85_spill] sm:$0xff] %v12672_v0  ;;  %v1519_v37 = vmul.f32 %v12672_v0, %v12392_v25  ;;  %2538 = vperm.xlu1 %10944, %v12407_v34   ;;  %9698 = vmatprep.mubr.bf16.mxu0 %v1527_v29  ;;  %v12679_v3 = vpop.permute.xlu0 %1724  ;;  %v12692_v0 = vld [vmem:[#allocation3] sm:$0xff] }
 0x1fd   : > { %16407 = vst [vmem:[#allocation86_spill] sm:$0xff] %v12679_v3  ;;  %9713 = vmatpush3.bf16.msra.mxu0 %v10984_v58  ;;  %16410 = vst [vmem:[#allocation89_spill] sm:$0xff] %v12692_v0 }
 0x1fe   : > { %v1528_v2 = vpack.c.bf16 %v1520_v30, %v1519_v37  ;;  %2796 = vperm.xlu0 %10946, %v12380_v24   ;;  %9714 = vmatprep.subr.bf16.mxu0 %v10985_v17  ;;  %v10987_v24 = vld [vmem:[%s11969_s0 + $0x140] sm:$0xff]  }
 0x200   : > { %2546 = vperm.xlu1 %10944, %v12422_v41   ;;  %v12688_v45 = vpop.permute.xlu1 %1708  ;;  %9699 = vmatmul.mubr.bf16.gmra.mrb[12].mxu0 %v1528_v2  ;;  %v12690_v29 = vpop.permute.xlu0 %1732  ;;  %v12709_v2 = vld [vmem:[#allocation3 + $0x10] sm:$0xff] }
 0x201   : > { %16408 = vst [vmem:[#allocation87_spill] sm:$0xff] %v12688_v45  ;;  %16409 = vst [vmem:[#allocation88_spill] sm:$0xff] %v12690_v29  ;;  %v1771_v37 = vmul.f32 %v12692_v0, %v12688_v45  ;;  %9715 = vmatpush3.bf16.msra.mxu0 %v10985_v17  ;;  %v12777_v0 = vld [vmem:[#allocation3 + $0x60] sm:$0xff] }
 0x202   : > { %2804 = vperm.xlu0 %10946, %v12407_v34   ;;  %9716 = vmatprep.subr.bf16.mxu0 %v10986_v44 }
 0x203   : > { %v1787_v58 = vpack.c.bf16 %v1772_v4, %v1771_v37  ;;  %v12713_v37 = vld [vmem:[#allocation3 + $0x18] sm:$0xff] }
 0x204   : > { %2554 = vperm.xlu1 %10944, %v12437_v46   ;;  %v12699_v30 = vpop.permute.xlu1 %1716  ;;  %v12701_v50 = vpop.permute.xlu0 %1740 }
 0x205   : > { %16411 = vst [vmem:[#allocation90_spill] sm:$0xff] %v12699_v30  ;;  %16412 = vst [vmem:[#allocation91_spill] sm:$0xff] %v12701_v50  ;;  %9718 = vmatprep.mubr.bf16.mxu0 %v1787_v58  ;;  %9717 = vmatpush3.bf16.msra.mxu0 %v10986_v44  ;;  %v1773_v4 = vmul.f32 %v12709_v2, %v12699_v30  ;;  %v12727_v30 = vld [vmem:[#allocation3 + $0x28] sm:$0xff] }
 0x206   : > { %2812 = vperm.xlu0 %10946, %v12422_v41   ;;  %9734 = vmatprep.subr.bf16.mxu0 %v10987_v24  ;;  %v12718_v41 = vld [vmem:[#allocation3 + $0x20] sm:$0xff] }
 0x207   : > { %v1775_v44 = vmul.f32 %v12718_v41, %v12679_v3 }
 0x208   : > { %2562 = vperm.xlu1 %10944, %v12459_v54   ;;  %v12705_v17 = vpop.permute.xlu1 %1720  ;;  %v12707_v34 = vpop.permute.xlu0 %1748 }
 0x209   : > { %16413 = vst [vmem:[#allocation92_spill] sm:$0xff] %v12705_v17  ;;  %16414 = vst [vmem:[#allocation93_spill] sm:$0xff] %v12707_v34  ;;  %v1774_v58 = vmul.f32 %v12713_v37, %v12705_v17 }
 0x20a   : > { %2820 = vperm.xlu0 %10946, %v12437_v46   ;;  %v12733_v46 = vld [vmem:[#allocation3 + $0x30] sm:$0xff] }
 0x20b   : > { %v1788_v45 = vpack.c.bf16 %v1774_v58, %v1773_v4  ;;  %v10989_v58 = vld [vmem:[%s11969_s0 + $0x150] sm:$0xff]  }
 0x20c   : > { %10945 = vset.pattern.permute.xlu1 %v11579_v18  ;;  %v12723_v23 = vpop.permute.xlu1 %1728  ;;  %v12725_v35 = vpop.permute.xlu0 %1756  ;;  %v1777_v18 = vmul.f32 %v12733_v46, %v12690_v29  ;;  %v12754_v29 = vld [vmem:[#allocation3 + $0x48] sm:$0xff] }
 0x20d   : > { %16415 = vst [vmem:[#allocation94_spill] sm:$0xff] %v12723_v23  ;;  %16416 = vst [vmem:[#allocation95_spill] sm:$0xff] %v12725_v35  ;;  %v1776_v17 = vmul.f32 %v12727_v30, %v12723_v23  ;;  %2772 = vperm.xlu1 %10945, %v12217_v59   ;;  %9719 = vmatmul.mubr.bf16.vlgmr.msra.gmra.mrb[0].mxu0 %v1788_v45  ;;  %v12742_v23 = vld [vmem:[#allocation3 + $0x38] sm:$0xff] }
 0x20e   : > { %9735 = vmatpush3.bf16.msra.mxu0 %v10987_v24  ;;  %2828 = vperm.xlu0 %10946, %v12459_v54   ;;  %v12747_v54 = vld [vmem:[#allocation3 + $0x40] sm:$0xff] }
 0x20f   : > { %v1789_v4 = vpack.c.bf16 %v1776_v17, %v1775_v44  ;;  %9736 = vmatprep.subr.bf16.mxu0 %v10988_v10  ;;  %v1779_v45 = vmul.f32 %v12747_v54, %v12701_v50  ;;  %v10990_v17 = vld [vmem:[%s11969_s0 + $0x158] sm:$0xff]  }
 0x210   : > { %v12738_v3 = vpop.permute.xlu1 %1736  ;;  %v12740_v53 = vpop.permute.xlu0 %1764 }
 0x211   : > { %16417 = vst [vmem:[#allocation96_spill] sm:$0xff] %v12738_v3  ;;  %16418 = vst [vmem:[#allocation97_spill] sm:$0xff] %v12740_v53  ;;  %v1778_v59 = vmul.f32 %v12742_v23, %v12738_v3  ;;  %2780 = vperm.xlu1 %10945, %v12335_v11   ;;  %9722 = vmatprep.mubr.bf16.mxu0 %v1789_v4  ;;  %v10991_v4 = vld [vmem:[%s11969_s0 + $0x160] sm:$0xff]  }
 0x212   : > { %9737 = vmatpush3.bf16.msra.mxu0 %v10988_v10 }
 0x213   : > { %v1790_v24 = vpack.c.bf16 %v1778_v59, %v1777_v18  ;;  %9738 = vmatprep.subr.bf16.mxu0 %v10989_v58  ;;  %v12764_v59 = vld [vmem:[#allocation3 + $0x50] sm:$0xff] }
 0x214   : > { %v12752_v44 = vpop.permute.xlu1 %1744  ;;  %v1781_v50 = vmul.f32 %v12764_v59, %v12707_v34  ;;  %v1783_v34 = vmul.f32 %v12777_v0, %v12725_v35 }
 0x215   : > { %16419 = vst [vmem:[#allocation98_spill] sm:$0xff] %v12752_v44  ;;  %v1780_v3 = vmul.f32 %v12754_v29, %v12752_v44  ;;  %2784 = vperm.xlu1 %10945, %v12246_v21   ;;  %9723 = vmatmul.mubr.bf16.gmra.mrb[4].mxu0 %v1790_v24  ;;  %v12759_v11 = vpop.permute.xlu0 %1974  ;;  %v11271_v24 = vld [vmem:[#allocation5 + $0x28] sm:$0xff] }
 0x216   : > { %16420 = vst [vmem:[#allocation99_spill] sm:$0xff] %v12759_v11  ;;  %9739 = vmatpush3.bf16.msra.mxu0 %v10989_v58 }
 0x217   : > { %v1791_v10 = vpack.c.bf16 %v1780_v3, %v1779_v45  ;;  %9740 = vmatprep.subr.bf16.mxu0 %v10990_v17  ;;  %v10992_v45 = vld [vmem:[%s11969_s0 + $0x168] sm:$0xff]  }
 0x218   : > { %v12762_v18 = vpop.permute.xlu1 %1752 }
 0x219   : > { %16421 = vst [vmem:[#allocation100_spill] sm:$0xff] %v12762_v18  ;;  %v1782_v21 = vmul.f32 %v12768_v60, %v12762_v18  ;;  %2792 = vperm.xlu1 %10945, %v11271_v24   ;;  %9726 = vmatprep.mubr.bf16.mxu0 %v1791_v10  ;;  %v12772_v58 = vpop.permute.xlu0 %1986  ;;  %v12789_v24 = vld [vmem:[#allocation3 + $0x70] sm:$0xff]  ;;  %v12793_v60 = vld [vmem:[#allocation3 + $0x78] sm:$0xff] }
 0x21a   : > { %16423 = vst [vmem:[#allocation102_spill] sm:$0xff] %v12772_v58  ;;  %9741 = vmatpush3.bf16.msra.mxu0 %v10990_v17  ;;  %v10993_v17 = vld [vmem:[%s11969_s0 + $0x170] sm:$0xff]   ;;  %v1785_v35 = vmul.f32 %v12789_v24, %v12740_v53 }
 0x21b   : > { %v1792_v3 = vpack.c.bf16 %v1782_v21, %v1781_v50  ;;  %9742 = vmatprep.subr.bf16.mxu0 %v10991_v4 }
 0x21c   : > { %v12775_v44 = vpop.permute.xlu1 %1760 }
 0x21d   : > { %16424 = vst [vmem:[#allocation103_spill] sm:$0xff] %v12775_v44  ;;  %v1784_v18 = vmul.f32 %v12775_v44, %v12190_v26  ;;  %2800 = vperm.xlu1 %10945, %v12196_v28   ;;  %9727 = vmatmul.mubr.bf16.gmra.mrb[8].mxu0 %v1792_v3  ;;  %v12784_v10 = vpop.permute.xlu0 %1994 }
 0x21e   : > { %16425 = vst [vmem:[#allocation104_spill] sm:$0xff] %v12784_v10  ;;  %9743 = vmatpush3.bf16.msra.mxu0 %v10991_v4  ;;  %v10994_v4 = vld [vmem:[%s11969_s0 + $0x178] sm:$0xff]  }
 0x21f   : > { %v1793_v50 = vpack.c.bf16 %v1784_v18, %v1783_v34  ;;  %9744 = vmatprep.subr.bf16.mxu0 %v10992_v45  ;;  %v2037_v18 = vmul.f32 %v12759_v11, %v12419_v42  ;;  %v10996_v11 = vld [vmem:[%s11969_s0 + $0x188] sm:$0xff]  }
 0x220   : > { %v12787_v21 = vpop.permute.xlu1 %1768 }
 0x221   : > { %16426 = vst [vmem:[#allocation105_spill] sm:$0xff] %v12787_v21  ;;  %v1786_v26 = vmul.f32 %v12793_v60, %v12787_v21  ;;  %2808 = vperm.xlu1 %10945, %v12212_v51   ;;  %9730 = vmatprep.mubr.bf16.mxu0 %v1793_v50  ;;  %v12798_v28 = vpop.permute.xlu0 %2002 }
 0x222   : > { %16427 = vst [vmem:[#allocation106_spill] sm:$0xff] %v12798_v28  ;;  %9745 = vmatpush3.bf16.msra.mxu0 %v10992_v45  ;;  %v10995_v45 = vld [vmem:[%s11969_s0 + $0x180] sm:$0xff]  }
 0x223   : > { %v1794_v34 = vpack.c.bf16 %v1786_v26, %v1785_v35  ;;  %9746 = vmatprep.subr.bf16.mxu0 %v10993_v17  ;;  %v2040_v35 = vmul.f32 %v12772_v58, %v12457_v39 }
 0x225   : > { %2816 = vperm.xlu1 %10945, %v12235_v9   ;;  %v12804_v3 = vpop.permute.xlu1 %1978  ;;  %9731 = vmatmul.mubr.bf16.gmra.mrb[12].mxu0 %v1794_v34  ;;  %v12806_v53 = vpop.permute.xlu0 %2010 }
 0x226   : > { %16428 = vst [vmem:[#allocation107_spill] sm:$0xff] %v12804_v3  ;;  %16429 = vst [vmem:[#allocation108_spill] sm:$0xff] %v12806_v53  ;;  %v2038_v51 = vmul.f32 %v12804_v3, %v12447_v33  ;;  %9747 = vmatpush3.bf16.msra.mxu0 %v10993_v17  ;;  %v2042_v17 = vmul.f32 %v12784_v10, %v12482_v47  ;;  %v10997_v10 = vld [vmem:[%s11969_s0 + $0x190] sm:$0xff]  }
 0x227   : > { %9748 = vmatprep.subr.bf16.mxu0 %v10994_v4 }
 0x228   : > { %v2053_v50 = vpack.c.bf16 %v2038_v51, %v2037_v18 }
 0x229   : > { %2824 = vperm.xlu1 %10945, %v12262_v22   ;;  %v12814_v26 = vpop.permute.xlu1 %1982  ;;  %v12816_v9 = vpop.permute.xlu0 %2018 }
 0x22a   : > { %16430 = vst [vmem:[#allocation109_spill] sm:$0xff] %v12814_v26  ;;  %16431 = vst [vmem:[#allocation110_spill] sm:$0xff] %v12816_v9  ;;  %v2039_v34 = vmul.f32 %v12814_v26, %v12452_v40  ;;  %9750 = vmatprep.mubr.bf16.mxu0 %v2053_v50  ;;  %9749 = vmatpush3.bf16.msra.mxu0 %v10994_v4  ;;  %v2044_v4 = vmul.f32 %v12798_v28, %v12503_v12 }
 0x22b   : > { %9766 = vmatprep.subr.bf16.mxu0 %v10995_v45 }
 0x22c   : > { %v2054_v3 = vpack.c.bf16 %v2040_v35, %v2039_v34 }
 0x22d   : > { %2832 = vperm.xlu1 %10945, %v12284_v56   ;;  %v12824_v18 = vpop.permute.xlu1 %1990  ;;  %v12826_v22 = vpop.permute.xlu0 %2026 }
 0x22e   : > { %16432 = vst [vmem:[#allocation111_spill] sm:$0xff] %v12824_v18  ;;  %16433 = vst [vmem:[#allocation112_spill] sm:$0xff] %v12826_v22  ;;  %v2041_v51 = vmul.f32 %v12824_v18, %v12474_v32  ;;  %9751 = vmatmul.mubr.bf16.vlgmr.msra.gmra.mrb[0].mxu0 %v2054_v3  ;;  %v10998_v3 = vld [vmem:[%s11969_s0 + $0x198] sm:$0xff]  }
 0x22f   : > { %9767 = vmatpush3.bf16.msra.mxu0 %v10995_v45 }
 0x230   : > { %v2055_v50 = vpack.c.bf16 %v2042_v17, %v2041_v51  ;;  %9768 = vmatprep.subr.bf16.mxu0 %v10996_v11  ;;  %v2046_v17 = vmul.f32 %v12806_v53, %v12524_v48 }
 0x231   : > { %v12833_v35 = vpop.permute.xlu1 %1998  ;;  %v12837_v34 = vpop.permute.xlu0 %2034 }
 0x232   : > { %16434 = vst [vmem:[#allocation113_spill] sm:$0xff] %v12833_v35  ;;  %v2043_v56 = vmul.f32 %v12833_v35, %v12495_v63  ;;  %9754 = vmatprep.mubr.bf16.mxu0 %v2055_v50  ;;  %16435 = vst [vmem:[#allocation114_spill] sm:$0xff] %v12837_v34  ;;  %v10999_v35 = vld [vmem:[%s11969_s0 + $0x1a0] sm:$0xff]  }
 0x233   : > { %9769 = vmatpush3.bf16.msra.mxu0 %v10996_v11 }
 0x234   : > { %v2056_v26 = vpack.c.bf16 %v2044_v4, %v2043_v56  ;;  %9770 = vmatprep.subr.bf16.mxu0 %v10997_v10  ;;  %v2048_v4 = vmul.f32 %v12816_v9, %v12552_v49 }
 0x235   : > { %v12840_v45 = vpop.permute.xlu1 %2006 }
 0x236   : > { %16436 = vst [vmem:[#allocation115_spill] sm:$0xff] %v12840_v45  ;;  %v2045_v51 = vmul.f32 %v12840_v45, %v12516_v13  ;;  %9755 = vmatmul.mubr.bf16.gmra.mrb[4].mxu0 %v2056_v26  ;;  %v11000_v45 = vld [vmem:[%s11969_s0 + $0x1a8] sm:$0xff]  }
 0x237   : > { %v12846_v28 = vpop.permute.xlu0 %2244  ;;  %9771 = vmatpush3.bf16.msra.mxu0 %v10997_v10 }
 0x238   : > { %16437 = vst [vmem:[#allocation116_spill] sm:$0xff] %v12846_v28  ;;  %v2057_v50 = vpack.c.bf16 %v2046_v17, %v2045_v51  ;;  %9772 = vmatprep.subr.bf16.mxu0 %v10998_v3  ;;  %v2050_v17 = vmul.f32 %v12826_v22, %v12573_v15 }
 0x239   : > { %v12849_v11 = vpop.permute.xlu1 %2014 }
 0x23a   : > { %16438 = vst [vmem:[#allocation117_spill] sm:$0xff] %v12849_v11  ;;  %v2047_v56 = vmul.f32 %v12849_v11, %v12537_v57  ;;  %9758 = vmatprep.mubr.bf16.mxu0 %v2057_v50  ;;  %v11001_v11 = vld [vmem:[%s11969_s0 + $0x1b0] sm:$0xff]  }
 0x23b   : > { %v12855_v53 = vpop.permute.xlu0 %2256  ;;  %9773 = vmatpush3.bf16.msra.mxu0 %v10998_v3 }
 0x23c   : > { %16439 = vst [vmem:[#allocation118_spill] sm:$0xff] %v12855_v53  ;;  %v2058_v26 = vpack.c.bf16 %v2048_v4, %v2047_v56  ;;  %9774 = vmatprep.subr.bf16.mxu0 %v10999_v35  ;;  %v16443_v4 = vld [vmem:[#allocation52_spill] sm:$0xff] }
 0x23d   : > { %v12858_v10 = vpop.permute.xlu1 %2022  ;;  %v2052_v56 = vmul.f32 %v12837_v34, %v16443_v4 }
 0x23e   : > { %16440 = vst [vmem:[#allocation119_spill] sm:$0xff] %v12858_v10  ;;  %v2049_v51 = vmul.f32 %v12858_v10, %v12558_v38  ;;  %9759 = vmatmul.mubr.bf16.gmra.mrb[8].mxu0 %v2058_v26  ;;  %v11002_v10 = vld [vmem:[%s11969_s0 + $0x1b8] sm:$0xff]  }
 0x23f   : > { %v12864_v9 = vpop.permute.xlu0 %2264  ;;  %9775 = vmatpush3.bf16.msra.mxu0 %v10999_v35  ;;  %v2304_v35 = vmul.f32 %v12846_v28, %v12257_v19 }
 0x240   : > { %16441 = vst [vmem:[#allocation120_spill] sm:$0xff] %v12864_v9  ;;  %v2059_v50 = vpack.c.bf16 %v2050_v17, %v2049_v51  ;;  %9776 = vmatprep.subr.bf16.mxu0 %v11000_v45 }
 0x241   : > { %v12867_v3 = vpop.permute.xlu1 %2030 }
 0x242   : > { %16442 = vst [vmem:[#allocation121_spill] sm:$0xff] %v12867_v3  ;;  %v2051_v22 = vmul.f32 %v12867_v3, %v12579_v14  ;;  %9762 = vmatprep.mubr.bf16.mxu0 %v2059_v50  ;;  %v11003_v50 = vld [vmem:[%s11969_s0 + $0x1c0] sm:$0xff]  }
 0x243   : > { %v12873_v18 = vpop.permute.xlu0 %2272  ;;  %9777 = vmatpush3.bf16.msra.mxu0 %v11000_v45 }
 0x244   : > { %16444 = vst [vmem:[#allocation52_spill] sm:$0xff] %v12873_v18  ;;  %v2060_v26 = vpack.c.bf16 %v2052_v56, %v2051_v22  ;;  %9778 = vmatprep.subr.bf16.mxu0 %v11001_v11 }
 0x246   : > { %v12878_v17 = vpop.permute.xlu1 %2240  ;;  %9763 = vmatmul.mubr.bf16.gmra.mrb[12].mxu0 %v2060_v26 }
 0x247   : > { %16445 = vst [vmem:[#allocation122_spill] sm:$0xff] %v12878_v17  ;;  %v2303_v51 = vmul.f32 %v12878_v17, %v12253_v27  ;;  %v12882_v34 = vpop.permute.xlu0 %2280  ;;  %9779 = vmatpush3.bf16.msra.mxu0 %v11001_v11  ;;  %v2307_v11 = vmul.f32 %v12855_v53, %v12298_v6 }
 0x248   : > { %16446 = vst [vmem:[#allocation123_spill] sm:$0xff] %v12882_v34  ;;  %9780 = vmatprep.subr.bf16.mxu0 %v11002_v10 }
 0x249   : > { %v2319_v3 = vpack.c.bf16 %v2304_v35, %v2303_v51  ;;  %v11004_v35 = vld [vmem:[%s11969_s0 + $0x1c8] sm:$0xff]  }
 0x24a   : > { %v12885_v45 = vpop.permute.xlu1 %2248 }
 0x24b   : > { %16447 = vst [vmem:[#allocation124_spill] sm:$0xff] %v12885_v45  ;;  %9782 = vmatprep.mubr.bf16.mxu0 %v2319_v3  ;;  %9781 = vmatpush3.bf16.msra.mxu0 %v11002_v10  ;;  %v12887_v22 = vpop.permute.xlu0 %2288  ;;  %v2305_v27 = vmul.f32 %v12885_v45, %v12276_v1  ;;  %v11005_v1 = vld [vmem:[%s11969_s0 + $0x1d0] sm:$0xff]  }
 0x24c   : > { %16448 = vst [vmem:[#allocation125_spill] sm:$0xff] %v12887_v22  ;;  %9798 = vmatprep.subr.bf16.mxu0 %v11003_v50 }
 0x24e   : > { %v12889_v19 = vpop.permute.xlu1 %2252 }
 0x24f   : > { %16449 = vst [vmem:[#allocation126_spill] sm:$0xff] %v12889_v19  ;;  %v2306_v56 = vmul.f32 %v12889_v19, %v12280_v16  ;;  %v12898_v51 = vpop.permute.xlu0 %2296  ;;  %v2309_v16 = vmul.f32 %v12864_v9, %v12320_v52 }
 0x250   : > { %16450 = vst [vmem:[#allocation127_spill] sm:$0xff] %v12898_v51 }
 0x251   : > { %v2320_v26 = vpack.c.bf16 %v2306_v56, %v2305_v27 }
 0x252   : > { %v12900_v10 = vpop.permute.xlu1 %2260 }
 0x253   : > { %16451 = vst [vmem:[#allocation128_spill] sm:$0xff] %v12900_v10  ;;  %v2308_v3 = vmul.f32 %v12900_v10, %v12302_v36  ;;  %9783 = vmatmul.mubr.bf16.vlgmr.msra.gmra.mrb[0].mxu0 %v2320_v26  ;;  %v11006_v36 = vld [vmem:[%s11969_s0 + $0x1d8] sm:$0xff]  }
 0x254   : > { %9799 = vmatpush3.bf16.msra.mxu0 %v11003_v50  ;;  %v12911_v27 = vpop.permute.xlu0 %2506 }
 0x255   : > { %v2321_v28 = vpack.c.bf16 %v2308_v3, %v2307_v11  ;;  %9800 = vmatprep.subr.bf16.mxu0 %v11004_v35  ;;  %16453 = vst [vmem:[#allocation130_spill] sm:$0xff] %v12911_v27  ;;  %v2311_v11 = vmul.f32 %v12873_v18, %v12341_v8  ;;  %v2313_v3 = vmul.f32 %v12882_v34, %v12364_v20  ;;  %v16530_v34 = vld [vmem:[#allocation43_spill] sm:$0xff] }
 0x256   : > { %v12905_v17 = vpop.permute.xlu1 %2268 }
 0x257   : > { %16452 = vst [vmem:[#allocation129_spill] sm:$0xff] %v12905_v17  ;;  %v2310_v6 = vmul.f32 %v12905_v17, %v12324_v31  ;;  %9786 = vmatprep.mubr.bf16.mxu0 %v2321_v28  ;;  %v11007_v31 = vld [vmem:[%s11969_s0 + $0x1e0] sm:$0xff]   ;;  %v16537_v17 = vld [vmem:[#allocation26_spill] sm:$0xff] }
 0x258   : > { %9801 = vmatpush3.bf16.msra.mxu0 %v11004_v35  ;;  %v12921_v28 = vpop.permute.xlu0 %2518 }
 0x259   : > { %v2322_v56 = vpack.c.bf16 %v2310_v6, %v2309_v16  ;;  %9802 = vmatprep.subr.bf16.mxu0 %v11005_v1  ;;  %16455 = vst [vmem:[#allocation132_spill] sm:$0xff] %v12921_v28  ;;  %v2315_v6 = vmul.f32 %v12887_v22, %v12386_v55  ;;  %v16526_v22 = vld [vmem:[#allocation41_spill] sm:$0xff] }
 0x25a   : > { %v12914_v50 = vpop.permute.xlu1 %2276 }
 0x25b   : > { %16454 = vst [vmem:[#allocation131_spill] sm:$0xff] %v12914_v50  ;;  %v2312_v26 = vmul.f32 %v12914_v50, %v12345_v7  ;;  %9787 = vmatmul.mubr.bf16.gmra.mrb[4].mxu0 %v2322_v56  ;;  %v11008_v7 = vld [vmem:[%s11969_s0 + $0x1e8] sm:$0xff]  }
 0x25c   : > { %9803 = vmatpush3.bf16.msra.mxu0 %v11005_v1 }
 0x25d   : > { %v2323_v52 = vpack.c.bf16 %v2312_v26, %v2311_v11  ;;  %9804 = vmatprep.subr.bf16.mxu0 %v11006_v36  ;;  %v12936_v11 = vpop.permute.xlu0 %2526  ;;  %v2317_v26 = vmul.f32 %v12898_v51, %v12230_v62  ;;  %v16524_v51 = vld [vmem:[#allocation37_spill] sm:$0xff] }
 0x25e   : > { %v12923_v35 = vpop.permute.xlu1 %2284  ;;  %16458 = vst [vmem:[#allocation135_spill] sm:$0xff] %v12936_v11 }
 0x25f   : > { %16456 = vst [vmem:[#allocation133_spill] sm:$0xff] %v12923_v35  ;;  %v2314_v16 = vmul.f32 %v12923_v35, %v12368_v43  ;;  %9790 = vmatprep.mubr.bf16.mxu0 %v2323_v52  ;;  %v11009_v43 = vld [vmem:[%s11969_s0 + $0x1f0] sm:$0xff]  }
 0x260   : > { %9805 = vmatpush3.bf16.msra.mxu0 %v11006_v36 }
 0x261   : > { %v2324_v8 = vpack.c.bf16 %v2314_v16, %v2313_v3  ;;  %9806 = vmatprep.subr.bf16.mxu0 %v11007_v31  ;;  %v12948_v3 = vpop.permute.xlu0 %2534 }
 0x262   : > { %v12930_v1 = vpop.permute.xlu1 %2292  ;;  %16460 = vst [vmem:[#allocation137_spill] sm:$0xff] %v12948_v3 }
 0x263   : > { %16457 = vst [vmem:[#allocation134_spill] sm:$0xff] %v12930_v1  ;;  %v2316_v56 = vmul.f32 %v12930_v1, %v12392_v25  ;;  %9791 = vmatmul.mubr.bf16.gmra.mrb[8].mxu0 %v2324_v8  ;;  %v11010_v25 = vld [vmem:[%s11969_s0 + $0x1f8] sm:$0xff]   ;;  %v2572_v8 = vmul.f32 %v12718_v41, %v12921_v28  ;;  %v2574_v41 = vmul.f32 %v12733_v46, %v12936_v11 }
 0x264   : > { %9807 = vmatpush3.bf16.msra.mxu0 %v11007_v31  ;;  %v2569_v31 = vmul.f32 %v12683_v5, %v12911_v27  ;;  %v16496_v27 = vld [vmem:[#allocation22_spill] sm:$0xff] }
 0x265   : > { %v2325_v20 = vpack.c.bf16 %v2316_v56, %v2315_v6  ;;  %9808 = vmatprep.subr.bf16.mxu0 %v11008_v7  ;;  %v12959_v5 = vpop.permute.xlu0 %2542 }
 0x266   : > { %v12939_v36 = vpop.permute.xlu1 %2300  ;;  %16463 = vst [vmem:[#allocation140_spill] sm:$0xff] %v12959_v5 }
 0x267   : > { %16459 = vst [vmem:[#allocation136_spill] sm:$0xff] %v12939_v36  ;;  %v2318_v52 = vmul.f32 %v12939_v36, %v12224_v61  ;;  %9794 = vmatprep.mubr.bf16.mxu0 %v2325_v20  ;;  %v11011_v61 = vld [vmem:[%s11969_s0 + $0x200] sm:$0xff]   ;;  %v11028_v36 = vld [vmem:[%s11969_s0 + $0x248] sm:$0xff]  }
 0x268   : > { %9809 = vmatpush3.bf16.msra.mxu0 %v11008_v7 }
 0x269   : > { %v2326_v55 = vpack.c.bf16 %v2318_v52, %v2317_v26  ;;  %9810 = vmatprep.subr.bf16.mxu0 %v11009_v43  ;;  %v12970_v52 = vpop.permute.xlu0 %2550 }
 0x26a   : > { %16465 = vst [vmem:[#allocation142_spill] sm:$0xff] %v12970_v52 }
 0x26b   : > { %v12950_v16 = vpop.permute.xlu1 %2510  ;;  %9795 = vmatmul.mubr.bf16.gmra.mrb[12].mxu0 %v2326_v55 }
 0x26c   : > { %16461 = vst [vmem:[#allocation138_spill] sm:$0xff] %v12950_v16  ;;  %v2570_v62 = vmul.f32 %v12709_v2, %v12950_v16  ;;  %9811 = vmatpush3.bf16.msra.mxu0 %v11009_v43  ;;  %v11012_v2 = vld [vmem:[%s11969_s0 + $0x208] sm:$0xff]  }
 0x26d   : > { %9812 = vmatprep.subr.bf16.mxu0 %v11010_v25 }
 0x26e   : > { %v2585_v7 = vpack.c.bf16 %v2570_v62, %v2569_v31  ;;  %v2576_v31 = vmul.f32 %v12747_v54, %v12948_v3 }
 0x26f   : > { %v12957_v6 = vpop.permute.xlu1 %2514 }
 0x270   : > { %16462 = vst [vmem:[#allocation139_spill] sm:$0xff] %v12957_v6  ;;  %v2571_v56 = vmul.f32 %v12713_v37, %v12957_v6  ;;  %9814 = vmatprep.mubr.bf16.mxu0 %v2585_v7  ;;  %9813 = vmatpush3.bf16.msra.mxu0 %v11010_v25  ;;  %v11013_v37 = vld [vmem:[%s11969_s0 + $0x210] sm:$0xff]   ;;  %v12984_v7 = vpop.permute.xlu0 %2558 }
 0x271   : > { %9830 = vmatprep.subr.bf16.mxu0 %v11011_v61  ;;  %16468 = vst [vmem:[#allocation145_spill] sm:$0xff] %v12984_v7 }
 0x272   : > { %v2586_v20 = vpack.c.bf16 %v2572_v8, %v2571_v56  ;;  %v2578_v8 = vmul.f32 %v12764_v59, %v12959_v5  ;;  %v16518_v5 = vld [vmem:[#allocation35_spill] sm:$0xff] }
 0x273   : > { %v12964_v43 = vpop.permute.xlu1 %2522 }
 0x274   : > { %16464 = vst [vmem:[#allocation141_spill] sm:$0xff] %v12964_v43  ;;  %v2573_v26 = vmul.f32 %v12727_v30, %v12964_v43  ;;  %9815 = vmatmul.mubr.bf16.vlgmr.msra.gmra.mrb[0].mxu0 %v2586_v20  ;;  %v11014_v30 = vld [vmem:[%s11969_s0 + $0x218] sm:$0xff]   ;;  %v12995_v59 = vpop.permute.xlu0 %2566 }
 0x275   : > { %9831 = vmatpush3.bf16.msra.mxu0 %v11011_v61 }
 0x276   : > { %v2587_v55 = vpack.c.bf16 %v2574_v41, %v2573_v26  ;;  %9832 = vmatprep.subr.bf16.mxu0 %v11012_v2  ;;  %v16470_v41 = vld [vmem:[#allocation101_spill] sm:$0xff] }
 0x277   : > { %v12973_v25 = vpop.permute.xlu1 %2530  ;;  %16471 = vst [vmem:[#allocation101_spill] sm:$0xff] %v12995_v59 }
 0x278   : > { %16466 = vst [vmem:[#allocation143_spill] sm:$0xff] %v12973_v25  ;;  %v2575_v62 = vmul.f32 %v12742_v23, %v12973_v25  ;;  %9818 = vmatprep.mubr.bf16.mxu0 %v2587_v55  ;;  %v11015_v23 = vld [vmem:[%s11969_s0 + $0x220] sm:$0xff]  }
 0x279   : > { %9833 = vmatpush3.bf16.msra.mxu0 %v11012_v2  ;;  %v2580_v2 = vmul.f32 %v12777_v0, %v12970_v52 }
 0x27a   : > { %v2588_v46 = vpack.c.bf16 %v2576_v31, %v2575_v62  ;;  %9834 = vmatprep.subr.bf16.mxu0 %v11013_v37  ;;  %v2582_v31 = vmul.f32 %v12789_v24, %v12984_v7  ;;  %v11275_v62 = vld [vmem:[#allocation3 + $0x68] sm:$0xff] }
 0x27b   : > { %v12980_v61 = vpop.permute.xlu1 %2538 }
 0x27c   : > { %16467 = vst [vmem:[#allocation144_spill] sm:$0xff] %v12980_v61  ;;  %v2577_v56 = vmul.f32 %v12754_v29, %v12980_v61  ;;  %9819 = vmatmul.mubr.bf16.gmra.mrb[4].mxu0 %v2588_v46  ;;  %v11016_v29 = vld [vmem:[%s11969_s0 + $0x228] sm:$0xff]   ;;  %v13003_v46 = vpop.permute.xlu0 %2776 }
 0x27d   : > { %9835 = vmatpush3.bf16.msra.mxu0 %v11013_v37  ;;  %16473 = vst [vmem:[#allocation148_spill] sm:$0xff] %v13003_v46 }
 0x27e   : > { %v2589_v54 = vpack.c.bf16 %v2578_v8, %v2577_v56  ;;  %9836 = vmatprep.subr.bf16.mxu0 %v11014_v30 }
 0x27f   : > { %v12989_v20 = vpop.permute.xlu1 %2546 }
 0x280   : > { %16469 = vst [vmem:[#allocation146_spill] sm:$0xff] %v12989_v20  ;;  %v2579_v26 = vmul.f32 %v16470_v41, %v12989_v20  ;;  %9822 = vmatprep.mubr.bf16.mxu0 %v2589_v54  ;;  %v16475_v54 = vld [vmem:[#allocation89_spill] sm:$0xff]  ;;  %v16512_v20 = vld [vmem:[#allocation30_spill] sm:$0xff] }
 0x281   : > { %9837 = vmatpush3.bf16.msra.mxu0 %v11014_v30  ;;  %v11017_v30 = vld [vmem:[%s11969_s0 + $0x230] sm:$0xff]  }
 0x282   : > { %v2590_v55 = vpack.c.bf16 %v2580_v2, %v2579_v26  ;;  %9838 = vmatprep.subr.bf16.mxu0 %v11015_v23  ;;  %v2584_v2 = vmul.f32 %v16475_v54, %v12995_v59  ;;  %v11018_v26 = vld [vmem:[%s11969_s0 + $0x238] sm:$0xff]  }
 0x283   : > { %v12998_v37 = vpop.permute.xlu1 %2554 }
 0x284   : > { %16472 = vst [vmem:[#allocation147_spill] sm:$0xff] %v12998_v37  ;;  %v2581_v0 = vmul.f32 %v11275_v62, %v12998_v37  ;;  %9823 = vmatmul.mubr.bf16.gmra.mrb[8].mxu0 %v2590_v55  ;;  %v13015_v55 = vpop.permute.xlu0 %2788 }
 0x285   : > { %9839 = vmatpush3.bf16.msra.mxu0 %v11015_v23  ;;  %v2836_v23 = vmul.f32 %v13003_v46, %v12452_v40  ;;  %16476 = vst [vmem:[#allocation89_spill] sm:$0xff] %v13015_v55 }
 0x286   : > { %v2591_v8 = vpack.c.bf16 %v2582_v31, %v2581_v0  ;;  %9840 = vmatprep.subr.bf16.mxu0 %v11016_v29 }
 0x287   : > { %v13006_v56 = vpop.permute.xlu1 %2562 }
 0x288   : > { %16474 = vst [vmem:[#allocation149_spill] sm:$0xff] %v13006_v56  ;;  %v2583_v41 = vmul.f32 %v12793_v60, %v13006_v56  ;;  %9826 = vmatprep.mubr.bf16.mxu0 %v2591_v8 }
 0x289   : > { %9841 = vmatpush3.bf16.msra.mxu0 %v11016_v29  ;;  %v13023_v29 = vpop.permute.xlu0 %2796 }
 0x28a   : > { %v2592_v24 = vpack.c.bf16 %v2584_v2, %v2583_v41  ;;  %9842 = vmatprep.subr.bf16.mxu0 %v11017_v30  ;;  %16479 = vst [vmem:[#allocation152_spill] sm:$0xff] %v13023_v29 }
 0x28c   : > { %v13017_v31 = vpop.permute.xlu1 %2772  ;;  %9827 = vmatmul.mubr.bf16.gmra.mrb[12].mxu0 %v2592_v24 }
 0x28d   : > { %16477 = vst [vmem:[#allocation150_spill] sm:$0xff] %v13017_v31  ;;  %v2835_v62 = vmul.f32 %v13017_v31, %v12447_v33  ;;  %9843 = vmatpush3.bf16.msra.mxu0 %v11017_v30  ;;  %v13031_v41 = vpop.permute.xlu0 %2804  ;;  %v2839_v30 = vmul.f32 %v13015_v55, %v12482_v47 }
 0x28e   : > { %9844 = vmatprep.subr.bf16.mxu0 %v11018_v26  ;;  %16481 = vst [vmem:[#allocation154_spill] sm:$0xff] %v13031_v41  ;;  %v2843_v47 = vmul.f32 %v13031_v41, %v12524_v48  ;;  %v16504_v41 = vld [vmem:[#allocation23_spill] sm:$0xff] }
 0x28f   : > { %v2851_v0 = vpack.c.bf16 %v2836_v23, %v2835_v62 }
 0x290   : > { %v13021_v60 = vpop.permute.xlu1 %2780 }
 0x291   : > { %16478 = vst [vmem:[#allocation151_spill] sm:$0xff] %v13021_v60  ;;  %9846 = vmatprep.mubr.bf16.mxu0 %v2851_v0  ;;  %9845 = vmatpush3.bf16.msra.mxu0 %v11018_v26  ;;  %v2837_v40 = vmul.f32 %v13021_v60, %v12457_v39  ;;  %v2841_v39 = vmul.f32 %v13023_v29, %v12503_v12  ;;  %v13045_v62 = vpop.permute.xlu0 %2812 }
 0x292   : > { %16484 = vst [vmem:[#allocation157_spill] sm:$0xff] %v13045_v62 }
 0x294   : > { %v13025_v8 = vpop.permute.xlu1 %2784 }
 0x295   : > { %16480 = vst [vmem:[#allocation153_spill] sm:$0xff] %v13025_v8  ;;  %v2838_v54 = vmul.f32 %v13025_v8, %v12474_v32 }
 0x297   : > { %v2852_v2 = vpack.c.bf16 %v2838_v54, %v2837_v40 }
 0x298   : > { %v13033_v33 = vpop.permute.xlu1 %2792 }
 0x299   : > { %16482 = vst [vmem:[#allocation155_spill] sm:$0xff] %v13033_v33  ;;  %v2840_v24 = vmul.f32 %v13033_v33, %v12495_v63  ;;  %9847 = vmatmul.mubr.bf16.vlgmr.msra.gmra.mrb[0].mxu0 %v2852_v2  ;;  %v13053_v2 = vpop.permute.xlu0 %2820 }
 0x29a   : > { %16486 = vst [vmem:[#allocation159_spill] sm:$0xff] %v13053_v2 }
 0x29b   : > { %v2853_v26 = vpack.c.bf16 %v2840_v24, %v2839_v30 }
 0x29c   : > { %v13039_v23 = vpop.permute.xlu1 %2800 }
 0x29d   : > { %16483 = vst [vmem:[#allocation156_spill] sm:$0xff] %v13039_v23  ;;  %v2842_v32 = vmul.f32 %v13039_v23, %v12516_v13  ;;  %9850 = vmatprep.mubr.bf16.mxu0 %v2853_v26  ;;  %v2845_v13 = vmul.f32 %v13045_v62, %v12552_v49  ;;  %v16503_v62 = vld [vmem:[#allocation24_spill] sm:$0xff] }
 0x29f   : > { %v2854_v0 = vpack.c.bf16 %v2842_v32, %v2841_v39  ;;  %v13067_v39 = vpop.permute.xlu0 %2828 }
 0x2a0   : > { %v13047_v40 = vpop.permute.xlu1 %2808  ;;  %16489 = vst [vmem:[#allocation162_spill] sm:$0xff] %v13067_v39 }
 0x2a1   : > { %16485 = vst [vmem:[#allocation158_spill] sm:$0xff] %v13047_v40  ;;  %v2844_v63 = vmul.f32 %v13047_v40, %v12537_v57  ;;  %9851 = vmatmul.mubr.bf16.gmra.mrb[4].mxu0 %v2854_v0  ;;  %v2847_v57 = vmul.f32 %v13053_v2, %v12573_v15 }
 0x2a3   : > { %v2855_v54 = vpack.c.bf16 %v2844_v63, %v2843_v47  ;;  %v11020_v47 = vld [vmem:[%s11969_s0 + $0x288] sm:$0xff]   ;;  %v11021_v63 = vld [vmem:[%s11969_s0 + $0x290] sm:$0xff]  }
 0x2a4   : > { %v13055_v12 = vpop.permute.xlu1 %2816 }
 0x2a5   : > { %16487 = vst [vmem:[#allocation160_spill] sm:$0xff] %v13055_v12  ;;  %v2846_v30 = vmul.f32 %v13055_v12, %v12558_v38  ;;  %9854 = vmatprep.mubr.bf16.mxu0 %v2855_v54  ;;  %v2849_v38 = vmul.f32 %v13067_v39, %v16443_v4  ;;  %v11022_v4 = vld [vmem:[%s11969_s0 + $0x298] sm:$0xff]   ;;  %v11024_v54 = vld [vmem:[%s11969_s0 + $0x2a8] sm:$0xff]  }
 0x2a7   : > { %v2856_v24 = vpack.c.bf16 %v2846_v30, %v2845_v13  ;;  %v11025_v13 = vld [vmem:[%s11969_s0 + $0x2b0] sm:$0xff]   ;;  %v11026_v30 = vld [vmem:[%s11969_s0 + $0x2b8] sm:$0xff]  }
 0x2a8   : > { %v13061_v48 = vpop.permute.xlu1 %2824 }
 0x2a9   : > { %16488 = vst [vmem:[#allocation161_spill] sm:$0xff] %v13061_v48  ;;  %v2848_v26 = vmul.f32 %v13061_v48, %v12579_v14  ;;  %9855 = vmatmul.mubr.bf16.gmra.mrb[8].mxu0 %v2856_v24  ;;  %v11019_v14 = vld [vmem:[%s11969_s0 + $0x280] sm:$0xff]  }
 0x2aa   : > { %9862 = vmatprep.subr.bf16.mxu1 %v11019_v14  ;;  %v13084_v24 = vld [vmem:[%s11969_s0 + $0x240] sm:$0xff]  }
 0x2ab   : > { %v2857_v49 = vpack.c.bf16 %v2848_v26, %v2847_v57  ;;  %9863 = vmatpush3.bf16.msra.mxu1 %v11019_v14  ;;  %v13091_v26 = vld [vmem:[%s13088_s23] ss:$0 sm:$0xff] }
 0x2ac   : > { %v13069_v32 = vpop.permute.xlu1 %2832  ;;  %9864 = vmatprep.subr.bf16.mxu1 %v11020_v47 }
 0x2ad   : > { %16490 = vst [vmem:[#allocation163_spill] sm:$0xff] %v13069_v32  ;;  %v2850_v0 = vmul.f32 %v13069_v32, %v12419_v42  ;;  %9858 = vmatprep.mubr.bf16.mxu0 %v2857_v49  ;;  %v11023_v42 = vld [vmem:[%s11969_s0 + $0x2a0] sm:$0xff]  }
 0x2af   : > { %v2858_v15 = vpack.c.bf16 %v2850_v0, %v2849_v38  ;;  %9865 = vmatpush3.bf16.msra.mxu1 %v11020_v47  ;;  %v13095_v47 = vstv %s559_s18 }
 0x2b0   : > { %9866 = vmatprep.subr.bf16.mxu1 %v11021_v63  ;;  %16491 = vst [vmem:[#allocation164_spill] sm:$0xff] %v13095_v47 }
 0x2b1   : > { %9859 = vmatmul.mubr.bf16.gmra.mrb[12].mxu0 %v2858_v15 }
 0x2b3   : > { %9867 = vmatpush3.bf16.msra.mxu1 %v11021_v63 }
 0x2b4   : > { %9868 = vmatprep.subr.bf16.mxu1 %v11022_v4 }
 0x2b7   : > { %9869 = vmatpush3.bf16.msra.mxu1 %v11022_v4 }
 0x2b8   : > { %9870 = vmatprep.subr.bf16.mxu1 %v11023_v42 }
 0x2bb   : > { %9871 = vmatpush3.bf16.msra.mxu1 %v11023_v42 }
 0x2bc   : > { %9872 = vmatprep.subr.bf16.mxu1 %v11024_v54 }
 0x2bf   : > { %9873 = vmatpush3.bf16.msra.mxu1 %v11024_v54 }
 0x2c0   : > { %9874 = vmatprep.subr.bf16.mxu1 %v11025_v13 }
 0x2c3   : > { %9875 = vmatpush3.bf16.msra.mxu1 %v11025_v13 }
 0x2c4   : > { %9876 = vmatprep.subr.bf16.mxu1 %v11026_v30 }
 0x2c7   : > { %9877 = vmatpush3.bf16.msra.mxu1 %v11026_v30 }
 0x2c8   : > { %9894 = vmatprep.subr.bf16.mxu1 %v13084_v24 }
 0x36c   : > { %v9848_v57 = vpop.f32.mrb[0].mxu0 }
 0x36d   : > { %v2958_v49 = vpop.f32.mrb[1].mxu0  ;;  %v3046_v15 = vadd.f32 %v9848_v57, %v13091_v26 }
 0x36e   : > { %v9849_v38 = vpop.f32.mrb[2].mxu0  ;;  %v3044_v63 = vadd.f32 %v13091_v26, %v2958_v49 }
 0x36f   : > { %v2961_v0 = vpop.f32.mrb[3].mxu0  ;;  %v3047_v14 = vadd.f32 %v9849_v38, %v13091_v26  ;;  %v3079_v4 = vmul.f32 %v13095_v47, %v3046_v15  ;;  %vm3062_vm2 = vcmp.gt.f32.partialorder %v3046_v15, 0.0 }
 0x370   : > { %v3045_v54 = vadd.f32 %v13091_v26, %v2961_v0  ;;  %v3077_v59 = vmul.f32 %v13095_v47, %v3044_v63  ;;  %vm3060_vm4 = vcmp.gt.f32.partialorder %v3044_v63, 0.0 }
 0x371   : > { %v3080_v42 = vmul.f32 %v13095_v47, %v3047_v14  ;;  %vm3063_vm3 = vcmp.gt.f32.partialorder %v3047_v14, 0.0  ;;  %v13103_v25 = vsel %vm3062_vm2, %v3046_v15, %v3079_v4 }
 0x372   : > { %16492 = vst [vmem:[#allocation165_spill] sm:$0xff] %v13103_v25  ;;  %v3078_v3 = vmul.f32 %v13095_v47, %v3045_v54  ;;  %vm3061_vm5 = vcmp.gt.f32.partialorder %v3045_v54, 0.0  ;;  %v13110_v43 = vsel %vm3060_vm4, %v3044_v63, %v3077_v59  ;;  %v3111_v16 = vrot.slane %v13103_v25, 7 }
 0x373   : > { %v13105_v49 = vsel %vm3063_vm3, %v3047_v14, %v3080_v42 }
 0x374   : > { %v9852_v13 = vpop.f32.mrb[4].mxu0  ;;  %16493 = vst [vmem:[#allocation166_spill] sm:$0xff] %v13105_v49  ;;  %v13115_v15 = vsel %vm3061_vm5, %v3045_v54, %v3078_v3  ;;  %v13127_v3 = vmul.f32 %v13105_v49, %v12957_v6  ;;  %v16501_v6 = vld [vmem:[#allocation21_spill] sm:$0xff]  ;;  %v13152_v40 = vmul.f32 %v13105_v49, %v16503_v62 }
 0x375   : > { %v2974_v30 = vpop.f32.mrb[5].mxu0  ;;  %v3050_v11 = vadd.f32 %v9852_v13, %v13091_v26  ;;  %16494 = vst [vmem:[#allocation167_spill] sm:$0xff] %v13115_v15  ;;  %v16497_v13 = vrot.slane %v13105_v49, 1  ;;  %v13145_v2 = vmul.f32 %v13103_v25, %v16501_v6  ;;  %v16505_v6 = vrot.slane %v13105_v49, 7 }
 0x376   : > { %v3048_v57 = vadd.f32 %v13091_v26, %v2974_v30  ;;  %v9853_v56 = vpop.f32.mrb[6].mxu0  ;;  %16495 = vst [vmem:[#allocation168_spill] sm:$0xff] %v13127_v3 }
 0x377   : > { %v2977_v38 = vpop.f32.mrb[7].mxu0  ;;  %v3083_v14 = vmul.f32 %v13095_v47, %v3050_v11  ;;  %v3051_v4 = vadd.f32 %v9853_v56, %v13091_v26  ;;  %vm3066_vm7 = vcmp.gt.f32.partialorder %v3050_v11, 0.0  ;;  %v13131_v56 = vmul.f32 %v13110_v43, %v16496_v27 }
 0x378   : > { %v3081_v0 = vmul.f32 %v13095_v47, %v3048_v57  ;;  %vm3064_vm6 = vcmp.gt.f32.partialorder %v3048_v57, 0.0  ;;  %v3049_v59 = vadd.f32 %v13091_v26, %v2977_v38  ;;  %v13167_v62 = vsel %vm610_vm0, %v3111_v16, %v16505_v6 }
 0x379   : > { %v13147_v12 = vsel %vm3066_vm7, %v3050_v11, %v3083_v14  ;;  %v3084_v27 = vmul.f32 %v13095_v47, %v3051_v4  ;;  %vm3067_vm8 = vcmp.gt.f32.partialorder %v3051_v4, 0.0 }
 0x37a   : > { %v13120_v32 = vsel %vm3064_vm6, %v3048_v57, %v3081_v0  ;;  %v16498_v57 = vrot.slane %v13103_v25, 1  ;;  %16502 = vst [vmem:[#allocation170_spill] sm:$0xff] %v13147_v12  ;;  %vm3065_vm9 = vcmp.gt.f32.partialorder %v3049_v59, 0.0 }
 0x37b   : > { %v13177_v11 = vsel %vm3067_vm8, %v3051_v4, %v3084_v27  ;;  %v3517_v50 = vrot.slane %v13120_v32, 1 }
 0x37c   : > { %v9856_v42 = vpop.f32.mrb[8].mxu0  ;;  %v13139_v38 = vsel %vm1158_vm1, %v16498_v57, %v16497_v13  ;;  %v13156_v13 = vmul.f32 %v13120_v32, %v16504_v41  ;;  %v16506_v41 = vrot.slane %v13115_v15, 7  ;;  %16507 = vst [vmem:[#allocation171_spill] sm:$0xff] %v13177_v11 }
 0x37d   : > { %v2990_v63 = vpop.f32.mrb[9].mxu0  ;;  %16500 = vst [vmem:[#allocation169_spill] sm:$0xff] %v13139_v38  ;;  %v3054_v30 = vadd.f32 %v9856_v42, %v13091_v26  ;;  %v3082_v42 = vmul.f32 %v13095_v47, %v3049_v59 }
 0x37e   : > { %v9857_v54 = vpop.f32.mrb[10].mxu0  ;;  %v3052_v57 = vadd.f32 %v13091_v26, %v2990_v63  ;;  %v13173_v23 = vsel %vm610_vm0, %v16506_v41, %v3111_v16  ;;  %v16509_v63 = vld [vmem:[#allocation19_spill] sm:$0xff] }
 0x37f   : > { %v2993_v48 = vpop.f32.mrb[11].mxu0  ;;  %v3055_v14 = vadd.f32 %v9857_v54, %v13091_v26  ;;  %vm3070_vm11 = vcmp.gt.f32.partialorder %v3054_v30, 0.0  ;;  %v13182_v33 = vsel %vm3065_vm9, %v3049_v59, %v3082_v42  ;;  %v3184_v46 = vmul.f32 %v13115_v15, %v16509_v63 }
 0x380   : > { %v3053_v39 = vadd.f32 %v13091_v26, %v2993_v48  ;;  %v3087_v48 = vmul.f32 %v13095_v47, %v3054_v30  ;;  %16508 = vst [vmem:[#allocation172_spill] sm:$0xff] %v13182_v33  ;;  %v3085_v55 = vmul.f32 %v13095_v47, %v3052_v57  ;;  %vm3068_vm12 = vcmp.gt.f32.partialorder %v3052_v57, 0.0 }
 0x381   : > { %v3088_v27 = vmul.f32 %v13095_v47, %v3055_v14  ;;  %vm3071_vm13 = vcmp.gt.f32.partialorder %v3055_v14, 0.0  ;;  %v3188_v9 = vmul.f32 %v13182_v33, %v16537_v17  ;;  %v16542_v17 = vld [vmem:[#allocation47_spill] sm:$0xff] }
 0x382   : > { %vm3069_vm10 = vcmp.gt.f32.partialorder %v3053_v39, 0.0  ;;  %v3086_v54 = vmul.f32 %v13095_v47, %v3053_v39  ;;  %v13192_v37 = vsel %vm3070_vm11, %v3054_v30, %v3087_v48  ;;  %v16511_v30 = vld [vmem:[#allocation31_spill] sm:$0xff] }
 0x383   : > { %v13207_v60 = vsel %vm3071_vm13, %v3055_v14, %v3088_v27  ;;  %v3199_v14 = vpack.c.bf16 %v13145_v2, %v3184_v46  ;;  %v16513_v27 = vld [vmem:[#allocation32_spill] sm:$0xff] }
 0x384   : > { %v9860_v29 = vpop.f32.mrb[12].mxu0  ;;  %v13189_v4 = vsel %vm3069_vm10, %v3053_v39, %v3086_v54  ;;  %v3113_v39 = vrot.slane %v13120_v32, 7  ;;  %v3114_v54 = vrot.slane %v13182_v33, 7 }
 0x385   : > { %v3058_v16 = vadd.f32 %v9860_v29, %v13091_v26  ;;  %v3006_v41 = vpop.f32.mrb[13].mxu0  ;;  %v13205_v48 = vmul.f32 %v13189_v4, %v16511_v30 }
 0x386   : > { %v3056_v31 = vadd.f32 %v13091_v26, %v3006_v41  ;;  %v9861_v7 = vpop.f32.mrb[14].mxu0  ;;  %v13201_v41 = vsel %vm3068_vm12, %v3052_v57, %v3085_v55 }
 0x387   : > { %vm3074_vm14 = vcmp.gt.f32.partialorder %v3058_v16, 0.0  ;;  %v3091_v59 = vmul.f32 %v13095_v47, %v3058_v16  ;;  %v3009_v42 = vpop.f32.mrb[15].mxu0  ;;  %v3059_v6 = vadd.f32 %v9861_v7, %v13091_v26  ;;  %16510 = vst [vmem:[#allocation173_spill] sm:$0xff] %v13201_v41  ;;  %v13213_v7 = vmul.f32 %v13192_v37, %v16512_v20  ;;  %v16517_v20 = vld [vmem:[#allocation20_spill] sm:$0xff] }
 0x388   : > { %vm3072_vm15 = vcmp.gt.f32.partialorder %v3056_v31, 0.0  ;;  %v3089_v29 = vmul.f32 %v13095_v47, %v3056_v31  ;;  %v3057_v63 = vadd.f32 %v13091_v26, %v3009_v42  ;;  %v3119_v26 = vrot.slane %v13192_v37, 7 }
 0x389   : > { %vm3075_vm2 = vcmp.gt.f32.partialorder %v3059_v6, 0.0  ;;  %v13217_v42 = vsel %vm3074_vm14, %v3058_v16, %v3091_v59  ;;  %v3092_v55 = vmul.f32 %v13095_v47, %v3059_v6  ;;  %v16515_v16 = vld [vmem:[#allocation33_spill] sm:$0xff] }
 0x38a   : > { %v13209_v52 = vsel %vm3072_vm15, %v3056_v31, %v3089_v29  ;;  %vm3073_vm3 = vcmp.gt.f32.partialorder %v3057_v63, 0.0  ;;  %v3090_v57 = vmul.f32 %v13095_v47, %v3057_v63  ;;  %v13233_v59 = vmul.f32 %v13207_v60, %v16515_v16  ;;  %v16522_v16 = vld [vmem:[#allocation40_spill] sm:$0xff] }
 0x38b   : > { %v13226_v29 = vmul.f32 %v13209_v52, %v16513_v27  ;;  %v13229_v30 = vsel %vm3075_vm2, %v3059_v6, %v3092_v55  ;;  %v16516_v47 = vrot.slane %v13105_v49, 7  ;;  %v3123_v2 = vrot.slane %v13217_v42, 7 }
 0x38c   : > { %16514 = vst [vmem:[#allocation174_spill] sm:$0xff] %v13229_v30  ;;  %v3124_v31 = vrot.slane %v13229_v30, 7  ;;  %v13243_v27 = vsel %vm3073_vm3, %v3057_v63, %v3090_v57  ;;  %v3182_v6 = vmul.f32 %v13229_v30, %v16517_v20  ;;  %v3118_v55 = vrot.slane %v13189_v4, 7 }
 0x38d   : > { %v13239_v46 = vsel %vm610_vm0, %v16516_v47, %v3113_v39  ;;  %v13252_v61 = vmul.f32 %v13243_v27, %v16518_v5  ;;  %v16519_v47 = vld [vmem:[#allocation34_spill] sm:$0xff]  ;;  %v16520_v57 = vrot.slane %v13110_v43, 7  ;;  %v13271_v5 = vmul.f32 %v13167_v62, %v16522_v16 }
 0x38e   : > { %v13256_v8 = vmul.f32 %v13217_v42, %v16519_v47  ;;  %v3198_v3 = vpack.c.bf16 %v13131_v56, %v3182_v6  ;;  %v13261_v63 = vsel %vm610_vm0, %v3123_v2, %v3124_v31  ;;  %v16525_v6 = vld [vmem:[#allocation36_spill] sm:$0xff]  ;;  %v3121_v16 = vrot.slane %v13209_v52, 7 }
 0x38f   : > { %v13267_v20 = vsel %vm610_vm0, %v3124_v31, %v16520_v57  ;;  %16523 = vst [vmem:[#allocation176_spill] sm:$0xff] %v13271_v5  ;;  %v13278_v56 = vmul.f32 %v13261_v63, %v16524_v51  ;;  %v13286_v31 = vmul.f32 %v13239_v46, %v16526_v22  ;;  %v3120_v57 = vrot.slane %v13207_v60, 7  ;;  %v16534_v22 = vld [vmem:[#allocation29_spill] sm:$0xff] }
 0x390   : > { %16521 = vst [vmem:[#allocation175_spill] sm:$0xff] %v13267_v20  ;;  %v13282_v1 = vmul.f32 %v13267_v20, %v16525_v6  ;;  %v3122_v35 = vrot.slane %v13243_v27, 7  ;;  %9878 = vmatprep.mubr.bf16.mxu1 %v3198_v3  ;;  %v16528_v47 = vrot.slane %v13147_v12, 7  ;;  %v13303_v20 = vsel %vm610_vm0, %v3113_v39, %v3114_v54  ;;  %v16535_v39 = vld [vmem:[#allocation42_spill] sm:$0xff] }
 0x391   : > { %16527 = vst [vmem:[#allocation177_spill] sm:$0xff] %v13286_v31  ;;  %9879 = vmatmul.mubr.bf16.vlgmr.msra.gmra.mrb[0].mxu1 %v3199_v14  ;;  %v16532_v14 = vpack.c.bf16 %v13156_v13, %v13152_v40  ;;  %v3190_v18 = vmul.f32 %v13177_v11, %v16534_v22  ;;  %v13329_v40 = vsel %vm610_vm0, %v3118_v55, %v3119_v26  ;;  %v16539_v13 = vrot.slane %v13201_v41, 7 }
 0x392   : > { %v13295_v51 = vsel %vm610_vm0, %v3114_v54, %v16528_v47  ;;  %9895 = vmatpush3.bf16.msra.mxu1 %v13084_v24  ;;  %v16533_v47 = vld [vmem:[#allocation25_spill] sm:$0xff]  ;;  %v13320_v54 = vmul.f32 %v13303_v20, %v16535_v39  ;;  %v16538_v24 = vld [vmem:[#allocation28_spill] sm:$0xff]  ;;  %v13349_v10 = vsel %vm610_vm0, %v3120_v57, %v3121_v16  ;;  %v3521_v5 = vrot.slane %v13201_v41, 1 }
 0x393   : > { %16529 = vst [vmem:[#allocation178_spill] sm:$0xff] %v13295_v51  ;;  %v13307_v3 = vmul.f32 %v13295_v51, %v16530_v34  ;;  %9882 = vmatprep.mubr.bf16.mxu1 %v16532_v14  ;;  %v3189_v6 = vmul.f32 %v13147_v12, %v16533_v47  ;;  %9896 = vmatprep.subr.bf16.mxu1 %v11028_v36  ;;  %v11029_v34 = vld [vmem:[%s11969_s0 + $0x250] sm:$0xff]   ;;  %v16540_v47 = vld [vmem:[#allocation46_spill] sm:$0xff]  ;;  %v3116_v31 = vrot.slane %v13177_v11, 7 }
 0x394   : > { %16536 = vst [vmem:[#allocation180_spill] sm:$0xff] %v13320_v54  ;;  %v3191_v51 = vmul.f32 %v13201_v41, %v16538_v24  ;;  %v13335_v14 = vsel %vm610_vm0, %v16539_v13, %v3118_v55  ;;  %v13345_v24 = vmul.f32 %v13329_v40, %v16542_v17  ;;  %v13354_v55 = vsel %vm610_vm0, %v3119_v26, %v3120_v57  ;;  %v16544_v13 = vld [vmem:[#allocation49_spill] sm:$0xff]  ;;  %v16546_v54 = vld [vmem:[#allocation48_spill] sm:$0xff]  ;;  %v16548_v57 = vld [vmem:[#allocation51_spill] sm:$0xff] }
 0x395   : > { %16531 = vst [vmem:[#allocation179_spill] sm:$0xff] %v13307_v3  ;;  %v13341_v22 = vmul.f32 %v13335_v14, %v16540_v47  ;;  %v13358_v39 = vmul.f32 %v13349_v10, %v16544_v13  ;;  %v13362_v47 = vsel %vm610_vm0, %v3122_v35, %v3123_v2  ;;  %v13368_v3 = vmul.f32 %v13354_v55, %v16546_v54 }
 0x396   : > { %16543 = vst [vmem:[#allocation182_spill] sm:$0xff] %v13345_v24  ;;  %9897 = vmatpush3.bf16.msra.mxu1 %v11028_v36  ;;  %v13372_v26 = vsel %vm610_vm0, %v3121_v16, %v3122_v35  ;;  %v13376_v53 = vmul.f32 %v13362_v47, %v16548_v57  ;;  %v16550_v13 = vrot.slane %v13115_v15, 7  ;;  %v16551_v2 = vrot.slane %v13110_v43, 7  ;;  %v11030_v57 = vld [vmem:[%s11969_s0 + $0x258] sm:$0xff]  }
 0x397   : > { %16541 = vst [vmem:[#allocation181_spill] sm:$0xff] %v13341_v22  ;;  %16545 = vst [vmem:[#allocation183_spill] sm:$0xff] %v13358_v39  ;;  %v16553_v17 = vrot.slane %v13103_v25, 1  ;;  %v16554_v54 = vrot.slane %v13115_v15, 1  ;;  %9898 = vmatprep.subr.bf16.mxu1 %v11029_v34  ;;  %v3201_v16 = vpack.c.bf16 %v3189_v6, %v3188_v9  ;;  %v16556_v22 = vld [vmem:[#allocation50_spill] sm:$0xff]  ;;  %v3524_v25 = vrot.slane %v13207_v60, 1 }
 0x398   : > { %16547 = vst [vmem:[#allocation184_spill] sm:$0xff] %v13368_v3  ;;  %16549 = vst [vmem:[#allocation185_spill] sm:$0xff] %v13376_v53  ;;  %v13384_v36 = vsel %vm610_vm0, %v16551_v2, %v16550_v13  ;;  %v13397_v24 = vmul.f32 %v13372_v26, %v16556_v22  ;;  %v3522_v13 = vrot.slane %v13189_v4, 1  ;;  %v3202_v2 = vpack.c.bf16 %v3191_v51, %v3190_v18  ;;  %v16564_v51 = vld [vmem:[#allocation59_spill] sm:$0xff] }
 0x399   : > { %16552 = vst [vmem:[#allocation186_spill] sm:$0xff] %v13384_v36  ;;  %v13392_v35 = vsel %vm1158_vm1, %v16554_v54, %v16553_v17  ;;  %9883 = vmatmul.mubr.bf16.gmra.mrb[4].mxu1 %v3201_v16  ;;  %v16558_v17 = vrot.slane %v13182_v33, 1  ;;  %v16560_v54 = vrot.slane %v13105_v49, 1  ;;  %v3525_v16 = vrot.slane %v13209_v52, 1 }
 0x39a   : > { %16555 = vst [vmem:[#allocation187_spill] sm:$0xff] %v13392_v35  ;;  %16557 = vst [vmem:[#allocation188_spill] sm:$0xff] %v13397_v24  ;;  %v3526_v9 = vrot.slane %v13243_v27, 1  ;;  %9899 = vmatpush3.bf16.msra.mxu1 %v11029_v34  ;;  %9886 = vmatprep.mubr.bf16.mxu1 %v3202_v2  ;;  %v3523_v22 = vrot.slane %v13192_v37, 1  ;;  %v16561_v24 = vld [vmem:[#allocation38_spill] sm:$0xff]  ;;  %v3527_v34 = vrot.slane %v13217_v42, 1  ;;  %v13440_v3 = vsel %vm1158_vm1, %v3521_v5, %v3522_v13 }
 0x39b   : > { %v13410_v6 = vsel %vm1158_vm1, %v3517_v50, %v16558_v17  ;;  %v13416_v18 = vsel %vm1158_vm1, %v16560_v54, %v3517_v50  ;;  %9900 = vmatprep.subr.bf16.mxu1 %v11030_v57  ;;  %v11031_v17 = vld [vmem:[%s11969_s0 + $0x260] sm:$0xff]   ;;  %v13426_v49 = vmul.f32 %v13384_v36, %v16561_v24  ;;  %v16562_v50 = vld [vmem:[#allocation56_spill] sm:$0xff]  ;;  %v3528_v2 = vrot.slane %v13229_v30, 1  ;;  %16566 = vst [vmem:[#allocation192_spill] sm:$0xff] %v13440_v3  ;;  %v16572_v35 = vld [vmem:[#allocation63_spill] sm:$0xff] }
 0x39c   : > { %16559 = vst [vmem:[#allocation189_spill] sm:$0xff] %v13410_v6  ;;  %v13430_v54 = vmul.f32 %v13416_v18, %v16562_v50  ;;  %v13434_v53 = vmul.f32 %v13410_v6, %v16564_v51  ;;  %v16567_v24 = vrot.slane %v13177_v11, 1  ;;  %v16569_v50 = vld [vmem:[#allocation39_spill] sm:$0xff]  ;;  %v16570_v6 = vld [vmem:[#allocation60_spill] sm:$0xff]  ;;  %v13460_v30 = vmul.f32 %v13440_v3, %v16572_v35  ;;  %v16576_v35 = vld [vmem:[#allocation70_spill] sm:$0xff] }
 0x39d   : > { %v13450_v36 = vmul.f32 %v13173_v23, %v16569_v50  ;;  %v13472_v51 = vsel %vm1158_vm1, %v3525_v16, %v3526_v9  ;;  %v13476_v50 = vsel %vm1158_vm1, %v3524_v25, %v3525_v16  ;;  %v16583_v16 = vld [vmem:[#allocation67_spill] sm:$0xff] }
 0x39e   : > { %16563 = vst [vmem:[#allocation190_spill] sm:$0xff] %v13430_v54  ;;  %16565 = vst [vmem:[#allocation191_spill] sm:$0xff] %v13434_v53  ;;  %v13446_v39 = vsel %vm1158_vm1, %v16567_v24, %v3521_v5  ;;  %9901 = vmatpush3.bf16.msra.mxu1 %v11030_v57  ;;  %v13464_v5 = vsel %vm1158_vm1, %v3523_v22, %v3524_v25  ;;  %v13468_v24 = vsel %vm1158_vm1, %v3522_v13, %v3523_v22  ;;  %v16578_v53 = vld [vmem:[#allocation62_spill] sm:$0xff]  ;;  %v16580_v13 = vld [vmem:[#allocation65_spill] sm:$0xff] }
 0x39f   : > { %16568 = vst [vmem:[#allocation193_spill] sm:$0xff] %v13446_v39  ;;  %v13456_v38 = vmul.f32 %v13446_v39, %v16570_v6  ;;  %16573 = vst [vmem:[#allocation195_spill] sm:$0xff] %v13460_v30  ;;  %9902 = vmatprep.subr.bf16.mxu1 %v11031_v17  ;;  %v11032_v6 = vld [vmem:[%s11969_s0 + $0x268] sm:$0xff]   ;;  %v13481_v57 = vmul.f32 %v13167_v62, %v16576_v35  ;;  %v13487_v22 = vmul.f32 %v13468_v24, %v16578_v53  ;;  %v16581_v39 = vld [vmem:[#allocation64_spill] sm:$0xff] }
 0x3a0   : > { %16574 = vst [vmem:[#allocation196_spill] sm:$0xff] %v13472_v51  ;;  %16575 = vst [vmem:[#allocation197_spill] sm:$0xff] %v13476_v50  ;;  %v13491_v3 = vmul.f32 %v13464_v5, %v16580_v13  ;;  %v13495_v25 = vmul.f32 %v13476_v50, %v16581_v39  ;;  %v13499_v35 = vmul.f32 %v13472_v51, %v16583_v16  ;;  %v16585_v39 = vrot.slane %v13201_v41, 7  ;;  %v16586_v30 = vld [vmem:[#allocation66_spill] sm:$0xff]  ;;  %v16588_v50 = vld [vmem:[#allocation69_spill] sm:$0xff] }
 0x3a1   : > { %16571 = vst [vmem:[#allocation194_spill] sm:$0xff] %v13456_v38  ;;  %16577 = vst [vmem:[#allocation198_spill] sm:$0xff] %v13481_v57  ;;  %v13503_v54 = vsel %vm1158_vm1, %v3527_v34, %v3528_v2  ;;  %v13507_v53 = vsel %vm1158_vm1, %v3526_v9, %v3527_v34  ;;  %v16584_v13 = vpack.c.bf16 %v13213_v7, %v13205_v48  ;;  %v3519_v48 = vrot.slane %v13147_v12, 1  ;;  %v16612_v57 = vld [vmem:[#allocation45_spill] sm:$0xff] }
 0x3a2   : > { %16579 = vst [vmem:[#allocation199_spill] sm:$0xff] %v13487_v22  ;;  %16582 = vst [vmem:[#allocation200_spill] sm:$0xff] %v13495_v25  ;;  %v13516_v38 = vsel %vm610_vm0, %v3116_v31, %v16585_v39  ;;  %v13522_v51 = vmul.f32 %v13507_v53, %v16586_v30  ;;  %v13526_v9 = vmul.f32 %v13503_v54, %v16588_v50  ;;  %9903 = vmatpush3.bf16.msra.mxu1 %v11031_v17  ;;  %v11033_v30 = vld [vmem:[%s11969_s0 + $0x270] sm:$0xff]  }
 0x3a3   : > { %9887 = vmatmul.mubr.bf16.gmra.mrb[8].mxu1 %v16584_v13  ;;  %v13531_v7 = vmul.f32 %v13120_v32, %v12921_v28  ;;  %v16590_v39 = vpack.c.bf16 %v13226_v29, %v13233_v59  ;;  %v16591_v13 = vld [vmem:[#allocation73_spill] sm:$0xff]  ;;  %9904 = vmatprep.subr.bf16.mxu1 %v11032_v6  ;;  %v16593_v17 = vld [vmem:[#allocation75_spill] sm:$0xff]  ;;  %v16595_v29 = vld [vmem:[#allocation72_spill] sm:$0xff]  ;;  %v16598_v34 = vrot.slane %v13147_v12, 7  ;;  %v13587_v28 = vmul.f32 %v13239_v46, %v12889_v19 }
 0x3a4   : > { %16587 = vst [vmem:[#allocation201_spill] sm:$0xff] %v13522_v51  ;;  %16589 = vst [vmem:[#allocation202_spill] sm:$0xff] %v13526_v9  ;;  %v13540_v16 = vmul.f32 %v13173_v23, %v16591_v13  ;;  %v13549_v22 = vmul.f32 %v13239_v46, %v16593_v17  ;;  %v13553_v59 = vmul.f32 %v13303_v20, %v16595_v29  ;;  %v16599_v17 = vld [vmem:[#allocation79_spill] sm:$0xff]  ;;  %v16600_v51 = vld [vmem:[#allocation76_spill] sm:$0xff]  ;;  %v16613_v9 = vrot.slane %v13115_v15, 1 }
 0x3a5   : > { %9890 = vmatprep.mubr.bf16.mxu1 %v16590_v39  ;;  %v13557_v39 = vmul.f32 %v13167_v62, %v12885_v45  ;;  %v13563_v50 = vsel %vm610_vm0, %v16598_v34, %v3116_v31  ;;  %v13569_v13 = vmul.f32 %v13516_v38, %v16599_v17  ;;  %v13575_v62 = vmul.f32 %v13335_v14, %v16600_v51  ;;  %v16601_v45 = vld [vmem:[#allocation81_spill] sm:$0xff]  ;;  %v16603_v31 = vld [vmem:[#allocation78_spill] sm:$0xff]  ;;  %v16605_v17 = vld [vmem:[#allocation83_spill] sm:$0xff] }
 0x3a6   : > { %16592 = vst [vmem:[#allocation203_spill] sm:$0xff] %v13540_v16  ;;  %16594 = vst [vmem:[#allocation204_spill] sm:$0xff] %v13549_v22  ;;  %v13579_v12 = vmul.f32 %v13329_v40, %v16601_v45  ;;  %v13583_v34 = vmul.f32 %v13354_v55, %v16603_v31  ;;  %9905 = vmatpush3.bf16.msra.mxu1 %v11032_v6  ;;  %v13591_v29 = vmul.f32 %v13349_v10, %v16605_v17  ;;  %v16606_v22 = vld [vmem:[#allocation80_spill] sm:$0xff]  ;;  %v16610_v17 = vld [vmem:[#allocation82_spill] sm:$0xff] }
 0x3a7   : > { %16596 = vst [vmem:[#allocation205_spill] sm:$0xff] %v13553_v59  ;;  %16597 = vst [vmem:[#allocation206_spill] sm:$0xff] %v13557_v39  ;;  %v13595_v51 = vmul.f32 %v13372_v26, %v16606_v22  ;;  %v16607_v59 = vld [vmem:[#allocation85_spill] sm:$0xff]  ;;  %9906 = vmatprep.subr.bf16.mxu1 %v11033_v30  ;;  %v11034_v31 = vld [vmem:[%s11969_s0 + $0x278] sm:$0xff]   ;;  %v13612_v22 = vmul.f32 %v13261_v63, %v16610_v17  ;;  %v16617_v15 = vrot.slane %v13177_v11, 1 }
 0x3a8   : > { %16602 = vst [vmem:[#allocation207_spill] sm:$0xff] %v13579_v12  ;;  %16604 = vst [vmem:[#allocation208_spill] sm:$0xff] %v13587_v28  ;;  %v13599_v45 = vmul.f32 %v13362_v47, %v16607_v59  ;;  %v16609_v16 = vld [vmem:[#allocation44_spill] sm:$0xff]  ;;  %v13616_v59 = vmul.f32 %v13516_v38, %v16612_v57  ;;  %v16616_v57 = vpack.c.bf16 %v13256_v8, %v13252_v61 }
 0x3a9   : > { %v13604_v6 = vmul.f32 %v13563_v50, %v16609_v16  ;;  %16611 = vst [vmem:[#allocation210_spill] sm:$0xff] %v13612_v22  ;;  %v16614_v16 = vrot.slane %v13110_v43, 1  ;;  %v13641_v12 = vsel %vm1158_vm1, %v3519_v48, %v16617_v15  ;;  %v16622_v61 = vpack.c.bf16 %v13282_v1, %v13278_v56  ;;  %v16624_v15 = vld [vmem:[#allocation91_spill] sm:$0xff]  ;;  %v11038_v28 = vld [vmem:[%s11969_s0 + $0x2d8] sm:$0xff]  }
 0x3aa   : > { %16608 = vst [vmem:[#allocation209_spill] sm:$0xff] %v13599_v45  ;;  %9907 = vmatpush3.bf16.msra.mxu1 %v11033_v30  ;;  %v13658_v8 = vmul.f32 %v13416_v18, %v12772_v58  ;;  %v16628_v30 = vrot.slane %v13182_v33, 1  ;;  %v16658_v22 = vld [vmem:[#allocation115_spill] sm:$0xff]  ;;  %v16666_v45 = vld [vmem:[#allocation110_spill] sm:$0xff] }
 0x3ab   : > { %v13624_v25 = vsel %vm1158_vm1, %v16614_v16, %v16613_v9  ;;  %v16615_v46 = vmov %v16614_v16  ;;  %9891 = vmatmul.mubr.bf16.gmra.mrb[12].mxu1 %v16616_v57  ;;  %v16618_v9 = vld [vmem:[#allocation86_spill] sm:$0xff]  ;;  %v13662_v57 = vmul.f32 %v13201_v41, %v16624_v15  ;;  %9908 = vmatprep.subr.bf16.mxu1 %v11034_v31  ;;  %v16631_v15 = vld [vmem:[#allocation100_spill] sm:$0xff]  ;;  %v16633_v41 = vld [vmem:[#allocation95_spill] sm:$0xff] }
 0x3ac   : > { %v13630_v19 = vsel %vm1158_vm1, %v3528_v2, %v16615_v46  ;;  %v13647_v2 = vmul.f32 %v13120_v32, %v16618_v9  ;;  %v16620_v46 = vld [vmem:[#allocation94_spill] sm:$0xff]  ;;  %9910 = vmatprep.mubr.bf16.mxu1 %v16622_v61  ;;  %16623 = vst [vmem:[#allocation213_spill] sm:$0xff] %v13658_v8  ;;  %v13673_v1 = vsel %vm1158_vm1, %v16628_v30, %v3519_v48  ;;  %v16629_v61 = vld [vmem:[#allocation93_spill] sm:$0xff]  ;;  %v16640_v9 = vld [vmem:[#allocation99_spill] sm:$0xff] }
 0x3ad   : > { %v13651_v17 = vmul.f32 %v13182_v33, %v16620_v46  ;;  %16625 = vst [vmem:[#allocation214_spill] sm:$0xff] %v13662_v57  ;;  %v16626_v16 = vld [vmem:[#allocation98_spill] sm:$0xff]  ;;  %v11035_v46 = vld [vmem:[%s11969_s0 + $0x2c0] sm:$0xff]   ;;  %v13679_v58 = vmul.f32 %v13192_v37, %v16629_v61  ;;  %v13689_v0 = vmul.f32 %v13209_v52, %v16633_v41  ;;  %v13693_v48 = vmul.f32 %v13243_v27, %v12775_v44  ;;  %v16642_v41 = vld [vmem:[#allocation107_spill] sm:$0xff] }
 0x3ae   : > { %16619 = vst [vmem:[#allocation211_spill] sm:$0xff] %v13647_v2  ;;  %v13666_v32 = vmul.f32 %v13189_v4, %v16626_v16  ;;  %v13683_v16 = vmul.f32 %v13207_v60, %v16631_v15  ;;  %v16636_v30 = vld [vmem:[#allocation97_spill] sm:$0xff]  ;;  %v16638_v15 = vld [vmem:[#allocation174_spill] sm:$0xff]  ;;  %v13707_v57 = vmul.f32 %v13624_v25, %v16640_v9  ;;  %9909 = vmatpush3.bf16.msra.mxu1 %v11034_v31  ;;  %v16648_v61 = vld [vmem:[#allocation111_spill] sm:$0xff] }
 0x3af   : > { %16621 = vst [vmem:[#allocation212_spill] sm:$0xff] %v13651_v17  ;;  %16630 = vst [vmem:[#allocation216_spill] sm:$0xff] %v13679_v58  ;;  %v13697_v56 = vmul.f32 %v13217_v42, %v16636_v30  ;;  %v13703_v33 = vmul.f32 %v16638_v15, %v12787_v21  ;;  %v16645_v44 = vld [vmem:[#allocation109_spill] sm:$0xff]  ;;  %v16651_v15 = vld [vmem:[#allocation104_spill] sm:$0xff]  ;;  %9926 = vmatprep.subr.bf16.mxu1 %v11035_v46 }
 0x3b0   : > { %16627 = vst [vmem:[#allocation215_spill] sm:$0xff] %v13666_v32  ;;  %16632 = vst [vmem:[#allocation217_spill] sm:$0xff] %v13683_v16  ;;  %v16643_v32 = vld [vmem:[#allocation187_spill] sm:$0xff]  ;;  %v16646_v2 = vld [vmem:[#allocation169_spill] sm:$0xff]  ;;  %v13725_v9 = vmul.f32 %v13673_v1, %v16651_v15 }
 0x3b1   : > { %16634 = vst [vmem:[#allocation218_spill] sm:$0xff] %v13689_v0  ;;  %16635 = vst [vmem:[#allocation219_spill] sm:$0xff] %v13693_v48  ;;  %v13711_v11 = vmul.f32 %v16643_v32, %v16642_v41  ;;  %v13717_v17 = vmul.f32 %v16646_v2, %v16645_v44  ;;  %v16649_v58 = vld [vmem:[#allocation189_spill] sm:$0xff]  ;;  %v11036_v16 = vld [vmem:[%s11969_s0 + $0x2c8] sm:$0xff]  }
 0x3b2   : > { %16637 = vst [vmem:[#allocation220_spill] sm:$0xff] %v13697_v56  ;;  %16639 = vst [vmem:[#allocation221_spill] sm:$0xff] %v13703_v33  ;;  %v13721_v21 = vmul.f32 %v16649_v58, %v16648_v61  ;;  %v16653_v41 = vld [vmem:[#allocation113_spill] sm:$0xff]  ;;  %v16655_v0 = vld [vmem:[#allocation106_spill] sm:$0xff] }
 0x3b3   : > { %16641 = vst [vmem:[#allocation222_spill] sm:$0xff] %v13707_v57  ;;  %16644 = vst [vmem:[#allocation187_spill] sm:$0xff] %v13711_v11  ;;  %v13734_v44 = vmul.f32 %v13641_v12, %v16653_v41  ;;  %v16656_v48 = vld [vmem:[#allocation193_spill] sm:$0xff]  ;;  %v16659_v31 = vld [vmem:[#allocation192_spill] sm:$0xff]  ;;  %v16663_v41 = vpack.c.bf16 %v13450_v36, %v13426_v49 }
 0x3b4   : > { %16647 = vst [vmem:[#allocation169_spill] sm:$0xff] %v13717_v17  ;;  %16650 = vst [vmem:[#allocation189_spill] sm:$0xff] %v13721_v21  ;;  %v13738_v61 = vmul.f32 %v16656_v48, %v16655_v0  ;;  %v13746_v56 = vmul.f32 %v16659_v31, %v16658_v22  ;;  %v16661_v30 = vld [vmem:[#allocation108_spill] sm:$0xff]  ;;  %v16664_v11 = vld [vmem:[#allocation117_spill] sm:$0xff] }
 0x3b5   : > { %16652 = vst [vmem:[#allocation223_spill] sm:$0xff] %v13725_v9  ;;  %16654 = vst [vmem:[#allocation224_spill] sm:$0xff] %v13734_v44  ;;  %v13750_v57 = vmul.f32 %v13468_v24, %v16661_v30  ;;  %9911 = vmatmul.mubr.bf16.vlgmr.msra.gmra.mrb[0].mxu1 %v16663_v41  ;;  %v13759_v15 = vmul.f32 %v13464_v5, %v16664_v11  ;;  %v16667_v21 = vld [vmem:[#allocation197_spill] sm:$0xff]  ;;  %v16669_v22 = vld [vmem:[#allocation119_spill] sm:$0xff] }
 0x3b6   : > { %16657 = vst [vmem:[#allocation193_spill] sm:$0xff] %v13738_v61  ;;  %16660 = vst [vmem:[#allocation192_spill] sm:$0xff] %v13746_v56  ;;  %v13763_v9 = vmul.f32 %v16667_v21, %v16666_v45  ;;  %v16670_v17 = vld [vmem:[#allocation196_spill] sm:$0xff]  ;;  %9927 = vmatpush3.bf16.msra.mxu1 %v11035_v46  ;;  %v16672_v30 = vld [vmem:[#allocation177_spill] sm:$0xff] }
 0x3b7   : > { %16662 = vst [vmem:[#allocation225_spill] sm:$0xff] %v13750_v57  ;;  %16665 = vst [vmem:[#allocation226_spill] sm:$0xff] %v13759_v15  ;;  %v13767_v8 = vmul.f32 %v16670_v17, %v16669_v22  ;;  %v16673_v33 = vld [vmem:[#allocation176_spill] sm:$0xff]  ;;  %v16676_v11 = vld [vmem:[#allocation121_spill] sm:$0xff]  ;;  %9928 = vmatprep.subr.bf16.mxu1 %v11036_v16 }
 0x3b8   : > { %16668 = vst [vmem:[#allocation197_spill] sm:$0xff] %v13763_v9  ;;  %v16674_v49 = vpack.c.bf16 %v16672_v30, %v16673_v33  ;;  %v16675_v36 = vld [vmem:[#allocation112_spill] sm:$0xff]  ;;  %v13780_v45 = vmul.f32 %v13503_v54, %v16676_v11  ;;  %v11037_v44 = vld [vmem:[%s11969_s0 + $0x2d0] sm:$0xff]   ;;  %v16677_v22 = vld [vmem:[#allocation114_spill] sm:$0xff] }
 0x3b9   : > { %16671 = vst [vmem:[#allocation196_spill] sm:$0xff] %v13767_v8  ;;  %v13776_v0 = vmul.f32 %v13507_v53, %v16675_v36  ;;  %v13787_v33 = vmul.f32 %v13630_v19, %v16677_v22  ;;  %v16678_v30 = vld [vmem:[#allocation122_spill] sm:$0xff]  ;;  %v16680_v56 = vld [vmem:[#allocation116_spill] sm:$0xff]  ;;  %v16686_v8 = vld [vmem:[#allocation129_spill] sm:$0xff] }
 0x3ba   : > { %9914 = vmatprep.mubr.bf16.mxu1 %v16674_v49  ;;  %v16679_v49 = vld [vmem:[#allocation186_spill] sm:$0xff]  ;;  %v13795_v36 = vmul.f32 %v13173_v23, %v16680_v56  ;;  %v16682_v22 = vld [vmem:[#allocation128_spill] sm:$0xff]  ;;  %v13819_v57 = vmul.f32 %v13516_v38, %v16686_v8  ;;  %9929 = vmatpush3.bf16.msra.mxu1 %v11036_v16  ;;  %v16690_v23 = vld [vmem:[#allocation123_spill] sm:$0xff] }
 0x3bb   : > { %v13791_v41 = vmul.f32 %v16679_v49, %v16678_v30  ;;  %v16681_v46 = vld [vmem:[#allocation118_spill] sm:$0xff]  ;;  %v16684_v56 = vld [vmem:[#allocation120_spill] sm:$0xff]  ;;  %v16689_v30 = vld [vmem:[#allocation131_spill] sm:$0xff]  ;;  %9930 = vmatprep.subr.bf16.mxu1 %v11037_v44 }
 0x3bc   : > { %v13803_v15 = vmul.f32 %v13303_v20, %v16681_v46  ;;  %v16683_v9 = vld [vmem:[#allocation178_spill] sm:$0xff]  ;;  %v13815_v11 = vmul.f32 %v13563_v50, %v16684_v56  ;;  %16687 = vst [vmem:[#allocation176_spill] sm:$0xff] %v13819_v57  ;;  %v13829_v39 = vmul.f32 %v13329_v40, %v16689_v30  ;;  %v13833_v56 = vmul.f32 %v13354_v55, %v16690_v23  ;;  %v16691_v16 = vld [vmem:[#allocation133_spill] sm:$0xff]  ;;  %v16694_v38 = vld [vmem:[#allocation127_spill] sm:$0xff] }
 0x3bd   : > { %v13807_v61 = vmul.f32 %v16683_v9, %v16682_v22  ;;  %v16688_v22 = vld [vmem:[#allocation52_spill] sm:$0xff]  ;;  %v13840_v20 = vmul.f32 %v13349_v10, %v16691_v16  ;;  %v16693_v40 = vld [vmem:[#allocation134_spill] sm:$0xff]  ;;  %v3161_v55 = vpack.c.bf16 %v13616_v59, %v13604_v6  ;;  %v13856_v8 = vmul.f32 %v13261_v63, %v16694_v38  ;;  %v16696_v16 = vld [vmem:[#allocation175_spill] sm:$0xff] }
 0x3be   : > { %16685 = vst [vmem:[#allocation177_spill] sm:$0xff] %v13815_v11  ;;  %v13825_v46 = vmul.f32 %v13335_v14, %v16688_v22  ;;  %v16692_v14 = vld [vmem:[#allocation125_spill] sm:$0xff]  ;;  %v13848_v30 = vmul.f32 %v13362_v47, %v16693_v40  ;;  %v16695_v10 = vld [vmem:[#allocation136_spill] sm:$0xff]  ;;  %9931 = vmatpush3.bf16.msra.mxu1 %v11037_v44  ;;  %v16705_v44 = vld [vmem:[#allocation146_spill] sm:$0xff] }
 0x3bf   : > { %v13844_v22 = vmul.f32 %v13372_v26, %v16692_v14  ;;  %v13860_v11 = vmul.f32 %v16696_v16, %v16695_v10  ;;  %v16697_v26 = vld [vmem:[#allocation179_spill] sm:$0xff]  ;;  %v16698_v14 = vld [vmem:[#allocation180_spill] sm:$0xff]  ;;  %9932 = vmatprep.subr.bf16.mxu1 %v11038_v28  ;;  %v11039_v10 = vld [vmem:[%s11969_s0 + $0x2e0] sm:$0xff]  }
 0x3c0   : > { %v16699_v57 = vpack.c.bf16 %v16697_v26, %v16698_v14  ;;  %v16700_v6 = vld [vmem:[#allocation168_spill] sm:$0xff]  ;;  %v16701_v38 = vld [vmem:[#allocation153_spill] sm:$0xff]  ;;  %v16707_v23 = vld [vmem:[#allocation142_spill] sm:$0xff] }
 0x3c1   : > { %v16703_v14 = vld [vmem:[#allocation144_spill] sm:$0xff]  ;;  %v13892_v63 = vmul.f32 %v13209_v52, %v16707_v23  ;;  %v16708_v40 = vld [vmem:[#allocation151_spill] sm:$0xff]  ;;  %v16714_v23 = vld [vmem:[#allocation150_spill] sm:$0xff] }
 0x3c2   : > { %9915 = vmatmul.mubr.bf16.gmra.mrb[4].mxu1 %v16699_v57  ;;  %v13876_v57 = vmul.f32 %v16649_v58, %v16701_v38  ;;  %v13880_v26 = vmul.f32 %v13189_v4, %v16703_v14  ;;  %v16704_v59 = vld [vmem:[#allocation140_spill] sm:$0xff]  ;;  %v13896_v58 = vmul.f32 %v13416_v18, %v16708_v40  ;;  %v16710_v38 = vld [vmem:[#allocation147_spill] sm:$0xff]  ;;  %v16712_v14 = vld [vmem:[#allocation145_spill] sm:$0xff] }
 0x3c3   : > { %9918 = vmatprep.mubr.bf16.mxu1 %v3161_v55  ;;  %v13884_v47 = vmul.f32 %v13192_v37, %v16704_v59  ;;  %v13888_v55 = vmul.f32 %v13207_v60, %v16705_v44  ;;  %v13900_v4 = vmul.f32 %v13243_v27, %v16710_v38  ;;  %v13904_v37 = vmul.f32 %v13217_v42, %v16712_v14  ;;  %v11040_v18 = vld [vmem:[%s11969_s0 + $0x2e8] sm:$0xff]   ;;  %v16715_v38 = vld [vmem:[#allocation148_spill] sm:$0xff]  ;;  %v16716_v60 = vld [vmem:[#allocation89_spill] sm:$0xff] }
 0x3c4   : > { %16702 = vst [vmem:[#allocation186_spill] sm:$0xff] %v13876_v57  ;;  %16709 = vst [vmem:[#allocation175_spill] sm:$0xff] %v13896_v58  ;;  %9933 = vmatpush3.bf16.msra.mxu1 %v11038_v28  ;;  %v13912_v44 = vmul.f32 %v16643_v32, %v16714_v23  ;;  %v13919_v42 = vmul.f32 %v16646_v2, %v16715_v38  ;;  %v13925_v52 = vmul.f32 %v13673_v1, %v16716_v60  ;;  %v16717_v14 = vld [vmem:[#allocation155_spill] sm:$0xff]  ;;  %v16718_v40 = vld [vmem:[#allocation152_spill] sm:$0xff] }
 0x3c5   : > { %16706 = vst [vmem:[#allocation178_spill] sm:$0xff] %v13888_v55  ;;  %16711 = vst [vmem:[#allocation179_spill] sm:$0xff] %v13900_v4  ;;  %9934 = vmatprep.subr.bf16.mxu1 %v11039_v10  ;;  %v13929_v23 = vmul.f32 %v13641_v12, %v16717_v14  ;;  %v13933_v59 = vmul.f32 %v16656_v48, %v16718_v40  ;;  %v16719_v27 = vld [vmem:[#allocation156_spill] sm:$0xff]  ;;  %v16720_v4 = vld [vmem:[#allocation182_spill] sm:$0xff] }
 0x3c6   : > { %16713 = vst [vmem:[#allocation180_spill] sm:$0xff] %v13904_v37  ;;  %v13937_v38 = vmul.f32 %v16659_v31, %v16719_v27  ;;  %v16721_v37 = vld [vmem:[#allocation181_spill] sm:$0xff]  ;;  %v16723_v58 = vld [vmem:[#allocation154_spill] sm:$0xff]  ;;  %v16726_v31 = vld [vmem:[#allocation183_spill] sm:$0xff] }
 0x3c7   : > { %v16722_v28 = vpack.c.bf16 %v16720_v4, %v16721_v37  ;;  %v13946_v57 = vmul.f32 %v13468_v24, %v16723_v58  ;;  %v16724_v14 = vld [vmem:[#allocation158_spill] sm:$0xff]  ;;  %v16725_v48 = vld [vmem:[#allocation157_spill] sm:$0xff]  ;;  %v16727_v27 = vld [vmem:[#allocation184_spill] sm:$0xff] }
 0x3c8   : > { %v13950_v55 = vmul.f32 %v13464_v5, %v16724_v14  ;;  %v13954_v40 = vmul.f32 %v16667_v21, %v16725_v48  ;;  %9935 = vmatpush3.bf16.msra.mxu1 %v11039_v10  ;;  %v16728_v4 = vpack.c.bf16 %v16726_v31, %v16727_v27  ;;  %v11041_v60 = vld [vmem:[%s11969_s0 + $0x2f0] sm:$0xff]   ;;  %v16732_v31 = vld [vmem:[#allocation161_spill] sm:$0xff]  ;;  %v16733_v37 = vld [vmem:[#allocation162_spill] sm:$0xff] }
 0x3c9   : > { %9936 = vmatprep.subr.bf16.mxu1 %v11040_v18  ;;  %v16730_v10 = vld [vmem:[#allocation159_spill] sm:$0xff]  ;;  %v13980_v24 = vmul.f32 %v13630_v19, %v16733_v37  ;;  %v16737_v58 = vld [vmem:[#allocation185_spill] sm:$0xff]  ;;  %v16738_v48 = vld [vmem:[#allocation188_spill] sm:$0xff] }
 0x3ca   : > { %9919 = vmatmul.mubr.bf16.gmra.mrb[8].mxu1 %v16722_v28  ;;  %v16729_v28 = vld [vmem:[#allocation160_spill] sm:$0xff]  ;;  %v13972_v27 = vmul.f32 %v13507_v53, %v16730_v10  ;;  %v16735_v21 = vld [vmem:[#allocation163_spill] sm:$0xff]  ;;  %v11043_v53 = vld [vmem:[%s11969_s0 + $0x300] sm:$0xff]  }
 0x3cb   : > { %9922 = vmatprep.mubr.bf16.mxu1 %v16728_v4  ;;  %v13965_v5 = vmul.f32 %v16670_v17, %v16729_v28  ;;  %v13976_v4 = vmul.f32 %v13503_v54, %v16732_v31  ;;  %v16734_v17 = vld [vmem:[#allocation53_spill] sm:$0xff]  ;;  %v13988_v14 = vmul.f32 %v13624_v25, %v16735_v21  ;;  %v16736_v54 = vld [vmem:[#allocation54_spill] sm:$0xff] }
 0x3cc   : > { %16731 = vst [vmem:[#allocation168_spill] sm:$0xff] %v13972_v27  ;;  %v3545_v28 = vmul.f32 %v13630_v19, %v16734_v17  ;;  %9937 = vmatpush3.bf16.msra.mxu1 %v11040_v18  ;;  %v3546_v31 = vmul.f32 %v13624_v25, %v16736_v54  ;;  %v11042_v19 = vld [vmem:[%s11969_s0 + $0x2f8] sm:$0xff]   ;;  %v16739_v17 = vpack.c.bf16 %v16737_v58, %v16738_v48  ;;  %v16740_v18 = vld [vmem:[#allocation55_spill] sm:$0xff]  ;;  %v16741_v27 = vld [vmem:[#allocation57_spill] sm:$0xff] }
 0x3cd   : > { %9938 = vmatprep.subr.bf16.mxu1 %v11041_v60  ;;  %v3547_v21 = vmul.f32 %v16643_v32, %v16740_v18  ;;  %v3548_v25 = vmul.f32 %v16646_v2, %v16741_v27  ;;  %v16742_v58 = vld [vmem:[#allocation191_spill] sm:$0xff]  ;;  %v16743_v48 = vld [vmem:[#allocation190_spill] sm:$0xff] }
 0x3ce   : > { %v3561_v10 = vpack.c.bf16 %v3546_v31, %v3545_v28  ;;  %v11044_v28 = vld [vmem:[%s11969_s0 + $0x308] sm:$0xff]  }
 0x3cf   : > { %v3562_v37 = vpack.c.bf16 %v3548_v25, %v3547_v21  ;;  %v16745_v31 = vld [vmem:[#allocation58_spill] sm:$0xff] }
 0x3d0   : > { %9939 = vmatpush3.bf16.msra.mxu1 %v11041_v60  ;;  %v16744_v60 = vpack.c.bf16 %v16742_v58, %v16743_v48  ;;  %v3551_v32 = vmul.f32 %v13673_v1, %v16745_v31  ;;  %v11047_v58 = vld [vmem:[%s11969_s0 + $0x320] sm:$0xff]   ;;  %v11048_v1 = vld [vmem:[%s11969_s0 + $0x328] sm:$0xff]   ;;  %v16750_v48 = vld [vmem:[#allocation199_spill] sm:$0xff] }
 0x3d1   : > { %9940 = vmatprep.subr.bf16.mxu1 %v11042_v19 }
 0x3d2   : > { %9923 = vmatmul.mubr.bf16.gmra.mrb[12].mxu1 %v16739_v17  ;;  %v16746_v17 = vld [vmem:[#allocation61_spill] sm:$0xff] }
 0x3d3   : > { %9942 = vmatprep.mubr.bf16.mxu1 %v3561_v10  ;;  %v11045_v10 = vld [vmem:[%s11969_s0 + $0x310] sm:$0xff]   ;;  %v3552_v2 = vmul.f32 %v13641_v12, %v16746_v17  ;;  %v16751_v12 = vpack.c.bf16 %v13491_v3, %v16750_v48  ;;  %v11050_v3 = vld [vmem:[%s11969_s0 + $0x338] sm:$0xff]  }
 0x3d4   : > { %9941 = vmatpush3.bf16.msra.mxu1 %v11042_v19  ;;  %v11046_v19 = vld [vmem:[%s11969_s0 + $0x318] sm:$0xff]   ;;  %v16760_v48 = vld [vmem:[#allocation203_spill] sm:$0xff] }
 0x3d5   : > { %9958 = vmatprep.subr.bf16.mxu1 %v11043_v53  ;;  %v3564_v21 = vpack.c.bf16 %v3552_v2, %v3551_v32  ;;  %v16754_v32 = vld [vmem:[#allocation68_spill] sm:$0xff] }
 0x3d6   : > { %v3747_v2 = vmul.f32 %v16696_v16, %v16754_v32  ;;  %v11052_v16 = vld [vmem:[%s11969_s0 + $0x348] sm:$0xff]   ;;  %v16902_v32 = vld [vmem:[#allocation40_spill] sm:$0xff] }
 0x3da   : > { %9943 = vmatmul.mubr.bf16.vlgmr.msra.gmra.mrb[0].mxu1 %v3562_v37  ;;  %v16747_v37 = vld [vmem:[#allocation195_spill] sm:$0xff] }
 0x3db   : > { %9959 = vmatpush3.bf16.msra.mxu1 %v11043_v53  ;;  %9946 = vmatprep.mubr.bf16.mxu1 %v16744_v60  ;;  %v16748_v53 = vld [vmem:[#allocation194_spill] sm:$0xff] }
 0x3dc   : > { %9960 = vmatprep.subr.bf16.mxu1 %v11044_v28  ;;  %v16749_v25 = vpack.c.bf16 %v16747_v37, %v16748_v53  ;;  %v16756_v53 = vld [vmem:[#allocation202_spill] sm:$0xff] }
 0x3df   : > { %9961 = vmatpush3.bf16.msra.mxu1 %v11044_v28  ;;  %v16752_v28 = vld [vmem:[#allocation200_spill] sm:$0xff] }
 0x3e0   : > { %9962 = vmatprep.subr.bf16.mxu1 %v11045_v10  ;;  %v16753_v60 = vpack.c.bf16 %v13499_v35, %v16752_v28  ;;  %v11051_v35 = vld [vmem:[%s11969_s0 + $0x340] sm:$0xff]   ;;  %v16763_v28 = vld [vmem:[#allocation204_spill] sm:$0xff] }
 0x3e2   : > { %9947 = vmatmul.mubr.bf16.gmra.mrb[4].mxu1 %v3564_v21  ;;  %v16755_v21 = vld [vmem:[#allocation71_spill] sm:$0xff] }
 0x3e3   : > { %9963 = vmatpush3.bf16.msra.mxu1 %v11045_v10  ;;  %9950 = vmatprep.mubr.bf16.mxu1 %v16749_v25  ;;  %v11049_v10 = vld [vmem:[%s11969_s0 + $0x330] sm:$0xff]   ;;  %v16757_v25 = vld [vmem:[#allocation201_spill] sm:$0xff] }
 0x3e4   : > { %9964 = vmatprep.subr.bf16.mxu1 %v11046_v19 }
 0x3e7   : > { %9965 = vmatpush3.bf16.msra.mxu1 %v11046_v19  ;;  %v3748_v19 = vmul.f32 %v16679_v49, %v16755_v21  ;;  %v16762_v49 = vld [vmem:[#allocation205_spill] sm:$0xff]  ;;  %v16909_v21 = vld [vmem:[#allocation43_spill] sm:$0xff] }
 0x3e8   : > { %9966 = vmatprep.subr.bf16.mxu1 %v11047_v58 }
 0x3e9   : > { %v3763_v37 = vpack.c.bf16 %v3748_v19, %v3747_v2  ;;  %v16765_v2 = vld [vmem:[#allocation77_spill] sm:$0xff] }
 0x3ea   : > { %9951 = vmatmul.mubr.bf16.gmra.mrb[8].mxu1 %v16751_v12  ;;  %v3753_v19 = vmul.f32 %v16683_v9, %v16765_v2  ;;  %v11056_v9 = vld [vmem:[%s11969_s0 + $0x368] sm:$0xff]  }
 0x3eb   : > { %9967 = vmatpush3.bf16.msra.mxu1 %v11047_v58  ;;  %9954 = vmatprep.mubr.bf16.mxu1 %v16753_v60  ;;  %v16758_v58 = vpack.c.bf16 %v16756_v53, %v16757_v25  ;;  %v16764_v60 = vpack.c.bf16 %v16762_v49, %v16763_v28  ;;  %v11054_v25 = vld [vmem:[%s11969_s0 + $0x358] sm:$0xff]   ;;  %v16773_v49 = vld [vmem:[#allocation87_spill] sm:$0xff] }
 0x3ec   : > { %9968 = vmatprep.subr.bf16.mxu1 %v11048_v1  ;;  %v3949_v28 = vmul.f32 %v13110_v43, %v16773_v49  ;;  %v16899_v49 = vld [vmem:[#allocation41_spill] sm:$0xff] }
 0x3ef   : > { %9969 = vmatpush3.bf16.msra.mxu1 %v11048_v1  ;;  %v16759_v1 = vld [vmem:[#allocation198_spill] sm:$0xff] }
 0x3f0   : > { %9970 = vmatprep.subr.bf16.mxu1 %v11049_v10  ;;  %v16761_v12 = vpack.c.bf16 %v16759_v1, %v16760_v48  ;;  %v16768_v1 = vld [vmem:[#allocation207_spill] sm:$0xff] }
 0x3f1   : > { %v11057_v48 = vld [vmem:[%s11969_s0 + $0x370] sm:$0xff]  }
 0x3f2   : > { %9955 = vmatmul.mubr.bf16.gmra.mrb[12].mxu1 %v16758_v58  ;;  %v16767_v58 = vpack.c.bf16 %v13575_v62, %v13569_v13  ;;  %v16771_v13 = vld [vmem:[#allocation84_spill] sm:$0xff]  ;;  %v16772_v62 = vld [vmem:[#allocation167_spill] sm:$0xff] }
 0x3f3   : > { %9971 = vmatpush3.bf16.msra.mxu1 %v11049_v10  ;;  %9974 = vmatprep.mubr.bf16.mxu1 %v3763_v37  ;;  %v11053_v10 = vld [vmem:[%s11969_s0 + $0x350] sm:$0xff]   ;;  %v16766_v37 = vld [vmem:[#allocation74_spill] sm:$0xff] }
 0x3f4   : > { %9972 = vmatprep.subr.bf16.mxu1 %v11050_v3 }
 0x3f7   : > { %9973 = vmatpush3.bf16.msra.mxu1 %v11050_v3  ;;  %v3754_v3 = vmul.f32 %v13563_v50, %v16766_v37  ;;  %v16769_v50 = vpack.c.bf16 %v13583_v34, %v16768_v1 }
 0x3f8   : > { %9990 = vmatprep.subr.bf16.mxu1 %v11051_v35 }
 0x3f9   : > { %v3766_v53 = vpack.c.bf16 %v3754_v3, %v3753_v19  ;;  %v16775_v19 = vld [vmem:[#allocation209_spill] sm:$0xff] }
 0x3fa   : > { %9975 = vmatmul.mubr.bf16.vlgmr.msra.gmra.mrb[0].mxu1 %v16761_v12  ;;  %v3950_v12 = vmul.f32 %v16772_v62, %v16771_v13 }
 0x3fb   : > { %9991 = vmatpush3.bf16.msra.mxu1 %v11051_v35  ;;  %9978 = vmatprep.mubr.bf16.mxu1 %v16764_v60  ;;  %v11055_v35 = vld [vmem:[%s11969_s0 + $0x360] sm:$0xff]   ;;  %v11058_v60 = vld [vmem:[%s11969_s0 + $0x378] sm:$0xff]  }
 0x3fc   : > { %9992 = vmatprep.subr.bf16.mxu1 %v11052_v16  ;;  %v3965_v34 = vpack.c.bf16 %v3950_v12, %v3949_v28  ;;  %v16782_v12 = vld [vmem:[#allocation211_spill] sm:$0xff] }
 0x3fd   : > { %v11061_v28 = vld [vmem:[%s11969_s0 + $0x390] sm:$0xff]  }
 0x3ff   : > { %9993 = vmatpush3.bf16.msra.mxu1 %v11052_v16  ;;  %v16770_v16 = vpack.c.bf16 %v13595_v51, %v13591_v29  ;;  %v16777_v51 = vld [vmem:[#allocation92_spill] sm:$0xff]  ;;  %v16778_v29 = vld [vmem:[#allocation166_spill] sm:$0xff] }
 0x400   : > { %9994 = vmatprep.subr.bf16.mxu1 %v11053_v10 }
 0x402   : > { %9979 = vmatmul.mubr.bf16.gmra.mrb[4].mxu1 %v3766_v53  ;;  %v3952_v53 = vmul.f32 %v16778_v29, %v16777_v51  ;;  %v16787_v29 = vld [vmem:[#allocation170_spill] sm:$0xff] }
 0x403   : > { %9995 = vmatpush3.bf16.msra.mxu1 %v11053_v10  ;;  %9982 = vmatprep.mubr.bf16.mxu1 %v16767_v58  ;;  %v16774_v10 = vld [vmem:[#allocation210_spill] sm:$0xff] }
 0x404   : > { %9996 = vmatprep.subr.bf16.mxu1 %v11054_v25  ;;  %v16776_v3 = vpack.c.bf16 %v16774_v10, %v16775_v19  ;;  %v16779_v58 = vld [vmem:[#allocation90_spill] sm:$0xff]  ;;  %v16785_v10 = vld [vmem:[#allocation171_spill] sm:$0xff] }
 0x407   : > { %9997 = vmatpush3.bf16.msra.mxu1 %v11054_v25  ;;  %v11059_v25 = vld [vmem:[%s11969_s0 + $0x380] sm:$0xff]  }
 0x408   : > { %9998 = vmatprep.subr.bf16.mxu1 %v11055_v35 }
 0x40a   : > { %9983 = vmatmul.mubr.bf16.gmra.mrb[8].mxu1 %v16769_v50  ;;  %v11060_v50 = vld [vmem:[%s11969_s0 + $0x388] sm:$0xff]  }
 0x40b   : > { %9999 = vmatpush3.bf16.msra.mxu1 %v11055_v35  ;;  %9986 = vmatprep.mubr.bf16.mxu1 %v16770_v16  ;;  %v16780_v35 = vld [vmem:[#allocation165_spill] sm:$0xff]  ;;  %v16781_v16 = vld [vmem:[#allocation212_spill] sm:$0xff] }
 0x40c   : > { %10000 = vmatprep.subr.bf16.mxu1 %v11056_v9 }
 0x40f   : > { %10001 = vmatpush3.bf16.msra.mxu1 %v11056_v9  ;;  %v3951_v9 = vmul.f32 %v16780_v35, %v16779_v58 }
 0x410   : > { %10002 = vmatprep.subr.bf16.mxu1 %v11057_v48 }
 0x411   : > { %v3966_v1 = vpack.c.bf16 %v3952_v53, %v3951_v9  ;;  %v11062_v53 = vld [vmem:[%s11969_s0 + $0x398] sm:$0xff]   ;;  %v16789_v9 = vld [vmem:[#allocation214_spill] sm:$0xff] }
 0x412   : > { %9987 = vmatmul.mubr.bf16.gmra.mrb[12].mxu1 %v16776_v3  ;;  %v16786_v3 = vld [vmem:[#allocation88_spill] sm:$0xff] }
 0x413   : > { %10003 = vmatpush3.bf16.msra.mxu1 %v11057_v48  ;;  %10006 = vmatprep.mubr.bf16.mxu1 %v3965_v34  ;;  %v16783_v48 = vpack.c.bf16 %v16781_v16, %v16782_v12  ;;  %v16784_v34 = vld [vmem:[#allocation96_spill] sm:$0xff]  ;;  %v3955_v58 = vmul.f32 %v16787_v29, %v16786_v3  ;;  %v11063_v16 = vld [vmem:[%s11969_s0 + $0x3a0] sm:$0xff]   ;;  %v11064_v12 = vld [vmem:[%s11969_s0 + $0x3a8] sm:$0xff]  }
 0x414   : > { %10004 = vmatprep.subr.bf16.mxu1 %v11058_v60  ;;  %v3956_v19 = vmul.f32 %v16785_v10, %v16784_v34  ;;  %v16792_v3 = vld [vmem:[#allocation216_spill] sm:$0xff] }
 0x417   : > { %10005 = vmatpush3.bf16.msra.mxu1 %v11058_v60  ;;  %v3968_v60 = vpack.c.bf16 %v3956_v19, %v3955_v58  ;;  %v16794_v58 = vld [vmem:[#allocation219_spill] sm:$0xff]  ;;  %v16795_v19 = vld [vmem:[#allocation218_spill] sm:$0xff] }
 0x418   : > { %10022 = vmatprep.subr.bf16.mxu1 %v11059_v25 }
 0x41a   : > { %10007 = vmatmul.mubr.bf16.vlgmr.msra.gmra.mrb[0].mxu1 %v3966_v1 }
 0x41b   : > { %10023 = vmatpush3.bf16.msra.mxu1 %v11059_v25  ;;  %10010 = vmatprep.mubr.bf16.mxu1 %v16783_v48  ;;  %v16788_v25 = vld [vmem:[#allocation215_spill] sm:$0xff]  ;;  %v16791_v48 = vld [vmem:[#allocation217_spill] sm:$0xff] }
 0x41c   : > { %10024 = vmatprep.subr.bf16.mxu1 %v11060_v50  ;;  %v16790_v1 = vpack.c.bf16 %v16788_v25, %v16789_v9  ;;  %v11066_v25 = vld [vmem:[%s11969_s0 + $0x3b8] sm:$0xff]   ;;  %v16797_v9 = vld [vmem:[#allocation221_spill] sm:$0xff] }
 0x41f   : > { %10025 = vmatpush3.bf16.msra.mxu1 %v11060_v50  ;;  %v16793_v50 = vpack.c.bf16 %v16791_v48, %v16792_v3  ;;  %v16800_v3 = vld [vmem:[#allocation187_spill] sm:$0xff]  ;;  %v16801_v48 = vld [vmem:[#allocation222_spill] sm:$0xff] }
 0x420   : > { %10026 = vmatprep.subr.bf16.mxu1 %v11061_v28 }
 0x422   : > { %10011 = vmatmul.mubr.bf16.gmra.mrb[4].mxu1 %v3968_v60  ;;  %v16796_v60 = vpack.c.bf16 %v16794_v58, %v16795_v19  ;;  %v11068_v58 = vld [vmem:[%s11969_s0 + $0x3c8] sm:$0xff]   ;;  %v16803_v19 = vld [vmem:[#allocation213_spill] sm:$0xff] }
 0x423   : > { %10027 = vmatpush3.bf16.msra.mxu1 %v11061_v28  ;;  %10014 = vmatprep.mubr.bf16.mxu1 %v16790_v1  ;;  %v11065_v28 = vld [vmem:[%s11969_s0 + $0x3b0] sm:$0xff]  }
 0x424   : > { %10028 = vmatprep.subr.bf16.mxu1 %v11062_v53 }
 0x427   : > { %10029 = vmatpush3.bf16.msra.mxu1 %v11062_v53  ;;  %v16798_v53 = vld [vmem:[#allocation220_spill] sm:$0xff] }
 0x428   : > { %10030 = vmatprep.subr.bf16.mxu1 %v11063_v16  ;;  %v16799_v1 = vpack.c.bf16 %v16797_v9, %v16798_v53  ;;  %v16806_v9 = vld [vmem:[#allocation223_spill] sm:$0xff]  ;;  %v16807_v53 = vld [vmem:[#allocation189_spill] sm:$0xff] }
 0x42a   : > { %10015 = vmatmul.mubr.bf16.gmra.mrb[8].mxu1 %v16793_v50  ;;  %v16802_v50 = vpack.c.bf16 %v16800_v3, %v16801_v48  ;;  %v11070_v3 = vld [vmem:[%s11969_s0 + $0x3d8] sm:$0xff]   ;;  %v16809_v48 = vld [vmem:[#allocation193_spill] sm:$0xff] }
 0x42b   : > { %10031 = vmatpush3.bf16.msra.mxu1 %v11063_v16  ;;  %10018 = vmatprep.mubr.bf16.mxu1 %v16796_v60  ;;  %v11067_v16 = vld [vmem:[%s11969_s0 + $0x3c0] sm:$0xff]  }
 0x42c   : > { %10032 = vmatprep.subr.bf16.mxu1 %v11064_v12 }
 0x42f   : > { %10033 = vmatpush3.bf16.msra.mxu1 %v11064_v12  ;;  %v16804_v12 = vld [vmem:[#allocation169_spill] sm:$0xff] }
 0x430   : > { %10034 = vmatprep.subr.bf16.mxu1 %v11065_v28  ;;  %v16805_v60 = vpack.c.bf16 %v16803_v19, %v16804_v12  ;;  %v16812_v19 = vld [vmem:[#allocation225_spill] sm:$0xff]  ;;  %v16813_v12 = vld [vmem:[#allocation192_spill] sm:$0xff] }
 0x432   : > { %10019 = vmatmul.mubr.bf16.gmra.mrb[12].mxu1 %v16799_v1  ;;  %v16808_v1 = vpack.c.bf16 %v16806_v9, %v16807_v53  ;;  %v11072_v9 = vld [vmem:[%s11969_s0 + $0x3e8] sm:$0xff]   ;;  %v16815_v53 = vld [vmem:[#allocation197_spill] sm:$0xff] }
 0x433   : > { %10035 = vmatpush3.bf16.msra.mxu1 %v11065_v28  ;;  %10038 = vmatprep.mubr.bf16.mxu1 %v16802_v50  ;;  %v11069_v28 = vld [vmem:[%s11969_s0 + $0x3d0] sm:$0xff]  }
 0x434   : > { %10036 = vmatprep.subr.bf16.mxu1 %v11066_v25 }
 0x437   : > { %10037 = vmatpush3.bf16.msra.mxu1 %v11066_v25  ;;  %v16810_v25 = vld [vmem:[#allocation224_spill] sm:$0xff] }
 0x438   : > { %10054 = vmatprep.subr.bf16.mxu1 %v11067_v16  ;;  %v16811_v50 = vpack.c.bf16 %v16809_v48, %v16810_v25  ;;  %v16818_v48 = vld [vmem:[#allocation196_spill] sm:$0xff] }
 0x439   : > { %v16819_v25 = vpack.c.bf16 %v13776_v0, %v16818_v48  ;;  %v11076_v0 = vld [vmem:[%s11969_s0 + $0x408] sm:$0xff]   ;;  %v11079_v48 = vld [vmem:[%s11969_s0 + $0x420] sm:$0xff]  }
 0x43a   : > { %10039 = vmatmul.mubr.bf16.vlgmr.msra.gmra.mrb[0].mxu1 %v16805_v60  ;;  %v16814_v60 = vpack.c.bf16 %v16812_v19, %v16813_v12  ;;  %v16821_v19 = vpack.c.bf16 %v13795_v36, %v13791_v41  ;;  %v11075_v12 = vld [vmem:[%s11969_s0 + $0x400] sm:$0xff]   ;;  %v11078_v41 = vld [vmem:[%s11969_s0 + $0x418] sm:$0xff]  }
 0x43b   : > { %10055 = vmatpush3.bf16.msra.mxu1 %v11067_v16  ;;  %10042 = vmatprep.mubr.bf16.mxu1 %v16808_v1  ;;  %v11071_v16 = vld [vmem:[%s11969_s0 + $0x3e0] sm:$0xff]   ;;  %v16826_v36 = vld [vmem:[#allocation176_spill] sm:$0xff] }
 0x43c   : > { %10056 = vmatprep.subr.bf16.mxu1 %v11068_v58 }
 0x43f   : > { %10057 = vmatpush3.bf16.msra.mxu1 %v11068_v58  ;;  %v16816_v58 = vld [vmem:[#allocation226_spill] sm:$0xff] }
 0x440   : > { %10058 = vmatprep.subr.bf16.mxu1 %v11069_v28  ;;  %v16817_v1 = vpack.c.bf16 %v16815_v53, %v16816_v58  ;;  %v16827_v53 = vld [vmem:[#allocation177_spill] sm:$0xff] }
 0x441   : > { %v16828_v58 = vpack.c.bf16 %v16826_v36, %v16827_v53  ;;  %v11086_v53 = vld [vmem:[%s11969_s0 + $0x458] sm:$0xff]  }
 0x442   : > { %10043 = vmatmul.mubr.bf16.gmra.mrb[4].mxu1 %v16811_v50  ;;  %v11074_v50 = vld [vmem:[%s11969_s0 + $0x3f8] sm:$0xff]  }
 0x443   : > { %10059 = vmatpush3.bf16.msra.mxu1 %v11069_v28  ;;  %10046 = vmatprep.mubr.bf16.mxu1 %v16814_v60  ;;  %v11073_v28 = vld [vmem:[%s11969_s0 + $0x3f0] sm:$0xff]   ;;  %v16822_v60 = vld [vmem:[#allocation208_spill] sm:$0xff] }
 0x444   : > { %10060 = vmatprep.subr.bf16.mxu1 %v11070_v3 }
 0x447   : > { %10061 = vmatpush3.bf16.msra.mxu1 %v11070_v3  ;;  %v16820_v3 = vpack.c.bf16 %v13787_v33, %v13780_v45  ;;  %v16825_v45 = vpack.c.bf16 %v13807_v61, %v13803_v15  ;;  %v11077_v33 = vld [vmem:[%s11969_s0 + $0x410] sm:$0xff]   ;;  %v11080_v15 = vld [vmem:[%s11969_s0 + $0x428] sm:$0xff]   ;;  %v16830_v61 = vpack.c.bf16 %v13840_v20, %v13833_v56  ;;  %v16834_v20 = vpack.c.bf16 %v13860_v11, %v13856_v8 }
 0x448   : > { %10062 = vmatprep.subr.bf16.mxu1 %v11071_v16  ;;  %v16838_v11 = vpack.c.bf16 %v13531_v7, %v16700_v6  ;;  %v11085_v8 = vld [vmem:[%s11969_s0 + $0x450] sm:$0xff]   ;;  %v16842_v7 = vpack.c.bf16 %v13884_v47, %v13880_v26  ;;  %v11087_v6 = vld [vmem:[%s11969_s0 + $0x460] sm:$0xff]   ;;  %v16849_v47 = vld [vmem:[#allocation174_spill] sm:$0xff] }
 0x44a   : > { %10047 = vmatmul.mubr.bf16.gmra.mrb[8].mxu1 %v16817_v1  ;;  %v16829_v1 = vpack.c.bf16 %v13829_v39, %v13825_v46  ;;  %v16832_v39 = vld [vmem:[#allocation130_spill] sm:$0xff] }
 0x44b   : > { %10063 = vmatpush3.bf16.msra.mxu1 %v11071_v16  ;;  %10050 = vmatprep.mubr.bf16.mxu1 %v16819_v25  ;;  %v16823_v16 = vld [vmem:[#allocation206_spill] sm:$0xff]  ;;  %v16831_v25 = vpack.c.bf16 %v13848_v30, %v13844_v22  ;;  %v4555_v46 = vmul.f32 %v16772_v62, %v16832_v39  ;;  %v11083_v22 = vld [vmem:[%s11969_s0 + $0x440] sm:$0xff]   ;;  %v16837_v62 = vld [vmem:[#allocation135_spill] sm:$0xff] }
 0x44c   : > { %10064 = vmatprep.subr.bf16.mxu1 %v11072_v9  ;;  %v16835_v30 = vld [vmem:[#allocation141_spill] sm:$0xff]  ;;  %v16894_v39 = vld [vmem:[#allocation36_spill] sm:$0xff] }
 0x44f   : > { %10065 = vmatpush3.bf16.msra.mxu1 %v11072_v9  ;;  %v16824_v9 = vpack.c.bf16 %v16822_v60, %v16823_v16  ;;  %v11084_v60 = vld [vmem:[%s11969_s0 + $0x448] sm:$0xff]  }
 0x450   : > { %10066 = vmatprep.subr.bf16.mxu1 %v11073_v28 }
 0x452   : > { %10051 = vmatmul.mubr.bf16.gmra.mrb[12].mxu1 %v16820_v3 }
 0x453   : > { %10067 = vmatpush3.bf16.msra.mxu1 %v11073_v28  ;;  %10070 = vmatprep.mubr.bf16.mxu1 %v16821_v19  ;;  %v11081_v28 = vld [vmem:[%s11969_s0 + $0x430] sm:$0xff]   ;;  %v11082_v19 = vld [vmem:[%s11969_s0 + $0x438] sm:$0xff]  }
 0x454   : > { %10068 = vmatprep.subr.bf16.mxu1 %v11074_v50 }
 0x457   : > { %10069 = vmatpush3.bf16.msra.mxu1 %v11074_v50  ;;  %v16833_v50 = vld [vmem:[#allocation138_spill] sm:$0xff] }
 0x458   : > { %10086 = vmatprep.subr.bf16.mxu1 %v11075_v12  ;;  %v4556_v3 = vmul.f32 %v16780_v35, %v16833_v50  ;;  %v4560_v35 = vmul.f32 %v16787_v29, %v16837_v62  ;;  %v16888_v62 = vld [vmem:[#allocation35_spill] sm:$0xff] }
 0x45a   : > { %10071 = vmatmul.mubr.bf16.vlgmr.msra.gmra.mrb[0].mxu1 %v16824_v9  ;;  %v4571_v56 = vpack.c.bf16 %v4556_v3, %v4555_v46  ;;  %v16839_v9 = vld [vmem:[#allocation137_spill] sm:$0xff] }
 0x45b   : > { %10087 = vmatpush3.bf16.msra.mxu1 %v11075_v12  ;;  %10074 = vmatprep.mubr.bf16.mxu1 %v16825_v45  ;;  %v16836_v12 = vld [vmem:[#allocation172_spill] sm:$0xff]  ;;  %v16840_v45 = vld [vmem:[#allocation173_spill] sm:$0xff] }
 0x45c   : > { %10088 = vmatprep.subr.bf16.mxu1 %v11076_v0  ;;  %v16850_v46 = vld [vmem:[#allocation101_spill] sm:$0xff] }
 0x45d   : > { %v4570_v3 = vmul.f32 %v13110_v43, %v16850_v46  ;;  %v16855_v43 = vpack.c.bf16 %v13929_v23, %v13925_v52  ;;  %v16861_v23 = vpack.c.bf16 %v13988_v14, %v13980_v24  ;;  %v16862_v52 = vmov 0   ;;  %v11096_v14 = vld [vmem:[%s11969_s0 + $0x4e8] sm:$0xff]   ;;  %v11097_v24 = vld [vmem:[%s11969_s0 + $0x4f0] sm:$0xff]  }
 0x45f   : > { %10089 = vmatpush3.bf16.msra.mxu1 %v11076_v0  ;;  %v4559_v0 = vmul.f32 %v16836_v12, %v16835_v30 }
 0x460   : > { %10090 = vmatprep.subr.bf16.mxu1 %v11077_v33 }
 0x461   : > { %v4573_v16 = vpack.c.bf16 %v4560_v35, %v4559_v0  ;;  %v16856_v0 = vpack.c.bf16 %v13937_v38, %v13933_v59  ;;  %v16859_v35 = vld [vmem:[#allocation168_spill] sm:$0xff]  ;;  %v11091_v38 = vld [vmem:[%s11969_s0 + $0x4c0] sm:$0xff]   ;;  %v11092_v59 = vld [vmem:[%s11969_s0 + $0x4c8] sm:$0xff]  }
 0x462   : > { %10075 = vmatmul.mubr.bf16.gmra.mrb[4].mxu1 %v16828_v58  ;;  %v11088_v58 = vld [vmem:[%s11969_s0 + $0x468] sm:$0xff]   ;;  %10150 = vmatprep.subr.bf16.mxu0 %v11091_v38 }
 0x463   : > { %10091 = vmatpush3.bf16.msra.mxu1 %v11077_v33  ;;  %10078 = vmatprep.mubr.bf16.mxu1 %v16829_v1  ;;  %v4562_v33 = vmul.f32 %v16840_v45, %v16839_v9  ;;  %v16843_v1 = vld [vmem:[#allocation178_spill] sm:$0xff] }
 0x464   : > { %10092 = vmatprep.subr.bf16.mxu1 %v11078_v41  ;;  %10151 = vmatpush3.bf16.msra.mxu0 %v11091_v38 }
 0x465   : > { %10152 = vmatprep.subr.bf16.mxu0 %v11092_v59 }
 0x467   : > { %10093 = vmatpush3.bf16.msra.mxu1 %v11078_v41  ;;  %v16841_v41 = vld [vmem:[#allocation143_spill] sm:$0xff] }
 0x468   : > { %10094 = vmatprep.subr.bf16.mxu1 %v11079_v48  ;;  %v4561_v36 = vmul.f32 %v16785_v10, %v16841_v41  ;;  %v16844_v10 = vpack.c.bf16 %v13892_v63, %v16843_v1  ;;  %v16851_v63 = vpack.c.bf16 %v13919_v42, %v13912_v44  ;;  %v16857_v44 = vpack.c.bf16 %v13950_v55, %v13946_v57  ;;  %v11094_v57 = vld [vmem:[%s11969_s0 + $0x4d8] sm:$0xff]   ;;  %v11095_v55 = vld [vmem:[%s11969_s0 + $0x4e0] sm:$0xff]  }
 0x469   : > { %v16858_v42 = vpack.c.bf16 %v13965_v5, %v13954_v40  ;;  %v11093_v40 = vld [vmem:[%s11969_s0 + $0x4d0] sm:$0xff]   ;;  %10153 = vmatpush3.bf16.msra.mxu0 %v11092_v59  ;;  %v11098_v5 = vld [vmem:[%s11969_s0 + $0x4f8] sm:$0xff]  }
 0x46a   : > { %10079 = vmatmul.mubr.bf16.gmra.mrb[8].mxu1 %v16830_v61  ;;  %v4574_v29 = vpack.c.bf16 %v4562_v33, %v4561_v36  ;;  %10154 = vmatprep.subr.bf16.mxu0 %v11093_v40 }
 0x46b   : > { %10095 = vmatpush3.bf16.msra.mxu1 %v11079_v48  ;;  %10082 = vmatprep.mubr.bf16.mxu1 %v16831_v25  ;;  %v16845_v48 = vld [vmem:[#allocation180_spill] sm:$0xff]  ;;  %v11089_v25 = vld [vmem:[%s11969_s0 + $0x470] sm:$0xff]  }
 0x46c   : > { %10096 = vmatprep.subr.bf16.mxu1 %v11080_v15 }
 0x46d   : > { %10155 = vmatpush3.bf16.msra.mxu0 %v11093_v40 }
 0x46e   : > { %10156 = vmatprep.subr.bf16.mxu0 %v11094_v57 }
 0x46f   : > { %10097 = vmatpush3.bf16.msra.mxu1 %v11080_v15  ;;  %v16846_v15 = vld [vmem:[#allocation179_spill] sm:$0xff] }
 0x470   : > { %10098 = vmatprep.subr.bf16.mxu1 %v11081_v28  ;;  %v16847_v61 = vpack.c.bf16 %v16845_v48, %v16846_v15 }
 0x471   : > { %10157 = vmatpush3.bf16.msra.mxu0 %v11094_v57 }
 0x472   : > { %10083 = vmatmul.mubr.bf16.gmra.mrb[12].mxu1 %v16834_v20  ;;  %v16852_v20 = vld [vmem:[#allocation186_spill] sm:$0xff]  ;;  %10158 = vmatprep.subr.bf16.mxu0 %v11095_v55 }
 0x473   : > { %10099 = vmatpush3.bf16.msra.mxu1 %v11081_v28  ;;  %10102 = vmatprep.mubr.bf16.mxu1 %v4571_v56  ;;  %v16848_v28 = vld [vmem:[#allocation149_spill] sm:$0xff]  ;;  %v11090_v56 = vld [vmem:[%s11969_s0 + $0x478] sm:$0xff]  }
 0x474   : > { %10100 = vmatprep.subr.bf16.mxu1 %v11082_v19  ;;  %v4569_v26 = vmul.f32 %v16849_v47, %v16848_v28 }
 0x475   : > { %10159 = vmatpush3.bf16.msra.mxu0 %v11095_v55 }
 0x476   : > { %10160 = vmatprep.subr.bf16.mxu0 %v11096_v14 }
 0x477   : > { %10101 = vmatpush3.bf16.msra.mxu1 %v11082_v19  ;;  %v4578_v19 = vpack.c.bf16 %v4570_v3, %v4569_v26 }
 0x478   : > { %10118 = vmatprep.subr.bf16.mxu1 %v11083_v22 }
 0x479   : > { %10161 = vmatpush3.bf16.msra.mxu0 %v11096_v14 }
 0x47a   : > { %10103 = vmatmul.mubr.bf16.vlgmr.msra.gmra.mrb[0].mxu1 %v16838_v11  ;;  %10162 = vmatprep.subr.bf16.mxu0 %v11097_v24  ;;  %v14238_v11 = vld [vmem:[%s13088_s23 + $0x1] ss:$0 sm:$0xff] }
 0x47b   : > { %10119 = vmatpush3.bf16.msra.mxu1 %v11083_v22  ;;  %10106 = vmatprep.mubr.bf16.mxu1 %v4573_v16  ;;  %v16853_v22 = vld [vmem:[#allocation175_spill] sm:$0xff] }
 0x47c   : > { %10120 = vmatprep.subr.bf16.mxu1 %v11084_v60  ;;  %v16854_v12 = vpack.c.bf16 %v16852_v20, %v16853_v22 }
 0x47d   : > { %10163 = vmatpush3.bf16.msra.mxu0 %v11097_v24  ;;  %v16870_v24 = vld [vmem:[#allocation139_spill] sm:$0xff] }
 0x47e   : > { %10164 = vmatprep.subr.bf16.mxu0 %v11098_v5 }
 0x47f   : > { %10121 = vmatpush3.bf16.msra.mxu1 %v11084_v60  ;;  %v16860_v60 = vpack.c.bf16 %v13976_v4, %v16859_v35  ;;  %v14234_v4 = vld [vmem:[%s11969_s0 + $0x480] sm:$0xff]  }
 0x480   : > { %10122 = vmatprep.subr.bf16.mxu1 %v11085_v8 }
 0x481   : > { %10165 = vmatpush3.bf16.msra.mxu0 %v11098_v5 }
 0x482   : > { %10107 = vmatmul.mubr.bf16.gmra.mrb[4].mxu1 %v4574_v29  ;;  %10182 = vmatprep.subr.bf16.mxu0 %v14234_v4 }
 0x483   : > { %10123 = vmatpush3.bf16.msra.mxu1 %v11085_v8  ;;  %10110 = vmatprep.mubr.bf16.mxu1 %v16842_v7 }
 0x484   : > { %10124 = vmatprep.subr.bf16.mxu1 %v11086_v53 }
 0x487   : > { %10125 = vmatpush3.bf16.msra.mxu1 %v11086_v53 }
 0x488   : > { %10126 = vmatprep.subr.bf16.mxu1 %v11087_v6 }
 0x48a   : > { %10111 = vmatmul.mubr.bf16.gmra.mrb[8].mxu1 %v16844_v10 }
 0x48b   : > { %10127 = vmatpush3.bf16.msra.mxu1 %v11087_v6  ;;  %10114 = vmatprep.mubr.bf16.mxu1 %v16847_v61  ;;  %v16863_v6 = vld [vmem:[#allocation164_spill] sm:$0xff] }
 0x48c   : > { %10128 = vmatprep.subr.bf16.mxu1 %v11088_v58 }
 0x48f   : > { %10129 = vmatpush3.bf16.msra.mxu1 %v11088_v58 }
 0x490   : > { %10130 = vmatprep.subr.bf16.mxu1 %v11089_v25 }
 0x492   : > { %10115 = vmatmul.mubr.bf16.gmra.mrb[12].mxu1 %v4578_v19 }
 0x493   : > { %10131 = vmatpush3.bf16.msra.mxu1 %v11089_v25  ;;  %10134 = vmatprep.mubr.bf16.mxu1 %v16851_v63 }
 0x494   : > { %10132 = vmatprep.subr.bf16.mxu1 %v11090_v56 }
 0x497   : > { %10133 = vmatpush3.bf16.msra.mxu1 %v11090_v56 }
 0x49a   : > { %10135 = vmatmul.mubr.bf16.vlgmr.msra.gmra.mrb[0].mxu1 %v16854_v12 }
 0x49b   : > { %10138 = vmatprep.mubr.bf16.mxu1 %v16855_v43 }
 0x4a2   : > { %10139 = vmatmul.mubr.bf16.gmra.mrb[4].mxu1 %v16856_v0 }
 0x4a3   : > { %10142 = vmatprep.mubr.bf16.mxu1 %v16857_v44 }
 0x4aa   : > { %10143 = vmatmul.mubr.bf16.gmra.mrb[8].mxu1 %v16858_v42 }
 0x4ab   : > { %10146 = vmatprep.mubr.bf16.mxu1 %v16860_v60  ;;  %v16868_v60 = vld [vmem:[#allocation21_spill] sm:$0xff] }
 0x4b2   : > { %10147 = vmatmul.mubr.bf16.gmra.mrb[12].mxu1 %v16861_v23 }
 0x4b3   : > { %7207 = vmatprep.mubr.bf16.mxu1 %v16862_v52 }
 0x56d   : > { %v10136_v16 = vpop.f32.mrb[0].mxu1 }
 0x56e   : > { %v4880_v8 = vpop.f32.mrb[1].mxu1  ;;  %v4969_v29 = vadd.f32 %v10136_v16, %v14238_v11 }
 0x56f   : > { %v10137_v45 = vpop.f32.mrb[2].mxu1  ;;  %v4967_v53 = vadd.f32 %v14238_v11, %v4880_v8 }
 0x570   : > { %v4970_v33 = vadd.f32 %v10137_v45, %v14238_v11  ;;  %v4883_v36 = vpop.f32.mrb[3].mxu1  ;;  %v5001_v1 = vmul.f32 %v4969_v29, %v16863_v6  ;;  %vm4985_vm5 = vcmp.gt.f32.partialorder %v4969_v29, 0.0 }
 0x571   : > { %v4968_v7 = vadd.f32 %v14238_v11, %v4883_v36  ;;  %v4999_v10 = vmul.f32 %v4967_v53, %v16863_v6  ;;  %vm4983_vm6 = vcmp.gt.f32.partialorder %v4967_v53, 0.0 }
 0x572   : > { %v5002_v58 = vmul.f32 %v4970_v33, %v16863_v6  ;;  %vm4986_vm4 = vcmp.gt.f32.partialorder %v4970_v33, 0.0  ;;  %v14252_v56 = vsel %vm4985_vm5, %v4969_v29, %v5001_v1 }
 0x573   : > { %v5000_v48 = vmul.f32 %v4968_v7, %v16863_v6  ;;  %vm4984_vm7 = vcmp.gt.f32.partialorder %v4968_v7, 0.0  ;;  %16865 = vst [vmem:[#allocation181_spill] sm:$0xff] %v14252_v56  ;;  %v14254_v63 = vsel %vm4983_vm6, %v4967_v53, %v4999_v10  ;;  %v16217_v44 = vrot.slane %v14252_v56, 7 }
 0x574   : > { %v14248_v25 = vsel %vm4986_vm4, %v4970_v33, %v5002_v58  ;;  %16866 = vst [vmem:[#allocation183_spill] sm:$0xff] %v14254_v63  ;;  %v16214_v42 = vrot.slane %v14252_v56, 1  ;;  %v14267_v23 = vmul.f32 %v14252_v56, %v16868_v60  ;;  %v16873_v58 = vld [vmem:[#allocation19_spill] sm:$0xff]  ;;  %v16879_v60 = vld [vmem:[#allocation28_spill] sm:$0xff] }
 0x575   : > { %v10140_v15 = vpop.f32.mrb[4].mxu1  ;;  %16864 = vst [vmem:[#allocation182_spill] sm:$0xff] %v14248_v25  ;;  %v14256_v20 = vsel %vm4984_vm7, %v4968_v7, %v5000_v48  ;;  %v16215_v22 = vrot.slane %v14248_v25, 1  ;;  %v14283_v5 = vmul.f32 %v14248_v25, %v16870_v24  ;;  %v16874_v48 = vld [vmem:[#allocation24_spill] sm:$0xff]  ;;  %v16896_v51 = vrot.slane %v14248_v25, 7 }
 0x576   : > { %v4896_v61 = vpop.f32.mrb[5].mxu1  ;;  %v4973_v47 = vadd.f32 %v10140_v15, %v14238_v11  ;;  %16867 = vst [vmem:[#allocation184_spill] sm:$0xff] %v14256_v20  ;;  %v16216_v35 = vrot.slane %v14256_v20, 7  ;;  %v14301_v1 = vmul.f32 %v14256_v20, %v16873_v58  ;;  %v14305_v15 = vmul.f32 %v14248_v25, %v16874_v48  ;;  %v16877_v58 = vld [vmem:[#allocation22_spill] sm:$0xff] }
 0x577   : > { %v10141_v26 = vpop.f32.mrb[6].mxu1  ;;  %v4971_v3 = vadd.f32 %v14238_v11, %v4896_v61  ;;  %v14279_v14 = vsel %vm1158_vm1, %v16214_v42, %v16215_v22  ;;  %16871 = vst [vmem:[#allocation185_spill] sm:$0xff] %v14283_v5  ;;  %v16875_v61 = vld [vmem:[#allocation23_spill] sm:$0xff] }
 0x578   : > { %v4899_v19 = vpop.f32.mrb[7].mxu1  ;;  %v4974_v43 = vadd.f32 %v10141_v26, %v14238_v11  ;;  %v5005_v0 = vmul.f32 %v4973_v47, %v16863_v6  ;;  %vm4989_vm9 = vcmp.gt.f32.partialorder %v4973_v47, 0.0  ;;  %v14297_v7 = vsel %vm610_vm0, %v16216_v35, %v16217_v44  ;;  %v16882_v44 = vld [vmem:[#allocation30_spill] sm:$0xff]  ;;  %v16919_v5 = vld [vmem:[#allocation47_spill] sm:$0xff] }
 0x579   : > { %vm4987_vm8 = vcmp.gt.f32.partialorder %v4971_v3, 0.0  ;;  %v5003_v12 = vmul.f32 %v4971_v3, %v16863_v6  ;;  %v4972_v8 = vadd.f32 %v14238_v11, %v4899_v19 }
 0x57a   : > { %v5006_v16 = vmul.f32 %v4974_v43, %v16863_v6  ;;  %v14287_v33 = vsel %vm4989_vm9, %v4973_v47, %v5005_v0  ;;  %vm4990_vm10 = vcmp.gt.f32.partialorder %v4974_v43, 0.0 }
 0x57b   : > { %v14271_v40 = vsel %vm4987_vm8, %v4971_v3, %v5003_v12  ;;  %16872 = vst [vmem:[#allocation188_spill] sm:$0xff] %v14287_v33  ;;  %vm4988_vm12 = vcmp.gt.f32.partialorder %v4972_v8, 0.0  ;;  %v16878_v12 = vld [vmem:[#allocation29_spill] sm:$0xff]  ;;  %v16904_v27 = vrot.slane %v14287_v33, 7 }
 0x57c   : > { %v14309_v47 = vmul.f32 %v14271_v40, %v16875_v61  ;;  %v14315_v0 = vsel %vm4990_vm10, %v4974_v43, %v5006_v16  ;;  %v5121_v43 = vpack.c.bf16 %v14267_v23, %v14301_v1  ;;  %v16895_v34 = vrot.slane %v14271_v40, 7 }
 0x57d   : > { %v10144_v57 = vpop.f32.mrb[8].mxu1  ;;  %16876 = vst [vmem:[#allocation191_spill] sm:$0xff] %v14315_v0 }
 0x57e   : > { %v4912_v45 = vpop.f32.mrb[9].mxu1  ;;  %v4977_v36 = vadd.f32 %v10144_v57, %v14238_v11  ;;  %v5004_v57 = vmul.f32 %v4972_v8, %v16863_v6 }
 0x57f   : > { %v4975_v29 = vadd.f32 %v14238_v11, %v4912_v45  ;;  %v10145_v53 = vpop.f32.mrb[10].mxu1 }
 0x580   : > { %v4915_v10 = vpop.f32.mrb[11].mxu1  ;;  %v4978_v3 = vadd.f32 %v10145_v53, %v14238_v11  ;;  %v5009_v24 = vmul.f32 %v4977_v36, %v16863_v6  ;;  %vm4993_vm14 = vcmp.gt.f32.partialorder %v4977_v36, 0.0  ;;  %v14344_v1 = vsel %vm4988_vm12, %v4972_v8, %v5004_v57 }
 0x581   : > { %vm4991_vm11 = vcmp.gt.f32.partialorder %v4975_v29, 0.0  ;;  %v5007_v26 = vmul.f32 %v4975_v29, %v16863_v6  ;;  %v4976_v19 = vadd.f32 %v14238_v11, %v4915_v10  ;;  %v5105_v10 = vmul.f32 %v14254_v63, %v16877_v58  ;;  %16880 = vst [vmem:[#allocation190_spill] sm:$0xff] %v14344_v1 }
 0x582   : > { %v5010_v42 = vmul.f32 %v4978_v3, %v16863_v6  ;;  %v14337_v58 = vmul.f32 %v14315_v0, %v16878_v12  ;;  %v14346_v48 = vsel %vm4993_vm14, %v4977_v36, %v5009_v24  ;;  %vm4994_vm15 = vcmp.gt.f32.partialorder %v4978_v3, 0.0  ;;  %v16881_v36 = vld [vmem:[#allocation31_spill] sm:$0xff] }
 0x583   : > { %v14321_v45 = vsel %vm4991_vm11, %v4975_v29, %v5007_v26  ;;  %vm4992_vm13 = vcmp.gt.f32.partialorder %v4976_v19, 0.0  ;;  %v5008_v53 = vmul.f32 %v4976_v19, %v16863_v6  ;;  %v14369_v38 = vmul.f32 %v14346_v48, %v16882_v44  ;;  %v16889_v44 = vld [vmem:[#allocation34_spill] sm:$0xff] }
 0x584   : > { %v14341_v23 = vmul.f32 %v14321_v45, %v16879_v60  ;;  %v14360_v24 = vsel %vm4994_vm15, %v4978_v3, %v5010_v42  ;;  %v16884_v3 = vld [vmem:[#allocation26_spill] sm:$0xff]  ;;  %v5039_v46 = vrot.slane %v14321_v45, 7 }
 0x585   : > { %v10148_v29 = vpop.f32.mrb[12].mxu1  ;;  %v14332_v26 = vsel %vm4992_vm13, %v4976_v19, %v5008_v53 }
 0x586   : > { %v4981_v22 = vadd.f32 %v10148_v29, %v14238_v11  ;;  %v4928_v35 = vpop.f32.mrb[13].mxu1  ;;  %v14357_v57 = vmul.f32 %v14332_v26, %v16881_v36  ;;  %v14377_v36 = vmul.f32 %v14344_v1, %v16884_v3  ;;  %v16887_v3 = vld [vmem:[#allocation32_spill] sm:$0xff] }
 0x587   : > { %v4979_v19 = vadd.f32 %v14238_v11, %v4928_v35  ;;  %v10149_v53 = vpop.f32.mrb[14].mxu1  ;;  %v5036_v35 = vrot.slane %v14344_v1, 7 }
 0x588   : > { %vm4997_vm2 = vcmp.gt.f32.partialorder %v4981_v22, 0.0  ;;  %v5013_v29 = vmul.f32 %v4981_v22, %v16863_v6  ;;  %v4982_v61 = vadd.f32 %v10149_v53, %v14238_v11  ;;  %v4931_v12 = vpop.f32.mrb[15].mxu1 }
 0x589   : > { %vm4995_vm3 = vcmp.gt.f32.partialorder %v4979_v19, 0.0  ;;  %v5011_v60 = vmul.f32 %v4979_v19, %v16863_v6  ;;  %v4980_v8 = vadd.f32 %v14238_v11, %v4931_v12 }
 0x58a   : > { %vm4998_vm4 = vcmp.gt.f32.partialorder %v4982_v61, 0.0  ;;  %v5014_v53 = vmul.f32 %v4982_v61, %v16863_v6  ;;  %v14363_v59 = vsel %vm4997_vm2, %v4981_v22, %v5013_v29  ;;  %v5041_v22 = vrot.slane %v14346_v48, 7  ;;  %v16885_v29 = vld [vmem:[#allocation20_spill] sm:$0xff] }
 0x58b   : > { %v14365_v16 = vsel %vm4995_vm3, %v4979_v19, %v5011_v60  ;;  %vm4996_vm5 = vcmp.gt.f32.partialorder %v4980_v8, 0.0  ;;  %v5012_v42 = vmul.f32 %v4980_v8, %v16863_v6  ;;  %v5045_v11 = vrot.slane %v14363_v59, 7 }
 0x58c   : > { %v14372_v12 = vsel %vm4998_vm4, %v4982_v61, %v5014_v53  ;;  %v16886_v53 = vld [vmem:[#allocation33_spill] sm:$0xff]  ;;  %v14394_v6 = vmul.f32 %v14365_v16, %v16887_v3  ;;  %v14403_v30 = vmul.f32 %v14363_v59, %v16889_v44 }
 0x58d   : > { %16883 = vst [vmem:[#allocation58_spill] sm:$0xff] %v14372_v12  ;;  %v5046_v19 = vrot.slane %v14372_v12, 7  ;;  %v5104_v60 = vmul.f32 %v14372_v12, %v16885_v29  ;;  %v14386_v61 = vsel %vm4996_vm5, %v4980_v8, %v5012_v42  ;;  %v14390_v52 = vmul.f32 %v14360_v24, %v16886_v53  ;;  %v11100_v8 = vld [vmem:[%s11969_s0 + $0x488] sm:$0xff]   ;;  %v16890_v42 = vld [vmem:[#allocation25_spill] sm:$0xff] }
 0x58e   : > { %v14399_v29 = vmul.f32 %v14386_v61, %v16888_v62  ;;  %v5111_v53 = vmul.f32 %v14287_v33, %v16890_v42  ;;  %v16893_v44 = vld [vmem:[#allocation37_spill] sm:$0xff] }
 0x58f   : > { %v5120_v28 = vpack.c.bf16 %v5105_v10, %v5104_v60  ;;  %v14412_v3 = vsel %vm610_vm0, %v5045_v11, %v5046_v19  ;;  %v16891_v10 = vrot.slane %v14254_v63, 7  ;;  %v16898_v60 = vrot.slane %v14252_v56, 7 }
 0x590   : > { %v14424_v42 = vmul.f32 %v14412_v3, %v16893_v44  ;;  %v16897_v44 = vmov %v16896_v51 }
 0x591   : > { %v14418_v62 = vsel %vm610_vm0, %v5046_v19, %v16891_v10  ;;  %10166 = vmatprep.mubr.bf16.mxu0 %v5120_v28  ;;  %v14436_v19 = vsel %vm610_vm0, %v16896_v51, %v16895_v34  ;;  %v5042_v28 = vrot.slane %v14360_v24, 7  ;;  %v5040_v10 = vrot.slane %v14332_v26, 7 }
 0x592   : > { %16892 = vst [vmem:[#allocation61_spill] sm:$0xff] %v14418_v62  ;;  %v14428_v50 = vmul.f32 %v14418_v62, %v16894_v39  ;;  %10167 = vmatmul.mubr.bf16.vlgmr.msra.gmra.mrb[16].mxu0 %v5121_v43  ;;  %v14446_v39 = vsel %vm610_vm0, %v16898_v60, %v16897_v44  ;;  %v14450_v13 = vmul.f32 %v14436_v19, %v16899_v49  ;;  %v5043_v51 = vrot.slane %v14365_v16, 7  ;;  %v11101_v44 = vld [vmem:[%s11969_s0 + $0x490] sm:$0xff]  }
 0x593   : > { %10183 = vmatpush3.bf16.msra.mxu0 %v14234_v4  ;;  %v16901_v34 = vpack.c.bf16 %v14309_v47, %v14305_v15  ;;  %v5123_v43 = vpack.c.bf16 %v5111_v53, %v14377_v36  ;;  %v14462_v60 = vmul.f32 %v14446_v39, %v16902_v32  ;;  %v5044_v49 = vrot.slane %v14386_v61, 7  ;;  %v16915_v53 = vld [vmem:[#allocation45_spill] sm:$0xff] }
 0x594   : > { %16900 = vst [vmem:[#allocation195_spill] sm:$0xff] %v14450_v13  ;;  %10184 = vmatprep.subr.bf16.mxu0 %v11100_v8  ;;  %v14470_v4 = vsel %vm610_vm0, %v5036_v35, %v16904_v27  ;;  %v16905_v15 = vrot.slane %v14271_v40, 7  ;;  %v16906_v36 = vrot.slane %v14315_v0, 7  ;;  %v14516_v41 = vsel %vm610_vm0, %v5039_v46, %v5040_v10 }
 0x595   : > { %10170 = vmatprep.mubr.bf16.mxu0 %v16901_v34  ;;  %16903 = vst [vmem:[#allocation194_spill] sm:$0xff] %v14462_v60  ;;  %v16907_v34 = vld [vmem:[#allocation42_spill] sm:$0xff]  ;;  %v14492_v18 = vmul.f32 %v14470_v4, %v16909_v21  ;;  %v14512_v21 = vsel %vm610_vm0, %v5040_v10, %v5041_v22  ;;  %v14530_v62 = vsel %vm610_vm0, %v5042_v28, %v5043_v51  ;;  %v11102_v60 = vld [vmem:[%s11969_s0 + $0x498] sm:$0xff]   ;;  %v16921_v10 = vld [vmem:[#allocation49_spill] sm:$0xff]  ;;  %v16944_v13 = vrot.slane %v14344_v1, 1 }
 0x596   : > { %v14476_v47 = vsel %vm610_vm0, %v16905_v15, %v5036_v35  ;;  %v14482_v32 = vsel %vm610_vm0, %v16906_v36, %v5039_v46  ;;  %v16911_v35 = vmov %v16906_v36  ;;  %v16912_v15 = vrot.slane %v14287_v33, 7  ;;  %v16913_v36 = vld [vmem:[#allocation44_spill] sm:$0xff] }
 0x597   : > { %v14488_v27 = vmul.f32 %v14476_v47, %v16907_v34  ;;  %16910 = vst [vmem:[#allocation200_spill] sm:$0xff] %v14492_v18  ;;  %v14508_v34 = vmul.f32 %v14482_v32, %v16915_v53  ;;  %10185 = vmatpush3.bf16.msra.mxu0 %v11100_v8  ;;  %v14526_v53 = vmul.f32 %v14512_v21, %v16919_v5  ;;  %v16927_v46 = vrot.slane %v14256_v20, 7 }
 0x598   : > { %v14500_v54 = vsel %vm610_vm0, %v16912_v15, %v16911_v35  ;;  %v16917_v15 = vld [vmem:[#allocation46_spill] sm:$0xff]  ;;  %10186 = vmatprep.subr.bf16.mxu0 %v11101_v44  ;;  %v14537_v8 = vsel %vm610_vm0, %v5041_v22, %v5042_v28  ;;  %v14545_v5 = vsel %vm610_vm0, %v5044_v49, %v5045_v11  ;;  %v14555_v22 = vsel %vm610_vm0, %v5043_v51, %v5044_v49  ;;  %v16925_v28 = vld [vmem:[#allocation51_spill] sm:$0xff] }
 0x599   : > { %16908 = vst [vmem:[#allocation199_spill] sm:$0xff] %v14488_v27  ;;  %v14504_v9 = vmul.f32 %v14500_v54, %v16913_v36  ;;  %16916 = vst [vmem:[#allocation201_spill] sm:$0xff] %v14508_v34  ;;  %v14522_v36 = vmul.f32 %v14516_v41, %v16917_v15  ;;  %v14541_v15 = vmul.f32 %v14530_v62, %v16921_v10  ;;  %v16923_v27 = vld [vmem:[#allocation48_spill] sm:$0xff]  ;;  %v16928_v11 = vrot.slane %v14254_v63, 7 }
 0x59a   : > { %16920 = vst [vmem:[#allocation203_spill] sm:$0xff] %v14526_v53  ;;  %v14551_v18 = vmul.f32 %v14537_v8, %v16923_v27  ;;  %v14559_v10 = vmul.f32 %v14545_v5, %v16925_v28  ;;  %v5441_v27 = vrot.slane %v14287_v33, 1  ;;  %10171 = vmatmul.mubr.bf16.gmra.mrb[20].mxu0 %v5123_v43  ;;  %v16929_v53 = vld [vmem:[#allocation50_spill] sm:$0xff]  ;;  %v5445_v49 = vrot.slane %v14346_v48, 1  ;;  %v11103_v33 = vld [vmem:[%s11969_s0 + $0x4a0] sm:$0xff]  }
 0x59b   : > { %16914 = vst [vmem:[#allocation202_spill] sm:$0xff] %v14504_v9  ;;  %16918 = vst [vmem:[#allocation198_spill] sm:$0xff] %v14522_v36  ;;  %v14567_v35 = vsel %vm610_vm0, %v16928_v11, %v16927_v46  ;;  %v5442_v36 = vrot.slane %v14315_v0, 1  ;;  %v14573_v51 = vmul.f32 %v14555_v22, %v16929_v53  ;;  %v5443_v28 = vrot.slane %v14321_v45, 1  ;;  %10187 = vmatpush3.bf16.msra.mxu0 %v11101_v44 }
 0x59c   : > { %16922 = vst [vmem:[#allocation205_spill] sm:$0xff] %v14541_v15  ;;  %16924 = vst [vmem:[#allocation204_spill] sm:$0xff] %v14551_v18  ;;  %v5444_v9 = vrot.slane %v14332_v26, 1  ;;  %v16931_v46 = vpack.c.bf16 %v14341_v23, %v14337_v58  ;;  %v5446_v43 = vrot.slane %v14360_v24, 1  ;;  %10188 = vmatprep.subr.bf16.mxu0 %v11102_v60  ;;  %v16932_v0 = vrot.slane %v14344_v1, 1  ;;  %v16939_v18 = vld [vmem:[#allocation59_spill] sm:$0xff] }
 0x59d   : > { %16926 = vst [vmem:[#allocation77_spill] sm:$0xff] %v14559_v10  ;;  %16930 = vst [vmem:[#allocation74_spill] sm:$0xff] %v14573_v51  ;;  %v16933_v34 = vrot.slane %v14271_v40, 1  ;;  %v16936_v23 = vrot.slane %v14248_v25, 1  ;;  %v5449_v11 = vrot.slane %v14363_v59, 1  ;;  %v5448_v53 = vrot.slane %v14386_v61, 1 }
 0x59e   : > { %10174 = vmatprep.mubr.bf16.mxu0 %v16931_v46  ;;  %v16937_v51 = vld [vmem:[#allocation56_spill] sm:$0xff]  ;;  %v16941_v15 = vld [vmem:[#allocation70_spill] sm:$0xff] }
 0x59f   : > { %v14593_v44 = vsel %vm1158_vm1, %v16933_v34, %v16932_v0  ;;  %v16935_v58 = vmov %v16933_v34  ;;  %v5447_v34 = vrot.slane %v14365_v16, 1  ;;  %10189 = vmatpush3.bf16.msra.mxu0 %v11102_v60 }
 0x5a0   : > { %16934 = vst [vmem:[#allocation207_spill] sm:$0xff] %v14593_v44  ;;  %v14601_v46 = vsel %vm1158_vm1, %v16936_v23, %v16935_v58  ;;  %v14611_v0 = vmul.f32 %v14593_v44, %v16939_v18  ;;  %v14617_v58 = vmul.f32 %v14446_v39, %v16941_v15  ;;  %v14621_v23 = vsel %vm1158_vm1, %v5441_v27, %v5442_v36  ;;  %v11104_v44 = vld [vmem:[%s11969_s0 + $0x4a8] sm:$0xff]  }
 0x5a1   : > { %v14607_v10 = vmul.f32 %v14601_v46, %v16937_v51  ;;  %16943 = vst [vmem:[#allocation166_spill] sm:$0xff] %v14621_v23  ;;  %v14629_v18 = vsel %vm1158_vm1, %v16944_v13, %v5441_v27  ;;  %v14633_v25 = vmul.f32 %v14621_v23, %v16746_v17  ;;  %v14637_v15 = vsel %vm1158_vm1, %v5443_v28, %v5444_v9  ;;  %v16947_v13 = vld [vmem:[#allocation63_spill] sm:$0xff]  ;;  %v16951_v23 = vld [vmem:[#allocation65_spill] sm:$0xff] }
 0x5a2   : > { %16940 = vst [vmem:[#allocation210_spill] sm:$0xff] %v14611_v0  ;;  %16942 = vst [vmem:[#allocation209_spill] sm:$0xff] %v14617_v58  ;;  %10190 = vmatprep.subr.bf16.mxu0 %v11103_v33  ;;  %v14642_v60 = vmul.f32 %v14629_v18, %v16745_v31  ;;  %v14646_v51 = vsel %vm1158_vm1, %v5442_v36, %v5443_v28  ;;  %v14650_v27 = vmul.f32 %v14637_v15, %v16947_v13 }
 0x5a3   : > { %16938 = vst [vmem:[#allocation167_spill] sm:$0xff] %v14607_v10  ;;  %16945 = vst [vmem:[#allocation165_spill] sm:$0xff] %v14637_v15  ;;  %v14654_v17 = vsel %vm1158_vm1, %v5445_v49, %v5446_v43  ;;  %v16949_v10 = vld [vmem:[#allocation60_spill] sm:$0xff]  ;;  %v14662_v31 = vsel %vm1158_vm1, %v5444_v9, %v5445_v49  ;;  %v14670_v28 = vsel %vm1158_vm1, %v5447_v34, %v5448_v53  ;;  %v16954_v15 = vld [vmem:[#allocation62_spill] sm:$0xff]  ;;  %10191 = vmatpush3.bf16.msra.mxu0 %v11103_v33 }
 0x5a4   : > { %16946 = vst [vmem:[#allocation212_spill] sm:$0xff] %v14646_v51  ;;  %16948 = vst [vmem:[#allocation211_spill] sm:$0xff] %v14654_v17  ;;  %v14658_v0 = vmul.f32 %v14646_v51, %v16949_v10  ;;  %v14666_v36 = vmul.f32 %v14654_v17, %v16951_v23  ;;  %v16953_v13 = vpack.c.bf16 %v14369_v38, %v14357_v57  ;;  %v16956_v49 = vld [vmem:[#allocation67_spill] sm:$0xff]  ;;  %v5436_v17 = vrot.slane %v14256_v20, 1  ;;  %v16962_v33 = vld [vmem:[#allocation38_spill] sm:$0xff] }
 0x5a5   : > { %v14679_v51 = vmul.f32 %v14662_v31, %v16954_v15  ;;  %v14683_v9 = vsel %vm1158_vm1, %v5446_v43, %v5447_v34  ;;  %v14687_v23 = vmul.f32 %v14670_v28, %v16956_v49  ;;  %v16958_v38 = vpack.c.bf16 %v14394_v6, %v14390_v52  ;;  %v16959_v15 = vld [vmem:[#allocation64_spill] sm:$0xff]  ;;  %10192 = vmatprep.subr.bf16.mxu0 %v11104_v44  ;;  %v11105_v49 = vld [vmem:[%s11969_s0 + $0x4b0] sm:$0xff]   ;;  %v16966_v20 = vld [vmem:[#allocation66_spill] sm:$0xff] }
 0x5a6   : > { %16950 = vst [vmem:[#allocation171_spill] sm:$0xff] %v14658_v0  ;;  %16952 = vst [vmem:[#allocation170_spill] sm:$0xff] %v14666_v36  ;;  %10175 = vmatmul.mubr.bf16.gmra.mrb[24].mxu0 %v16953_v13  ;;  %v14697_v13 = vmul.f32 %v14683_v9, %v16959_v15  ;;  %v16961_v43 = vrot.slane %v14372_v12, 1  ;;  %v14708_v10 = vmul.f32 %v14567_v35, %v16962_v33  ;;  %v16968_v52 = vld [vmem:[#allocation73_spill] sm:$0xff]  ;;  %v16976_v33 = vrot.slane %v14252_v56, 1  ;;  %v16983_v56 = vld [vmem:[#allocation80_spill] sm:$0xff] }
 0x5a7   : > { %16955 = vst [vmem:[#allocation215_spill] sm:$0xff] %v14679_v51  ;;  %16957 = vst [vmem:[#allocation214_spill] sm:$0xff] %v14687_v23  ;;  %10178 = vmatprep.mubr.bf16.mxu0 %v16958_v38  ;;  %v14714_v6 = vsel %vm1158_vm1, %v5448_v53, %v5449_v11  ;;  %v16963_v38 = vld [vmem:[#allocation69_spill] sm:$0xff]  ;;  %v16970_v53 = vld [vmem:[#allocation75_spill] sm:$0xff]  ;;  %10193 = vmatpush3.bf16.msra.mxu0 %v11104_v44 }
 0x5a8   : > { %16960 = vst [vmem:[#allocation217_spill] sm:$0xff] %v14697_v13  ;;  %v14703_v34 = vsel %vm1158_vm1, %v5449_v11, %v16961_v43  ;;  %v16965_v43 = vld [vmem:[#allocation39_spill] sm:$0xff]  ;;  %v14728_v0 = vmul.f32 %v14714_v6, %v16966_v20  ;;  %v14732_v11 = vmul.f32 %v14297_v7, %v16968_v52  ;;  %v14736_v51 = vmul.f32 %v14436_v19, %v16970_v53  ;;  %v16978_v23 = vld [vmem:[#allocation76_spill] sm:$0xff]  ;;  %v16979_v53 = vld [vmem:[#allocation81_spill] sm:$0xff] }
 0x5a9   : > { %v14718_v15 = vmul.f32 %v14703_v34, %v16963_v38  ;;  %v14722_v57 = vmul.f32 %v14297_v7, %v16965_v43  ;;  %v16972_v38 = vld [vmem:[#allocation72_spill] sm:$0xff]  ;;  %v14744_v43 = vmul.f32 %v14470_v4, %v16765_v2  ;;  %v14748_v20 = vmul.f32 %v14500_v54, %v16766_v37  ;;  %v16977_v13 = vld [vmem:[#allocation79_spill] sm:$0xff]  ;;  %10194 = vmatprep.subr.bf16.mxu0 %v11105_v49 }
 0x5aa   : > { %16967 = vst [vmem:[#allocation219_spill] sm:$0xff] %v14728_v0  ;;  %16969 = vst [vmem:[#allocation218_spill] sm:$0xff] %v14732_v11  ;;  %v14740_v36 = vmul.f32 %v14476_v47, %v16972_v38  ;;  %v14754_v52 = vsel %vm1158_vm1, %v5436_v17, %v16976_v33  ;;  %v14762_v2 = vmul.f32 %v14482_v32, %v16977_v13  ;;  %v11106_v37 = vld [vmem:[%s11969_s0 + $0x4b8] sm:$0xff]   ;;  %v16980_v38 = vld [vmem:[#allocation78_spill] sm:$0xff] }
 0x5ab   : > { %16964 = vst [vmem:[#allocation216_spill] sm:$0xff] %v14718_v15  ;;  %16971 = vst [vmem:[#allocation221_spill] sm:$0xff] %v14736_v51  ;;  %v14771_v44 = vmul.f32 %v14516_v41, %v16978_v23  ;;  %v14775_v0 = vmul.f32 %v14512_v21, %v16979_v53  ;;  %v14779_v13 = vmul.f32 %v14537_v8, %v16980_v38  ;;  %v16981_v11 = vld [vmem:[#allocation83_spill] sm:$0xff]  ;;  %10195 = vmatpush3.bf16.msra.mxu0 %v11105_v49  ;;  %v16993_v15 = vld [vmem:[#allocation126_spill] sm:$0xff] }
 0x5ac   : > { %16973 = vst [vmem:[#allocation220_spill] sm:$0xff] %v14740_v36  ;;  %16974 = vst [vmem:[#allocation187_spill] sm:$0xff] %v14744_v43  ;;  %v14783_v58 = vmul.f32 %v14530_v62, %v16981_v11  ;;  %v14787_v33 = vmul.f32 %v14555_v22, %v16983_v56  ;;  %v16985_v43 = vld [vmem:[#allocation85_spill] sm:$0xff]  ;;  %v16989_v38 = vpack.c.bf16 %v14403_v30, %v14399_v29  ;;  %v16990_v56 = vld [vmem:[#allocation82_spill] sm:$0xff]  ;;  %10196 = vmatprep.subr.bf16.mxu0 %v11106_v37 }
 0x5ad   : > { %16975 = vst [vmem:[#allocation222_spill] sm:$0xff] %v14748_v20  ;;  %v14791_v23 = vmul.f32 %v14545_v5, %v16985_v43  ;;  %v16987_v20 = vld [vmem:[#allocation132_spill] sm:$0xff]  ;;  %v5080_v11 = vpack.c.bf16 %v14722_v57, %v14708_v10  ;;  %v14806_v36 = vmul.f32 %v14412_v3, %v16990_v56  ;;  %v5435_v43 = vrot.slane %v14254_v63, 1  ;;  %v11107_v57 = vld [vmem:[%s11969_s0 + $0x500] sm:$0xff]  }
 0x5ae   : > { %16982 = vst [vmem:[#allocation213_spill] sm:$0xff] %v14783_v58  ;;  %16984 = vst [vmem:[#allocation169_spill] sm:$0xff] %v14787_v33  ;;  %v14795_v53 = vmul.f32 %v14271_v40, %v16987_v20  ;;  %10179 = vmatmul.mubr.bf16.gmra.mrb[28].mxu0 %v16989_v38  ;;  %v16992_v20 = vpack.c.bf16 %v14428_v50, %v14424_v42  ;;  %v14814_v30 = vmul.f32 %v14436_v19, %v16993_v15  ;;  %v16995_v38 = vld [vmem:[#allocation124_spill] sm:$0xff]  ;;  %v16997_v42 = vld [vmem:[#allocation86_spill] sm:$0xff] }
 0x5af   : > { %16986 = vst [vmem:[#allocation223_spill] sm:$0xff] %v14791_v23  ;;  %16991 = vst [vmem:[#allocation193_spill] sm:$0xff] %v14806_v36  ;;  %v14823_v56 = vmul.f32 %v14446_v39, %v16995_v38  ;;  %v14829_v49 = vmul.f32 %v14271_v40, %v16997_v42  ;;  %v16999_v19 = vld [vmem:[#allocation94_spill] sm:$0xff]  ;;  %v17001_v10 = vrot.slane %v14372_v12, 1  ;;  %v17002_v38 = vld [vmem:[#allocation91_spill] sm:$0xff]  ;;  %10197 = vmatpush3.bf16.msra.mxu0 %v11106_v37 }
 0x5b0   : > { %16988 = vst [vmem:[#allocation189_spill] sm:$0xff] %v14795_v53  ;;  %10198 = vmatprep.mubr.bf16.mxu0 %v16992_v20  ;;  %16994 = vst [vmem:[#allocation224_spill] sm:$0xff] %v14814_v30  ;;  %v14833_v15 = vmul.f32 %v14344_v1, %v16999_v19  ;;  %v14837_v20 = vsel %vm1158_vm1, %v5435_v43, %v5436_v17  ;;  %v14847_v50 = vmul.f32 %v14321_v45, %v17002_v38  ;;  %v17004_v40 = vld [vmem:[#allocation98_spill] sm:$0xff]  ;;  %v17008_v51 = vld [vmem:[#allocation93_spill] sm:$0xff] }
 0x5b1   : > { %16996 = vst [vmem:[#allocation225_spill] sm:$0xff] %v14823_v56  ;;  %16998 = vst [vmem:[#allocation192_spill] sm:$0xff] %v14829_v49  ;;  %v14843_v39 = vsel %vm1158_vm1, %v17001_v10, %v5435_v43  ;;  %v14851_v42 = vmul.f32 %v14332_v26, %v17004_v40  ;;  %v17006_v19 = vld [vmem:[#allocation102_spill] sm:$0xff]  ;;  %v14861_v55 = vmul.f32 %v14346_v48, %v17008_v51  ;;  %v17010_v43 = vld [vmem:[#allocation100_spill] sm:$0xff]  ;;  %10214 = vmatprep.subr.bf16.mxu0 %v11107_v57 }
 0x5b2   : > { %17000 = vst [vmem:[#allocation197_spill] sm:$0xff] %v14833_v15  ;;  %17003 = vst [vmem:[#allocation226_spill] sm:$0xff] %v14847_v50  ;;  %v14855_v29 = vmul.f32 %v14601_v46, %v17006_v19  ;;  %v14865_v10 = vmul.f32 %v14360_v24, %v17010_v43  ;;  %v17012_v40 = vld [vmem:[#allocation95_spill] sm:$0xff]  ;;  %v17016_v17 = vld [vmem:[#allocation97_spill] sm:$0xff] }
 0x5b3   : > { %17005 = vst [vmem:[#allocation196_spill] sm:$0xff] %v14851_v42  ;;  %17009 = vst [vmem:[#allocation206_spill] sm:$0xff] %v14861_v55  ;;  %v14871_v1 = vmul.f32 %v14365_v16, %v17012_v40  ;;  %v17014_v19 = vld [vmem:[#allocation103_spill] sm:$0xff]  ;;  %v14879_v51 = vmul.f32 %v14363_v59, %v17016_v17  ;;  %v11108_v49 = vld [vmem:[%s11969_s0 + $0x508] sm:$0xff]  }
 0x5b4   : > { %17007 = vst [vmem:[#allocation208_spill] sm:$0xff] %v14855_v29  ;;  %17011 = vst [vmem:[#allocation176_spill] sm:$0xff] %v14865_v10  ;;  %v14875_v23 = vmul.f32 %v14386_v61, %v17014_v19  ;;  %v17018_v43 = vld [vmem:[#allocation105_spill] sm:$0xff]  ;;  %v17020_v50 = vld [vmem:[#allocation99_spill] sm:$0xff] }
 0x5b5   : > { %17013 = vst [vmem:[#allocation177_spill] sm:$0xff] %v14871_v1  ;;  %17017 = vst [vmem:[#allocation173_spill] sm:$0xff] %v14879_v51  ;;  %v14886_v38 = vmul.f32 %v14372_v12, %v17018_v43  ;;  %v14890_v40 = vmul.f32 %v14837_v20, %v17020_v50  ;;  %v17022_v42 = vld [vmem:[#allocation107_spill] sm:$0xff]  ;;  %v17024_v15 = vld [vmem:[#allocation109_spill] sm:$0xff] }
 0x5b6   : > { %17015 = vst [vmem:[#allocation172_spill] sm:$0xff] %v14875_v23  ;;  %v14894_v19 = vmul.f32 %v14754_v52, %v17022_v42  ;;  %v14900_v36 = vmul.f32 %v14279_v14, %v17024_v15  ;;  %v17026_v37 = vld [vmem:[#allocation111_spill] sm:$0xff]  ;;  %v17029_v12 = vld [vmem:[#allocation104_spill] sm:$0xff]  ;;  %10199 = vmatmul.mubr.bf16.vlgmr.msra.gmra.mrb[16].mxu0 %v5080_v11  ;;  %v17031_v17 = vld [vmem:[#allocation113_spill] sm:$0xff] }
 0x5b7   : > { %17019 = vst [vmem:[#allocation178_spill] sm:$0xff] %v14886_v38  ;;  %17021 = vst [vmem:[#allocation180_spill] sm:$0xff] %v14890_v40  ;;  %v17027_v55 = vld [vmem:[#allocation207_spill] sm:$0xff]  ;;  %v14908_v50 = vmul.f32 %v14629_v18, %v17029_v12  ;;  %v17032_v1 = vld [vmem:[#allocation166_spill] sm:$0xff]  ;;  %10215 = vmatpush3.bf16.msra.mxu0 %v11107_v57 }
 0x5b8   : > { %17023 = vst [vmem:[#allocation179_spill] sm:$0xff] %v14894_v19  ;;  %17025 = vst [vmem:[#allocation174_spill] sm:$0xff] %v14900_v36  ;;  %v14904_v43 = vmul.f32 %v17027_v55, %v17026_v37  ;;  %v14916_v23 = vmul.f32 %v17032_v1, %v17031_v17  ;;  %v17034_v15 = vld [vmem:[#allocation106_spill] sm:$0xff]  ;;  %v17035_v63 = vld [vmem:[#allocation212_spill] sm:$0xff]  ;;  %10216 = vmatprep.subr.bf16.mxu0 %v11108_v49 }
 0x5b9   : > { %17030 = vst [vmem:[#allocation175_spill] sm:$0xff] %v14908_v50  ;;  %v14920_v58 = vmul.f32 %v17035_v63, %v17034_v15  ;;  %v17037_v37 = vld [vmem:[#allocation195_spill] sm:$0xff]  ;;  %v17038_v33 = vld [vmem:[#allocation194_spill] sm:$0xff]  ;;  %v17041_v40 = vld [vmem:[#allocation165_spill] sm:$0xff] }
 0x5ba   : > { %17028 = vst [vmem:[#allocation186_spill] sm:$0xff] %v14904_v43  ;;  %17033 = vst [vmem:[#allocation168_spill] sm:$0xff] %v14916_v23  ;;  %v17039_v12 = vpack.c.bf16 %v17037_v37, %v17038_v33  ;;  %v17040_v10 = vld [vmem:[#allocation115_spill] sm:$0xff]  ;;  %v17043_v57 = vld [vmem:[#allocation108_spill] sm:$0xff] }
 0x5bb   : > { %17036 = vst [vmem:[#allocation21_spill] sm:$0xff] %v14920_v58  ;;  %v14931_v19 = vmul.f32 %v17041_v40, %v17040_v10  ;;  %v11109_v17 = vld [vmem:[%s11969_s0 + $0x510] sm:$0xff]   ;;  %v14938_v51 = vmul.f32 %v14662_v31, %v17043_v57  ;;  %v17044_v33 = vld [vmem:[#allocation117_spill] sm:$0xff]  ;;  %v17046_v11 = vld [vmem:[#allocation110_spill] sm:$0xff]  ;;  %10217 = vmatpush3.bf16.msra.mxu0 %v11108_v49 }
 0x5bc   : > { %10202 = vmatprep.mubr.bf16.mxu0 %v17039_v12  ;;  %v17045_v37 = vld [vmem:[#allocation211_spill] sm:$0xff]  ;;  %v14946_v42 = vmul.f32 %v14683_v9, %v17046_v11  ;;  %v17049_v50 = vld [vmem:[#allocation112_spill] sm:$0xff]  ;;  %v17050_v23 = vld [vmem:[#allocation121_spill] sm:$0xff]  ;;  %10218 = vmatprep.subr.bf16.mxu0 %v11109_v17 }
 0x5bd   : > { %17042 = vst [vmem:[#allocation139_spill] sm:$0xff] %v14931_v19  ;;  %v14942_v12 = vmul.f32 %v17045_v37, %v17044_v33  ;;  %v17047_v10 = vld [vmem:[#allocation119_spill] sm:$0xff]  ;;  %v14954_v15 = vmul.f32 %v14714_v6, %v17049_v50  ;;  %v14958_v57 = vmul.f32 %v14703_v34, %v17050_v23  ;;  %v17051_v58 = vld [vmem:[#allocation114_spill] sm:$0xff]  ;;  %v17054_v50 = vld [vmem:[#allocation116_spill] sm:$0xff] }
 0x5be   : > { %v14950_v43 = vmul.f32 %v14670_v28, %v17047_v10  ;;  %v14962_v33 = vmul.f32 %v14843_v39, %v17051_v58  ;;  %v17052_v10 = vld [vmem:[#allocation122_spill] sm:$0xff]  ;;  %v14974_v38 = vmul.f32 %v14297_v7, %v17054_v50  ;;  %v17056_v50 = vld [vmem:[#allocation128_spill] sm:$0xff]  ;;  %v17058_v58 = vld [vmem:[#allocation129_spill] sm:$0xff] }
 0x5bf   : > { %v14970_v29 = vmul.f32 %v14567_v35, %v17052_v10  ;;  %v17055_v19 = vld [vmem:[#allocation118_spill] sm:$0xff]  ;;  %v11110_v10 = vld [vmem:[%s11969_s0 + $0x518] sm:$0xff]   ;;  %v14991_v49 = vmul.f32 %v14470_v4, %v17056_v50  ;;  %v14999_v11 = vmul.f32 %v14482_v32, %v17058_v58  ;;  %v17061_v30 = vld [vmem:[#allocation123_spill] sm:$0xff]  ;;  %10219 = vmatpush3.bf16.msra.mxu0 %v11109_v17 }
 0x5c0   : > { %17048 = vst [vmem:[#allocation19_spill] sm:$0xff] %v14950_v43  ;;  %v14984_v36 = vmul.f32 %v14476_v47, %v17055_v19  ;;  %v17057_v23 = vld [vmem:[#allocation120_spill] sm:$0xff]  ;;  %v17060_v19 = vld [vmem:[#allocation131_spill] sm:$0xff]  ;;  %v15011_v4 = vmul.f32 %v14537_v8, %v17061_v30  ;;  %v17063_v50 = vld [vmem:[#allocation133_spill] sm:$0xff]  ;;  %10220 = vmatprep.subr.bf16.mxu0 %v11110_v10 }
 0x5c1   : > { %17053 = vst [vmem:[#allocation24_spill] sm:$0xff] %v14970_v29  ;;  %v14995_v43 = vmul.f32 %v14500_v54, %v17057_v23  ;;  %v17059_v56 = vld [vmem:[#allocation52_spill] sm:$0xff]  ;;  %v15007_v7 = vmul.f32 %v14512_v21, %v17060_v19  ;;  %v15015_v54 = vmul.f32 %v14530_v62, %v17063_v50  ;;  %v17065_v32 = vld [vmem:[#allocation199_spill] sm:$0xff]  ;;  %v17067_v21 = vld [vmem:[#allocation125_spill] sm:$0xff] }
 0x5c2   : > { %v15003_v47 = vmul.f32 %v14516_v41, %v17059_v56  ;;  %17062 = vst [vmem:[#allocation23_spill] sm:$0xff] %v15011_v4  ;;  %v17064_v23 = vld [vmem:[#allocation200_spill] sm:$0xff]  ;;  %v15026_v19 = vmul.f32 %v14555_v22, %v17067_v21  ;;  %v17069_v8 = vld [vmem:[#allocation134_spill] sm:$0xff]  ;;  %v17070_v62 = vld [vmem:[#allocation201_spill] sm:$0xff] }
 0x5c3   : > { %v17066_v58 = vpack.c.bf16 %v17064_v23, %v17065_v32  ;;  %v15030_v30 = vmul.f32 %v14545_v5, %v17069_v8  ;;  %v17071_v50 = vld [vmem:[#allocation202_spill] sm:$0xff]  ;;  %v11111_v22 = vld [vmem:[%s11969_s0 + $0x520] sm:$0xff]   ;;  %v17074_v17 = vld [vmem:[#allocation136_spill] sm:$0xff]  ;;  %10221 = vmatpush3.bf16.msra.mxu0 %v11110_v10 }
 0x5c4   : > { %17068 = vst [vmem:[#allocation22_spill] sm:$0xff] %v15026_v19  ;;  %v17072_v29 = vpack.c.bf16 %v17070_v62, %v17071_v50  ;;  %v17075_v21 = vld [vmem:[#allocation61_spill] sm:$0xff]  ;;  %v17079_v23 = vld [vmem:[#allocation191_spill] sm:$0xff]  ;;  %v17083_v32 = vld [vmem:[#allocation146_spill] sm:$0xff]  ;;  %10222 = vmatprep.subr.bf16.mxu0 %v11111_v22 }
 0x5c5   : > { %10203 = vmatmul.mubr.bf16.gmra.mrb[20].mxu0 %v17066_v58  ;;  %v17073_v58 = vld [vmem:[#allocation127_spill] sm:$0xff]  ;;  %v15048_v8 = vmul.f32 %v17075_v21, %v17074_v17  ;;  %v17080_v4 = vld [vmem:[#allocation137_spill] sm:$0xff]  ;;  %v17081_v17 = vld [vmem:[#allocation144_spill] sm:$0xff] }
 0x5c6   : > { %10206 = vmatprep.mubr.bf16.mxu0 %v17072_v29  ;;  %v15041_v56 = vmul.f32 %v14412_v3, %v17073_v58  ;;  %v17076_v29 = vld [vmem:[#allocation153_spill] sm:$0xff]  ;;  %v17078_v58 = vld [vmem:[#allocation143_spill] sm:$0xff]  ;;  %v15064_v5 = vmul.f32 %v14321_v45, %v17080_v4  ;;  %v15068_v19 = vmul.f32 %v14332_v26, %v17081_v17  ;;  %v15076_v3 = vmul.f32 %v14360_v24, %v17083_v32  ;;  %v17085_v50 = vld [vmem:[#allocation142_spill] sm:$0xff] }
 0x5c7   : > { %v15052_v62 = vmul.f32 %v17027_v55, %v17076_v29  ;;  %v15060_v41 = vmul.f32 %v17079_v23, %v17078_v58  ;;  %v17082_v55 = vld [vmem:[#allocation140_spill] sm:$0xff]  ;;  %v15080_v58 = vmul.f32 %v14365_v16, %v17085_v50  ;;  %v11112_v45 = vld [vmem:[%s11969_s0 + $0x528] sm:$0xff]   ;;  %v17087_v4 = vld [vmem:[#allocation151_spill] sm:$0xff]  ;;  %10223 = vmatpush3.bf16.msra.mxu0 %v11111_v22 }
 0x5c8   : > { %v15072_v29 = vmul.f32 %v14346_v48, %v17082_v55  ;;  %17084 = vst [vmem:[#allocation29_spill] sm:$0xff] %v15076_v3  ;;  %v15085_v53 = vmul.f32 %v14601_v46, %v17087_v4  ;;  %v17088_v10 = vld [vmem:[#allocation147_spill] sm:$0xff]  ;;  %v17090_v17 = vld [vmem:[#allocation145_spill] sm:$0xff]  ;;  %v17091_v46 = vld [vmem:[#allocation150_spill] sm:$0xff]  ;;  %10224 = vmatprep.subr.bf16.mxu0 %v11112_v45 }
 0x5c9   : > { %17086 = vst [vmem:[#allocation28_spill] sm:$0xff] %v15080_v58  ;;  %v15091_v48 = vmul.f32 %v14386_v61, %v17088_v10  ;;  %v15095_v24 = vmul.f32 %v14363_v59, %v17090_v17  ;;  %v15103_v50 = vmul.f32 %v14754_v52, %v17091_v46  ;;  %v17092_v55 = vld [vmem:[#allocation203_spill] sm:$0xff]  ;;  %v17093_v4 = vld [vmem:[#allocation198_spill] sm:$0xff]  ;;  %v17095_v10 = vld [vmem:[#allocation148_spill] sm:$0xff] }
 0x5ca   : > { %v17094_v26 = vpack.c.bf16 %v17092_v55, %v17093_v4  ;;  %v15112_v59 = vmul.f32 %v14279_v14, %v17095_v10  ;;  %v17096_v16 = vld [vmem:[#allocation89_spill] sm:$0xff]  ;;  %v17098_v3 = vld [vmem:[#allocation204_spill] sm:$0xff]  ;;  %v17101_v4 = vld [vmem:[#allocation155_spill] sm:$0xff] }
 0x5cb   : > { %17089 = vst [vmem:[#allocation31_spill] sm:$0xff] %v15091_v48  ;;  %v15118_v32 = vmul.f32 %v14629_v18, %v17096_v16  ;;  %v17097_v46 = vld [vmem:[#allocation205_spill] sm:$0xff]  ;;  %v15127_v61 = vmul.f32 %v17032_v1, %v17101_v4  ;;  %v17102_v10 = vld [vmem:[#allocation152_spill] sm:$0xff]  ;;  %v11113_v17 = vld [vmem:[%s11969_s0 + $0x530] sm:$0xff]   ;;  %10225 = vmatpush3.bf16.msra.mxu0 %v11112_v45 }
 0x5cc   : > { %v17099_v58 = vpack.c.bf16 %v17097_v46, %v17098_v3  ;;  %v15131_v48 = vmul.f32 %v17035_v63, %v17102_v10  ;;  %v17103_v22 = vld [vmem:[#allocation156_spill] sm:$0xff]  ;;  %v17105_v1 = vld [vmem:[#allocation158_spill] sm:$0xff]  ;;  %10226 = vmatprep.subr.bf16.mxu0 %v11113_v17  ;;  %v17113_v45 = vld [vmem:[#allocation77_spill] sm:$0xff] }
 0x5cd   : > { %10207 = vmatmul.mubr.bf16.gmra.mrb[24].mxu0 %v17094_v26  ;;  %v17100_v26 = vld [vmem:[#allocation53_spill] sm:$0xff]  ;;  %v15138_v3 = vmul.f32 %v17041_v40, %v17103_v22  ;;  %v15146_v46 = vmul.f32 %v17045_v37, %v17105_v1  ;;  %v17107_v10 = vld [vmem:[#allocation160_spill] sm:$0xff]  ;;  %v17108_v22 = vld [vmem:[#allocation159_spill] sm:$0xff] }
 0x5ce   : > { %10210 = vmatprep.mubr.bf16.mxu0 %v17099_v58  ;;  %v5467_v55 = vmul.f32 %v14843_v39, %v17100_v26  ;;  %v17104_v58 = vld [vmem:[#allocation154_spill] sm:$0xff]  ;;  %v17106_v26 = vld [vmem:[#allocation157_spill] sm:$0xff]  ;;  %v15156_v40 = vmul.f32 %v14670_v28, %v17107_v10  ;;  %v15160_v18 = vmul.f32 %v14714_v6, %v17108_v22  ;;  %v17112_v22 = vld [vmem:[#allocation163_spill] sm:$0xff] }
 0x5cf   : > { %v15142_v16 = vmul.f32 %v14662_v31, %v17104_v58  ;;  %v15152_v4 = vmul.f32 %v14683_v9, %v17106_v26  ;;  %v17109_v58 = vld [vmem:[#allocation161_spill] sm:$0xff]  ;;  %v17110_v9 = vld [vmem:[#allocation162_spill] sm:$0xff]  ;;  %v15180_v31 = vmul.f32 %v14837_v20, %v17112_v22  ;;  %v11114_v37 = vld [vmem:[%s11969_s0 + $0x538] sm:$0xff]   ;;  %10227 = vmatpush3.bf16.msra.mxu0 %v11113_v17 }
 0x5d0   : > { %v15168_v1 = vmul.f32 %v14703_v34, %v17109_v58  ;;  %v15172_v26 = vmul.f32 %v14843_v39, %v17110_v9  ;;  %v17111_v28 = vld [vmem:[#allocation54_spill] sm:$0xff]  ;;  %10228 = vmatprep.subr.bf16.mxu0 %v11114_v37  ;;  %v17116_v22 = vld [vmem:[#allocation55_spill] sm:$0xff]  ;;  %v17117_v63 = vld [vmem:[#allocation57_spill] sm:$0xff] }
 0x5d1   : > { %v5468_v6 = vmul.f32 %v14837_v20, %v17111_v28  ;;  %v17114_v9 = vld [vmem:[#allocation74_spill] sm:$0xff]  ;;  %v11115_v20 = vld [vmem:[%s11969_s0 + $0x540] sm:$0xff]   ;;  %v5469_v10 = vmul.f32 %v14754_v52, %v17116_v22  ;;  %v5470_v34 = vmul.f32 %v14279_v14, %v17117_v63  ;;  %v17119_v17 = vld [vmem:[#allocation167_spill] sm:$0xff]  ;;  %v17121_v14 = vpack.c.bf16 %v14633_v25, %v14642_v60 }
 0x5d2   : > { %v6702_v39 = vpack.c.bf16 %v15180_v31, %v15172_v26  ;;  %v17115_v28 = vpack.c.bf16 %v17113_v45, %v17114_v9  ;;  %v17118_v45 = vld [vmem:[#allocation210_spill] sm:$0xff]  ;;  %v11117_v9 = vld [vmem:[%s11969_s0 + $0x550] sm:$0xff]   ;;  %v11118_v52 = vld [vmem:[%s11969_s0 + $0x558] sm:$0xff]  }
 0x5d3   : > { %v5483_v58 = vpack.c.bf16 %v5468_v6, %v5467_v55  ;;  %10229 = vmatpush3.bf16.msra.mxu0 %v11114_v37  ;;  %v5484_v55 = vpack.c.bf16 %v5470_v34, %v5469_v10  ;;  %v11116_v6 = vld [vmem:[%s11969_s0 + $0x548] sm:$0xff]   ;;  %v17122_v63 = vld [vmem:[#allocation171_spill] sm:$0xff]  ;;  %v11119_v10 = vld [vmem:[%s11969_s0 + $0x560] sm:$0xff]  }
 0x5d4   : > { %10246 = vmatprep.subr.bf16.mxu0 %v11115_v20  ;;  %v17123_v37 = vpack.c.bf16 %v14650_v27, %v17122_v63  ;;  %v11120_v34 = vld [vmem:[%s11969_s0 + $0x568] sm:$0xff]   ;;  %v17128_v25 = vld [vmem:[#allocation217_spill] sm:$0xff]  ;;  %v11121_v27 = vld [vmem:[%s11969_s0 + $0x570] sm:$0xff]  }
 0x5d5   : > { %10211 = vmatmul.mubr.bf16.gmra.mrb[28].mxu0 %v17115_v28  ;;  %v17124_v28 = vld [vmem:[#allocation170_spill] sm:$0xff]  ;;  %v17133_v63 = vld [vmem:[#allocation219_spill] sm:$0xff] }
 0x5d6   : > { %10230 = vmatprep.mubr.bf16.mxu0 %v5483_v58  ;;  %v17120_v58 = vpack.c.bf16 %v17118_v45, %v17119_v17  ;;  %v17131_v17 = vld [vmem:[#allocation71_spill] sm:$0xff] }
 0x5dd   : > { %10231 = vmatmul.mubr.bf16.vlgmr.msra.gmra.mrb[16].mxu0 %v5484_v55  ;;  %v17127_v55 = vld [vmem:[#allocation214_spill] sm:$0xff] }
 0x5de   : > { %10247 = vmatpush3.bf16.msra.mxu0 %v11115_v20  ;;  %10234 = vmatprep.mubr.bf16.mxu0 %v17120_v58  ;;  %v17125_v20 = vld [vmem:[#allocation215_spill] sm:$0xff]  ;;  %v17129_v60 = vpack.c.bf16 %v17127_v55, %v17128_v25  ;;  %v5670_v58 = vmul.f32 %v14567_v35, %v17131_v17  ;;  %v17144_v17 = vpack.c.bf16 %v14771_v44, %v14762_v2  ;;  %v17149_v2 = vld [vmem:[#allocation84_spill] sm:$0xff] }
 0x5df   : > { %10248 = vmatprep.subr.bf16.mxu0 %v11116_v6  ;;  %v17126_v22 = vpack.c.bf16 %v17124_v28, %v17125_v20  ;;  %v17136_v28 = vld [vmem:[#allocation218_spill] sm:$0xff]  ;;  %v17138_v20 = vld [vmem:[#allocation220_spill] sm:$0xff]  ;;  %v11125_v25 = vld [vmem:[%s11969_s0 + $0x590] sm:$0xff]  }
 0x5e0   : > { %v17150_v44 = vld [vmem:[#allocation184_spill] sm:$0xff] }
 0x5e2   : > { %10249 = vmatpush3.bf16.msra.mxu0 %v11116_v6  ;;  %v17130_v6 = vld [vmem:[#allocation68_spill] sm:$0xff] }
 0x5e3   : > { %10250 = vmatprep.subr.bf16.mxu0 %v11117_v9  ;;  %v5669_v45 = vmul.f32 %v17075_v21, %v17130_v6  ;;  %v11124_v21 = vld [vmem:[%s11969_s0 + $0x588] sm:$0xff]   ;;  %v17142_v6 = vld [vmem:[#allocation187_spill] sm:$0xff] }
 0x5e5   : > { %10235 = vmatmul.mubr.bf16.gmra.mrb[20].mxu0 %v17121_v14  ;;  %v17132_v14 = vld [vmem:[#allocation216_spill] sm:$0xff] }
 0x5e6   : > { %10251 = vmatpush3.bf16.msra.mxu0 %v11117_v9  ;;  %10238 = vmatprep.mubr.bf16.mxu0 %v17123_v37  ;;  %v11122_v9 = vld [vmem:[%s11969_s0 + $0x578] sm:$0xff]   ;;  %v17134_v37 = vpack.c.bf16 %v17132_v14, %v17133_v63  ;;  %v17146_v14 = vld [vmem:[#allocation169_spill] sm:$0xff] }
 0x5e7   : > { %10252 = vmatprep.subr.bf16.mxu0 %v11118_v52  ;;  %v17147_v63 = vld [vmem:[#allocation213_spill] sm:$0xff] }
 0x5ea   : > { %10253 = vmatpush3.bf16.msra.mxu0 %v11118_v52  ;;  %v5685_v52 = vpack.c.bf16 %v5670_v58, %v5669_v45  ;;  %v11127_v58 = vld [vmem:[%s11969_s0 + $0x5a0] sm:$0xff]  }
 0x5eb   : > { %10254 = vmatprep.subr.bf16.mxu0 %v11119_v10 }
 0x5ed   : > { %10239 = vmatmul.mubr.bf16.gmra.mrb[24].mxu0 %v17126_v22  ;;  %v17139_v22 = vld [vmem:[#allocation221_spill] sm:$0xff] }
 0x5ee   : > { %10255 = vmatpush3.bf16.msra.mxu0 %v11119_v10  ;;  %10242 = vmatprep.mubr.bf16.mxu0 %v17129_v60  ;;  %v11123_v10 = vld [vmem:[%s11969_s0 + $0x580] sm:$0xff]   ;;  %v17140_v55 = vpack.c.bf16 %v17138_v20, %v17139_v22  ;;  %v11126_v60 = vld [vmem:[%s11969_s0 + $0x598] sm:$0xff]   ;;  %v17154_v22 = vld [vmem:[#allocation223_spill] sm:$0xff] }
 0x5ef   : > { %10256 = vmatprep.subr.bf16.mxu0 %v11120_v34  ;;  %v11130_v20 = vld [vmem:[%s11969_s0 + $0x5b8] sm:$0xff]  }
 0x5f2   : > { %10257 = vmatpush3.bf16.msra.mxu0 %v11120_v34  ;;  %v17135_v34 = vld [vmem:[#allocation209_spill] sm:$0xff] }
 0x5f3   : > { %10258 = vmatprep.subr.bf16.mxu0 %v11121_v27  ;;  %v17137_v35 = vpack.c.bf16 %v17135_v34, %v17136_v28  ;;  %v17151_v34 = vld [vmem:[#allocation87_spill] sm:$0xff] }
 0x5f4   : > { %v17152_v28 = vld [vmem:[#allocation183_spill] sm:$0xff] }
 0x5f5   : > { %10243 = vmatmul.mubr.bf16.gmra.mrb[28].mxu0 %v17134_v37  ;;  %v17148_v37 = vpack.c.bf16 %v17146_v14, %v17147_v63  ;;  %v17160_v14 = vld [vmem:[#allocation197_spill] sm:$0xff]  ;;  %v17161_v63 = vld [vmem:[#allocation192_spill] sm:$0xff] }
 0x5f6   : > { %10259 = vmatpush3.bf16.msra.mxu0 %v11121_v27  ;;  %10262 = vmatprep.mubr.bf16.mxu0 %v5685_v52  ;;  %v17141_v27 = vld [vmem:[#allocation222_spill] sm:$0xff]  ;;  %v17145_v52 = vpack.c.bf16 %v14779_v13, %v14775_v0  ;;  %v17153_v13 = vld [vmem:[#allocation193_spill] sm:$0xff] }
 0x5f7   : > { %10260 = vmatprep.subr.bf16.mxu0 %v11122_v9  ;;  %v17143_v45 = vpack.c.bf16 %v17141_v27, %v17142_v6  ;;  %v11131_v6 = vld [vmem:[%s11969_s0 + $0x5c0] sm:$0xff]  }
 0x5fa   : > { %10261 = vmatpush3.bf16.msra.mxu0 %v11122_v9  ;;  %v11128_v9 = vld [vmem:[%s11969_s0 + $0x5a8] sm:$0xff]  }
 0x5fb   : > { %10278 = vmatprep.subr.bf16.mxu0 %v11123_v10 }
 0x5fd   : > { %10263 = vmatmul.mubr.bf16.vlgmr.msra.gmra.mrb[16].mxu0 %v17137_v35  ;;  %v5871_v35 = vmul.f32 %v17152_v28, %v17151_v34  ;;  %v17164_v34 = vld [vmem:[#allocation88_spill] sm:$0xff] }
 0x5fe   : > { %10279 = vmatpush3.bf16.msra.mxu0 %v11123_v10  ;;  %10266 = vmatprep.mubr.bf16.mxu0 %v17140_v55  ;;  %v11129_v10 = vld [vmem:[%s11969_s0 + $0x5b0] sm:$0xff]   ;;  %v17155_v55 = vpack.c.bf16 %v17153_v13, %v17154_v22  ;;  %v11134_v13 = vld [vmem:[%s11969_s0 + $0x5d8] sm:$0xff]  }
 0x5ff   : > { %10280 = vmatprep.subr.bf16.mxu0 %v11124_v21  ;;  %v17166_v22 = vld [vmem:[#allocation196_spill] sm:$0xff] }
 0x602   : > { %10281 = vmatpush3.bf16.msra.mxu0 %v11124_v21  ;;  %v5872_v21 = vmul.f32 %v17150_v44, %v17149_v2  ;;  %v17163_v2 = vld [vmem:[#allocation96_spill] sm:$0xff] }
 0x603   : > { %10282 = vmatprep.subr.bf16.mxu0 %v11125_v25 }
 0x604   : > { %v5887_v0 = vpack.c.bf16 %v5872_v21, %v5871_v35  ;;  %v5878_v21 = vmul.f32 %v17079_v23, %v17163_v2  ;;  %v17165_v35 = vld [vmem:[#allocation188_spill] sm:$0xff]  ;;  %v11136_v23 = vld [vmem:[%s11969_s0 + $0x5e8] sm:$0xff]  }
 0x605   : > { %10267 = vmatmul.mubr.bf16.gmra.mrb[20].mxu0 %v17143_v45  ;;  %v17158_v45 = vld [vmem:[#allocation90_spill] sm:$0xff] }
 0x606   : > { %10283 = vmatpush3.bf16.msra.mxu0 %v11125_v25  ;;  %10270 = vmatprep.mubr.bf16.mxu0 %v17144_v17  ;;  %v17156_v25 = vld [vmem:[#allocation92_spill] sm:$0xff]  ;;  %v17159_v17 = vld [vmem:[#allocation181_spill] sm:$0xff] }
 0x607   : > { %10284 = vmatprep.subr.bf16.mxu0 %v11126_v60 }
 0x60a   : > { %10285 = vmatpush3.bf16.msra.mxu0 %v11126_v60  ;;  %v17157_v60 = vld [vmem:[#allocation182_spill] sm:$0xff] }
 0x60b   : > { %10286 = vmatprep.subr.bf16.mxu0 %v11127_v58  ;;  %v5874_v27 = vmul.f32 %v17157_v60, %v17156_v25  ;;  %v11135_v60 = vld [vmem:[%s11969_s0 + $0x5e0] sm:$0xff]  }
 0x60d   : > { %10271 = vmatmul.mubr.bf16.gmra.mrb[24].mxu0 %v17145_v52  ;;  %v11132_v52 = vld [vmem:[%s11969_s0 + $0x5c8] sm:$0xff]  }
 0x60e   : > { %10287 = vmatpush3.bf16.msra.mxu0 %v11127_v58  ;;  %10274 = vmatprep.mubr.bf16.mxu0 %v17148_v37  ;;  %v5873_v58 = vmul.f32 %v17159_v17, %v17158_v45  ;;  %v17162_v37 = vpack.c.bf16 %v17160_v14, %v17161_v63  ;;  %v11137_v14 = vld [vmem:[%s11969_s0 + $0x5f0] sm:$0xff]   ;;  %v11138_v63 = vld [vmem:[%s11969_s0 + $0x5f8] sm:$0xff]  }
 0x60f   : > { %10288 = vmatprep.subr.bf16.mxu0 %v11128_v9 }
 0x612   : > { %10289 = vmatpush3.bf16.msra.mxu0 %v11128_v9  ;;  %v5888_v9 = vpack.c.bf16 %v5874_v27, %v5873_v58  ;;  %v17169_v27 = vld [vmem:[#allocation176_spill] sm:$0xff] }
 0x613   : > { %10290 = vmatprep.subr.bf16.mxu0 %v11129_v10  ;;  %v17172_v58 = vld [vmem:[#allocation172_spill] sm:$0xff] }
 0x615   : > { %10275 = vmatmul.mubr.bf16.gmra.mrb[28].mxu0 %v17155_v55  ;;  %v17167_v55 = vld [vmem:[#allocation226_spill] sm:$0xff] }
 0x616   : > { %10291 = vmatpush3.bf16.msra.mxu0 %v11129_v10  ;;  %10294 = vmatprep.mubr.bf16.mxu0 %v5887_v0  ;;  %v11133_v10 = vld [vmem:[%s11969_s0 + $0x5d0] sm:$0xff]   ;;  %v5877_v0 = vmul.f32 %v17165_v35, %v17164_v34  ;;  %v17168_v25 = vpack.c.bf16 %v17166_v22, %v17167_v55  ;;  %v17179_v34 = vld [vmem:[#allocation180_spill] sm:$0xff] }
 0x617   : > { %10292 = vmatprep.subr.bf16.mxu0 %v11130_v20  ;;  %v11165_v22 = vld [vmem:[%s15295_s16 + $0x4] ss:$16 sps:$4 sm:$0xff]  }
 0x618   : > { %v11168_v55 = vld [vmem:[%s15295_s16 + $0x24] ss:$16 sps:$4 sm:$0xff]   ;;  %7175 = vmatprep.subr.bf16.mxu1 %v11165_v22  ;;  %v11175_v22 = vld [vmem:[%s15295_s16 + $0x80] ss:$16 sps:$4 sm:$0xff]  }
 0x61a   : > { %10293 = vmatpush3.bf16.msra.mxu0 %v11130_v20  ;;  %v5890_v20 = vpack.c.bf16 %v5878_v21, %v5877_v0  ;;  %v17178_v21 = vld [vmem:[#allocation179_spill] sm:$0xff] }
 0x61b   : > { %10310 = vmatprep.subr.bf16.mxu0 %v11131_v6  ;;  %v17180_v0 = vpack.c.bf16 %v17178_v21, %v17179_v34  ;;  %v11177_v21 = vld [vmem:[%s15295_s16 + $0x84] ss:$16 sps:$4 sm:$0xff]   ;;  %v17187_v34 = vld [vmem:[#allocation21_spill] sm:$0xff] }
 0x61d   : > { %10295 = vmatmul.mubr.bf16.vlgmr.msra.gmra.mrb[16].mxu0 %v5888_v9  ;;  %v17173_v9 = vld [vmem:[#allocation177_spill] sm:$0xff] }
 0x61e   : > { %10311 = vmatpush3.bf16.msra.mxu0 %v11131_v6  ;;  %10298 = vmatprep.mubr.bf16.mxu0 %v17162_v37  ;;  %v17170_v6 = vld [vmem:[#allocation206_spill] sm:$0xff] }
 0x61f   : > { %10312 = vmatprep.subr.bf16.mxu0 %v11132_v52  ;;  %v17171_v45 = vpack.c.bf16 %v17169_v27, %v17170_v6  ;;  %v17175_v37 = vld [vmem:[#allocation178_spill] sm:$0xff]  ;;  %v17181_v27 = vld [vmem:[#allocation208_spill] sm:$0xff] }
 0x620   : > { %v17182_v6 = vld [vmem:[#allocation174_spill] sm:$0xff] }
 0x622   : > { %10313 = vmatpush3.bf16.msra.mxu0 %v11132_v52  ;;  %v17174_v52 = vpack.c.bf16 %v17172_v58, %v17173_v9  ;;  %v11141_v58 = vld [vmem:[%s11969_s0 + $0x610] sm:$0xff]  }
 0x623   : > { %10314 = vmatprep.subr.bf16.mxu0 %v11133_v10  ;;  %v17184_v9 = vld [vmem:[#allocation175_spill] sm:$0xff] }
 0x625   : > { %10299 = vmatmul.mubr.bf16.gmra.mrb[20].mxu0 %v5890_v20  ;;  %v11139_v20 = vld [vmem:[%s11969_s0 + $0x600] sm:$0xff]  }
 0x626   : > { %10315 = vmatpush3.bf16.msra.mxu0 %v11133_v10  ;;  %10302 = vmatprep.mubr.bf16.mxu0 %v17168_v25  ;;  %v17176_v10 = vld [vmem:[#allocation173_spill] sm:$0xff]  ;;  %v11140_v25 = vld [vmem:[%s11969_s0 + $0x608] sm:$0xff]  }
 0x627   : > { %10316 = vmatprep.subr.bf16.mxu0 %v11134_v13  ;;  %v17177_v2 = vpack.c.bf16 %v17175_v37, %v17176_v10  ;;  %v11174_v37 = vld [vmem:[%s15295_s16 + $0x64] ss:$16 sps:$4 sm:$0xff]  }
 0x628   : > { %v11142_v10 = vld [vmem:[%s11969_s0 + $0x618] sm:$0xff]  }
 0x62a   : > { %10317 = vmatpush3.bf16.msra.mxu0 %v11134_v13  ;;  %v11163_v13 = vld [vmem:[%s15295_s16] ss:$16 sps:$4 sm:$0xff]  }
 0x62b   : > { %10318 = vmatprep.subr.bf16.mxu0 %v11135_v60  ;;  %7176 = vmatpush1.bf16.msra.mxu1 %v11163_v13  ;;  %v11143_v13 = vld [vmem:[%s11969_s0 + $0x620] sm:$0xff]  }
 0x62c   : > { %7177 = vmatprep.subr.bf16.mxu1 %v11168_v55  ;;  %v17190_v55 = vld [vmem:[#allocation139_spill] sm:$0xff] }
 0x62d   : > { %10303 = vmatmul.mubr.bf16.gmra.mrb[24].mxu0 %v17171_v45  ;;  %v17183_v45 = vpack.c.bf16 %v17181_v27, %v17182_v6  ;;  %v11178_v27 = vld [vmem:[%s15295_s16 + $0xa0] ss:$16 sps:$4 sm:$0xff]   ;;  %v17192_v6 = vpack.c.bf16 %v14946_v42, %v14942_v12 }
 0x62e   : > { %10319 = vmatpush3.bf16.msra.mxu0 %v11135_v60  ;;  %10306 = vmatprep.mubr.bf16.mxu0 %v17174_v52  ;;  %v11166_v60 = vld [vmem:[%s15295_s16 + $0x20] ss:$16 sps:$4 sm:$0xff]  }
 0x62f   : > { %10320 = vmatprep.subr.bf16.mxu0 %v11136_v23  ;;  %v17185_v52 = vld [vmem:[#allocation186_spill] sm:$0xff]  ;;  %7178 = vmatpush1.bf16.msra.mxu1 %v11166_v60  ;;  %v17191_v60 = vpack.c.bf16 %v14938_v51, %v17190_v55  ;;  %v17193_v51 = vld [vmem:[#allocation19_spill] sm:$0xff]  ;;  %v11147_v42 = vld [vmem:[%s11969_s0 + $0x640] sm:$0xff]  }
 0x630   : > { %v17196_v12 = vld [vmem:[#allocation24_spill] sm:$0xff] }
 0x631   : > { %v11154_v55 = vld [vmem:[%s11969_s0 + $0x678] sm:$0xff]  }
 0x632   : > { %10321 = vmatpush3.bf16.msra.mxu0 %v11136_v23  ;;  %v11171_v23 = vld [vmem:[%s15295_s16 + $0x44] ss:$16 sps:$4 sm:$0xff]  }
 0x633   : > { %10322 = vmatprep.subr.bf16.mxu0 %v11137_v14  ;;  %7179 = vmatprep.subr.bf16.mxu1 %v11171_v23  ;;  %v11144_v23 = vld [vmem:[%s11969_s0 + $0x628] sm:$0xff]  }
 0x635   : > { %10307 = vmatmul.mubr.bf16.gmra.mrb[28].mxu0 %v17177_v2  ;;  %v11172_v2 = vld [vmem:[%s15295_s16 + $0x60] ss:$16 sps:$4 sm:$0xff]  }
 0x636   : > { %10323 = vmatpush3.bf16.msra.mxu0 %v11137_v14  ;;  %10326 = vmatprep.mubr.bf16.mxu0 %v17180_v0  ;;  %v17186_v14 = vpack.c.bf16 %v17184_v9, %v17185_v52  ;;  %v17188_v0 = vld [vmem:[#allocation168_spill] sm:$0xff]  ;;  %v17195_v52 = vpack.c.bf16 %v14962_v33, %v14958_v57  ;;  %v17201_v57 = vpack.c.bf16 %v14991_v49, %v14984_v36  ;;  %v11149_v33 = vld [vmem:[%s11969_s0 + $0x650] sm:$0xff]   ;;  %v11152_v36 = vld [vmem:[%s11969_s0 + $0x668] sm:$0xff]  }
 0x637   : > { %10324 = vmatprep.subr.bf16.mxu0 %v11138_v63  ;;  %v11146_v9 = vld [vmem:[%s11969_s0 + $0x638] sm:$0xff]   ;;  %v17204_v49 = vld [vmem:[#allocation23_spill] sm:$0xff] }
 0x63a   : > { %10325 = vmatpush3.bf16.msra.mxu0 %v11138_v63  ;;  %v11169_v63 = vld [vmem:[%s15295_s16 + $0x40] ss:$16 sps:$4 sm:$0xff]  }
 0x63b   : > { %10342 = vmatprep.subr.bf16.mxu0 %v11139_v20  ;;  %7180 = vmatpush1.bf16.msra.mxu1 %v11169_v63  ;;  %v17198_v63 = vld [vmem:[#allocation224_spill] sm:$0xff] }
 0x63c   : > { %7181 = vmatprep.subr.bf16.mxu1 %v11174_v37  ;;  %v17199_v37 = vld [vmem:[#allocation225_spill] sm:$0xff] }
 0x63d   : > { %10327 = vmatmul.mubr.bf16.vlgmr.msra.gmra.mrb[16].mxu0 %v17183_v45  ;;  %v11145_v45 = vld [vmem:[%s11969_s0 + $0x630] sm:$0xff]  }
 0x63e   : > { %10343 = vmatpush3.bf16.msra.mxu0 %v11139_v20  ;;  %10330 = vmatprep.mubr.bf16.mxu0 %v17186_v14  ;;  %v17189_v20 = vpack.c.bf16 %v17187_v34, %v17188_v0  ;;  %v17197_v14 = vpack.c.bf16 %v14974_v38, %v17196_v12  ;;  %v11150_v38 = vld [vmem:[%s11969_s0 + $0x658] sm:$0xff]   ;;  %v11151_v34 = vld [vmem:[%s11969_s0 + $0x660] sm:$0xff]   ;;  %v17205_v0 = vpack.c.bf16 %v15015_v54, %v17204_v49  ;;  %v11160_v12 = vld [vmem:[%s11969_s0 + $0x6a8] sm:$0xff]  }
 0x63f   : > { %10344 = vmatprep.subr.bf16.mxu0 %v11140_v25  ;;  %7182 = vmatpush1.bf16.msra.mxu1 %v11172_v2  ;;  %v17202_v2 = vpack.c.bf16 %v14999_v11, %v14995_v43  ;;  %v17206_v43 = vld [vmem:[#allocation22_spill] sm:$0xff] }
 0x640   : > { %7183 = vmatprep.subr.bf16.mxu1 %v11177_v21  ;;  %v17203_v21 = vpack.c.bf16 %v15007_v7, %v15003_v47  ;;  %v17207_v11 = vpack.c.bf16 %v15030_v30, %v17206_v43  ;;  %v17208_v7 = vld [vmem:[#allocation130_spill] sm:$0xff]  ;;  %v11155_v30 = vld [vmem:[%s11969_s0 + $0x680] sm:$0xff]  }
 0x641   : > { %v6477_v47 = vmul.f32 %v17150_v44, %v17208_v7 }
 0x642   : > { %10345 = vmatpush3.bf16.msra.mxu0 %v11140_v25  ;;  %v11180_v25 = vld [vmem:[%s15295_s16 + $0xa4] ss:$16 sps:$4 sm:$0xff]  }
 0x643   : > { %10346 = vmatprep.subr.bf16.mxu0 %v11141_v58  ;;  %7184 = vmatpush1.bf16.msra.mxu1 %v11175_v22 }
 0x644   : > { %7185 = vmatprep.subr.bf16.mxu1 %v11180_v25  ;;  %v17211_v25 = vld [vmem:[#allocation141_spill] sm:$0xff] }
 0x645   : > { %10331 = vmatmul.mubr.bf16.gmra.mrb[20].mxu0 %v17189_v20  ;;  %v11153_v20 = vld [vmem:[%s11969_s0 + $0x670] sm:$0xff]  }
 0x646   : > { %10347 = vmatpush3.bf16.msra.mxu0 %v11141_v58  ;;  %10334 = vmatprep.mubr.bf16.mxu0 %v17191_v60  ;;  %v17194_v58 = vpack.c.bf16 %v14954_v15, %v17193_v51  ;;  %v11148_v15 = vld [vmem:[%s11969_s0 + $0x648] sm:$0xff]   ;;  %v17210_v60 = vpack.c.bf16 %v15048_v8, %v15041_v56  ;;  %v17214_v51 = vld [vmem:[#allocation189_spill] sm:$0xff] }
 0x647   : > { %10348 = vmatprep.subr.bf16.mxu0 %v11142_v10  ;;  %7186 = vmatpush1.bf16.msra.mxu1 %v11178_v27  ;;  %v17213_v27 = vld [vmem:[#allocation135_spill] sm:$0xff]  ;;  %v17215_v56 = vld [vmem:[#allocation185_spill] sm:$0xff] }
 0x648   : > { %v17216_v8 = vpack.c.bf16 %v17214_v51, %v17215_v56 }
 0x64a   : > { %10349 = vmatpush3.bf16.msra.mxu0 %v11142_v10  ;;  %v17200_v10 = vpack.c.bf16 %v17198_v63, %v17199_v37  ;;  %v17222_v37 = vld [vmem:[#allocation31_spill] sm:$0xff] }
 0x64b   : > { %10350 = vmatprep.subr.bf16.mxu0 %v11143_v13 }
 0x64d   : > { %10335 = vmatmul.mubr.bf16.gmra.mrb[24].mxu0 %v17192_v6  ;;  %v11156_v6 = vld [vmem:[%s11969_s0 + $0x688] sm:$0xff]  }
 0x64e   : > { %10351 = vmatpush3.bf16.msra.mxu0 %v11143_v13  ;;  %10338 = vmatprep.mubr.bf16.mxu0 %v17194_v58  ;;  %v17209_v13 = vld [vmem:[#allocation138_spill] sm:$0xff]  ;;  %v11157_v58 = vld [vmem:[%s11969_s0 + $0x690] sm:$0xff]  }
 0x64f   : > { %10352 = vmatprep.subr.bf16.mxu0 %v11144_v23  ;;  %v6478_v22 = vmul.f32 %v17159_v17, %v17209_v13  ;;  %v6482_v17 = vmul.f32 %v17165_v35, %v17213_v27  ;;  %v17217_v35 = vpack.c.bf16 %v15064_v5, %v15060_v41  ;;  %v17223_v41 = vpack.c.bf16 %v15095_v24, %v17222_v37  ;;  %v11161_v5 = vld [vmem:[%s11969_s0 + $0x6b0] sm:$0xff]  }
 0x650   : > { %v17227_v24 = vpack.c.bf16 %v15112_v59, %v15103_v50  ;;  %v17231_v50 = vpack.c.bf16 %v15146_v46, %v15142_v16  ;;  %v17232_v59 = vpack.c.bf16 %v15156_v40, %v15152_v4  ;;  %v15438_v16 = vld [vmem:[%s13088_s23 + $0x2] ss:$0 sm:$0xff] }
 0x651   : > { %v6493_v54 = vpack.c.bf16 %v6478_v22, %v6477_v47 }
 0x652   : > { %10353 = vmatpush3.bf16.msra.mxu0 %v11144_v23  ;;  %v17212_v23 = vld [vmem:[#allocation190_spill] sm:$0xff] }
 0x653   : > { %10354 = vmatprep.subr.bf16.mxu0 %v11145_v45  ;;  %v6481_v44 = vmul.f32 %v17212_v23, %v17211_v25  ;;  %v11192_v23 = vld [vmem:[%s15295_s16 + $0x2c] ss:$16 sps:$4 sm:$0xff]  }
 0x655   : > { %10339 = vmatmul.mubr.bf16.gmra.mrb[28].mxu0 %v17195_v52  ;;  %v17218_v52 = vpack.c.bf16 %v15072_v29, %v15068_v19  ;;  %v17225_v19 = vld [vmem:[#allocation58_spill] sm:$0xff] }
 0x656   : > { %10355 = vmatpush3.bf16.msra.mxu0 %v11145_v45  ;;  %10358 = vmatprep.mubr.bf16.mxu0 %v17197_v14  ;;  %v6495_v45 = vpack.c.bf16 %v6482_v17, %v6481_v44  ;;  %v17219_v14 = vld [vmem:[#allocation28_spill] sm:$0xff] }
 0x657   : > { %10356 = vmatprep.subr.bf16.mxu0 %v11146_v9 }
 0x65a   : > { %10357 = vmatpush3.bf16.msra.mxu0 %v11146_v9  ;;  %v11158_v9 = vld [vmem:[%s11969_s0 + $0x698] sm:$0xff]  }
 0x65b   : > { %10374 = vmatprep.subr.bf16.mxu0 %v11147_v42 }
 0x65d   : > { %10359 = vmatmul.mubr.bf16.vlgmr.msra.gmra.mrb[16].mxu0 %v17200_v10  ;;  %v17224_v10 = vld [vmem:[#allocation149_spill] sm:$0xff] }
 0x65e   : > { %10375 = vmatpush3.bf16.msra.mxu0 %v11147_v42  ;;  %10362 = vmatprep.mubr.bf16.mxu0 %v17201_v57  ;;  %v11159_v42 = vld [vmem:[%s11969_s0 + $0x6a0] sm:$0xff]   ;;  %v6491_v29 = vmul.f32 %v17225_v19, %v17224_v10 }
 0x65f   : > { %10376 = vmatprep.subr.bf16.mxu0 %v11148_v15  ;;  %v17226_v57 = vld [vmem:[#allocation101_spill] sm:$0xff] }
 0x662   : > { %10377 = vmatpush3.bf16.msra.mxu0 %v11148_v15  ;;  %v17220_v15 = vld [vmem:[#allocation29_spill] sm:$0xff] }
 0x663   : > { %10378 = vmatprep.subr.bf16.mxu0 %v11149_v33  ;;  %v17221_v63 = vpack.c.bf16 %v17219_v14, %v17220_v15  ;;  %v11193_v15 = vld [vmem:[%s15295_s16 + $0x48] ss:$16 sps:$4 sm:$0xff]  }
 0x665   : > { %10363 = vmatmul.mubr.bf16.gmra.mrb[20].mxu0 %v17202_v2  ;;  %v11162_v2 = vld [vmem:[%s11969_s0 + $0x6b8] sm:$0xff]  }
 0x666   : > { %10379 = vmatpush3.bf16.msra.mxu0 %v11149_v33  ;;  %10366 = vmatprep.mubr.bf16.mxu0 %v17203_v21  ;;  %v6492_v33 = vmul.f32 %v17152_v28, %v17226_v57  ;;  %v17228_v21 = vpack.c.bf16 %v15052_v62, %v15085_v53  ;;  %v17229_v28 = vpack.c.bf16 %v15127_v61, %v15118_v32  ;;  %v11181_v62 = vld [vmem:[%s15295_s16 + $0xc0] ss:$16 sps:$4 sm:$0xff]   ;;  %v11186_v61 = vld [vmem:[%s15295_s16 + $0xe4] ss:$16 sps:$4 sm:$0xff]  }
 0x667   : > { %10380 = vmatprep.subr.bf16.mxu0 %v11150_v38  ;;  %v17233_v53 = vpack.c.bf16 %v15168_v1, %v15160_v18  ;;  %v11184_v32 = vld [vmem:[%s15295_s16 + $0xe0] ss:$16 sps:$4 sm:$0xff]  }
 0x668   : > { %v17234_v1 = vld [vmem:[#allocation164_spill] sm:$0xff] }
 0x66a   : > { %10381 = vmatpush3.bf16.msra.mxu0 %v11150_v38  ;;  %v6500_v38 = vpack.c.bf16 %v6492_v33, %v6491_v29  ;;  %v11198_v29 = vld [vmem:[%s15295_s16 + $0x6c] ss:$16 sps:$4 sm:$0xff]  }
 0x66b   : > { %10382 = vmatprep.subr.bf16.mxu0 %v11151_v34 }
 0x66d   : > { %10367 = vmatmul.mubr.bf16.gmra.mrb[24].mxu0 %v17205_v0 }
 0x66e   : > { %10383 = vmatpush3.bf16.msra.mxu0 %v11151_v34  ;;  %10370 = vmatprep.mubr.bf16.mxu0 %v17207_v11  ;;  %v17230_v34 = vpack.c.bf16 %v15138_v3, %v15131_v48  ;;  %v11183_v48 = vld [vmem:[%s15295_s16 + $0xc4] ss:$16 sps:$4 sm:$0xff]   ;;  %v11189_v3 = vld [vmem:[%s15295_s16 + $0xc] ss:$16 sps:$4 sm:$0xff]  }
 0x66f   : > { %10384 = vmatprep.subr.bf16.mxu0 %v11152_v36  ;;  %7187 = vmatprep.subr.bf16.mxu1 %v11183_v48 }
 0x670   : > { %7188 = vmatpush1.bf16.msra.mxu1 %v11181_v62 }
 0x671   : > { %7189 = vmatprep.subr.bf16.mxu1 %v11186_v61  ;;  %v11199_v61 = vld [vmem:[%s15295_s16 + $0x88] ss:$16 sps:$4 sm:$0xff]  }
 0x672   : > { %10385 = vmatpush3.bf16.msra.mxu0 %v11152_v36 }
 0x673   : > { %10386 = vmatprep.subr.bf16.mxu0 %v11153_v20 }
 0x674   : > { %7190 = vmatpush1.bf16.msra.mxu1 %v11184_v32 }
 0x675   : > { %10371 = vmatmul.mubr.bf16.gmra.mrb[28].mxu0 %v17210_v60  ;;  %7288 = vmatprep.subr.bf16.mxu1 %v11189_v3 }
 0x676   : > { %10387 = vmatpush3.bf16.msra.mxu0 %v11153_v20  ;;  %10390 = vmatprep.mubr.bf16.mxu0 %v6493_v54 }
 0x677   : > { %10388 = vmatprep.subr.bf16.mxu0 %v11154_v55 }
 0x67a   : > { %10389 = vmatpush3.bf16.msra.mxu0 %v11154_v55  ;;  %v11187_v55 = vld [vmem:[%s15295_s16 + $0x8] ss:$16 sps:$4 sm:$0xff]  }
 0x67b   : > { %10406 = vmatprep.subr.bf16.mxu0 %v11155_v30 }
 0x67d   : > { %10391 = vmatmul.mubr.bf16.vlgmr.msra.gmra.mrb[16].mxu0 %v17216_v8  ;;  %v17235_v8 = vmov 0  }
 0x67e   : > { %10407 = vmatpush3.bf16.msra.mxu0 %v11155_v30  ;;  %10394 = vmatprep.mubr.bf16.mxu0 %v6495_v45 }
 0x67f   : > { %10408 = vmatprep.subr.bf16.mxu0 %v11156_v6 }
 0x682   : > { %10409 = vmatpush3.bf16.msra.mxu0 %v11156_v6 }
 0x683   : > { %10410 = vmatprep.subr.bf16.mxu0 %v11157_v58 }
 0x685   : > { %10395 = vmatmul.mubr.bf16.gmra.mrb[20].mxu0 %v17217_v35  ;;  %v11195_v35 = vld [vmem:[%s15295_s16 + $0x4c] ss:$16 sps:$4 sm:$0xff]  }
 0x686   : > { %10411 = vmatpush3.bf16.msra.mxu0 %v11157_v58  ;;  %10398 = vmatprep.mubr.bf16.mxu0 %v17218_v52  ;;  %v11190_v58 = vld [vmem:[%s15295_s16 + $0x28] ss:$16 sps:$4 sm:$0xff]  }
 0x687   : > { %10412 = vmatprep.subr.bf16.mxu0 %v11158_v9 }
 0x68a   : > { %10413 = vmatpush3.bf16.msra.mxu0 %v11158_v9 }
 0x68b   : > { %10414 = vmatprep.subr.bf16.mxu0 %v11159_v42 }
 0x68d   : > { %10399 = vmatmul.mubr.bf16.gmra.mrb[24].mxu0 %v17221_v63 }
 0x68e   : > { %10415 = vmatpush3.bf16.msra.mxu0 %v11159_v42  ;;  %10402 = vmatprep.mubr.bf16.mxu0 %v17223_v41 }
 0x68f   : > { %10416 = vmatprep.subr.bf16.mxu0 %v11160_v12 }
 0x692   : > { %10417 = vmatpush3.bf16.msra.mxu0 %v11160_v12 }
 0x693   : > { %10418 = vmatprep.subr.bf16.mxu0 %v11161_v5 }
 0x695   : > { %10403 = vmatmul.mubr.bf16.gmra.mrb[28].mxu0 %v6500_v38 }
 0x696   : > { %10419 = vmatpush3.bf16.msra.mxu0 %v11161_v5  ;;  %10422 = vmatprep.mubr.bf16.mxu0 %v17227_v24 }
 0x697   : > { %10420 = vmatprep.subr.bf16.mxu0 %v11162_v2 }
 0x69a   : > { %10421 = vmatpush3.bf16.msra.mxu0 %v11162_v2 }
 0x69d   : > { %10423 = vmatmul.mubr.bf16.vlgmr.msra.gmra.mrb[16].mxu0 %v17228_v21 }
 0x69e   : > { %10426 = vmatprep.mubr.bf16.mxu0 %v17229_v28 }
 0x6a5   : > { %10427 = vmatmul.mubr.bf16.gmra.mrb[20].mxu0 %v17230_v34  ;;  %v11196_v34 = vld [vmem:[%s15295_s16 + $0x68] ss:$16 sps:$4 sm:$0xff]  }
 0x6a6   : > { %10430 = vmatprep.mubr.bf16.mxu0 %v17231_v50 }
 0x6ad   : > { %10431 = vmatmul.mubr.bf16.gmra.mrb[24].mxu0 %v17232_v59  ;;  %v11201_v59 = vld [vmem:[%s15295_s16 + $0x8c] ss:$16 sps:$4 sm:$0xff]  }
 0x6ae   : > { %10434 = vmatprep.mubr.bf16.mxu0 %v17233_v53 }
 0x6b5   : > { %10435 = vmatmul.mubr.bf16.gmra.mrb[28].mxu0 %v6702_v39 }
 0x770   : > { %v10424_v46 = vpop.f32.mrb[16].mxu0 }
 0x771   : > { %v6891_v18 = vadd.f32 %v10424_v46, %v15438_v16  ;;  %v6802_v4 = vpop.f32.mrb[17].mxu0 }
 0x772   : > { %v6889_v40 = vadd.f32 %v15438_v16, %v6802_v4  ;;  %v10425_v31 = vpop.f32.mrb[18].mxu0 }
 0x773   : > { %v6923_v26 = vmul.f32 %v6891_v18, %v17234_v1  ;;  %v6892_v39 = vadd.f32 %v10425_v31, %v15438_v16  ;;  %v6805_v36 = vpop.f32.mrb[19].mxu0  ;;  %vm6907_vm0 = vcmp.gt.f32.partialorder %v6891_v18, 0.0 }
 0x774   : > { %v6921_v49 = vmul.f32 %v6889_v40, %v17234_v1  ;;  %v6890_v0 = vadd.f32 %v15438_v16, %v6805_v36  ;;  %vm6905_vm1 = vcmp.gt.f32.partialorder %v6889_v40, 0.0 }
 0x775   : > { %vm6908_vm6 = vcmp.gt.f32.partialorder %v6892_v39, 0.0  ;;  %v6924_v43 = vmul.f32 %v6892_v39, %v17234_v1  ;;  %v6939_v20 = vsel %vm6907_vm0, %v6891_v18, %v6923_v26  ;;  %v11204_v26 = vld [vmem:[%s15295_s16 + $0xac] ss:$16 sps:$4 sm:$0xff]  }
 0x776   : > { %vm6906_vm7 = vcmp.gt.f32.partialorder %v6890_v0, 0.0  ;;  %v6922_v11 = vmul.f32 %v6890_v0, %v17234_v1  ;;  %v6937_v47 = vsel %vm6905_vm1, %v6889_v40, %v6921_v49 }
 0x777   : > { %v6940_v7 = vsel %vm6908_vm6, %v6892_v39, %v6924_v43 }
 0x778   : > { %v6938_v13 = vsel %vm6906_vm7, %v6890_v0, %v6922_v11  ;;  %v10428_v22 = vpop.f32.mrb[20].mxu0  ;;  %v15449_v54 = vpack.c.bf16 %v6940_v7, %v6939_v20  ;;  %v11202_v7 = vld [vmem:[%s15295_s16 + $0xa8] ss:$16 sps:$4 sm:$0xff]  }
 0x779   : > { %v15451_v60 = vpack.c.bf16 %v6938_v13, %v6937_v47  ;;  %v6895_v30 = vadd.f32 %v10428_v22, %v15438_v16  ;;  %v6818_v25 = vpop.f32.mrb[21].mxu0  ;;  %v11207_v13 = vld [vmem:[%s15295_s16 + $0xcc] ss:$16 sps:$4 sm:$0xff]  }
 0x77a   : > { %v6893_v44 = vadd.f32 %v15438_v16, %v6818_v25  ;;  %v10429_v27 = vpop.f32.mrb[22].mxu0 }
 0x77b   : > { %v6927_v17 = vmul.f32 %v6895_v30, %v17234_v1  ;;  %v6896_v6 = vadd.f32 %v10429_v27, %v15438_v16  ;;  %v6821_v45 = vpop.f32.mrb[23].mxu0  ;;  %7208 = vmatmul.mubr.bf16.vlgmr.msra.gmra.mrb[16].mxu1 %v15451_v60  ;;  %vm6911_vm8 = vcmp.gt.f32.partialorder %v6895_v30, 0.0 }
 0x77c   : > { %v6925_v51 = vmul.f32 %v6893_v44, %v17234_v1  ;;  %v6894_v56 = vadd.f32 %v15438_v16, %v6821_v45  ;;  %7289 = vmatpush1.bf16.msra.mxu1 %v11187_v55  ;;  %7217 = vmatprep.mubr.bf16.mxu1 %v17235_v8  ;;  %vm6909_vm9 = vcmp.gt.f32.partialorder %v6893_v44, 0.0  ;;  %v11211_v45 = vld [vmem:[%s15322_s15 + $0x40] sm:$0xff]  }
 0x77d   : > { %vm6912_vm10 = vcmp.gt.f32.partialorder %v6896_v6, 0.0  ;;  %v6928_v9 = vmul.f32 %v6896_v6, %v17234_v1  ;;  %7290 = vmatprep.subr.bf16.mxu1 %v11192_v23  ;;  %v6943_v42 = vsel %vm6911_vm8, %v6895_v30, %v6927_v17  ;;  %v11210_v17 = vld [vmem:[%s15295_s16 + $0xec] ss:$16 sps:$4 sm:$0xff]  }
 0x77e   : > { %vm6910_vm11 = vcmp.gt.f32.partialorder %v6894_v56, 0.0  ;;  %v6926_v52 = vmul.f32 %v6894_v56, %v17234_v1  ;;  %v6941_v63 = vsel %vm6909_vm9, %v6893_v44, %v6925_v51  ;;  %v11212_v51 = vld [vmem:[%s15322_s15] sm:$0xff]  }
 0x77f   : > { %v6944_v12 = vsel %vm6912_vm10, %v6896_v6, %v6928_v9  ;;  %v11208_v6 = vld [vmem:[%s15295_s16 + $0xe8] ss:$16 sps:$4 sm:$0xff]  }
 0x780   : > { %v10432_v14 = vpop.f32.mrb[24].mxu0  ;;  %7291 = vmatpush1.bf16.msra.mxu1 %v11190_v58  ;;  %v6942_v37 = vsel %vm6910_vm11, %v6894_v56, %v6926_v52  ;;  %v15467_v41 = vpack.c.bf16 %v6944_v12, %v6943_v42  ;;  %v11213_v56 = vld [vmem:[%s15322_s15 + $0x48] sm:$0xff]   ;;  %v11215_v9 = vld [vmem:[%s15322_s15 + $0x50] sm:$0xff]   ;;  %v11217_v52 = vld [vmem:[%s15322_s15 + $0x58] sm:$0xff]  }
 0x781   : > { %v6899_v5 = vadd.f32 %v10432_v14, %v15438_v16  ;;  %v6834_v10 = vpop.f32.mrb[25].mxu0  ;;  %7292 = vmatprep.subr.bf16.mxu1 %v11195_v35  ;;  %v15470_v19 = vpack.c.bf16 %v6942_v37, %v6941_v63  ;;  %v11214_v58 = vld [vmem:[%s15322_s15 + $0x8] sm:$0xff]   ;;  %v11216_v35 = vld [vmem:[%s15322_s15 + $0x10] sm:$0xff]   ;;  %v11219_v42 = vld [vmem:[%s15322_s15 + $0x60] sm:$0xff]  }
 0x782   : > { %v6897_v57 = vadd.f32 %v15438_v16, %v6834_v10  ;;  %v10433_v33 = vpop.f32.mrb[26].mxu0  ;;  %v11220_v12 = vld [vmem:[%s15322_s15 + $0x20] sm:$0xff]   ;;  %v11221_v14 = vld [vmem:[%s15322_s15 + $0x68] sm:$0xff]   ;;  %v11224_v63 = vld [vmem:[%s15322_s15 + $0x30] sm:$0xff]  }
 0x783   : > { %v6931_v38 = vmul.f32 %v6899_v5, %v17234_v1  ;;  %v6900_v2 = vadd.f32 %v10433_v33, %v15438_v16  ;;  %v6837_v24 = vpop.f32.mrb[27].mxu0  ;;  %7218 = vmatmul.mubr.bf16.gmra.mrb[20].mxu1 %v15449_v54  ;;  %vm6915_vm12 = vcmp.gt.f32.partialorder %v6899_v5, 0.0  ;;  %v11225_v37 = vld [vmem:[%s15322_s15 + $0x78] sm:$0xff]   ;;  %v11227_v10 = vld [vmem:[%s15322_s15 + $0xc0] sm:$0xff]  }
 0x784   : > { %v6929_v21 = vmul.f32 %v6897_v57, %v17234_v1  ;;  %v6898_v28 = vadd.f32 %v15438_v16, %v6837_v24  ;;  %7227 = vmatprep.mubr.bf16.mxu1 %v17235_v8  ;;  %7293 = vmatpush1.bf16.msra.mxu1 %v11193_v15  ;;  %vm6913_vm13 = vcmp.gt.f32.partialorder %v6897_v57, 0.0  ;;  %v11223_v15 = vld [vmem:[%s15322_s15 + $0x70] sm:$0xff]  }
 0x785   : > { %vm6916_vm14 = vcmp.gt.f32.partialorder %v6900_v2, 0.0  ;;  %v6932_v50 = vmul.f32 %v6900_v2, %v17234_v1  ;;  %7294 = vmatprep.subr.bf16.mxu1 %v11198_v29  ;;  %v6947_v62 = vsel %vm6915_vm12, %v6899_v5, %v6931_v38  ;;  %v11226_v5 = vld [vmem:[%s15322_s15 + $0x38] sm:$0xff]  }
 0x786   : > { %vm6914_vm15 = vcmp.gt.f32.partialorder %v6898_v28, 0.0  ;;  %v6930_v53 = vmul.f32 %v6898_v28, %v17234_v1  ;;  %v6945_v3 = vsel %vm6913_vm13, %v6897_v57, %v6929_v21  ;;  %v15549_v29 = vld [vmem:[%s477_s30] sm:$0xf] }
 0x787   : > { %v6948_v48 = vsel %vm6916_vm14, %v6900_v2, %v6932_v50 }
 0x788   : > { %v10436_v32 = vpop.f32.mrb[28].mxu0  ;;  %7295 = vmatpush1.bf16.msra.mxu1 %v11196_v34  ;;  %v6946_v46 = vsel %vm6914_vm15, %v6898_v28, %v6930_v53  ;;  %v15485_v18 = vpack.c.bf16 %v6948_v48, %v6947_v62 }
 0x789   : > { %v6903_v4 = vadd.f32 %v10436_v32, %v15438_v16  ;;  %v6850_v40 = vpop.f32.mrb[29].mxu0  ;;  %7296 = vmatprep.subr.bf16.mxu1 %v11201_v59  ;;  %v15488_v31 = vpack.c.bf16 %v6946_v46, %v6945_v3 }
 0x78a   : > { %v6901_v39 = vadd.f32 %v15438_v16, %v6850_v40  ;;  %v10437_v36 = vpop.f32.mrb[30].mxu0 }
 0x78b   : > { %v6935_v49 = vmul.f32 %v6903_v4, %v17234_v1  ;;  %v6904_v0 = vadd.f32 %v10437_v36, %v15438_v16  ;;  %v6853_v43 = vpop.f32.mrb[31].mxu0  ;;  %7228 = vmatmul.mubr.bf16.gmra.mrb[24].mxu1 %v15470_v19  ;;  %vm6919_vm2 = vcmp.gt.f32.partialorder %v6903_v4, 0.0  ;;  %v11228_v36 = vld [vmem:[%s15322_s15 + $0x80] sm:$0xff]  }
 0x78c   : > { %v6933_v11 = vmul.f32 %v6901_v39, %v17234_v1  ;;  %v6902_v20 = vadd.f32 %v15438_v16, %v6853_v43  ;;  %7237 = vmatprep.mubr.bf16.mxu1 %v17235_v8  ;;  %7297 = vmatpush1.bf16.msra.mxu1 %v11199_v61  ;;  %vm6917_vm3 = vcmp.gt.f32.partialorder %v6901_v39, 0.0  ;;  %v11205_v16 = vld [vmem:[%s15295_s16 + $0xc8] ss:$16 sps:$4 sm:$0xff]   ;;  %v11229_v43 = vld [vmem:[%s15322_s15 + $0xc8] sm:$0xff]  }
 0x78d   : > { %vm6920_vm4 = vcmp.gt.f32.partialorder %v6904_v0, 0.0  ;;  %v6936_v47 = vmul.f32 %v6904_v0, %v17234_v1  ;;  %7298 = vmatprep.subr.bf16.mxu1 %v11204_v26  ;;  %v6951_v55 = vsel %vm6919_vm2, %v6903_v4, %v6935_v49 }
 0x78e   : > { %vm6918_vm5 = vcmp.gt.f32.partialorder %v6902_v20, 0.0  ;;  %v6934_v22 = vmul.f32 %v6902_v20, %v17234_v1  ;;  %v6949_v25 = vsel %vm6917_vm3, %v6901_v39, %v6933_v11 }
 0x78f   : > { %v6952_v30 = vsel %vm6920_vm4, %v6904_v0, %v6936_v47 }
 0x790   : > { %7299 = vmatpush1.bf16.msra.mxu1 %v11202_v7  ;;  %v6950_v23 = vsel %vm6918_vm5, %v6902_v20, %v6934_v22  ;;  %v15503_v44 = vpack.c.bf16 %v6952_v30, %v6951_v55  ;;  %v11230_v55 = vld [vmem:[%s15322_s15 + $0x88] sm:$0xff]  }
 0x791   : > { %7300 = vmatprep.subr.bf16.mxu1 %v11207_v13  ;;  %v6959_v27 = vpack.c.bf16 %v6950_v23, %v6949_v25 }
 0x793   : > { %7238 = vmatmul.mubr.bf16.gmra.mrb[28].mxu1 %v15467_v41 }
 0x794   : > { %7247 = vmatprep.mubr.bf16.mxu1 %v17235_v8  ;;  %7301 = vmatpush1.bf16.msra.mxu1 %v11205_v16  ;;  %v11231_v16 = vld [vmem:[%s15322_s15 + $0xd0] sm:$0xff]  }
 0x795   : > { %7302 = vmatprep.subr.bf16.mxu1 %v11210_v17 }
 0x798   : > { %7303 = vmatpush1.bf16.msra.mxu1 %v11208_v6 }
 0x799   : > { %9446 = vmatprep.subr.bf16.mxu1 %v11211_v45 }
 0x79b   : > { %7248 = vmatmul.mubr.bf16.gmra.mrb[32].mxu1 %v15488_v31 }
 0x79c   : > { %7257 = vmatprep.mubr.bf16.mxu1 %v17235_v8 }
 0x7a3   : > { %7258 = vmatmul.mubr.bf16.gmra.mrb[36].mxu1 %v15485_v18 }
 0x7a4   : > { %7267 = vmatprep.mubr.bf16.mxu1 %v17235_v8 }
 0x7ab   : > { %7268 = vmatmul.mubr.bf16.gmra.mrb[40].mxu1 %v6959_v27 }
 0x7ac   : > { %7277 = vmatprep.mubr.bf16.mxu1 %v17235_v8 }
 0x7b3   : > { %7278 = vmatmul.mubr.bf16.gmra.mrb[44].mxu1 %v15503_v44 }
 0x7b4   : > { %7320 = vmatprep.mubr.bf16.mxu1 %v17235_v8 }
 0x7bb   : > { %7321 = vmatmul.mubr.bf16.vlgmr.msra.gmra.mrb[48].mxu1 %v15451_v60  ;;  %v11218_v60 = vld [vmem:[%s15322_s15 + $0x18] sm:$0xff]  }
 0x7bc   : > { %7330 = vmatprep.mubr.bf16.mxu1 %v17235_v8  ;;  %9447 = vmatpush3.bf16.msra.mxu1 %v11212_v51 }
 0x7bd   : > { %9448 = vmatprep.subr.bf16.mxu1 %v11213_v56 }
 0x7c0   : > { %9449 = vmatpush3.bf16.msra.mxu1 %v11214_v58  ;;  %v11232_v58 = vld [vmem:[%s15322_s15 + $0x90] sm:$0xff]  }
 0x7c1   : > { %9450 = vmatprep.subr.bf16.mxu1 %v11215_v9 }
 0x7c3   : > { %7331 = vmatmul.mubr.bf16.gmra.mrb[52].mxu1 %v15449_v54  ;;  %v11222_v54 = vld [vmem:[%s15322_s15 + $0x28] sm:$0xff]  }
 0x7c4   : > { %7340 = vmatprep.mubr.bf16.mxu1 %v17235_v8  ;;  %9451 = vmatpush3.bf16.msra.mxu1 %v11216_v35 }
 0x7c5   : > { %9452 = vmatprep.subr.bf16.mxu1 %v11217_v52  ;;  %v11233_v52 = vld [vmem:[%s15322_s15 + $0xd8] sm:$0xff]  }
 0x7c8   : > { %9453 = vmatpush3.bf16.msra.mxu1 %v11218_v60 }
 0x7c9   : > { %9454 = vmatprep.subr.bf16.mxu1 %v11219_v42 }
 0x7cb   : > { %7341 = vmatmul.mubr.bf16.gmra.mrb[56].mxu1 %v15470_v19 }
 0x7cc   : > { %7350 = vmatprep.mubr.bf16.mxu1 %v17235_v8  ;;  %9455 = vmatpush3.bf16.msra.mxu1 %v11220_v12 }
 0x7cd   : > { %9456 = vmatprep.subr.bf16.mxu1 %v11221_v14 }
 0x7d0   : > { %9457 = vmatpush3.bf16.msra.mxu1 %v11222_v54 }
 0x7d1   : > { %9458 = vmatprep.subr.bf16.mxu1 %v11223_v15 }
 0x7d3   : > { %7351 = vmatmul.mubr.bf16.gmra.mrb[60].mxu1 %v15467_v41  ;;  %v17236_v41 = vld [vmem:[#allocation27_spill] sm:$0xff] }
 0x7d4   : > { %7360 = vmatprep.mubr.bf16.mxu1 %v17235_v8  ;;  %9459 = vmatpush3.bf16.msra.mxu1 %v11224_v63  ;;  %v6997_v19 = vsub.s32 0, %v17236_v41  ;;  %v7001_v57 = vsub.s32 1, %v17236_v41  ;;  %v11234_v63 = vld [vmem:[%s15322_s15 + $0x98] sm:$0xff]  }
 0x7d5   : > { %9460 = vmatprep.subr.bf16.mxu1 %v11225_v37 }
 0x7d6   : > { %v15553_v33 = vrot.slane %v15549_v29, %v6997_v19  ;;  %v15556_v38 = vrot.slane %v15549_v29, %v7001_v57 }
 0x7d8   : > { %9461 = vmatpush3.bf16.msra.mxu1 %v11226_v5  ;;  %v11235_v5 = vld [vmem:[%s15322_s15 + $0xe0] sm:$0xff]  }
 0x7d9   : > { %9510 = vmatprep.subr.bf16.mxu1 %v11227_v10 }
 0x7db   : > { %7361 = vmatmul.mubr.bf16.gmra.mrb[64].mxu1 %v15488_v31 }
 0x7dc   : > { %7370 = vmatprep.mubr.bf16.mxu1 %v17235_v8 }
 0x7e3   : > { %7371 = vmatmul.mubr.bf16.gmra.mrb[68].mxu1 %v15485_v18 }
 0x7e4   : > { %7380 = vmatprep.mubr.bf16.mxu1 %v17235_v8 }
 0x7eb   : > { %7381 = vmatmul.mubr.bf16.gmra.mrb[72].mxu1 %v6959_v27 }
 0x7ec   : > { %7390 = vmatprep.mubr.bf16.mxu1 %v17235_v8 }
 0x7f3   : > { %7391 = vmatmul.mubr.bf16.gmra.mrb[76].mxu1 %v15503_v44 }
 0x84e   : > { %v7209_v2 = vpop.f32.mrb[16].mxu1 }
 0x84f   : > { %v7210_v24 = vadd.f32 %v7209_v2, %v15553_v33  ;;  %v7211_v8 = vpop.f32.mrb[17].mxu1 }
 0x850   : > { %v7212_v21 = vadd.f32 %v7211_v8, %v15556_v38  ;;  %v7213_v28 = vpop.f32.mrb[18].mxu1 }
 0x851   : > { %v7465_v34 = vmul.f32 %v7210_v24, %v17234_v1  ;;  %v7214_v50 = vadd.f32 %v7213_v28, %v15553_v33  ;;  %v7215_v59 = vpop.f32.mrb[19].mxu1  ;;  %vm7401_vm0 = vcmp.gt.f32.partialorder %v7210_v24, 0.0 }
 0x852   : > { %v7466_v53 = vmul.f32 %v7212_v21, %v17234_v1  ;;  %v7216_v62 = vadd.f32 %v7215_v59, %v15556_v38  ;;  %vm7402_vm1 = vcmp.gt.f32.partialorder %v7212_v21, 0.0 }
 0x853   : > { %vm7405_vm6 = vcmp.gt.f32.partialorder %v7214_v50, 0.0  ;;  %v7469_v48 = vmul.f32 %v7214_v50, %v17234_v1  ;;  %v7529_v61 = vsel %vm7401_vm0, %v7210_v24, %v7465_v34 }
 0x854   : > { %vm7406_vm7 = vcmp.gt.f32.partialorder %v7216_v62, 0.0  ;;  %v7470_v32 = vmul.f32 %v7216_v62, %v17234_v1  ;;  %v7530_v4 = vsel %vm7402_vm1, %v7212_v21, %v7466_v53 }
 0x855   : > { %v7533_v3 = vsel %vm7405_vm6, %v7214_v50, %v7469_v48  ;;  %v11236_v50 = vld [vmem:[%s15322_s15 + $0xa0] sm:$0xff]  }
 0x856   : > { %v7593_v46 = vpack.c.bf16 %v7533_v3, %v7529_v61  ;;  %v7219_v18 = vpop.f32.mrb[20].mxu1  ;;  %v7534_v40 = vsel %vm7406_vm7, %v7216_v62, %v7470_v32  ;;  %v11237_v62 = vld [vmem:[%s15322_s15 + $0xe8] sm:$0xff]  }
 0x857   : > { %v7220_v31 = vadd.f32 %v7219_v18, %v15553_v33  ;;  %v7221_v26 = vpop.f32.mrb[21].mxu1  ;;  %v7594_v39 = vpack.c.bf16 %v7534_v40, %v7530_v4  ;;  %v11238_v4 = vld [vmem:[%s15322_s15 + $0xa8] sm:$0xff]  }
 0x858   : > { %v7222_v49 = vadd.f32 %v7221_v26, %v15556_v38  ;;  %v7223_v0 = vpop.f32.mrb[22].mxu1 }
 0x859   : > { %v7473_v11 = vmul.f32 %v7220_v31, %v17234_v1  ;;  %v7224_v20 = vadd.f32 %v7223_v0, %v15553_v33  ;;  %v7225_v7 = vpop.f32.mrb[23].mxu1  ;;  %7920 = vmatprep.mubr.bf16.mxu1 %v7594_v39  ;;  %vm7409_vm8 = vcmp.gt.f32.partialorder %v7220_v31, 0.0 }
 0x85a   : > { %v7474_v47 = vmul.f32 %v7222_v49, %v17234_v1  ;;  %v7226_v13 = vadd.f32 %v7225_v7, %v15556_v38  ;;  %7921 = vmatmul.mubr.bf16.vlgmr.msra.gmra.mrb[80].mxu1 %v7593_v46  ;;  %vm7410_vm9 = vcmp.gt.f32.partialorder %v7222_v49, 0.0 }
 0x85b   : > { %vm7413_vm10 = vcmp.gt.f32.partialorder %v7224_v20, 0.0  ;;  %v7477_v22 = vmul.f32 %v7224_v20, %v17234_v1  ;;  %9511 = vmatpush3.bf16.msra.mxu1 %v11228_v36  ;;  %v7537_v25 = vsel %vm7409_vm8, %v7220_v31, %v7473_v11  ;;  %v11239_v31 = vld [vmem:[%s15322_s15 + $0xf0] sm:$0xff]  }
 0x85c   : > { %vm7414_vm11 = vcmp.gt.f32.partialorder %v7226_v13, 0.0  ;;  %v7478_v30 = vmul.f32 %v7226_v13, %v17234_v1  ;;  %9512 = vmatprep.subr.bf16.mxu1 %v11229_v43  ;;  %v7538_v27 = vsel %vm7410_vm9, %v7222_v49, %v7474_v47  ;;  %v11240_v47 = vld [vmem:[%s15322_s15 + $0xb0] sm:$0xff]  }
 0x85d   : > { %v7541_v23 = vsel %vm7413_vm10, %v7224_v20, %v7477_v22 }
 0x85e   : > { %v7229_v44 = vpop.f32.mrb[24].mxu1  ;;  %v7542_v17 = vsel %vm7414_vm11, %v7226_v13, %v7478_v30  ;;  %v7597_v6 = vpack.c.bf16 %v7541_v23, %v7537_v25 }
 0x85f   : > { %v7230_v45 = vadd.f32 %v7229_v44, %v15553_v33  ;;  %v7231_v51 = vpop.f32.mrb[25].mxu1  ;;  %v7598_v56 = vpack.c.bf16 %v7542_v17, %v7538_v27  ;;  %9513 = vmatpush3.bf16.msra.mxu1 %v11230_v55  ;;  %v11241_v55 = vld [vmem:[%s15322_s15 + $0xf8] sm:$0xff]  }
 0x860   : > { %v7232_v9 = vadd.f32 %v7231_v51, %v15556_v38  ;;  %v7233_v35 = vpop.f32.mrb[26].mxu1  ;;  %9514 = vmatprep.subr.bf16.mxu1 %v11231_v16  ;;  %v11242_v17 = vld [vmem:[%s15322_s15 + $0xb8] sm:$0xff]  }
 0x861   : > { %v7481_v60 = vmul.f32 %v7230_v45, %v17234_v1  ;;  %v7234_v42 = vadd.f32 %v7233_v35, %v15553_v33  ;;  %v7235_v12 = vpop.f32.mrb[27].mxu1  ;;  %7928 = vmatprep.mubr.bf16.mxu1 %v7598_v56  ;;  %vm7417_vm12 = vcmp.gt.f32.partialorder %v7230_v45, 0.0 }
 0x862   : > { %v7482_v14 = vmul.f32 %v7232_v9, %v17234_v1  ;;  %v7236_v54 = vadd.f32 %v7235_v12, %v15556_v38  ;;  %7929 = vmatmul.mubr.bf16.gmra.mrb[84].mxu1 %v7597_v6  ;;  %vm7418_vm13 = vcmp.gt.f32.partialorder %v7232_v9, 0.0 }
 0x863   : > { %vm7421_vm14 = vcmp.gt.f32.partialorder %v7234_v42, 0.0  ;;  %v7485_v15 = vmul.f32 %v7234_v42, %v17234_v1  ;;  %9515 = vmatpush3.bf16.msra.mxu1 %v11232_v58  ;;  %v7545_v10 = vsel %vm7417_vm12, %v7230_v45, %v7481_v60 }
 0x864   : > { %vm7422_vm15 = vcmp.gt.f32.partialorder %v7236_v54, 0.0  ;;  %v7486_v37 = vmul.f32 %v7236_v54, %v17234_v1  ;;  %9516 = vmatprep.subr.bf16.mxu1 %v11233_v52  ;;  %v7546_v2 = vsel %vm7418_vm13, %v7232_v9, %v7482_v14 }
 0x865   : > { %v7549_v19 = vsel %vm7421_vm14, %v7234_v42, %v7485_v15 }
 0x866   : > { %v7239_v57 = vpop.f32.mrb[28].mxu1  ;;  %v7550_v24 = vsel %vm7422_vm15, %v7236_v54, %v7486_v37  ;;  %v7601_v8 = vpack.c.bf16 %v7549_v19, %v7545_v10 }
 0x867   : > { %v7240_v21 = vadd.f32 %v7239_v57, %v15553_v33  ;;  %v7241_v28 = vpop.f32.mrb[29].mxu1  ;;  %v7602_v34 = vpack.c.bf16 %v7550_v24, %v7546_v2  ;;  %9517 = vmatpush3.bf16.msra.mxu1 %v11234_v63 }
 0x868   : > { %v7242_v59 = vadd.f32 %v7241_v28, %v15556_v38  ;;  %v7243_v53 = vpop.f32.mrb[30].mxu1  ;;  %9518 = vmatprep.subr.bf16.mxu1 %v11235_v5 }
 0x869   : > { %v7489_v48 = vmul.f32 %v7240_v21, %v17234_v1  ;;  %v7244_v32 = vadd.f32 %v7243_v53, %v15553_v33  ;;  %v7245_v61 = vpop.f32.mrb[31].mxu1  ;;  %7936 = vmatprep.mubr.bf16.mxu1 %v7602_v34  ;;  %vm7425_vm2 = vcmp.gt.f32.partialorder %v7240_v21, 0.0 }
 0x86a   : > { %v7490_v3 = vmul.f32 %v7242_v59, %v17234_v1  ;;  %v7246_v46 = vadd.f32 %v7245_v61, %v15556_v38  ;;  %7937 = vmatmul.mubr.bf16.gmra.mrb[88].mxu1 %v7601_v8  ;;  %vm7426_vm3 = vcmp.gt.f32.partialorder %v7242_v59, 0.0 }
 0x86b   : > { %vm7429_vm4 = vcmp.gt.f32.partialorder %v7244_v32, 0.0  ;;  %v7493_v18 = vmul.f32 %v7244_v32, %v17234_v1  ;;  %9519 = vmatpush3.bf16.msra.mxu1 %v11236_v50  ;;  %v7553_v26 = vsel %vm7425_vm2, %v7240_v21, %v7489_v48 }
 0x86c   : > { %vm7430_vm5 = vcmp.gt.f32.partialorder %v7246_v46, 0.0  ;;  %v7494_v40 = vmul.f32 %v7246_v46, %v17234_v1  ;;  %9520 = vmatprep.subr.bf16.mxu1 %v11237_v62  ;;  %v7554_v49 = vsel %vm7426_vm3, %v7242_v59, %v7490_v3 }
 0x86d   : > { %v7557_v39 = vsel %vm7429_vm4, %v7244_v32, %v7493_v18 }
 0x86e   : > { %v7249_v36 = vpop.f32.mrb[32].mxu1  ;;  %v7558_v0 = vsel %vm7430_vm5, %v7246_v46, %v7494_v40  ;;  %v7605_v43 = vpack.c.bf16 %v7557_v39, %v7553_v26 }
 0x86f   : > { %v7250_v11 = vadd.f32 %v7249_v36, %v15553_v33  ;;  %v7251_v20 = vpop.f32.mrb[33].mxu1  ;;  %v7606_v7 = vpack.c.bf16 %v7558_v0, %v7554_v49  ;;  %9521 = vmatpush3.bf16.msra.mxu1 %v11238_v4 }
 0x870   : > { %v7252_v13 = vadd.f32 %v7251_v20, %v15556_v38  ;;  %v7253_v22 = vpop.f32.mrb[34].mxu1  ;;  %9522 = vmatprep.subr.bf16.mxu1 %v11239_v31  ;;  %v7005_v20 = vsub.s32 2, %v17236_v41 }
 0x871   : > { %v7497_v30 = vmul.f32 %v7250_v11, %v17234_v1  ;;  %v7254_v16 = vadd.f32 %v7253_v22, %v15553_v33  ;;  %v7255_v25 = vpop.f32.mrb[35].mxu1  ;;  %7944 = vmatprep.mubr.bf16.mxu1 %v7606_v7  ;;  %vm7433_vm0 = vcmp.gt.f32.partialorder %v7250_v11, 0.0 }
 0x872   : > { %v7498_v23 = vmul.f32 %v7252_v13, %v17234_v1  ;;  %v7256_v44 = vadd.f32 %v7255_v25, %v15556_v38  ;;  %7945 = vmatmul.mubr.bf16.gmra.mrb[92].mxu1 %v7605_v43  ;;  %vm7434_vm1 = vcmp.gt.f32.partialorder %v7252_v13, 0.0 }
 0x873   : > { %vm7437_vm6 = vcmp.gt.f32.partialorder %v7254_v16, 0.0  ;;  %v7501_v27 = vmul.f32 %v7254_v16, %v17234_v1  ;;  %9523 = vmatpush3.bf16.msra.mxu1 %v11240_v47  ;;  %v7561_v45 = vsel %vm7433_vm0, %v7250_v11, %v7497_v30 }
 0x874   : > { %vm7438_vm7 = vcmp.gt.f32.partialorder %v7256_v44, 0.0  ;;  %v7502_v6 = vmul.f32 %v7256_v44, %v17234_v1  ;;  %9524 = vmatprep.subr.bf16.mxu1 %v11241_v55  ;;  %v7562_v58 = vsel %vm7434_vm1, %v7252_v13, %v7498_v23  ;;  %v7009_v13 = vsub.s32 3, %v17236_v41 }
 0x875   : > { %v7565_v51 = vsel %vm7437_vm6, %v7254_v16, %v7501_v27 }
 0x876   : > { %v7259_v56 = vpop.f32.mrb[36].mxu1  ;;  %v7566_v9 = vsel %vm7438_vm7, %v7256_v44, %v7502_v6  ;;  %v7609_v35 = vpack.c.bf16 %v7565_v51, %v7561_v45  ;;  %v15639_v44 = vrot.slane %v15549_v29, %v7005_v20 }
 0x877   : > { %v7260_v52 = vadd.f32 %v7259_v56, %v15553_v33  ;;  %v7261_v60 = vpop.f32.mrb[37].mxu1  ;;  %v7610_v42 = vpack.c.bf16 %v7566_v9, %v7562_v58  ;;  %9525 = vmatpush3.bf16.msra.mxu1 %v11242_v17 }
 0x878   : > { %v7262_v12 = vadd.f32 %v7261_v60, %v15556_v38  ;;  %v7263_v14 = vpop.f32.mrb[38].mxu1 }
 0x879   : > { %v7505_v54 = vmul.f32 %v7260_v52, %v17234_v1  ;;  %v7264_v15 = vadd.f32 %v7263_v14, %v15553_v33  ;;  %v7265_v63 = vpop.f32.mrb[39].mxu1  ;;  %7952 = vmatprep.mubr.bf16.mxu1 %v7610_v42  ;;  %vm7441_vm8 = vcmp.gt.f32.partialorder %v7260_v52, 0.0 }
 0x87a   : > { %v7506_v37 = vmul.f32 %v7262_v12, %v17234_v1  ;;  %v7266_v5 = vadd.f32 %v7265_v63, %v15556_v38  ;;  %7953 = vmatmul.mubr.bf16.gmra.mrb[96].mxu1 %v7609_v35  ;;  %vm7442_vm9 = vcmp.gt.f32.partialorder %v7262_v12, 0.0 }
 0x87b   : > { %vm7445_vm10 = vcmp.gt.f32.partialorder %v7264_v15, 0.0  ;;  %v7509_v10 = vmul.f32 %v7264_v15, %v17234_v1  ;;  %v7569_v57 = vsel %vm7441_vm8, %v7260_v52, %v7505_v54 }
 0x87c   : > { %vm7446_vm11 = vcmp.gt.f32.partialorder %v7266_v5, 0.0  ;;  %v7510_v19 = vmul.f32 %v7266_v5, %v17234_v1  ;;  %v7570_v8 = vsel %vm7442_vm9, %v7262_v12, %v7506_v37 }
 0x87d   : > { %v7573_v2 = vsel %vm7445_vm10, %v7264_v15, %v7509_v10 }
 0x87e   : > { %v7269_v24 = vpop.f32.mrb[40].mxu1  ;;  %v7574_v21 = vsel %vm7446_vm11, %v7266_v5, %v7510_v19  ;;  %v7613_v28 = vpack.c.bf16 %v7573_v2, %v7569_v57 }
 0x87f   : > { %v7270_v34 = vadd.f32 %v7269_v24, %v15553_v33  ;;  %v7271_v50 = vpop.f32.mrb[41].mxu1  ;;  %v7614_v59 = vpack.c.bf16 %v7574_v21, %v7570_v8 }
 0x880   : > { %v7272_v53 = vadd.f32 %v7271_v50, %v15556_v38  ;;  %v7273_v62 = vpop.f32.mrb[42].mxu1 }
 0x881   : > { %v7513_v48 = vmul.f32 %v7270_v34, %v17234_v1  ;;  %v7274_v32 = vadd.f32 %v7273_v62, %v15553_v33  ;;  %v7275_v61 = vpop.f32.mrb[43].mxu1  ;;  %7960 = vmatprep.mubr.bf16.mxu1 %v7614_v59  ;;  %vm7449_vm12 = vcmp.gt.f32.partialorder %v7270_v34, 0.0 }
 0x882   : > { %v7514_v3 = vmul.f32 %v7272_v53, %v17234_v1  ;;  %v7276_v46 = vadd.f32 %v7275_v61, %v15556_v38  ;;  %7961 = vmatmul.mubr.bf16.gmra.mrb[100].mxu1 %v7613_v28  ;;  %vm7450_vm13 = vcmp.gt.f32.partialorder %v7272_v53, 0.0 }
 0x883   : > { %vm7453_vm14 = vcmp.gt.f32.partialorder %v7274_v32, 0.0  ;;  %v7517_v18 = vmul.f32 %v7274_v32, %v17234_v1  ;;  %v7577_v40 = vsel %vm7449_vm12, %v7270_v34, %v7513_v48 }
 0x884   : > { %vm7454_vm15 = vcmp.gt.f32.partialorder %v7276_v46, 0.0  ;;  %v7518_v4 = vmul.f32 %v7276_v46, %v17234_v1  ;;  %v7578_v39 = vsel %vm7450_vm13, %v7272_v53, %v7514_v3 }
 0x885   : > { %v7581_v31 = vsel %vm7453_vm14, %v7274_v32, %v7517_v18 }
 0x886   : > { %v7279_v26 = vpop.f32.mrb[44].mxu1  ;;  %v7582_v36 = vsel %vm7454_vm15, %v7276_v46, %v7518_v4  ;;  %v7617_v49 = vpack.c.bf16 %v7581_v31, %v7577_v40 }
 0x887   : > { %v7280_v0 = vadd.f32 %v7279_v26, %v15553_v33  ;;  %v7281_v43 = vpop.f32.mrb[45].mxu1  ;;  %v7618_v11 = vpack.c.bf16 %v7582_v36, %v7578_v39 }
 0x888   : > { %v7282_v7 = vadd.f32 %v7281_v43, %v15556_v38  ;;  %v7283_v47 = vpop.f32.mrb[46].mxu1 }
 0x889   : > { %v7521_v22 = vmul.f32 %v7280_v0, %v17234_v1  ;;  %v7284_v55 = vadd.f32 %v7283_v47, %v15553_v33  ;;  %v7285_v30 = vpop.f32.mrb[47].mxu1  ;;  %7968 = vmatprep.mubr.bf16.mxu1 %v7618_v11  ;;  %vm7457_vm2 = vcmp.gt.f32.partialorder %v7280_v0, 0.0  ;;  %v15643_v33 = vrot.slane %v15549_v29, %v7009_v13 }
 0x88a   : > { %v7522_v16 = vmul.f32 %v7282_v7, %v17234_v1  ;;  %v7286_v25 = vadd.f32 %v7285_v30, %v15556_v38  ;;  %7969 = vmatmul.mubr.bf16.gmra.mrb[104].mxu1 %v7617_v49  ;;  %vm7458_vm3 = vcmp.gt.f32.partialorder %v7282_v7, 0.0 }
 0x88b   : > { %vm7461_vm4 = vcmp.gt.f32.partialorder %v7284_v55, 0.0  ;;  %v7525_v23 = vmul.f32 %v7284_v55, %v17234_v1  ;;  %v7585_v27 = vsel %vm7457_vm2, %v7280_v0, %v7521_v22 }
 0x88c   : > { %vm7462_vm5 = vcmp.gt.f32.partialorder %v7286_v25, 0.0  ;;  %v7526_v41 = vmul.f32 %v7286_v25, %v17234_v1  ;;  %v7586_v45 = vsel %vm7458_vm3, %v7282_v7, %v7522_v16 }
 0x88d   : > { %v7589_v17 = vsel %vm7461_vm4, %v7284_v55, %v7525_v23 }
 0x88e   : > { %v7322_v6 = vpop.f32.mrb[48].mxu1  ;;  %v7590_v51 = vsel %vm7462_vm5, %v7286_v25, %v7526_v41  ;;  %v7621_v38 = vpack.c.bf16 %v7589_v17, %v7585_v27 }
 0x88f   : > { %v7323_v56 = vadd.f32 %v7322_v6, %v15639_v44  ;;  %v7324_v58 = vpop.f32.mrb[49].mxu1  ;;  %v7622_v9 = vpack.c.bf16 %v7590_v51, %v7586_v45 }
 0x890   : > { %v7325_v35 = vadd.f32 %v7324_v58, %v15643_v33  ;;  %v7326_v52 = vpop.f32.mrb[50].mxu1 }
 0x891   : > { %v7467_v60 = vmul.f32 %v7323_v56, %v17234_v1  ;;  %v7327_v42 = vadd.f32 %v7326_v52, %v15639_v44  ;;  %v7328_v12 = vpop.f32.mrb[51].mxu1  ;;  %7976 = vmatprep.mubr.bf16.mxu1 %v7622_v9  ;;  %vm7403_vm0 = vcmp.gt.f32.partialorder %v7323_v56, 0.0 }
 0x892   : > { %v7468_v29 = vmul.f32 %v7325_v35, %v17234_v1  ;;  %v7329_v14 = vadd.f32 %v7328_v12, %v15643_v33  ;;  %7977 = vmatmul.mubr.bf16.gmra.mrb[108].mxu1 %v7621_v38  ;;  %vm7404_vm1 = vcmp.gt.f32.partialorder %v7325_v35, 0.0 }
 0x893   : > { %vm7407_vm6 = vcmp.gt.f32.partialorder %v7327_v42, 0.0  ;;  %v7471_v54 = vmul.f32 %v7327_v42, %v17234_v1  ;;  %v7531_v63 = vsel %vm7403_vm0, %v7323_v56, %v7467_v60 }
 0x894   : > { %vm7408_vm7 = vcmp.gt.f32.partialorder %v7329_v14, 0.0  ;;  %v7472_v15 = vmul.f32 %v7329_v14, %v17234_v1  ;;  %v7532_v19 = vsel %vm7404_vm1, %v7325_v35, %v7468_v29 }
 0x895   : > { %v7535_v37 = vsel %vm7407_vm6, %v7327_v42, %v7471_v54 }
 0x896   : > { %v7595_v5 = vpack.c.bf16 %v7535_v37, %v7531_v63  ;;  %v7332_v10 = vpop.f32.mrb[52].mxu1  ;;  %v7536_v57 = vsel %vm7408_vm7, %v7329_v14, %v7472_v15 }
 0x897   : > { %v7333_v2 = vadd.f32 %v7332_v10, %v15639_v44  ;;  %v7334_v24 = vpop.f32.mrb[53].mxu1  ;;  %v7596_v8 = vpack.c.bf16 %v7536_v57, %v7532_v19 }
 0x898   : > { %v7335_v21 = vadd.f32 %v7334_v24, %v15643_v33  ;;  %v7336_v28 = vpop.f32.mrb[54].mxu1 }
 0x899   : > { %v7475_v34 = vmul.f32 %v7333_v2, %v17234_v1  ;;  %v7337_v50 = vadd.f32 %v7336_v28, %v15639_v44  ;;  %v7338_v59 = vpop.f32.mrb[55].mxu1  ;;  %8017 = vmatprep.mubr.bf16.mxu1 %v7596_v8  ;;  %vm7411_vm8 = vcmp.gt.f32.partialorder %v7333_v2, 0.0 }
 0x89a   : > { %v7476_v53 = vmul.f32 %v7335_v21, %v17234_v1  ;;  %v7339_v62 = vadd.f32 %v7338_v59, %v15643_v33  ;;  %8018 = vmatmul.mubr.bf16.vlgmr.msra.gmra.mrb[112].mxu1 %v7595_v5  ;;  %vm7412_vm9 = vcmp.gt.f32.partialorder %v7335_v21, 0.0 }
 0x89b   : > { %vm7415_vm10 = vcmp.gt.f32.partialorder %v7337_v50, 0.0  ;;  %v7479_v48 = vmul.f32 %v7337_v50, %v17234_v1  ;;  %v7539_v61 = vsel %vm7411_vm8, %v7333_v2, %v7475_v34 }
 0x89c   : > { %vm7416_vm11 = vcmp.gt.f32.partialorder %v7339_v62, 0.0  ;;  %v7480_v32 = vmul.f32 %v7339_v62, %v17234_v1  ;;  %v7540_v18 = vsel %vm7412_vm9, %v7335_v21, %v7476_v53 }
 0x89d   : > { %v7543_v3 = vsel %vm7415_vm10, %v7337_v50, %v7479_v48 }
 0x89e   : > { %v7342_v46 = vpop.f32.mrb[56].mxu1  ;;  %v7544_v4 = vsel %vm7416_vm11, %v7339_v62, %v7480_v32  ;;  %v7599_v40 = vpack.c.bf16 %v7543_v3, %v7539_v61 }
 0x89f   : > { %v7343_v31 = vadd.f32 %v7342_v46, %v15639_v44  ;;  %v7344_v26 = vpop.f32.mrb[57].mxu1  ;;  %v7600_v39 = vpack.c.bf16 %v7544_v4, %v7540_v18 }
 0x8a0   : > { %v7345_v36 = vadd.f32 %v7344_v26, %v15643_v33  ;;  %v7346_v49 = vpop.f32.mrb[58].mxu1 }
 0x8a1   : > { %v7483_v0 = vmul.f32 %v7343_v31, %v17234_v1  ;;  %v7347_v43 = vadd.f32 %v7346_v49, %v15639_v44  ;;  %v7348_v11 = vpop.f32.mrb[59].mxu1  ;;  %8025 = vmatprep.mubr.bf16.mxu1 %v7600_v39  ;;  %vm7419_vm12 = vcmp.gt.f32.partialorder %v7343_v31, 0.0 }
 0x8a2   : > { %v7484_v20 = vmul.f32 %v7345_v36, %v17234_v1  ;;  %v7349_v7 = vadd.f32 %v7348_v11, %v15643_v33  ;;  %8026 = vmatmul.mubr.bf16.gmra.mrb[116].mxu1 %v7599_v40  ;;  %vm7420_vm13 = vcmp.gt.f32.partialorder %v7345_v36, 0.0 }
 0x8a3   : > { %vm7423_vm14 = vcmp.gt.f32.partialorder %v7347_v43, 0.0  ;;  %v7487_v47 = vmul.f32 %v7347_v43, %v17234_v1  ;;  %v7547_v22 = vsel %vm7419_vm12, %v7343_v31, %v7483_v0 }
 0x8a4   : > { %vm7424_vm15 = vcmp.gt.f32.partialorder %v7349_v7, 0.0  ;;  %v7488_v13 = vmul.f32 %v7349_v7, %v17234_v1  ;;  %v7548_v16 = vsel %vm7420_vm13, %v7345_v36, %v7484_v20 }
 0x8a5   : > { %v7551_v55 = vsel %vm7423_vm14, %v7347_v43, %v7487_v47 }
 0x8a6   : > { %v7352_v30 = vpop.f32.mrb[60].mxu1  ;;  %v7552_v25 = vsel %vm7424_vm15, %v7349_v7, %v7488_v13  ;;  %v7603_v23 = vpack.c.bf16 %v7551_v55, %v7547_v22 }
 0x8a7   : > { %v7353_v41 = vadd.f32 %v7352_v30, %v15639_v44  ;;  %v7354_v27 = vpop.f32.mrb[61].mxu1  ;;  %v7604_v17 = vpack.c.bf16 %v7552_v25, %v7548_v16 }
 0x8a8   : > { %v7355_v6 = vadd.f32 %v7354_v27, %v15643_v33  ;;  %v7356_v45 = vpop.f32.mrb[62].mxu1 }
 0x8a9   : > { %v7491_v51 = vmul.f32 %v7353_v41, %v17234_v1  ;;  %v7357_v38 = vadd.f32 %v7356_v45, %v15639_v44  ;;  %v7358_v56 = vpop.f32.mrb[63].mxu1  ;;  %8033 = vmatprep.mubr.bf16.mxu1 %v7604_v17  ;;  %vm7427_vm2 = vcmp.gt.f32.partialorder %v7353_v41, 0.0 }
 0x8aa   : > { %v7492_v58 = vmul.f32 %v7355_v6, %v17234_v1  ;;  %v7359_v9 = vadd.f32 %v7358_v56, %v15643_v33  ;;  %8034 = vmatmul.mubr.bf16.gmra.mrb[120].mxu1 %v7603_v23  ;;  %vm7428_vm3 = vcmp.gt.f32.partialorder %v7355_v6, 0.0 }
 0x8ab   : > { %vm7431_vm4 = vcmp.gt.f32.partialorder %v7357_v38, 0.0  ;;  %v7495_v35 = vmul.f32 %v7357_v38, %v17234_v1  ;;  %v7555_v60 = vsel %vm7427_vm2, %v7353_v41, %v7491_v51 }
 0x8ac   : > { %vm7432_vm5 = vcmp.gt.f32.partialorder %v7359_v9, 0.0  ;;  %v7496_v52 = vmul.f32 %v7359_v9, %v17234_v1  ;;  %v7556_v29 = vsel %vm7428_vm3, %v7355_v6, %v7492_v58 }
 0x8ad   : > { %v7559_v42 = vsel %vm7431_vm4, %v7357_v38, %v7495_v35 }
 0x8ae   : > { %v7362_v12 = vpop.f32.mrb[64].mxu1  ;;  %v7560_v14 = vsel %vm7432_vm5, %v7359_v9, %v7496_v52  ;;  %v7607_v54 = vpack.c.bf16 %v7559_v42, %v7555_v60 }
 0x8af   : > { %v7363_v15 = vadd.f32 %v7362_v12, %v15639_v44  ;;  %v7364_v63 = vpop.f32.mrb[65].mxu1  ;;  %v7608_v37 = vpack.c.bf16 %v7560_v14, %v7556_v29 }
 0x8b0   : > { %v7365_v5 = vadd.f32 %v7364_v63, %v15643_v33  ;;  %v7366_v10 = vpop.f32.mrb[66].mxu1 }
 0x8b1   : > { %v7499_v19 = vmul.f32 %v7363_v15, %v17234_v1  ;;  %v7367_v57 = vadd.f32 %v7366_v10, %v15639_v44  ;;  %v7368_v2 = vpop.f32.mrb[67].mxu1  ;;  %8041 = vmatprep.mubr.bf16.mxu1 %v7608_v37  ;;  %vm7435_vm0 = vcmp.gt.f32.partialorder %v7363_v15, 0.0 }
 0x8b2   : > { %v7500_v24 = vmul.f32 %v7365_v5, %v17234_v1  ;;  %v7369_v8 = vadd.f32 %v7368_v2, %v15643_v33  ;;  %8042 = vmatmul.mubr.bf16.gmra.mrb[124].mxu1 %v7607_v54  ;;  %vm7436_vm1 = vcmp.gt.f32.partialorder %v7365_v5, 0.0 }
 0x8b3   : > { %vm7439_vm6 = vcmp.gt.f32.partialorder %v7367_v57, 0.0  ;;  %v7503_v21 = vmul.f32 %v7367_v57, %v17234_v1  ;;  %v7563_v34 = vsel %vm7435_vm0, %v7363_v15, %v7499_v19 }
 0x8b4   : > { %vm7440_vm7 = vcmp.gt.f32.partialorder %v7369_v8, 0.0  ;;  %v7504_v28 = vmul.f32 %v7369_v8, %v17234_v1  ;;  %v7564_v53 = vsel %vm7436_vm1, %v7365_v5, %v7500_v24 }
 0x8b5   : > { %v7567_v50 = vsel %vm7439_vm6, %v7367_v57, %v7503_v21 }
 0x8b6   : > { %v7372_v59 = vpop.f32.mrb[68].mxu1  ;;  %v7568_v62 = vsel %vm7440_vm7, %v7369_v8, %v7504_v28  ;;  %v7611_v48 = vpack.c.bf16 %v7567_v50, %v7563_v34 }
 0x8b7   : > { %v7373_v32 = vadd.f32 %v7372_v59, %v15639_v44  ;;  %v7374_v61 = vpop.f32.mrb[69].mxu1  ;;  %v7612_v3 = vpack.c.bf16 %v7568_v62, %v7564_v53 }
 0x8b8   : > { %v7375_v46 = vadd.f32 %v7374_v61, %v15643_v33  ;;  %v7376_v18 = vpop.f32.mrb[70].mxu1 }
 0x8b9   : > { %v7507_v4 = vmul.f32 %v7373_v32, %v17234_v1  ;;  %v7377_v40 = vadd.f32 %v7376_v18, %v15639_v44  ;;  %v7378_v31 = vpop.f32.mrb[71].mxu1  ;;  %8049 = vmatprep.mubr.bf16.mxu1 %v7612_v3  ;;  %vm7443_vm8 = vcmp.gt.f32.partialorder %v7373_v32, 0.0 }
 0x8ba   : > { %v7508_v26 = vmul.f32 %v7375_v46, %v17234_v1  ;;  %v7379_v39 = vadd.f32 %v7378_v31, %v15643_v33  ;;  %8050 = vmatmul.mubr.bf16.gmra.mrb[128].mxu1 %v7611_v48  ;;  %vm7444_vm9 = vcmp.gt.f32.partialorder %v7375_v46, 0.0 }
 0x8bb   : > { %vm7447_vm10 = vcmp.gt.f32.partialorder %v7377_v40, 0.0  ;;  %v7511_v36 = vmul.f32 %v7377_v40, %v17234_v1  ;;  %v7571_v0 = vsel %vm7443_vm8, %v7373_v32, %v7507_v4 }
 0x8bc   : > { %vm7448_vm11 = vcmp.gt.f32.partialorder %v7379_v39, 0.0  ;;  %v7512_v49 = vmul.f32 %v7379_v39, %v17234_v1  ;;  %v7572_v20 = vsel %vm7444_vm9, %v7375_v46, %v7508_v26 }
 0x8bd   : > { %v7575_v43 = vsel %vm7447_vm10, %v7377_v40, %v7511_v36 }
 0x8be   : > { %v7382_v11 = vpop.f32.mrb[72].mxu1  ;;  %v7576_v7 = vsel %vm7448_vm11, %v7379_v39, %v7512_v49  ;;  %v7615_v47 = vpack.c.bf16 %v7575_v43, %v7571_v0 }
 0x8bf   : > { %v7383_v13 = vadd.f32 %v7382_v11, %v15639_v44  ;;  %v7384_v22 = vpop.f32.mrb[73].mxu1  ;;  %v7616_v55 = vpack.c.bf16 %v7576_v7, %v7572_v20 }
 0x8c0   : > { %v7385_v30 = vadd.f32 %v7384_v22, %v15643_v33  ;;  %v7386_v16 = vpop.f32.mrb[74].mxu1 }
 0x8c1   : > { %v7515_v25 = vmul.f32 %v7383_v13, %v17234_v1  ;;  %v7387_v23 = vadd.f32 %v7386_v16, %v15639_v44  ;;  %v7388_v41 = vpop.f32.mrb[75].mxu1  ;;  %8057 = vmatprep.mubr.bf16.mxu1 %v7616_v55  ;;  %vm7451_vm12 = vcmp.gt.f32.partialorder %v7383_v13, 0.0 }
 0x8c2   : > { %v7516_v27 = vmul.f32 %v7385_v30, %v17234_v1  ;;  %v7389_v17 = vadd.f32 %v7388_v41, %v15643_v33  ;;  %8058 = vmatmul.mubr.bf16.gmra.mrb[132].mxu1 %v7615_v47  ;;  %vm7452_vm13 = vcmp.gt.f32.partialorder %v7385_v30, 0.0 }
 0x8c3   : > { %vm7455_vm14 = vcmp.gt.f32.partialorder %v7387_v23, 0.0  ;;  %v7519_v6 = vmul.f32 %v7387_v23, %v17234_v1  ;;  %v7579_v51 = vsel %vm7451_vm12, %v7383_v13, %v7515_v25 }
 0x8c4   : > { %vm7456_vm15 = vcmp.gt.f32.partialorder %v7389_v17, 0.0  ;;  %v7520_v45 = vmul.f32 %v7389_v17, %v17234_v1  ;;  %v7580_v58 = vsel %vm7452_vm13, %v7385_v30, %v7516_v27 }
 0x8c5   : > { %v7583_v38 = vsel %vm7455_vm14, %v7387_v23, %v7519_v6 }
 0x8c6   : > { %v7392_v56 = vpop.f32.mrb[76].mxu1  ;;  %v7584_v9 = vsel %vm7456_vm15, %v7389_v17, %v7520_v45  ;;  %v7619_v35 = vpack.c.bf16 %v7583_v38, %v7579_v51 }
 0x8c7   : > { %v7393_v52 = vadd.f32 %v7392_v56, %v15639_v44  ;;  %v7394_v60 = vpop.f32.mrb[77].mxu1  ;;  %v7620_v42 = vpack.c.bf16 %v7584_v9, %v7580_v58 }
 0x8c8   : > { %v7395_v12 = vadd.f32 %v7394_v60, %v15643_v33  ;;  %v7396_v29 = vpop.f32.mrb[78].mxu1 }
 0x8c9   : > { %v7523_v14 = vmul.f32 %v7393_v52, %v17234_v1  ;;  %v7397_v54 = vadd.f32 %v7396_v29, %v15639_v44  ;;  %v7398_v15 = vpop.f32.mrb[79].mxu1  ;;  %8065 = vmatprep.mubr.bf16.mxu1 %v7620_v42  ;;  %vm7459_vm2 = vcmp.gt.f32.partialorder %v7393_v52, 0.0  ;;  %v15736_v42 = vld [vmem:[%s494_s25] ss:$0 sm:$0xff] }
 0x8ca   : > { %v7524_v63 = vmul.f32 %v7395_v12, %v17234_v1  ;;  %v7399_v37 = vadd.f32 %v7398_v15, %v15643_v33  ;;  %8066 = vmatmul.mubr.bf16.gmra.mrb[136].mxu1 %v7619_v35  ;;  %vm7460_vm3 = vcmp.gt.f32.partialorder %v7395_v12, 0.0 }
 0x8cb   : > { %vm7463_vm4 = vcmp.gt.f32.partialorder %v7397_v54, 0.0  ;;  %v7527_v5 = vmul.f32 %v7397_v54, %v17234_v1  ;;  %v7587_v19 = vsel %vm7459_vm2, %v7393_v52, %v7523_v14 }
 0x8cc   : > { %vm7464_vm5 = vcmp.gt.f32.partialorder %v7399_v37, 0.0  ;;  %v7528_v10 = vmul.f32 %v7399_v37, %v17234_v1  ;;  %v7588_v2 = vsel %vm7460_vm3, %v7395_v12, %v7524_v63 }
 0x8cd   : > { %v7591_v57 = vsel %vm7463_vm4, %v7397_v54, %v7527_v5 }
 0x8ce   : > { %v7592_v24 = vsel %vm7464_vm5, %v7399_v37, %v7528_v10  ;;  %v7623_v44 = vpack.c.bf16 %v7591_v57, %v7587_v19 }
 0x8cf   : > { %v7624_v8 = vpack.c.bf16 %v7592_v24, %v7588_v2 }
 0x8d1   : > { %8073 = vmatprep.mubr.bf16.mxu1 %v7624_v8 }
 0x8d2   : > { %8074 = vmatmul.mubr.bf16.gmra.mrb[140].mxu1 %v7623_v44 }
 0x92d   : > { %v9462_v21 = vpop.f32.mrb[80].mxu1 }
 0x92e   : > { %v9463_v28 = vpop.f32.mrb[81].mxu1 }
 0x92f   : > { %v9464_v34 = vadd.f32 %v9463_v28, %v9462_v21  ;;  %v9465_v33 = vpop.f32.mrb[82].mxu1 }
 0x930   : > { %v9466_v50 = vpop.f32.mrb[83].mxu1 }
 0x931   : > { %v9467_v59 = vadd.f32 %v9466_v50, %v9465_v33  ;;  %v7923_v14 = vadd.f32 %v9464_v34, %v15736_v42 }
 0x933   : > { %v7926_v37 = vadd.f32 %v9467_v59, %v15736_v42 }
 0x935   : > { %v9468_v53 = vpop.f32.mrb[84].mxu1 }
 0x936   : > { %v9469_v62 = vpop.f32.mrb[85].mxu1 }
 0x937   : > { %v9470_v48 = vadd.f32 %v9469_v62, %v9468_v53  ;;  %v9471_v32 = vpop.f32.mrb[86].mxu1 }
 0x938   : > { %v9472_v61 = vpop.f32.mrb[87].mxu1 }
 0x939   : > { %v9473_v1 = vadd.f32 %v9472_v61, %v9471_v32  ;;  %v7931_v24 = vadd.f32 %v9470_v48, %v15736_v42 }
 0x93b   : > { %v7934_v28 = vadd.f32 %v9473_v1, %v15736_v42 }
 0x93d   : > { %v9474_v3 = vpop.f32.mrb[88].mxu1 }
 0x93e   : > { %v9475_v46 = vpop.f32.mrb[89].mxu1 }
 0x93f   : > { %v15709_v18 = vadd.f32 %v9475_v46, %v9474_v3  ;;  %v9477_v4 = vpop.f32.mrb[90].mxu1 }
 0x940   : > { %v9478_v40 = vpop.f32.mrb[91].mxu1 }
 0x941   : > { %v15711_v31 = vadd.f32 %v9478_v40, %v9477_v4  ;;  %v7939_v62 = vadd.f32 %v15709_v18, %v15736_v42 }
 0x943   : > { %v7942_v3 = vadd.f32 %v15711_v31, %v15736_v42 }
 0x945   : > { %v9480_v26 = vpop.f32.mrb[92].mxu1 }
 0x946   : > { %v9481_v39 = vpop.f32.mrb[93].mxu1 }
 0x947   : > { %v15713_v36 = vadd.f32 %v9481_v39, %v9480_v26  ;;  %v9483_v49 = vpop.f32.mrb[94].mxu1 }
 0x948   : > { %v9484_v0 = vpop.f32.mrb[95].mxu1 }
 0x949   : > { %v15715_v43 = vadd.f32 %v9484_v0, %v9483_v49  ;;  %v7947_v39 = vadd.f32 %v15713_v36, %v15736_v42 }
 0x94d   : > { %v9486_v11 = vpop.f32.mrb[96].mxu1 }
 0x94e   : > { %v9487_v20 = vpop.f32.mrb[97].mxu1 }
 0x94f   : > { %v15717_v7 = vadd.f32 %v9487_v20, %v9486_v11  ;;  %v9489_v47 = vpop.f32.mrb[98].mxu1  ;;  %v7950_v11 = vadd.f32 %v15715_v43, %v15736_v42 }
 0x950   : > { %v9490_v13 = vpop.f32.mrb[99].mxu1 }
 0x951   : > { %v15719_v22 = vadd.f32 %v9490_v13, %v9489_v47 }
 0x955   : > { %v9492_v55 = vpop.f32.mrb[100].mxu1 }
 0x956   : > { %v9493_v30 = vpop.f32.mrb[101].mxu1 }
 0x957   : > { %v15721_v16 = vadd.f32 %v9493_v30, %v9492_v55  ;;  %v9495_v25 = vpop.f32.mrb[102].mxu1  ;;  %v7955_v30 = vadd.f32 %v15717_v7, %v15736_v42 }
 0x958   : > { %v9496_v23 = vpop.f32.mrb[103].mxu1 }
 0x959   : > { %v15723_v41 = vadd.f32 %v9496_v23, %v9495_v25 }
 0x95d   : > { %v9498_v27 = vpop.f32.mrb[104].mxu1 }
 0x95e   : > { %v9499_v17 = vpop.f32.mrb[105].mxu1 }
 0x95f   : > { %v15725_v6 = vadd.f32 %v9499_v17, %v9498_v27  ;;  %v9501_v45 = vpop.f32.mrb[106].mxu1  ;;  %v7958_v27 = vadd.f32 %v15719_v22, %v15736_v42 }
 0x960   : > { %v9502_v51 = vpop.f32.mrb[107].mxu1 }
 0x961   : > { %v15727_v38 = vadd.f32 %v9502_v51, %v9501_v45 }
 0x965   : > { %v9504_v56 = vpop.f32.mrb[108].mxu1 }
 0x966   : > { %v9505_v58 = vpop.f32.mrb[109].mxu1 }
 0x967   : > { %v15730_v9 = vadd.f32 %v9505_v58, %v9504_v56  ;;  %v9507_v35 = vpop.f32.mrb[110].mxu1  ;;  %v7963_v58 = vadd.f32 %v15721_v16, %v15736_v42 }
 0x968   : > { %v9508_v52 = vpop.f32.mrb[111].mxu1 }
 0x969   : > { %v15732_v60 = vadd.f32 %v9508_v52, %v9507_v35 }
 0x96d   : > { %v9526_v12 = vpop.f32.mrb[112].mxu1 }
 0x96e   : > { %v9527_v29 = vpop.f32.mrb[113].mxu1 }
 0x96f   : > { %v9528_v54 = vadd.f32 %v9527_v29, %v9526_v12  ;;  %v9529_v15 = vpop.f32.mrb[114].mxu1  ;;  %v7966_v12 = vadd.f32 %v15723_v41, %v15736_v42 }
 0x970   : > { %v9530_v63 = vpop.f32.mrb[115].mxu1 }
 0x971   : > { %v8020_v5 = vadd.f32 %v9528_v54, %v7923_v14  ;;  %v9531_v10 = vadd.f32 %v9530_v63, %v9529_v15  ;;  %v7971_v63 = vadd.f32 %v15725_v6, %v15736_v42 }
 0x973   : > { %8082 = vst [vmem:[%s15742_s26] sm:$0xff] %v8020_v5  ;;  %v8023_v19 = vadd.f32 %v9531_v10, %v7926_v37  ;;  %v7974_v10 = vadd.f32 %v15727_v38, %v15736_v42 }
 0x975   : > { %8083 = vst [vmem:[%s15742_s26 + $0x8] sm:$0xff] %v8023_v19  ;;  %v9532_v57 = vpop.f32.mrb[116].mxu1 }
 0x976   : > { %v9533_v2 = vpop.f32.mrb[117].mxu1 }
 0x977   : > { %v9534_v44 = vadd.f32 %v9533_v2, %v9532_v57  ;;  %v9535_v8 = vpop.f32.mrb[118].mxu1 }
 0x978   : > { %v9536_v21 = vpop.f32.mrb[119].mxu1 }
 0x979   : > { %v8028_v34 = vadd.f32 %v9534_v44, %v7931_v24  ;;  %v9537_v33 = vadd.f32 %v9536_v21, %v9535_v8  ;;  %v7979_v44 = vadd.f32 %v15730_v9, %v15736_v42 }
 0x97b   : > { %8084 = vst [vmem:[%s15742_s26 + $0x10] sm:$0xff] %v8028_v34  ;;  %v8031_v50 = vadd.f32 %v9537_v33, %v7934_v28  ;;  %v7982_v28 = vadd.f32 %v15732_v60, %v15736_v42 }
 0x97d   : > { %8085 = vst [vmem:[%s15742_s26 + $0x18] sm:$0xff] %v8031_v50  ;;  %v9538_v59 = vpop.f32.mrb[120].mxu1 }
 0x97e   : > { %v9539_v53 = vpop.f32.mrb[121].mxu1 }
 0x97f   : > { %v9540_v32 = vadd.f32 %v9539_v53, %v9538_v59  ;;  %v9541_v61 = vpop.f32.mrb[122].mxu1 }
 0x980   : > { %v9542_v48 = vpop.f32.mrb[123].mxu1 }
 0x981   : > { %v8036_v46 = vadd.f32 %v9540_v32, %v7939_v62  ;;  %v9543_v1 = vadd.f32 %v9542_v48, %v9541_v61 }
 0x983   : > { %8086 = vst [vmem:[%s15742_s26 + $0x20] sm:$0xff] %v8036_v46  ;;  %v8039_v4 = vadd.f32 %v9543_v1, %v7942_v3 }
 0x985   : > { %8087 = vst [vmem:[%s15742_s26 + $0x28] sm:$0xff] %v8039_v4  ;;  %v9544_v40 = vpop.f32.mrb[124].mxu1 }
 0x986   : > { %v9545_v26 = vpop.f32.mrb[125].mxu1 }
 0x987   : > { %v9546_v49 = vadd.f32 %v9545_v26, %v9544_v40  ;;  %v9547_v18 = vpop.f32.mrb[126].mxu1 }
 0x988   : > { %v9548_v0 = vpop.f32.mrb[127].mxu1 }
 0x989   : > { %v8044_v20 = vadd.f32 %v9546_v49, %v7947_v39  ;;  %v9549_v31 = vadd.f32 %v9548_v0, %v9547_v18 }
 0x98b   : > { %8088 = vst [vmem:[%s15742_s26 + $0x30] sm:$0xff] %v8044_v20  ;;  %v8047_v47 = vadd.f32 %v9549_v31, %v7950_v11 }
 0x98d   : > { %8089 = vst [vmem:[%s15742_s26 + $0x38] sm:$0xff] %v8047_v47  ;;  %v9550_v13 = vpop.f32.mrb[128].mxu1 }
 0x98e   : > { %v9551_v55 = vpop.f32.mrb[129].mxu1 }
 0x98f   : > { %v9552_v25 = vadd.f32 %v9551_v55, %v9550_v13  ;;  %v9553_v36 = vpop.f32.mrb[130].mxu1 }
 0x990   : > { %v9554_v23 = vpop.f32.mrb[131].mxu1 }
 0x991   : > { %v8052_v17 = vadd.f32 %v9552_v25, %v7955_v30  ;;  %v9555_v43 = vadd.f32 %v9554_v23, %v9553_v36 }
 0x993   : > { %8090 = vst [vmem:[%s15742_s26 + $0x40] sm:$0xff] %v8052_v17  ;;  %v8055_v45 = vadd.f32 %v9555_v43, %v7958_v27 }
 0x995   : > { %8091 = vst [vmem:[%s15742_s26 + $0x48] sm:$0xff] %v8055_v45  ;;  %v9556_v51 = vpop.f32.mrb[132].mxu1 }
 0x996   : > { %v9557_v56 = vpop.f32.mrb[133].mxu1 }
 0x997   : > { %v9558_v35 = vadd.f32 %v9557_v56, %v9556_v51  ;;  %v9559_v7 = vpop.f32.mrb[134].mxu1 }
 0x998   : > { %v9560_v52 = vpop.f32.mrb[135].mxu1 }
 0x999   : > { %v8060_v29 = vadd.f32 %v9558_v35, %v7963_v58  ;;  %v9561_v22 = vadd.f32 %v9560_v52, %v9559_v7 }
 0x99b   : > { %8092 = vst [vmem:[%s15742_s26 + $0x50] sm:$0xff] %v8060_v29  ;;  %v8063_v14 = vadd.f32 %v9561_v22, %v7966_v12 }
 0x99d   : > { %8093 = vst [vmem:[%s15742_s26 + $0x58] sm:$0xff] %v8063_v14  ;;  %v9562_v54 = vpop.f32.mrb[136].mxu1 }
 0x99e   : > { %v9563_v15 = vpop.f32.mrb[137].mxu1 }
 0x99f   : > { %v9564_v37 = vadd.f32 %v9563_v15, %v9562_v54  ;;  %v9565_v16 = vpop.f32.mrb[138].mxu1 }
 0x9a0   : > { %v9566_v5 = vpop.f32.mrb[139].mxu1 }
 0x9a1   : > { %v8068_v19 = vadd.f32 %v9564_v37, %v7971_v63  ;;  %v9567_v41 = vadd.f32 %v9566_v5, %v9565_v16 }
 0x9a3   : > { %8094 = vst [vmem:[%s15742_s26 + $0x60] sm:$0xff] %v8068_v19  ;;  %v8071_v57 = vadd.f32 %v9567_v41, %v7974_v10 }
 0x9a5   : > { %8095 = vst [vmem:[%s15742_s26 + $0x68] sm:$0xff] %v8071_v57  ;;  %v9568_v2 = vpop.f32.mrb[140].mxu1 }
 0x9a6   : > { %v9569_v24 = vpop.f32.mrb[141].mxu1 }
 0x9a7   : > { %v9570_v8 = vadd.f32 %v9569_v24, %v9568_v2  ;;  %v9571_v6 = vpop.f32.mrb[142].mxu1 }
 0x9a8   : > { %v9572_v21 = vpop.f32.mrb[143].mxu1 }
 0x9a9   : > { %v8076_v34 = vadd.f32 %v9570_v8, %v7979_v44  ;;  %v9573_v33 = vadd.f32 %v9572_v21, %v9571_v6 }
 0x9ab   : > { %8096 = vst [vmem:[%s15742_s26 + $0x70] sm:$0xff] %v8076_v34  ;;  %v8079_v38 = vadd.f32 %v9573_v33, %v7982_v28 }
 0x9ad   : > { %8097 = vst [vmem:[%s15742_s26 + $0x78] sm:$0xff] %v8079_v38 }
 0x9ae PF: > { %s17238_s14 = sld [smem:[#allocation17_spill]]  ;;  %s17239_s8 = sld [smem:[#allocation16_spill]] }
 0x9af   : > { %s17240_s13 = sld [smem:[#allocation18_spill]]  ;;  %s17241_s11 = smov %s11546_s12 }
 0x9b4   : > { %p19_p4 = scmp.ge.s32.totalorder %s17238_s14, 4   ;;  %s17242_s12 = smov %s17239_s8 }
 0x9b6   :  { %21 = sbr.rel (!%p19_p4) target bundleno = 7 (0x7), region = 186 }
 0x9bd   :  { %8119 = vsyncpa [#allocation4], 1 }
 0x9be   :  { %8121 = vsyncpa [#allocation4 + $0x1], 1 }
 0x9bf   :  { %8122 = vsyncpa [#allocation6], 1 }

</bundles_post_ra>
